<compile_context>
chip_gen: v5e
topology: v5e:2x2
jax: 0.10.0
libtpu: 0.0.40
codegen_flags: <defaults>
</compile_context>

<pallas_src>
import jax
import jax.numpy as jnp
from jax.experimental import pallas as pl
from jax.experimental.pallas import tpu as pltpu


_GELU_APPROXIMATE = True  # tanh GELU (EUP); False = exact erf (torch default)


def _round_up(n, m):
    return (n + m - 1) // m * m


def _largest_tile(dim_p, cap):
    """Largest multiple-of-128 divisor of dim_p (dim_p % 128 == 0), <= cap."""
    best = 128
    t = 128
    while t <= min(dim_p, cap):
        if dim_p % t == 0:
            best = t
        t += 128
    return best


def _physical_vmem_bytes():
    try:
        return int(pltpu.get_tpu_info().vmem_capacity_bytes)
    except Exception:
        return 64 * 1024 * 1024  # conservative (v7x per-core VMEM)


# ----------------------------------------------------------------------------
# Kernel: one (tm x tn) output tile, reduced over ffn tiles of width tf.
# Operands feed the MXU in their native dtype; only the accumulator is f32.
# ----------------------------------------------------------------------------
def _mlp_kernel(x_ref, w1_ref, b1_ref, w2_ref, b2_ref, o_ref, *scratch):
    # f32 outputs accumulate directly into the resident output block; narrow
    # output dtypes get a dedicated f32 VMEM scratch.
    acc_ref = scratch[0] if scratch else o_ref
    k = pl.program_id(2)

    @pl.when(k == 0)
    def _():
        acc_ref[...] = jnp.zeros_like(acc_ref)

    # [tm, d_in] @ [d_in, tf] on the MXU, f32 accumulate, GELU in f32.
    h = jnp.dot(x_ref[...], w1_ref[...], preferred_element_type=jnp.float32)
    h = h + b1_ref[...].astype(jnp.float32)
    h = jax.nn.gelu(h, approximate=_GELU_APPROXIMATE)

    # Second matmul for this ffn tile, accumulated into the resident f32 acc.
    acc_ref[...] += jnp.dot(h.astype(w2_ref.dtype), w2_ref[...],
                            preferred_element_type=jnp.float32)

    @pl.when(k == pl.num_programs(2) - 1)
    def _():
        o_ref[...] = (acc_ref[...] + b2_ref[...].astype(jnp.float32)
                      ).astype(o_ref.dtype)


# ----------------------------------------------------------------------------
# Tile selection from an explicit VMEM footprint model.
# ----------------------------------------------------------------------------
def _select_tiles(m, d_in_p, ffn_p, d_out_p, in_dtype, out_dtype, budget):
    isz = jnp.dtype(in_dtype).itemsize
    osz = jnp.dtype(out_dtype).itemsize
    sep_acc = jnp.dtype(out_dtype) != jnp.dtype(jnp.float32)
    tm_cap = _round_up(m, 8)
    tf = _largest_tile(ffn_p, 512)
    tn = _largest_tile(d_out_p, 2048)   # keep whole d_out resident unless huge

    def footprint(tm, tf, tn):
        f = 2 * tm * d_in_p * isz        # x block (double-buffered)
        f += 2 * d_in_p * tf * isz       # W1 k-tile (k-streamed)
        f += 2 * 8 * tf * isz            # b1 k-tile (sublane-padded to 8)
        f += 2 * tf * tn * isz           # W2 k-tile (k-streamed)
        f += 2 * 8 * tn * isz            # b2 tile
        f += 2 * tm * tn * osz           # output block
        if sep_acc:
            f += tm * tn * 4             # resident f32 accumulator scratch
        f += tm * tf * 4                 # f32 GELU intermediate / temps
        return f

    tm = min(8, tm_cap)
    for cand in (512, 384, 256, 128, 64, 32, 16, 8):
        tm = min(cand, tm_cap)
        if footprint(tm, tf, tn) <= budget:
            break
    while footprint(tm, tf, tn) > budget and tn > 128:
        tn = _largest_tile(d_out_p, tn - 128)
    while footprint(tm, tf, tn) > budget and tf > 128:
        tf = _largest_tile(ffn_p, tf - 128)
    return tm, tf, tn, footprint(tm, tf, tn), sep_acc


# ----------------------------------------------------------------------------
# Wrapper: pad to lane-dense shapes, pre-block W1, tile (M, d_out, ffn).
# ----------------------------------------------------------------------------
def _mlp_pallas(x2d, w1, b1, w2, b2):
    m, d_in = x2d.shape
    ffn, d_out = w2.shape
    out_dtype = x2d.dtype

    d_in_p = _round_up(d_in, 128)
    ffn_p = _round_up(ffn, 128)
    d_out_p = _round_up(d_out, 128)

    budget = int(_physical_vmem_bytes() * 0.85)  # headroom for Mosaic scratch
    tm, tf, tn, fp_bytes, sep_acc = _select_tiles(
        m, d_in_p, ffn_p, d_out_p, x2d.dtype, out_dtype, budget)

    m_p = _round_up(m, tm)
    n_m, n_j, n_k = m_p // tm, d_out_p // tn, ffn_p // tf

    # Zero padding is exact (GELU(0)=0; zero rows/cols are inert).
    def pad2(a, r, c):
        if a.shape == (r, c):
            return a
        return jnp.pad(a, ((0, r - a.shape[0]), (0, c - a.shape[1])))

    xp = pad2(x2d, m_p, d_in_p)
    w1p = pad2(w1, d_in_p, ffn_p)
    b1p = pad2(b1, 1, ffn_p)
    w2p = pad2(w2, ffn_p, d_out_p)
    b2p = pad2(b2, 1, d_out_p)

    # k-major contiguous W1 tiles: every streamed W1 DMA is one contiguous
    # (d_in_p, tf) block instead of d_in_p short strided rows.
    w1_blk = w1p.reshape(d_in_p, n_k, tf).transpose(1, 0, 2)

    vmem_limit = int(min(budget, max(2 * fp_bytes, 32 * 1024 * 1024)))

    y_p = pl.pallas_call(
        _mlp_kernel,
        out_shape=jax.ShapeDtypeStruct((m_p, d_out_p), out_dtype),
        grid_spec=pltpu.PrefetchScalarGridSpec(
            num_scalar_prefetch=0,
            grid=(n_m, n_j, n_k),           # reduction (ffn) axis last
            in_specs=[
                pl.BlockSpec((tm, d_in_p), lambda i, j, k: (i, 0)),      # x
                pl.BlockSpec((None, d_in_p, tf), lambda i, j, k: (k, 0, 0)),  # W1 k-tile
                pl.BlockSpec((1, tf), lambda i, j, k: (0, k)),           # b1
                pl.BlockSpec((tf, tn), lambda i, j, k: (k, j)),          # W2
                pl.BlockSpec((1, tn), lambda i, j, k: (0, j)),           # b2
            ],
            out_specs=pl.BlockSpec((tm, tn), lambda i, j, k: (i, j)),
            scratch_shapes=(
                [pltpu.VMEM((tm, tn), jnp.float32)] if sep_acc else []),
        ),
        compiler_params=pltpu.CompilerParams(
            dimension_semantics=("parallel", "parallel", "arbitrary"),
            vmem_limit_bytes=vmem_limit,
        ),
    )(xp, w1_blk, b1p, w2p, b2p)

    if (m_p, d_out_p) != (m, d_out):
        y_p = y_p[:m, :d_out]
    return y_p


# ----------------------------------------------------------------------------
# Plain-JAX reference MLP (checkpointed backward recompute + tests).
# ----------------------------------------------------------------------------
def _mlp_reference(x, params):
    w1, b1, w2, b2 = params
    h = jax.nn.gelu(x @ w1 + b1[0], approximate=_GELU_APPROXIMATE)
    return h @ w2 + b2[0]


# ----------------------------------------------------------------------------
# CheckpointedModule.forward: same values as the wrapped module; under
# autodiff only the inputs are saved and the block is recomputed in backward
# (== torch.utils.checkpoint semantics).  preserve_rng_state needs no
# analogue: JAX RNG is purely functional.
# ----------------------------------------------------------------------------
@jax.custom_vjp
def checkpointed_module_forward(x, params):
    w1, b1, w2, b2 = params
    b, s, h = x.shape
    x2d = x.reshape(b * s, h)               # rows -> sublanes, hidden -> lanes
    y2d = _mlp_pallas(x2d, w1, b1, w2, b2)
    return y2d.reshape(b, s, -1)


def _ckpt_fwd(x, params):
    # Residuals are ONLY the inputs: that is activation checkpointing.
    return checkpointed_module_forward(x, params), (x, params)


def _ckpt_bwd(res, g):
    x, params = res
    # TODO(synk): recompute with the Pallas forward + tiled dgrad/wgrad
    # kernels; currently recomputes and differentiates in plain XLA.
    _, vjp = jax.vjp(_mlp_reference, x, params)
    return vjp(g)


checkpointed_module_forward.defvjp(_ckpt_fwd, _ckpt_bwd)


def init_params(key, hidden, ffn, dtype=jnp.float32):
    k1, k2, k3, k4 = jax.random.split(key, 4)
    lim1 = 1.0 / (hidden ** 0.5)
    lim2 = 1.0 / (ffn ** 0.5)
    w1 = jax.random.uniform(k1, (hidden, ffn), dtype, -lim1, lim1)
    b1 = jax.random.uniform(k2, (1, ffn), dtype, -lim1, lim1)
    w2 = jax.random.uniform(k3, (ffn, hidden), dtype, -lim2, lim2)
    b2 = jax.random.uniform(k4, (1, hidden), dtype, -lim2, lim2)
    return w1, b1, w2, b2


if __name__ == "__main__":
    key = jax.random.PRNGKey(0)
    kx, kp = jax.random.split(key)

    # Lane-aligned shapes exercising real tiling: M=1024 -> two 512-row tiles,
    # ffn=1024 -> two reduction steps (tf=512); grid = (2, 1, 2).
    batch, seq, hidden, ffn = 4, 256, 128, 1024
    x = jax.random.normal(kx, (batch, seq, hidden), jnp.float32)
    params = init_params(kp, hidden, ffn)

    fwd = jax.jit(checkpointed_module_forward)
    y = fwd(x, params)
    jax.block_until_ready(y)

    ref = _mlp_reference(x, params)
    assert y.shape == (batch, seq, hidden)
    # Accumulation order / MXU f32-pass precision differ slightly from the
    # fused XLA reference, so use a modest tolerance.
    assert jnp.allclose(y, ref, atol=5e-3, rtol=5e-3), float(
        jnp.max(jnp.abs(y - ref)))

    # Backward path (checkpointing: residuals are the inputs, bwd recomputes).
    gy = jax.grad(lambda xx: checkpointed_module_forward(xx, params).sum())(x)
    gr = jax.grad(lambda xx: _mlp_reference(xx, params).sum())(x)
    jax.block_until_ready(gy)
    assert jnp.allclose(gy, gr, atol=1e-5, rtol=1e-5)

    # Non-lane-aligned shapes exercise the zero-padding path.
    b2_, s2_, h2_, f2_ = 2, 8, 32, 64
    x2 = jax.random.normal(kx, (b2_, s2_, h2_), jnp.float32)
    params2 = init_params(kp, h2_, f2_)
    y2 = jax.jit(checkpointed_module_forward)(x2, params2)
    jax.block_until_ready(y2)
    assert y2.shape == (b2_, s2_, h2_)
    assert jnp.allclose(y2, _mlp_reference(x2, params2), atol=1e-4, rtol=1e-4)

    print("KERNEL_OK")
</pallas_src>

<mosaic_0001>
module attributes {stable_mosaic.version = 11 : i64} {
  func.func @_mlp_kernel(%arg0: i32, %arg1: i32, %arg2: i32, %arg3: memref<512x128xf32, #tpu.memory_space<vmem>>, %arg4: memref<1x128x512xf32, #tpu.memory_space<vmem>>, %arg5: memref<1x512xf32, #tpu.memory_space<vmem>>, %arg6: memref<512x128xf32, #tpu.memory_space<vmem>>, %arg7: memref<1x128xf32, #tpu.memory_space<vmem>>, %arg8: memref<512x128xf32, #tpu.memory_space<vmem>>) attributes {dimension_semantics = [#tpu.dimension_semantics<parallel>, #tpu.dimension_semantics<parallel>, #tpu.dimension_semantics<arbitrary>], iteration_bounds = array<i64: 2, 1, 2>, scalar_prefetch = 0 : i64, scratch_operands = 0 : i64, tpu.core_type = #tpu.core_type<tc>, window_params = [{transform_indices = @transform_0, window_bounds = array<i64: 512, 128>}, {transform_indices = @transform_1, window_bounds = array<i64: 1, 128, 512>}, {transform_indices = @transform_2, window_bounds = array<i64: 1, 512>}, {transform_indices = @transform_3, window_bounds = array<i64: 512, 128>}, {transform_indices = @transform_4, window_bounds = array<i64: 1, 128>}, {transform_indices = @transform_5, window_bounds = array<i64: 512, 128>}]} {
    %c0_i32 = arith.constant 0 : i32
    %0 = arith.cmpi eq, %arg2, %c0_i32 : i32
    %1 = arith.extui %0 : i1 to i32
    %c0_i32_0 = arith.constant 0 : i32
    %2 = arith.cmpi ne, %1, %c0_i32_0 : i32
    scf.if %2 {
      %cst_19 = arith.constant 0.000000e+00 : f32
      %31 = vector.broadcast %cst_19 : f32 to vector<512x128xf32>
      %c0_20 = arith.constant 0 : index
      %c0_21 = arith.constant 0 : index
      %32 = vector.load %arg8[%c0_20, %c0_21] : memref<512x128xf32, #tpu.memory_space<vmem>>, vector<512x128xf32>
      tpu.vector_store %arg8[%c0_20, %c0_21], %31 {strides = array<i32>} : memref<512x128xf32, #tpu.memory_space<vmem>>, vector<512x128xf32>,
    } else {
    }
    %c0 = arith.constant 0 : index
    %c0_1 = arith.constant 0 : index
    %3 = vector.load %arg3[%c0, %c0_1] : memref<512x128xf32, #tpu.memory_space<vmem>>, vector<512x128xf32>
    %c0_2 = arith.constant 0 : index
    %c0_3 = arith.constant 0 : index
    %c0_4 = arith.constant 0 : index
    %4 = vector.load %arg4[%c0_2, %c0_3, %c0_4] : memref<1x128x512xf32, #tpu.memory_space<vmem>>, vector<1x128x512xf32>
    %5 = vector.shape_cast %4 : vector<1x128x512xf32> to vector<128x512xf32>
    %cst = arith.constant dense<0.000000e+00> : vector<512x512xf32>
    %6 = tpu.matmul %3, %5, %cst {dimension_numbers = #tpu.dot_dimension_numbers<[1], [0], [0], [1], [0, 0, 1, 1], [], []>} : vector<512x128xf32>, vector<128x512xf32>, vector<512x512xf32> -> vector<512x512xf32>
    %c0_5 = arith.constant 0 : index
    %c0_6 = arith.constant 0 : index
    %7 = vector.load %arg5[%c0_5, %c0_6] : memref<1x512xf32, #tpu.memory_space<vmem>>, vector<1x512xf32>
    %8 = vector.broadcast %7 : vector<1x512xf32> to vector<512x512xf32>
    %9 = arith.addf %6, %8 : vector<512x512xf32>
    %10 = arith.mulf %9, %9 : vector<512x512xf32>
    %11 = arith.mulf %9, %10 : vector<512x512xf32>
    %cst_7 = arith.constant 4.471500e-02 : f32
    %12 = vector.broadcast %cst_7 : f32 to vector<512x512xf32>
    %13 = arith.mulf %12, %11 : vector<512x512xf32>
    %14 = arith.addf %9, %13 : vector<512x512xf32>
    %cst_8 = arith.constant 0.797884583 : f32
    %15 = vector.broadcast %cst_8 : f32 to vector<512x512xf32>
    %16 = arith.mulf %15, %14 : vector<512x512xf32>
    %17 = math.tanh %16 : vector<512x512xf32>
    %cst_9 = arith.constant 1.000000e+00 : f32
    %18 = vector.broadcast %cst_9 : f32 to vector<512x512xf32>
    %19 = arith.addf %18, %17 : vector<512x512xf32>
    %cst_10 = arith.constant 5.000000e-01 : f32
    %20 = vector.broadcast %cst_10 : f32 to vector<512x512xf32>
    %21 = arith.mulf %20, %19 : vector<512x512xf32>
    %22 = arith.mulf %9, %21 : vector<512x512xf32>
    %c0_11 = arith.constant 0 : index
    %c0_12 = arith.constant 0 : index
    %23 = vector.load %arg8[%c0_11, %c0_12] : memref<512x128xf32, #tpu.memory_space<vmem>>, vector<512x128xf32>
    %c0_13 = arith.constant 0 : index
    %c0_14 = arith.constant 0 : index
    %24 = vector.load %arg6[%c0_13, %c0_14] : memref<512x128xf32, #tpu.memory_space<vmem>>, vector<512x128xf32>
    %cst_15 = arith.constant dense<0.000000e+00> : vector<512x128xf32>
    %25 = tpu.matmul %22, %24, %cst_15 {dimension_numbers = #tpu.dot_dimension_numbers<[1], [0], [0], [1], [0, 0, 1, 1], [], []>} : vector<512x512xf32>, vector<512x128xf32>, vector<512x128xf32> -> vector<512x128xf32>
    %26 = arith.addf %23, %25 : vector<512x128xf32>
    %c0_16 = arith.constant 0 : index
    %c0_17 = arith.constant 0 : index
    %27 = vector.load %arg8[%c0_16, %c0_17] : memref<512x128xf32, #tpu.memory_space<vmem>>, vector<512x128xf32>
    tpu.vector_store %arg8[%c0_16, %c0_17], %26 {strides = array<i32>} : memref<512x128xf32, #tpu.memory_space<vmem>>, vector<512x128xf32>,
    %c1_i32 = arith.constant 1 : i32
    %28 = arith.cmpi eq, %arg2, %c1_i32 : i32
    %29 = arith.extui %28 : i1 to i32
    %c0_i32_18 = arith.constant 0 : i32
    %30 = arith.cmpi ne, %29, %c0_i32_18 : i32
    scf.if %30 {
      %c0_19 = arith.constant 0 : index
      %c0_20 = arith.constant 0 : index
      %31 = vector.load %arg8[%c0_19, %c0_20] : memref<512x128xf32, #tpu.memory_space<vmem>>, vector<512x128xf32>
      %c0_21 = arith.constant 0 : index
      %c0_22 = arith.constant 0 : index
      %32 = vector.load %arg7[%c0_21, %c0_22] : memref<1x128xf32, #tpu.memory_space<vmem>>, vector<1x128xf32>
      %33 = vector.broadcast %32 : vector<1x128xf32> to vector<512x128xf32>
      %34 = arith.addf %31, %33 : vector<512x128xf32>
      %c0_23 = arith.constant 0 : index
      %c0_24 = arith.constant 0 : index
      %35 = vector.load %arg8[%c0_23, %c0_24] : memref<512x128xf32, #tpu.memory_space<vmem>>, vector<512x128xf32>
      tpu.vector_store %arg8[%c0_23, %c0_24], %34 {strides = array<i32>} : memref<512x128xf32, #tpu.memory_space<vmem>>, vector<512x128xf32>,
    } else {
    }
    return
  }
  func.func @transform_0(%arg0: i32, %arg1: i32, %arg2: i32) -> (i32, i32) {
    %c0_i32 = arith.constant 0 : i32
    %c0_i32_0 = arith.constant 0 : i32
    return %arg0, %c0_i32 : i32, i32
  }
  func.func @transform_1(%arg0: i32, %arg1: i32, %arg2: i32) -> (i32, i32, i32) {
    %c0_i32 = arith.constant 0 : i32
    %c0_i32_0 = arith.constant 0 : i32
    %c0_i32_1 = arith.constant 0 : i32
    return %arg2, %c0_i32, %c0_i32_0 : i32, i32, i32
  }
  func.func @transform_2(%arg0: i32, %arg1: i32, %arg2: i32) -> (i32, i32) {
    %c0_i32 = arith.constant 0 : i32
    %c0_i32_0 = arith.constant 0 : i32
    return %c0_i32, %arg2 : i32, i32
  }
  func.func @transform_3(%arg0: i32, %arg1: i32, %arg2: i32) -> (i32, i32) {
    %c0_i32 = arith.constant 0 : i32
    return %arg2, %arg1 : i32, i32
  }
  func.func @transform_4(%arg0: i32, %arg1: i32, %arg2: i32) -> (i32, i32) {
    %c0_i32 = arith.constant 0 : i32
    %c0_i32_0 = arith.constant 0 : i32
    return %c0_i32, %arg1 : i32, i32
  }
  func.func @transform_5(%arg0: i32, %arg1: i32, %arg2: i32) -> (i32, i32) {
    %c0_i32 = arith.constant 0 : i32
    return %arg0, %arg1 : i32, i32
  }
}

</mosaic_0001>

<bundles_post_ra>
// kernel: checkpointed_module_forward.1
= control target key start
LH: loop header
LB: loop body
LE: loop exit
PB: predicated region body
PF: predicated region fallthrough
CT: control target
= control target key end

     0   :  { %10 = vsyncpa [#allocation3], 0  ;;  %s10620_s0 = inlined_call_operand.vmem [shape: f32[1024,128], index: 0, kind: input, shape index: {}]   ;;  %s10621_s1 = inlined_call_operand.vmem [shape: f32[2,128,512], index: 1, kind: input, shape index: {}]   ;;  %s10622_s2 = inlined_call_operand.vmem [shape: f32[1,1024], index: 2, kind: input, shape index: {}]   ;;  %s10623_s3 = inlined_call_operand.vmem [shape: f32[1024,128], index: 3, kind: input, shape index: {}]   ;;  %s10624_s4 = inlined_call_operand.vmem [shape: f32[1,128], index: 4, kind: input, shape index: {}]   ;;  %s10625_s5 = inlined_call_operand.hbm [shape: f32[1024,128], index: 5, kind: output, shape index: {}]  }
   0x1   :  { %12 = vsyncpa [#allocation3 + $0x1], 0  ;;  %s5853_s18 = smov 0   ;;  %s5855_s19 = smov 0  }
   0x2   :  { %s5857_s20 = smov 0   ;;  %s5859_s21 = smov 0  }
   0x3   :  { %s5861_s22 = smov 0   ;;  %s5863_s23 = smov 0  }
   0x4   :  { %s5865_s24 = smov 0   ;;  %s5867_s25 = smov 0  }
   0x5 LB: > { %10993 = sst [smem:[#allocation5_spill]] %s5814_s24  ;;  %s5114_s26 = sadd.s32 4294967295, %s5818_s25   ;;  %s5818_s25 = sphi %s5867_s25, %s18_s25   ;;  %s5814_s24 = sphi %s5865_s24, %s12273_s24   ;;  %s5810_s23 = sphi %s5863_s23, %s12278_s23   ;;  %s5806_s22 = sphi %s5861_s22, %s12271_s22   ;;  %s5802_s21 = sphi %s5859_s21, %s12277_s21   ;;  %s5798_s20 = sphi %s5857_s20, %s12276_s20   ;;  %s5794_s19 = sphi %s5855_s19, %s12275_s19   ;;  %s5790_s18 = sphi %s5853_s18, %s12274_s18  }
   0x6   : > { %s5115_s27 = sadd.s32 4294967294, %s5818_s25   ;;  %s30_s28 = sadd.s32 1, %s5810_s23 }
   0x7   : > { %p31_p0 = scmp.ge.s32.totalorder %s30_s28, 2  ;;  %s37_s29 = sadd.s32 1, %s5814_s24 }
   0x8   : > { %p188_p1 = scmp.ne.s32.totalorder %s5798_s20, %s5794_s19  ;;  %p189_p2 = scmp.eq.s32.totalorder %s5114_s26, 3 }
   0x9   : > { %s12280_s28 = smov (%p31_p0, %s30_s28), 0  ;;  %s12282_s29 = smov (!%p31_p0, %s37_s29), %s5814_s24 }
   0xa   : > { %10994 = sst [smem:[#allocation6_spill]] %s12280_s28  ;;  %p5902_p3 = por %p189_p2, %p188_p1 }
   0xb   : > { %p194_p4 = scmp.ne.s32.totalorder %s5794_s19, %s5790_s18  ;;  %p39_p5 = scmp.ge.s32.totalorder %s12282_s29, 2 }
   0xc   : > { %p195_p6 = scmp.eq.s32.totalorder %s5115_s27, 3  ;;  %p5119_p7 = scmp.ge.s32.totalorder %s5818_s25, 1 }
   0xd   : > { %p256_p8 = scmp.lt.s32.totalorder %s5818_s25, 5  ;;  %s12284_s29 = smov (%p39_p5, %s12282_s29), 0 }
   0xe   : > { %10996 = sst [smem:[#allocation7_spill]] %s12284_s29  ;;  %p5912_p9 = por %p195_p6, %p194_p4 }
   0xf   : > { %p257_p10 = pnand %p5119_p7, %p256_p8  ;;  %s173_s7 = ssub.s32 %s5814_s24, %s12284_s29 }
  0x10   : > { %s178_s8 = sadd.s32 1, %s5798_s20  ;;  %p176_p11 = scmp.eq.s32.totalorder %s173_s7, 0 }
  0x11   : > { %260 = sbr.rel (%p257_p10) target bundleno = 1492 (0x5d4), region = 40 }
  0x12   : > { %s5920_s9 = scalar_select %p176_p11, %s5798_s20, %s178_s8  }
  0x16   : > { %s10627_s10 = sand.u32 1, %s5794_s19   ;;  %s5121_s11 = sshll.u32 %s5806_s22, 6 }
  0x17   : > { %s5120_s12 = sshll.u32 %s10627_s10, 9  ;;  %p305_p12 = scmp.lt.s32.totalorder %s5121_s11, 127 }
  0x18   : > { %p310_p13 = scmp.lt.s32.totalorder %s5802_s21, 1  ;;  %s5125_s15 = sshll.u32 %s5802_s21, 2 }
  0x19   : > { %s12286_s11 = smov (!%p305_p12, %s5121_s11), 127  ;;  %p316_p0 = scmp.lt.s32.totalorder %s5125_s15, 7 }
  0x1a   : > { %s311_s13 = scalar_select %p310_p13, %s5802_s21, 1 }
  0x1b   : > { %s5122_s14 = sshll.u32 %s12286_s11, 3  ;;  %s5126_s28 = sshll.u32 %s5802_s21, 6 }
  0x1c   : > { %s5932_s26 = scalar_lea.vmem %s10620_s0, %s5122_s14  ;;  %s5135_s27 = sshll.u32 %s311_s13, 9 }
  0x1d   : > { %s5937_s29 = scalar_lea.vmem %s10621_s1, %s5135_s27  ;;  %s12288_s15 = smov (!%p316_p0, %s5125_s15), 7 }
  0x1e   : > { %p321_p1 = scmp.lt.s32.totalorder %s5126_s28, 127  ;;  %s318_s24 = scalar_lea.vmem %s10622_s2, %s12288_s15 }
  0x1f   : > { %s5951_s7 = scalar_lea.vmem [#allocation2], %s5120_s12  ;;  %p5128_p2 = scmp.ne.s32.totalorder %s5802_s21, 0 }
  0x20   : > { %s12290_s28 = smov (!%p321_p1, %s5126_s28), 127 }
  0x21   : > { %s5127_s16 = sshll.u32 %s12290_s28, 3  ;;  %336 = sbr.rel (%p5128_p2) target bundleno = 103 (0x67), region = 44 }
  0x22   : > { %s5949_s13 = scalar_lea.vmem %s10623_s3, %s5127_s16 }
  0x26   : > { %v5820_v0 = vmov 0.0  }
  0x27   : > { %337 = vst [vmem:[%s5951_s7] sm:$0xff] %v5820_v0 }
  0x28   : > { %338 = vst [vmem:[%s5951_s7 + $0x8] sm:$0xff] %v5820_v0 }
  0x29   : > { %339 = vst [vmem:[%s5951_s7 + $0x10] sm:$0xff] %v5820_v0 }
  0x2a   : > { %340 = vst [vmem:[%s5951_s7 + $0x18] sm:$0xff] %v5820_v0 }
  0x2b   : > { %341 = vst [vmem:[%s5951_s7 + $0x20] sm:$0xff] %v5820_v0 }
  0x2c   : > { %342 = vst [vmem:[%s5951_s7 + $0x28] sm:$0xff] %v5820_v0 }
  0x2d   : > { %343 = vst [vmem:[%s5951_s7 + $0x30] sm:$0xff] %v5820_v0 }
  0x2e   : > { %344 = vst [vmem:[%s5951_s7 + $0x38] sm:$0xff] %v5820_v0 }
  0x2f   : > { %345 = vst [vmem:[%s5951_s7 + $0x40] sm:$0xff] %v5820_v0 }
  0x30   : > { %346 = vst [vmem:[%s5951_s7 + $0x48] sm:$0xff] %v5820_v0 }
  0x31   : > { %347 = vst [vmem:[%s5951_s7 + $0x50] sm:$0xff] %v5820_v0 }
  0x32   : > { %348 = vst [vmem:[%s5951_s7 + $0x58] sm:$0xff] %v5820_v0 }
  0x33   : > { %349 = vst [vmem:[%s5951_s7 + $0x60] sm:$0xff] %v5820_v0 }
  0x34   : > { %350 = vst [vmem:[%s5951_s7 + $0x68] sm:$0xff] %v5820_v0 }
  0x35   : > { %351 = vst [vmem:[%s5951_s7 + $0x70] sm:$0xff] %v5820_v0 }
  0x36   : > { %352 = vst [vmem:[%s5951_s7 + $0x78] sm:$0xff] %v5820_v0 }
  0x37   : > { %353 = vst [vmem:[%s5951_s7 + $0x80] sm:$0xff] %v5820_v0 }
  0x38   : > { %354 = vst [vmem:[%s5951_s7 + $0x88] sm:$0xff] %v5820_v0 }
  0x39   : > { %355 = vst [vmem:[%s5951_s7 + $0x90] sm:$0xff] %v5820_v0 }
  0x3a   : > { %356 = vst [vmem:[%s5951_s7 + $0x98] sm:$0xff] %v5820_v0 }
  0x3b   : > { %357 = vst [vmem:[%s5951_s7 + $0xa0] sm:$0xff] %v5820_v0 }
  0x3c   : > { %358 = vst [vmem:[%s5951_s7 + $0xa8] sm:$0xff] %v5820_v0 }
  0x3d   : > { %359 = vst [vmem:[%s5951_s7 + $0xb0] sm:$0xff] %v5820_v0 }
  0x3e   : > { %360 = vst [vmem:[%s5951_s7 + $0xb8] sm:$0xff] %v5820_v0 }
  0x3f   : > { %361 = vst [vmem:[%s5951_s7 + $0xc0] sm:$0xff] %v5820_v0 }
  0x40   : > { %362 = vst [vmem:[%s5951_s7 + $0xc8] sm:$0xff] %v5820_v0 }
  0x41   : > { %363 = vst [vmem:[%s5951_s7 + $0xd0] sm:$0xff] %v5820_v0 }
  0x42   : > { %364 = vst [vmem:[%s5951_s7 + $0xd8] sm:$0xff] %v5820_v0 }
  0x43   : > { %365 = vst [vmem:[%s5951_s7 + $0xe0] sm:$0xff] %v5820_v0 }
  0x44   : > { %366 = vst [vmem:[%s5951_s7 + $0xe8] sm:$0xff] %v5820_v0 }
  0x45   : > { %367 = vst [vmem:[%s5951_s7 + $0xf0] sm:$0xff] %v5820_v0 }
  0x46   : > { %368 = vst [vmem:[%s5951_s7 + $0xf8] sm:$0xff] %v5820_v0 }
  0x47   : > { %369 = vst [vmem:[%s5951_s7 + $0x100] sm:$0xff] %v5820_v0 }
  0x48   : > { %370 = vst [vmem:[%s5951_s7 + $0x108] sm:$0xff] %v5820_v0 }
  0x49   : > { %371 = vst [vmem:[%s5951_s7 + $0x110] sm:$0xff] %v5820_v0 }
  0x4a   : > { %372 = vst [vmem:[%s5951_s7 + $0x118] sm:$0xff] %v5820_v0 }
  0x4b   : > { %373 = vst [vmem:[%s5951_s7 + $0x120] sm:$0xff] %v5820_v0 }
  0x4c   : > { %374 = vst [vmem:[%s5951_s7 + $0x128] sm:$0xff] %v5820_v0 }
  0x4d   : > { %375 = vst [vmem:[%s5951_s7 + $0x130] sm:$0xff] %v5820_v0 }
  0x4e   : > { %376 = vst [vmem:[%s5951_s7 + $0x138] sm:$0xff] %v5820_v0 }
  0x4f   : > { %377 = vst [vmem:[%s5951_s7 + $0x140] sm:$0xff] %v5820_v0 }
  0x50   : > { %378 = vst [vmem:[%s5951_s7 + $0x148] sm:$0xff] %v5820_v0 }
  0x51   : > { %379 = vst [vmem:[%s5951_s7 + $0x150] sm:$0xff] %v5820_v0 }
  0x52   : > { %380 = vst [vmem:[%s5951_s7 + $0x158] sm:$0xff] %v5820_v0 }
  0x53   : > { %381 = vst [vmem:[%s5951_s7 + $0x160] sm:$0xff] %v5820_v0 }
  0x54   : > { %382 = vst [vmem:[%s5951_s7 + $0x168] sm:$0xff] %v5820_v0 }
  0x55   : > { %383 = vst [vmem:[%s5951_s7 + $0x170] sm:$0xff] %v5820_v0 }
  0x56   : > { %384 = vst [vmem:[%s5951_s7 + $0x178] sm:$0xff] %v5820_v0 }
  0x57   : > { %385 = vst [vmem:[%s5951_s7 + $0x180] sm:$0xff] %v5820_v0 }
  0x58   : > { %386 = vst [vmem:[%s5951_s7 + $0x188] sm:$0xff] %v5820_v0 }
  0x59   : > { %387 = vst [vmem:[%s5951_s7 + $0x190] sm:$0xff] %v5820_v0 }
  0x5a   : > { %388 = vst [vmem:[%s5951_s7 + $0x198] sm:$0xff] %v5820_v0 }
  0x5b   : > { %389 = vst [vmem:[%s5951_s7 + $0x1a0] sm:$0xff] %v5820_v0 }
  0x5c   : > { %390 = vst [vmem:[%s5951_s7 + $0x1a8] sm:$0xff] %v5820_v0 }
  0x5d   : > { %391 = vst [vmem:[%s5951_s7 + $0x1b0] sm:$0xff] %v5820_v0 }
  0x5e   : > { %392 = vst [vmem:[%s5951_s7 + $0x1b8] sm:$0xff] %v5820_v0 }
  0x5f   : > { %393 = vst [vmem:[%s5951_s7 + $0x1c0] sm:$0xff] %v5820_v0 }
  0x60   : > { %394 = vst [vmem:[%s5951_s7 + $0x1c8] sm:$0xff] %v5820_v0 }
  0x61   : > { %395 = vst [vmem:[%s5951_s7 + $0x1d0] sm:$0xff] %v5820_v0 }
  0x62   : > { %396 = vst [vmem:[%s5951_s7 + $0x1d8] sm:$0xff] %v5820_v0 }
  0x63   : > { %397 = vst [vmem:[%s5951_s7 + $0x1e0] sm:$0xff] %v5820_v0 }
  0x64   : > { %398 = vst [vmem:[%s5951_s7 + $0x1e8] sm:$0xff] %v5820_v0 }
  0x65   : > { %399 = vst [vmem:[%s5951_s7 + $0x1f0] sm:$0xff] %v5820_v0 }
  0x66   : > { %400 = vst [vmem:[%s5951_s7 + $0x1f8] sm:$0xff] %v5820_v0 }
  0x67 PF: > { %v525_v1 = vld [vmem:[%s5937_s29 + $0x1e0] sm:$0xff]  ;;  %v526_v2 = vld [vmem:[%s5937_s29 + $0x1e8] sm:$0xff]  ;;  %v527_v3 = vld [vmem:[%s5937_s29 + $0x1f0] sm:$0xff]  ;;  %p5129_p4 = scmp.ne.s32.totalorder %s5802_s21, 1 }
  0x68   : > { %539 = vmatpush.msra.mxu0 %v525_v1  ;;  %748 = vmatpush.msra.mxu1 %v526_v2  ;;  %v528_v4 = vld [vmem:[%s5937_s29 + $0x1f8] sm:$0xff]  ;;  %v521_v5 = vld [vmem:[%s5937_s29 + $0x1c0] sm:$0xff]  ;;  %v522_v6 = vld [vmem:[%s5937_s29 + $0x1c8] sm:$0xff] }
  0x69   : > { %957 = vmatpush.msra.mxu2 %v527_v3  ;;  %1166 = vmatpush.msra.mxu3 %v528_v4  ;;  %v523_v7 = vld [vmem:[%s5937_s29 + $0x1d0] sm:$0xff]  ;;  %v524_v8 = vld [vmem:[%s5937_s29 + $0x1d8] sm:$0xff]  ;;  %v517_v9 = vld [vmem:[%s5937_s29 + $0x1a0] sm:$0xff] }
  0x6a   : > { %540 = vmatpush.msra.mxu0 %v521_v5  ;;  %749 = vmatpush.msra.mxu1 %v522_v6  ;;  %v518_v10 = vld [vmem:[%s5937_s29 + $0x1a8] sm:$0xff]  ;;  %v519_v11 = vld [vmem:[%s5937_s29 + $0x1b0] sm:$0xff]  ;;  %v520_v12 = vld [vmem:[%s5937_s29 + $0x1b8] sm:$0xff] }
  0x6b   : > { %958 = vmatpush.msra.mxu2 %v523_v7  ;;  %1167 = vmatpush.msra.mxu3 %v524_v8  ;;  %v513_v13 = vld [vmem:[%s5937_s29 + $0x180] sm:$0xff]  ;;  %v514_v14 = vld [vmem:[%s5937_s29 + $0x188] sm:$0xff]  ;;  %v515_v15 = vld [vmem:[%s5937_s29 + $0x190] sm:$0xff] }
  0x6c   : > { %541 = vmatpush.msra.mxu0 %v517_v9  ;;  %750 = vmatpush.msra.mxu1 %v518_v10  ;;  %v516_v16 = vld [vmem:[%s5937_s29 + $0x198] sm:$0xff]  ;;  %v509_v17 = vld [vmem:[%s5937_s29 + $0x160] sm:$0xff]  ;;  %v510_v18 = vld [vmem:[%s5937_s29 + $0x168] sm:$0xff] }
  0x6d   : > { %959 = vmatpush.msra.mxu2 %v519_v11  ;;  %1168 = vmatpush.msra.mxu3 %v520_v12  ;;  %v511_v19 = vld [vmem:[%s5937_s29 + $0x170] sm:$0xff]  ;;  %v512_v20 = vld [vmem:[%s5937_s29 + $0x178] sm:$0xff]  ;;  %v505_v21 = vld [vmem:[%s5937_s29 + $0x140] sm:$0xff] }
  0x6e   : > { %542 = vmatpush.msra.mxu0 %v513_v13  ;;  %751 = vmatpush.msra.mxu1 %v514_v14  ;;  %v506_v22 = vld [vmem:[%s5937_s29 + $0x148] sm:$0xff]  ;;  %v507_v23 = vld [vmem:[%s5937_s29 + $0x150] sm:$0xff]  ;;  %v508_v24 = vld [vmem:[%s5937_s29 + $0x158] sm:$0xff] }
  0x6f   : > { %960 = vmatpush.msra.mxu2 %v515_v15  ;;  %1169 = vmatpush.msra.mxu3 %v516_v16  ;;  %v501_v25 = vld [vmem:[%s5937_s29 + $0x120] sm:$0xff]  ;;  %v502_v26 = vld [vmem:[%s5937_s29 + $0x128] sm:$0xff]  ;;  %v503_v27 = vld [vmem:[%s5937_s29 + $0x130] sm:$0xff] }
  0x70   : > { %543 = vmatpush.msra.mxu0 %v509_v17  ;;  %752 = vmatpush.msra.mxu1 %v510_v18  ;;  %v504_v28 = vld [vmem:[%s5937_s29 + $0x138] sm:$0xff]  ;;  %v497_v29 = vld [vmem:[%s5937_s29 + $0x100] sm:$0xff]  ;;  %v498_v30 = vld [vmem:[%s5937_s29 + $0x108] sm:$0xff] }
  0x71   : > { %961 = vmatpush.msra.mxu2 %v511_v19  ;;  %1170 = vmatpush.msra.mxu3 %v512_v20  ;;  %v499_v31 = vld [vmem:[%s5937_s29 + $0x110] sm:$0xff]  ;;  %v500_v32 = vld [vmem:[%s5937_s29 + $0x118] sm:$0xff]  ;;  %v493_v33 = vld [vmem:[%s5937_s29 + $0xe0] sm:$0xff] }
  0x72   : > { %544 = vmatpush.msra.mxu0 %v505_v21  ;;  %753 = vmatpush.msra.mxu1 %v506_v22  ;;  %v494_v34 = vld [vmem:[%s5937_s29 + $0xe8] sm:$0xff]  ;;  %v495_v35 = vld [vmem:[%s5937_s29 + $0xf0] sm:$0xff]  ;;  %v496_v36 = vld [vmem:[%s5937_s29 + $0xf8] sm:$0xff] }
  0x73   : > { %962 = vmatpush.msra.mxu2 %v507_v23  ;;  %1171 = vmatpush.msra.mxu3 %v508_v24  ;;  %v489_v37 = vld [vmem:[%s5937_s29 + $0xc0] sm:$0xff]  ;;  %v490_v38 = vld [vmem:[%s5937_s29 + $0xc8] sm:$0xff]  ;;  %v491_v39 = vld [vmem:[%s5937_s29 + $0xd0] sm:$0xff] }
  0x74   : > { %545 = vmatpush.msra.mxu0 %v501_v25  ;;  %754 = vmatpush.msra.mxu1 %v502_v26  ;;  %v492_v40 = vld [vmem:[%s5937_s29 + $0xd8] sm:$0xff]  ;;  %v485_v41 = vld [vmem:[%s5937_s29 + $0xa0] sm:$0xff]  ;;  %v486_v42 = vld [vmem:[%s5937_s29 + $0xa8] sm:$0xff] }
  0x75   : > { %963 = vmatpush.msra.mxu2 %v503_v27  ;;  %1172 = vmatpush.msra.mxu3 %v504_v28  ;;  %v487_v43 = vld [vmem:[%s5937_s29 + $0xb0] sm:$0xff]  ;;  %v488_v44 = vld [vmem:[%s5937_s29 + $0xb8] sm:$0xff]  ;;  %v481_v45 = vld [vmem:[%s5937_s29 + $0x80] sm:$0xff] }
  0x76   : > { %546 = vmatpush.msra.mxu0 %v497_v29  ;;  %755 = vmatpush.msra.mxu1 %v498_v30  ;;  %v482_v46 = vld [vmem:[%s5937_s29 + $0x88] sm:$0xff]  ;;  %v483_v47 = vld [vmem:[%s5937_s29 + $0x90] sm:$0xff]  ;;  %v484_v48 = vld [vmem:[%s5937_s29 + $0x98] sm:$0xff] }
  0x77   : > { %964 = vmatpush.msra.mxu2 %v499_v31  ;;  %1173 = vmatpush.msra.mxu3 %v500_v32  ;;  %v477_v49 = vld [vmem:[%s5937_s29 + $0x60] sm:$0xff]  ;;  %v478_v50 = vld [vmem:[%s5937_s29 + $0x68] sm:$0xff]  ;;  %v479_v51 = vld [vmem:[%s5937_s29 + $0x70] sm:$0xff] }
  0x78   : > { %547 = vmatpush.msra.mxu0 %v493_v33  ;;  %756 = vmatpush.msra.mxu1 %v494_v34  ;;  %v480_v52 = vld [vmem:[%s5937_s29 + $0x78] sm:$0xff]  ;;  %v473_v53 = vld [vmem:[%s5937_s29 + $0x40] sm:$0xff]  ;;  %v474_v54 = vld [vmem:[%s5937_s29 + $0x48] sm:$0xff] }
  0x79   : > { %965 = vmatpush.msra.mxu2 %v495_v35  ;;  %1174 = vmatpush.msra.mxu3 %v496_v36  ;;  %v475_v55 = vld [vmem:[%s5937_s29 + $0x50] sm:$0xff]  ;;  %v476_v56 = vld [vmem:[%s5937_s29 + $0x58] sm:$0xff]  ;;  %v469_v57 = vld [vmem:[%s5937_s29 + $0x20] sm:$0xff] }
  0x7a   : > { %548 = vmatpush.msra.mxu0 %v489_v37  ;;  %757 = vmatpush.msra.mxu1 %v490_v38  ;;  %v470_v58 = vld [vmem:[%s5937_s29 + $0x28] sm:$0xff]  ;;  %v471_v59 = vld [vmem:[%s5937_s29 + $0x30] sm:$0xff]  ;;  %v472_v60 = vld [vmem:[%s5937_s29 + $0x38] sm:$0xff] }
  0x7b   : > { %966 = vmatpush.msra.mxu2 %v491_v39  ;;  %1175 = vmatpush.msra.mxu3 %v492_v40  ;;  %v465_v61 = vld [vmem:[%s5937_s29] sm:$0xff]  ;;  %v466_v62 = vld [vmem:[%s5937_s29 + $0x8] sm:$0xff]  ;;  %v467_v63 = vld [vmem:[%s5937_s29 + $0x10] sm:$0xff] }
  0x7c   : > { %549 = vmatpush.msra.mxu0 %v485_v41  ;;  %758 = vmatpush.msra.mxu1 %v486_v42  ;;  %v468_v0 = vld [vmem:[%s5937_s29 + $0x18] sm:$0xff]  ;;  %v401_v1 = vld [vmem:[%s5932_s26] sm:$0xff]  ;;  %v3789_v6 = vld [vmem:[%s5949_s13 + $0x170] sm:$0xff] }
  0x7d   : > { %967 = vmatpush.msra.mxu2 %v487_v43  ;;  %1176 = vmatpush.msra.mxu3 %v488_v44  ;;  %v3790_v2 = vld [vmem:[%s5949_s13 + $0x178] sm:$0xff]  ;;  %v3805_v7 = vld [vmem:[%s5949_s13 + $0x1f0] sm:$0xff]  ;;  %v402_v10 = vld [vmem:[%s5932_s26 + $0x8] sm:$0xff] }
  0x7e   : > { %550 = vmatpush.msra.mxu0 %v481_v45  ;;  %759 = vmatpush.msra.mxu1 %v482_v46  ;;  %v3806_v3 = vld [vmem:[%s5949_s13 + $0x1f8] sm:$0xff]  ;;  %v3757_v8 = vld [vmem:[%s5949_s13 + $0x70] sm:$0xff]  ;;  %v405_v13 = vld [vmem:[%s5932_s26 + $0x20] sm:$0xff] }
  0x7f   : > { %968 = vmatpush.msra.mxu2 %v483_v47  ;;  %1177 = vmatpush.msra.mxu3 %v484_v48  ;;  %v3758_v4 = vld [vmem:[%s5949_s13 + $0x78] sm:$0xff]  ;;  %v3773_v9 = vld [vmem:[%s5949_s13 + $0xf0] sm:$0xff]  ;;  %v3788_v14 = vld [vmem:[%s5949_s13 + $0x168] sm:$0xff] }
  0x80   : > { %551 = vmatpush.msra.mxu0 %v477_v49  ;;  %760 = vmatpush.msra.mxu1 %v478_v50  ;;  %v3774_v5 = vld [vmem:[%s5949_s13 + $0xf8] sm:$0xff]  ;;  %v403_v11 = vld [vmem:[%s5932_s26 + $0x10] sm:$0xff]  ;;  %v3804_v15 = vld [vmem:[%s5949_s13 + $0x1e8] sm:$0xff] }
  0x81   : > { %969 = vmatpush.msra.mxu2 %v479_v51  ;;  %1178 = vmatpush.msra.mxu3 %v480_v52  ;;  %v404_v12 = vld [vmem:[%s5932_s26 + $0x18] sm:$0xff]  ;;  %v3756_v16 = vld [vmem:[%s5949_s13 + $0x68] sm:$0xff]  ;;  %v407_v19 = vld [vmem:[%s5932_s26 + $0x30] sm:$0xff] }
  0x82   : > { %552 = vmatpush.msra.mxu0 %v473_v53  ;;  %761 = vmatpush.msra.mxu1 %v474_v54  ;;  %v3772_v17 = vld [vmem:[%s5949_s13 + $0xe8] sm:$0xff]  ;;  %v408_v20 = vld [vmem:[%s5932_s26 + $0x38] sm:$0xff]  ;;  %v409_v21 = vld [vmem:[%s5932_s26 + $0x40] sm:$0xff] }
  0x83   : > { %970 = vmatpush.msra.mxu2 %v475_v55  ;;  %1179 = vmatpush.msra.mxu3 %v476_v56  ;;  %v406_v18 = vld [vmem:[%s5932_s26 + $0x28] sm:$0xff]  ;;  %v3787_v22 = vld [vmem:[%s5949_s13 + $0x160] sm:$0xff]  ;;  %v411_v27 = vld [vmem:[%s5932_s26 + $0x50] sm:$0xff] }
  0x84   : > { %553 = vmatpush.msra.mxu0 %v469_v57  ;;  %762 = vmatpush.msra.mxu1 %v470_v58  ;;  %v3803_v23 = vld [vmem:[%s5949_s13 + $0x1e0] sm:$0xff]  ;;  %v410_v26 = vld [vmem:[%s5932_s26 + $0x48] sm:$0xff]  ;;  %v412_v28 = vld [vmem:[%s5932_s26 + $0x58] sm:$0xff] }
  0x85   : > { %971 = vmatpush.msra.mxu2 %v471_v59  ;;  %1180 = vmatpush.msra.mxu3 %v472_v60  ;;  %v3755_v24 = vld [vmem:[%s5949_s13 + $0x60] sm:$0xff]  ;;  %v414_v30 = vld [vmem:[%s5932_s26 + $0x68] sm:$0xff]  ;;  %v3786_v31 = vld [vmem:[%s5949_s13 + $0x158] sm:$0xff] }
  0x86   : > { %554 = vmatpush.msra.mxu0 %v465_v61  ;;  %763 = vmatpush.msra.mxu1 %v466_v62  ;;  %v3771_v25 = vld [vmem:[%s5949_s13 + $0xe0] sm:$0xff]  ;;  %v3802_v32 = vld [vmem:[%s5949_s13 + $0x1d8] sm:$0xff]  ;;  %v415_v33 = vld [vmem:[%s5932_s26 + $0x70] sm:$0xff] }
  0x87   : > { %972 = vmatpush.msra.mxu2 %v467_v63  ;;  %1181 = vmatpush.msra.mxu3 %v468_v0  ;;  %v413_v29 = vld [vmem:[%s5932_s26 + $0x60] sm:$0xff]  ;;  %v3754_v34 = vld [vmem:[%s5949_s13 + $0x58] sm:$0xff]  ;;  %v3785_v42 = vld [vmem:[%s5949_s13 + $0x150] sm:$0xff] }
  0x88   : > { %555 = vmatmul.f32.vlgmr.msra.gmra.mxu0 %v401_v1  ;;  %764 = vmatmul.f32.vlgmr.msra.gmra.mxu1 %v401_v1  ;;  %v3770_v35 = vld [vmem:[%s5949_s13 + $0xd8] sm:$0xff]  ;;  %v417_v39 = vld [vmem:[%s5932_s26 + $0x80] sm:$0xff]  ;;  %v3801_v43 = vld [vmem:[%s5949_s13 + $0x1d0] sm:$0xff] }
  0x89   : > { %973 = vmatmul.f32.vlgmr.msra.gmra.mxu2 %v401_v1  ;;  %1182 = vmatmul.f32.vlgmr.msra.gmra.mxu3 %v401_v1  ;;  %v416_v36 = vld [vmem:[%s5932_s26 + $0x78] sm:$0xff]  ;;  %v418_v46 = vld [vmem:[%s5932_s26 + $0x88] sm:$0xff]  ;;  %v3753_v47 = vld [vmem:[%s5949_s13 + $0x50] sm:$0xff] }
  0x8a   : > { %4225 = vmatpush.msrb.mxu2 %v3790_v2  ;;  %4434 = vmatpush.msrb.mxu3 %v3806_v3  ;;  %v3769_v48 = vld [vmem:[%s5949_s13 + $0xd0] sm:$0xff]  ;;  %v420_v58 = vld [vmem:[%s5932_s26 + $0x98] sm:$0xff]  ;;  %v421_v63 = vld [vmem:[%s5932_s26 + $0xa0] sm:$0xff] }
  0x8b   : > { %3807 = vmatpush.msrb.mxu0 %v3758_v4  ;;  %4016 = vmatpush.msrb.mxu1 %v3774_v5  ;;  %v419_v53 = vld [vmem:[%s5932_s26 + $0x90] sm:$0xff]  ;;  %v3784_v2 = vld [vmem:[%s5949_s13 + $0x148] sm:$0xff] }
  0x8c   : > { %4226 = vmatpush.msrb.mxu2 %v3789_v6  ;;  %4435 = vmatpush.msrb.mxu3 %v3805_v7  ;;  %v3800_v3 = vld [vmem:[%s5949_s13 + $0x1c8] sm:$0xff] }
  0x8d   : > { %3808 = vmatpush.msrb.mxu0 %v3757_v8  ;;  %4017 = vmatpush.msrb.mxu1 %v3773_v9  ;;  %v422_v6 = vld [vmem:[%s5932_s26 + $0xa8] sm:$0xff] }
  0x8e   : > { %4227 = vmatpush.msrb.mxu2 %v3788_v14  ;;  %4436 = vmatpush.msrb.mxu3 %v3804_v15  ;;  %v3752_v7 = vld [vmem:[%s5949_s13 + $0x48] sm:$0xff] }
  0x8f   : > { %3809 = vmatpush.msrb.mxu0 %v3756_v16  ;;  %4018 = vmatpush.msrb.mxu1 %v3772_v17  ;;  %v3768_v8 = vld [vmem:[%s5949_s13 + $0xc8] sm:$0xff] }
  0x90   : > { %558 = vmatmul.f32.gmra.mxu0 %v402_v10  ;;  %767 = vmatmul.f32.gmra.mxu1 %v402_v10 }
  0x91   : > { %976 = vmatmul.f32.gmra.mxu2 %v402_v10  ;;  %1185 = vmatmul.f32.gmra.mxu3 %v402_v10 }
  0x92   : > { %4228 = vmatpush.msrb.mxu2 %v3787_v22  ;;  %4437 = vmatpush.msrb.mxu3 %v3803_v23  ;;  %v425_v23 = vld [vmem:[%s5932_s26 + $0xc0] sm:$0xff] }
  0x93   : > { %3810 = vmatpush.msrb.mxu0 %v3755_v24  ;;  %4019 = vmatpush.msrb.mxu1 %v3771_v25 }
  0x94   : > { %4229 = vmatpush.msrb.mxu2 %v3786_v31  ;;  %4438 = vmatpush.msrb.mxu3 %v3802_v32  ;;  %v3751_v31 = vld [vmem:[%s5949_s13 + $0x40] sm:$0xff] }
  0x95   : > { %3811 = vmatpush.msrb.mxu0 %v3754_v34  ;;  %4020 = vmatpush.msrb.mxu1 %v3770_v35  ;;  %v3767_v32 = vld [vmem:[%s5949_s13 + $0xc0] sm:$0xff] }
  0x96   : > { %4230 = vmatpush.msrb.mxu2 %v3785_v42  ;;  %4439 = vmatpush.msrb.mxu3 %v3801_v43 }
  0x97   : > { %3812 = vmatpush.msrb.mxu0 %v3753_v47  ;;  %4021 = vmatpush.msrb.mxu1 %v3769_v48  ;;  %v428_v48 = vld [vmem:[%s5932_s26 + $0xd8] sm:$0xff] }
  0x98   : > { %561 = vmatmul.f32.gmra.mxu0 %v403_v11  ;;  %770 = vmatmul.f32.gmra.mxu1 %v403_v11 }
  0x99   : > { %979 = vmatmul.f32.gmra.mxu2 %v403_v11  ;;  %1188 = vmatmul.f32.gmra.mxu3 %v403_v11 }
  0x9a   : > { %4231 = vmatpush.msrb.mxu2 %v3784_v2  ;;  %4440 = vmatpush.msrb.mxu3 %v3800_v3  ;;  %v429_v3 = vld [vmem:[%s5932_s26 + $0xe0] sm:$0xff] }
  0x9b   : > { %3813 = vmatpush.msrb.mxu0 %v3752_v7  ;;  %4022 = vmatpush.msrb.mxu1 %v3768_v8  ;;  %v3782_v8 = vld [vmem:[%s5949_s13 + $0x138] sm:$0xff] }
  0x9d   : > { %3814 = vmatpush.msrb.mxu0 %v3751_v31  ;;  %4023 = vmatpush.msrb.mxu1 %v3767_v32 }
  0xa0   : > { %564 = vmatmul.f32.gmra.mxu0 %v404_v12  ;;  %773 = vmatmul.f32.gmra.mxu1 %v404_v12 }
  0xa1   : > { %982 = vmatmul.f32.gmra.mxu2 %v404_v12  ;;  %1191 = vmatmul.f32.gmra.mxu3 %v404_v12 }
  0xa8   : > { %567 = vmatmul.f32.gmra.mxu0 %v405_v13  ;;  %776 = vmatmul.f32.gmra.mxu1 %v405_v13 }
  0xa9   : > { %985 = vmatmul.f32.gmra.mxu2 %v405_v13  ;;  %1194 = vmatmul.f32.gmra.mxu3 %v405_v13  ;;  %v423_v13 = vld [vmem:[%s5932_s26 + $0xb0] sm:$0xff] }
  0xb0   : > { %570 = vmatmul.f32.gmra.mxu0 %v406_v18  ;;  %779 = vmatmul.f32.gmra.mxu1 %v406_v18 }
  0xb1   : > { %988 = vmatmul.f32.gmra.mxu2 %v406_v18  ;;  %1197 = vmatmul.f32.gmra.mxu3 %v406_v18  ;;  %v424_v18 = vld [vmem:[%s5932_s26 + $0xb8] sm:$0xff] }
  0xb8   : > { %573 = vmatmul.f32.gmra.mxu0 %v407_v19  ;;  %782 = vmatmul.f32.gmra.mxu1 %v407_v19 }
  0xb9   : > { %991 = vmatmul.f32.gmra.mxu2 %v407_v19  ;;  %1200 = vmatmul.f32.gmra.mxu3 %v407_v19 }
  0xc0   : > { %576 = vmatmul.f32.gmra.mxu0 %v408_v20  ;;  %785 = vmatmul.f32.gmra.mxu1 %v408_v20 }
  0xc1   : > { %994 = vmatmul.f32.gmra.mxu2 %v408_v20  ;;  %1203 = vmatmul.f32.gmra.mxu3 %v408_v20 }
  0xc8   : > { %579 = vmatmul.f32.gmra.mxu0 %v409_v21  ;;  %788 = vmatmul.f32.gmra.mxu1 %v409_v21 }
  0xc9   : > { %997 = vmatmul.f32.gmra.mxu2 %v409_v21  ;;  %1206 = vmatmul.f32.gmra.mxu3 %v409_v21 }
  0xd0   : > { %582 = vmatmul.f32.gmra.mxu0 %v410_v26  ;;  %791 = vmatmul.f32.gmra.mxu1 %v410_v26 }
  0xd1   : > { %1000 = vmatmul.f32.gmra.mxu2 %v410_v26  ;;  %1209 = vmatmul.f32.gmra.mxu3 %v410_v26  ;;  %v3783_v26 = vld [vmem:[%s5949_s13 + $0x140] sm:$0xff] }
  0xd2   : > { %4232 = vmatpush.msrb.mxu2 %v3783_v26  ;;  %v430_v26 = vld [vmem:[%s5932_s26 + $0xe8] sm:$0xff] }
  0xd4   : > { %4233 = vmatpush.msrb.mxu2 %v3782_v8 }
  0xd8   : > { %585 = vmatmul.f32.gmra.mxu0 %v411_v27  ;;  %794 = vmatmul.f32.gmra.mxu1 %v411_v27 }
  0xd9   : > { %1003 = vmatmul.f32.gmra.mxu2 %v411_v27  ;;  %1212 = vmatmul.f32.gmra.mxu3 %v411_v27  ;;  %v3799_v27 = vld [vmem:[%s5949_s13 + $0x1c0] sm:$0xff] }
  0xda   : > { %4441 = vmatpush.msrb.mxu3 %v3799_v27  ;;  %v3750_v27 = vld [vmem:[%s5949_s13 + $0x38] sm:$0xff] }
  0xdb   : > { %3815 = vmatpush.msrb.mxu0 %v3750_v27  ;;  %v432_v27 = vld [vmem:[%s5932_s26 + $0xf8] sm:$0xff] }
  0xe0   : > { %588 = vmatmul.f32.gmra.mxu0 %v412_v28  ;;  %797 = vmatmul.f32.gmra.mxu1 %v412_v28 }
  0xe1   : > { %1006 = vmatmul.f32.gmra.mxu2 %v412_v28  ;;  %1215 = vmatmul.f32.gmra.mxu3 %v412_v28 }
  0xe8   : > { %591 = vmatmul.f32.gmra.mxu0 %v413_v29  ;;  %800 = vmatmul.f32.gmra.mxu1 %v413_v29 }
  0xe9   : > { %1009 = vmatmul.f32.gmra.mxu2 %v413_v29  ;;  %1218 = vmatmul.f32.gmra.mxu3 %v413_v29 }
  0xf0   : > { %594 = vmatmul.f32.gmra.mxu0 %v414_v30  ;;  %803 = vmatmul.f32.gmra.mxu1 %v414_v30 }
  0xf1   : > { %1012 = vmatmul.f32.gmra.mxu2 %v414_v30  ;;  %1221 = vmatmul.f32.gmra.mxu3 %v414_v30  ;;  %v426_v30 = vld [vmem:[%s5932_s26 + $0xc8] sm:$0xff] }
  0xf8   : > { %597 = vmatmul.f32.gmra.mxu0 %v415_v33  ;;  %806 = vmatmul.f32.gmra.mxu1 %v415_v33 }
  0xf9   : > { %1015 = vmatmul.f32.gmra.mxu2 %v415_v33  ;;  %1224 = vmatmul.f32.gmra.mxu3 %v415_v33 }
 0x100   : > { %600 = vmatmul.f32.gmra.mxu0 %v416_v36  ;;  %809 = vmatmul.f32.gmra.mxu1 %v416_v36 }
 0x101   : > { %1018 = vmatmul.f32.gmra.mxu2 %v416_v36  ;;  %1227 = vmatmul.f32.gmra.mxu3 %v416_v36 }
 0x105   : > { %v6182_v37 = vpop.f32.mrf.mxu0  ;;  %v6184_v38 = vpop.f32.mrf.mxu1 }
 0x108   : > { %603 = vmatmul.f32.gmra.mxu0 %v417_v39  ;;  %812 = vmatmul.f32.gmra.mxu1 %v417_v39 }
 0x109   : > { %1021 = vmatmul.f32.gmra.mxu2 %v417_v39  ;;  %1230 = vmatmul.f32.gmra.mxu3 %v417_v39  ;;  %v427_v39 = vld [vmem:[%s5932_s26 + $0xd0] sm:$0xff] }
 0x10c   : > { %v6187_v40 = vpop.f32.mrf.mxu2  ;;  %v6189_v41 = vpop.f32.mrf.mxu3 }
 0x10d   : > { %v6193_v44 = vpop.f32.mrf.mxu0  ;;  %v6195_v45 = vpop.f32.mrf.mxu1 }
 0x110   : > { %606 = vmatmul.f32.gmra.mxu0 %v418_v46  ;;  %815 = vmatmul.f32.gmra.mxu1 %v418_v46 }
 0x111   : > { %1024 = vmatmul.f32.gmra.mxu2 %v418_v46  ;;  %1233 = vmatmul.f32.gmra.mxu3 %v418_v46 }
 0x114   : > { %v6200_v49 = vpop.f32.mrf.mxu2  ;;  %v6202_v50 = vpop.f32.mrf.mxu3 }
 0x115   : > { %v6204_v51 = vpop.f32.mrf.mxu0  ;;  %v6206_v52 = vpop.f32.mrf.mxu1 }
 0x118   : > { %609 = vmatmul.f32.gmra.mxu0 %v419_v53  ;;  %818 = vmatmul.f32.gmra.mxu1 %v419_v53 }
 0x119   : > { %1027 = vmatmul.f32.gmra.mxu2 %v419_v53  ;;  %1236 = vmatmul.f32.gmra.mxu3 %v419_v53 }
 0x11c   : > { %v6209_v54 = vpop.f32.mrf.mxu2  ;;  %v6211_v55 = vpop.f32.mrf.mxu3 }
 0x11d   : > { %v6213_v56 = vpop.f32.mrf.mxu0  ;;  %v6215_v57 = vpop.f32.mrf.mxu1 }
 0x120   : > { %612 = vmatmul.f32.gmra.mxu0 %v420_v58  ;;  %821 = vmatmul.f32.gmra.mxu1 %v420_v58 }
 0x121   : > { %1030 = vmatmul.f32.gmra.mxu2 %v420_v58  ;;  %1239 = vmatmul.f32.gmra.mxu3 %v420_v58 }
 0x124   : > { %v6218_v59 = vpop.f32.mrf.mxu2  ;;  %v6220_v60 = vpop.f32.mrf.mxu3 }
 0x125   : > { %v6222_v61 = vpop.f32.mrf.mxu0  ;;  %v6224_v62 = vpop.f32.mrf.mxu1 }
 0x128   : > { %615 = vmatmul.f32.gmra.mxu0 %v421_v63  ;;  %824 = vmatmul.f32.gmra.mxu1 %v421_v63 }
 0x129   : > { %1033 = vmatmul.f32.gmra.mxu2 %v421_v63  ;;  %1242 = vmatmul.f32.gmra.mxu3 %v421_v63 }
 0x12c   : > { %v6227_v0 = vpop.f32.mrf.mxu2  ;;  %v6229_v1 = vpop.f32.mrf.mxu3 }
 0x12d   : > { %v6233_v4 = vpop.f32.mrf.mxu0  ;;  %v6235_v5 = vpop.f32.mrf.mxu1 }
 0x130   : > { %618 = vmatmul.f32.gmra.mxu0 %v422_v6  ;;  %827 = vmatmul.f32.gmra.mxu1 %v422_v6 }
 0x131   : > { %1036 = vmatmul.f32.gmra.mxu2 %v422_v6  ;;  %1245 = vmatmul.f32.gmra.mxu3 %v422_v6 }
 0x134   : > { %v6240_v9 = vpop.f32.mrf.mxu2  ;;  %v6242_v10 = vpop.f32.mrf.mxu3 }
 0x135   : > { %v6244_v11 = vpop.f32.mrf.mxu0  ;;  %v6246_v12 = vpop.f32.mrf.mxu1 }
 0x138   : > { %621 = vmatmul.f32.gmra.mxu0 %v423_v13  ;;  %830 = vmatmul.f32.gmra.mxu1 %v423_v13 }
 0x139   : > { %1039 = vmatmul.f32.gmra.mxu2 %v423_v13  ;;  %1248 = vmatmul.f32.gmra.mxu3 %v423_v13  ;;  %v3798_v13 = vld [vmem:[%s5949_s13 + $0x1b8] sm:$0xff] }
 0x13a   : > { %4442 = vmatpush.msrb.mxu3 %v3798_v13 }
 0x13c   : > { %v6249_v14 = vpop.f32.mrf.mxu2  ;;  %v6251_v15 = vpop.f32.mrf.mxu3 }
 0x13d   : > { %v6253_v16 = vpop.f32.mrf.mxu0  ;;  %v6255_v17 = vpop.f32.mrf.mxu1 }
 0x140   : > { %624 = vmatmul.f32.gmra.mxu0 %v424_v18  ;;  %833 = vmatmul.f32.gmra.mxu1 %v424_v18 }
 0x141   : > { %1042 = vmatmul.f32.gmra.mxu2 %v424_v18  ;;  %1251 = vmatmul.f32.gmra.mxu3 %v424_v18 }
 0x144   : > { %v6258_v19 = vpop.f32.mrf.mxu2  ;;  %v6260_v20 = vpop.f32.mrf.mxu3 }
 0x145   : > { %v6262_v21 = vpop.f32.mrf.mxu0  ;;  %v6264_v22 = vpop.f32.mrf.mxu1 }
 0x146   : > { %10998 = vst [vmem:[#allocation8_spill] sm:$0xff] %v6264_v22 }
 0x148   : > { %627 = vmatmul.f32.gmra.mxu0 %v425_v23  ;;  %836 = vmatmul.f32.gmra.mxu1 %v425_v23 }
 0x149   : > { %1045 = vmatmul.f32.gmra.mxu2 %v425_v23  ;;  %1254 = vmatmul.f32.gmra.mxu3 %v425_v23 }
 0x14c   : > { %v6267_v24 = vpop.f32.mrf.mxu2  ;;  %v6269_v25 = vpop.f32.mrf.mxu3 }
 0x14d   : > { %10999 = vst [vmem:[#allocation9_spill] sm:$0xff] %v6267_v24  ;;  %v6273_v28 = vpop.f32.mrf.mxu0  ;;  %v6275_v29 = vpop.f32.mrf.mxu1 }
 0x14e   : > { %11000 = vst [vmem:[#allocation10_spill] sm:$0xff] %v6269_v25 }
 0x14f   : > { %11001 = vst [vmem:[#allocation11_spill] sm:$0xff] %v6273_v28 }
 0x150   : > { %11002 = vst [vmem:[#allocation12_spill] sm:$0xff] %v6275_v29  ;;  %630 = vmatmul.f32.gmra.mxu0 %v426_v30  ;;  %839 = vmatmul.f32.gmra.mxu1 %v426_v30 }
 0x151   : > { %1048 = vmatmul.f32.gmra.mxu2 %v426_v30  ;;  %1257 = vmatmul.f32.gmra.mxu3 %v426_v30  ;;  %v3766_v30 = vld [vmem:[%s5949_s13 + $0xb8] sm:$0xff] }
 0x152   : > { %4024 = vmatpush.msrb.mxu1 %v3766_v30 }
 0x154   : > { %v6280_v33 = vpop.f32.mrf.mxu2  ;;  %v6282_v34 = vpop.f32.mrf.mxu3 }
 0x155   : > { %11003 = vst [vmem:[#allocation13_spill] sm:$0xff] %v6280_v33  ;;  %v6284_v35 = vpop.f32.mrf.mxu0  ;;  %v6286_v36 = vpop.f32.mrf.mxu1 }
 0x156   : > { %11004 = vst [vmem:[#allocation14_spill] sm:$0xff] %v6282_v34 }
 0x157   : > { %11005 = vst [vmem:[#allocation15_spill] sm:$0xff] %v6284_v35 }
 0x158   : > { %11006 = vst [vmem:[#allocation16_spill] sm:$0xff] %v6286_v36  ;;  %633 = vmatmul.f32.gmra.mxu0 %v427_v39  ;;  %842 = vmatmul.f32.gmra.mxu1 %v427_v39 }
 0x159   : > { %1051 = vmatmul.f32.gmra.mxu2 %v427_v39  ;;  %1260 = vmatmul.f32.gmra.mxu3 %v427_v39 }
 0x15c   : > { %v6289_v42 = vpop.f32.mrf.mxu2  ;;  %v6291_v43 = vpop.f32.mrf.mxu3 }
 0x15d   : > { %11007 = vst [vmem:[#allocation17_spill] sm:$0xff] %v6289_v42  ;;  %v6293_v46 = vpop.f32.mrf.mxu0  ;;  %v6295_v47 = vpop.f32.mrf.mxu1 }
 0x15e   : > { %11008 = vst [vmem:[#allocation18_spill] sm:$0xff] %v6291_v43 }
 0x15f   : > { %11009 = vst [vmem:[#allocation19_spill] sm:$0xff] %v6293_v46 }
 0x160   : > { %11010 = vst [vmem:[#allocation20_spill] sm:$0xff] %v6295_v47  ;;  %636 = vmatmul.f32.gmra.mxu0 %v428_v48  ;;  %845 = vmatmul.f32.gmra.mxu1 %v428_v48 }
 0x161   : > { %1054 = vmatmul.f32.gmra.mxu2 %v428_v48  ;;  %1263 = vmatmul.f32.gmra.mxu3 %v428_v48 }
 0x164   : > { %v6298_v53 = vpop.f32.mrf.mxu2  ;;  %v6300_v58 = vpop.f32.mrf.mxu3 }
 0x165   : > { %11011 = vst [vmem:[#allocation21_spill] sm:$0xff] %v6298_v53  ;;  %v6302_v63 = vpop.f32.mrf.mxu0  ;;  %v6304_v2 = vpop.f32.mrf.mxu1 }
 0x166   : > { %11012 = vst [vmem:[#allocation22_spill] sm:$0xff] %v6300_v58 }
 0x167   : > { %11013 = vst [vmem:[#allocation23_spill] sm:$0xff] %v6302_v63 }
 0x168   : > { %11014 = vst [vmem:[#allocation24_spill] sm:$0xff] %v6304_v2  ;;  %639 = vmatmul.f32.gmra.mxu0 %v429_v3  ;;  %848 = vmatmul.f32.gmra.mxu1 %v429_v3 }
 0x169   : > { %1057 = vmatmul.f32.gmra.mxu2 %v429_v3  ;;  %1266 = vmatmul.f32.gmra.mxu3 %v429_v3  ;;  %v431_v3 = vld [vmem:[%s5932_s26 + $0xf0] sm:$0xff] }
 0x16c   : > { %v6307_v6 = vpop.f32.mrf.mxu2  ;;  %v6309_v7 = vpop.f32.mrf.mxu3 }
 0x16d   : > { %11015 = vst [vmem:[#allocation25_spill] sm:$0xff] %v6307_v6  ;;  %v6313_v18 = vpop.f32.mrf.mxu0  ;;  %v6315_v23 = vpop.f32.mrf.mxu1 }
 0x16e   : > { %11016 = vst [vmem:[#allocation26_spill] sm:$0xff] %v6309_v7  ;;  %v439_v7 = vld [vmem:[%s5932_s26 + $0x130] sm:$0xff] }
 0x16f   : > { %11017 = vst [vmem:[#allocation27_spill] sm:$0xff] %v6313_v18 }
 0x170   : > { %11018 = vst [vmem:[#allocation28_spill] sm:$0xff] %v6315_v23  ;;  %642 = vmatmul.f32.gmra.mxu0 %v430_v26  ;;  %851 = vmatmul.f32.gmra.mxu1 %v430_v26 }
 0x171   : > { %1060 = vmatmul.f32.gmra.mxu2 %v430_v26  ;;  %1269 = vmatmul.f32.gmra.mxu3 %v430_v26 }
 0x174   : > { %v6320_v31 = vpop.f32.mrf.mxu2  ;;  %v6322_v32 = vpop.f32.mrf.mxu3 }
 0x175   : > { %11019 = vst [vmem:[#allocation29_spill] sm:$0xff] %v6320_v31  ;;  %v6324_v39 = vpop.f32.mrf.mxu0  ;;  %v6326_v48 = vpop.f32.mrf.mxu1 }
 0x176   : > { %11020 = vst [vmem:[#allocation30_spill] sm:$0xff] %v6322_v32  ;;  %v435_v32 = vld [vmem:[%s5932_s26 + $0x110] sm:$0xff] }
 0x177   : > { %11021 = vst [vmem:[#allocation31_spill] sm:$0xff] %v6324_v39  ;;  %v3797_v39 = vld [vmem:[%s5949_s13 + $0x1b0] sm:$0xff] }
 0x178   : > { %11022 = vst [vmem:[#allocation32_spill] sm:$0xff] %v6326_v48  ;;  %645 = vmatmul.f32.gmra.mxu0 %v431_v3  ;;  %854 = vmatmul.f32.gmra.mxu1 %v431_v3 }
 0x179   : > { %1063 = vmatmul.f32.gmra.mxu2 %v431_v3  ;;  %1272 = vmatmul.f32.gmra.mxu3 %v431_v3 }
 0x17a   : > { %4443 = vmatpush.msrb.mxu3 %v3797_v39 }
 0x17c   : > { %v6329_v8 = vpop.f32.mrf.mxu2  ;;  %v6331_v13 = vpop.f32.mrf.mxu3 }
 0x17d   : > { %11023 = vst [vmem:[#allocation33_spill] sm:$0xff] %v6329_v8  ;;  %v6333_v26 = vpop.f32.mrf.mxu0  ;;  %v6335_v31 = vpop.f32.mrf.mxu1 }
 0x17e   : > { %11024 = vst [vmem:[#allocation34_spill] sm:$0xff] %v6331_v13  ;;  %v433_v13 = vld [vmem:[%s5932_s26 + $0x100] sm:$0xff] }
 0x17f   : > { %11025 = vst [vmem:[#allocation35_spill] sm:$0xff] %v6333_v26 }
 0x180   : > { %11026 = vst [vmem:[#allocation36_spill] sm:$0xff] %v6335_v31  ;;  %648 = vmatmul.f32.gmra.mxu0 %v432_v27  ;;  %857 = vmatmul.f32.gmra.mxu1 %v432_v27 }
 0x181   : > { %1066 = vmatmul.f32.gmra.mxu2 %v432_v27  ;;  %1275 = vmatmul.f32.gmra.mxu3 %v432_v27  ;;  %v3781_v27 = vld [vmem:[%s5949_s13 + $0x130] sm:$0xff] }
 0x182   : > { %4234 = vmatpush.msrb.mxu2 %v3781_v27 }
 0x184   : > { %v6338_v30 = vpop.f32.mrf.mxu2  ;;  %v6340_v48 = vpop.f32.mrf.mxu3 }
 0x185   : > { %11027 = vst [vmem:[#allocation37_spill] sm:$0xff] %v6338_v30  ;;  %v6342_v3 = vpop.f32.mrf.mxu0  ;;  %v6344_v8 = vpop.f32.mrf.mxu1 }
 0x186   : > { %11028 = vst [vmem:[#allocation38_spill] sm:$0xff] %v6340_v48 }
 0x187   : > { %11029 = vst [vmem:[#allocation39_spill] sm:$0xff] %v6342_v3  ;;  %v434_v3 = vld [vmem:[%s5932_s26 + $0x108] sm:$0xff] }
 0x188   : > { %11030 = vst [vmem:[#allocation40_spill] sm:$0xff] %v6344_v8  ;;  %651 = vmatmul.f32.gmra.mxu0 %v433_v13  ;;  %860 = vmatmul.f32.gmra.mxu1 %v433_v13  ;;  %v3749_v8 = vld [vmem:[%s5949_s13 + $0x30] sm:$0xff] }
 0x189   : > { %1069 = vmatmul.f32.gmra.mxu2 %v433_v13  ;;  %1278 = vmatmul.f32.gmra.mxu3 %v433_v13  ;;  %v3765_v13 = vld [vmem:[%s5949_s13 + $0xb0] sm:$0xff] }
 0x18a   : > { %3816 = vmatpush.msrb.mxu0 %v3749_v8  ;;  %4025 = vmatpush.msrb.mxu1 %v3765_v13  ;;  %v436_v8 = vld [vmem:[%s5932_s26 + $0x118] sm:$0xff] }
 0x18c   : > { %v6347_v31 = vpop.f32.mrf.mxu2  ;;  %v6349_v26 = vpop.f32.mrf.mxu3 }
 0x18d   : > { %11031 = vst [vmem:[#allocation41_spill] sm:$0xff] %v6347_v31  ;;  %v6353_v30 = vpop.f32.mrf.mxu0  ;;  %v6355_v48 = vpop.f32.mrf.mxu1 }
 0x18e   : > { %11032 = vst [vmem:[#allocation42_spill] sm:$0xff] %v6349_v26 }
 0x18f   : > { %11033 = vst [vmem:[#allocation43_spill] sm:$0xff] %v6353_v30 }
 0x190   : > { %11034 = vst [vmem:[#allocation44_spill] sm:$0xff] %v6355_v48  ;;  %654 = vmatmul.f32.gmra.mxu0 %v434_v3  ;;  %863 = vmatmul.f32.gmra.mxu1 %v434_v3 }
 0x191   : > { %1072 = vmatmul.f32.gmra.mxu2 %v434_v3  ;;  %1281 = vmatmul.f32.gmra.mxu3 %v434_v3 }
 0x194   : > { %v6360_v31 = vpop.f32.mrf.mxu2  ;;  %v6362_v26 = vpop.f32.mrf.mxu3 }
 0x195   : > { %11035 = vst [vmem:[#allocation45_spill] sm:$0xff] %v6360_v31  ;;  %v6364_v30 = vpop.f32.mrf.mxu0  ;;  %v6366_v48 = vpop.f32.mrf.mxu1 }
 0x196   : > { %11036 = vst [vmem:[#allocation46_spill] sm:$0xff] %v6362_v26 }
 0x197   : > { %11037 = vst [vmem:[#allocation47_spill] sm:$0xff] %v6364_v30  ;;  %v438_v30 = vld [vmem:[%s5932_s26 + $0x128] sm:$0xff] }
 0x198   : > { %11038 = vst [vmem:[#allocation48_spill] sm:$0xff] %v6366_v48  ;;  %657 = vmatmul.f32.gmra.mxu0 %v435_v32  ;;  %866 = vmatmul.f32.gmra.mxu1 %v435_v32 }
 0x199   : > { %1075 = vmatmul.f32.gmra.mxu2 %v435_v32  ;;  %1284 = vmatmul.f32.gmra.mxu3 %v435_v32 }
 0x19c   : > { %v6369_v39 = vpop.f32.mrf.mxu2  ;;  %v6371_v3 = vpop.f32.mrf.mxu3 }
 0x19d   : > { %11039 = vst [vmem:[#allocation49_spill] sm:$0xff] %v6369_v39  ;;  %v6373_v27 = vpop.f32.mrf.mxu0  ;;  %v6375_v26 = vpop.f32.mrf.mxu1 }
 0x19e   : > { %11040 = vst [vmem:[#allocation50_spill] sm:$0xff] %v6371_v3 }
 0x19f   : > { %11041 = vst [vmem:[#allocation51_spill] sm:$0xff] %v6373_v27  ;;  %v437_v27 = vld [vmem:[%s5932_s26 + $0x120] sm:$0xff] }
 0x1a0   : > { %11042 = vst [vmem:[#allocation52_spill] sm:$0xff] %v6375_v26  ;;  %660 = vmatmul.f32.gmra.mxu0 %v436_v8  ;;  %869 = vmatmul.f32.gmra.mxu1 %v436_v8  ;;  %v529_v26 = vld [vmem:[%s318_s24] sm:$0xf] }
 0x1a1   : > { %1078 = vmatmul.f32.gmra.mxu2 %v436_v8  ;;  %1287 = vmatmul.f32.gmra.mxu3 %v436_v8  ;;  %v6405_v31 = vperm.slane %v529_v26, 1  ;;  %v6415_v23 = vperm.slane %v529_v26, 3 }
 0x1a3   : > { %v6423_v18 = vadd.f32 %v6184_v38, %v6405_v31  ;;  %v6505_v36 = vadd.f32 %v6206_v52, %v6405_v31 }
 0x1a4   : > { %v6378_v13 = vpop.f32.mrf.mxu2  ;;  %v6380_v32 = vpop.f32.mrf.mxu3 }
 0x1a5   : > { %11043 = vst [vmem:[#allocation53_spill] sm:$0xff] %v6378_v13  ;;  %v6382_v39 = vpop.f32.mrf.mxu0  ;;  %v6384_v3 = vpop.f32.mrf.mxu1  ;;  %v1376_v38 = vmul.f32 %v6423_v18, %v6423_v18 }
 0x1a6   : > { %11044 = vst [vmem:[#allocation54_spill] sm:$0xff] %v6380_v32  ;;  %v3780_v32 = vld [vmem:[%s5949_s13 + $0x128] sm:$0xff] }
 0x1a7   : > { %11045 = vst [vmem:[#allocation55_spill] sm:$0xff] %v6382_v39  ;;  %v3796_v39 = vld [vmem:[%s5949_s13 + $0x1a8] sm:$0xff]  ;;  %4235 = vmatpush.msrb.mxu2 %v3780_v32 }
 0x1a8   : > { %11046 = vst [vmem:[#allocation56_spill] sm:$0xff] %v6384_v3  ;;  %663 = vmatmul.f32.gmra.mxu0 %v437_v27  ;;  %872 = vmatmul.f32.gmra.mxu1 %v437_v27 }
 0x1a9   : > { %1081 = vmatmul.f32.gmra.mxu2 %v437_v27  ;;  %1290 = vmatmul.f32.gmra.mxu3 %v437_v27  ;;  %v6403_v27 = vperm.slane %v529_v26, 0 }
 0x1aa   : > { %4444 = vmatpush.msrb.mxu3 %v3796_v39 }
 0x1ac   : > { %v6392_v8 = vpop.f32.mrf.mxu2  ;;  %v6394_v13 = vpop.f32.mrf.mxu3 }
 0x1ad   : > { %11047 = vst [vmem:[#allocation57_spill] sm:$0xff] %v6392_v8  ;;  %v6398_v48 = vpop.f32.mrf.mxu0  ;;  %v6400_v3 = vpop.f32.mrf.mxu1  ;;  %v6411_v8 = vperm.slane %v529_v26, 2 }
 0x1ae   : > { %11048 = vst [vmem:[#allocation58_spill] sm:$0xff] %v6394_v13  ;;  %v6409_v13 = vadd.f32 %v6182_v37, %v6403_v27 }
 0x1af   : > { %11049 = vst [vmem:[#allocation59_spill] sm:$0xff] %v6398_v48  ;;  %v3748_v48 = vld [vmem:[%s5949_s13 + $0x28] sm:$0xff]  ;;  %v6434_v26 = vadd.f32 %v6187_v40, %v6411_v8 }
 0x1b0   : > { %11050 = vst [vmem:[#allocation60_spill] sm:$0xff] %v6400_v3  ;;  %666 = vmatmul.f32.gmra.mxu0 %v438_v30  ;;  %875 = vmatmul.f32.gmra.mxu1 %v438_v30  ;;  %v3764_v3 = vld [vmem:[%s5949_s13 + $0xa8] sm:$0xff]  ;;  %v1375_v6 = vmul.f32 %v6409_v13, %v6409_v13 }
 0x1b1   : > { %1084 = vmatmul.f32.gmra.mxu2 %v438_v30  ;;  %1293 = vmatmul.f32.gmra.mxu3 %v438_v30  ;;  %v1377_v40 = vmul.f32 %v6434_v26, %v6434_v26 }
 0x1b2   : > { %3817 = vmatpush.msrb.mxu0 %v3748_v48  ;;  %4026 = vmatpush.msrb.mxu1 %v3764_v3  ;;  %v6438_v48 = vadd.f32 %v6189_v41, %v6415_v23  ;;  %v6444_v3 = vadd.f32 %v6193_v44, %v6403_v27  ;;  %v6451_v41 = vadd.f32 %v6195_v45, %v6405_v31 }
 0x1b3   : > { %v1633_v45 = vmul.f32 %v1377_v40, %v6434_v26 }
 0x1b4   : > { %v6417_v39 = vpop.f32.mrf.mxu2  ;;  %v6419_v32 = vpop.f32.mrf.mxu3  ;;  %v1379_v63 = vmul.f32 %v6444_v3, %v6444_v3  ;;  %v1380_v53 = vmul.f32 %v6451_v41, %v6451_v41 }
 0x1b5   : > { %11051 = vst [vmem:[#allocation61_spill] sm:$0xff] %v6417_v39  ;;  %v6425_v30 = vpop.f32.mrf.mxu0  ;;  %v6427_v37 = vpop.f32.mrf.mxu1 }
 0x1b6   : > { %11052 = vst [vmem:[#allocation62_spill] sm:$0xff] %v6419_v32 }
 0x1b7   : > { %11053 = vst [vmem:[#allocation63_spill] sm:$0xff] %v6425_v30  ;;  %v1378_v30 = vmul.f32 %v6438_v48, %v6438_v48 }
 0x1b8   : > { %11054 = vst [vmem:[#allocation64_spill] sm:$0xff] %v6427_v37  ;;  %669 = vmatmul.f32.gmra.mxu0 %v439_v7  ;;  %878 = vmatmul.f32.gmra.mxu1 %v439_v7  ;;  %v1631_v37 = vmul.f32 %v1375_v6, %v6409_v13  ;;  %v440_v6 = vld [vmem:[%s5932_s26 + $0x138] sm:$0xff] }
 0x1b9   : > { %1087 = vmatmul.f32.gmra.mxu2 %v439_v7  ;;  %1296 = vmatmul.f32.gmra.mxu3 %v439_v7  ;;  %v1632_v7 = vmul.f32 %v1376_v38, %v6423_v18 }
 0x1ba   : > { %v1887_v58 = vmul.f32 0.044715, %v1631_v37  ;;  %v1635_v37 = vmul.f32 %v1379_v63, %v6444_v3 }
 0x1bb   : > { %v1888_v38 = vmul.f32 0.044715, %v1632_v7 }
 0x1bc   : > { %v6455_v32 = vpop.f32.mrf.mxu2  ;;  %v6457_v39 = vpop.f32.mrf.mxu3  ;;  %v2143_v40 = vadd.f32 %v1887_v58, %v6409_v13  ;;  %v441_v58 = vld [vmem:[%s5932_s26 + $0x140] sm:$0xff] }
 0x1bd   : > { %11055 = vst [vmem:[#allocation65_spill] sm:$0xff] %v6455_v32  ;;  %v6460_v44 = vpop.f32.mrf.mxu0  ;;  %v6462_v2 = vpop.f32.mrf.mxu1  ;;  %v1634_v32 = vmul.f32 %v1378_v30, %v6438_v48  ;;  %v1636_v30 = vmul.f32 %v1380_v53, %v6451_v41 }
 0x1be   : > { %11056 = vst [vmem:[#allocation66_spill] sm:$0xff] %v6457_v39  ;;  %v6473_v39 = vadd.f32 %v6200_v49, %v6411_v8  ;;  %v2399_v53 = vmul.f32 0.7978846, %v2143_v40 }
 0x1bf   : > { %11057 = vst [vmem:[#allocation67_spill] sm:$0xff] %v6460_v44  ;;  %v1889_v44 = vmul.f32 0.044715, %v1633_v45  ;;  %v1890_v47 = vmul.f32 0.044715, %v1634_v32 }
 0x1c0   : > { %11058 = vst [vmem:[#allocation68_spill] sm:$0xff] %v6462_v2  ;;  %672 = vmatmul.f32.gmra.mxu0 %v440_v6  ;;  %881 = vmatmul.f32.gmra.mxu1 %v440_v6  ;;  %v6477_v2 = vadd.f32 %v6202_v50, %v6415_v23  ;;  %v1381_v49 = vmul.f32 %v6473_v39, %v6473_v39  ;;  %v1891_v45 = vmul.f32 0.044715, %v1635_v37  ;;  %v1892_v42 = vmul.f32 0.044715, %v1636_v30 }
 0x1c1   : > { %1090 = vmatmul.f32.gmra.mxu2 %v440_v6  ;;  %1299 = vmatmul.f32.gmra.mxu3 %v440_v6  ;;  %v2144_v50 = vadd.f32 %v1888_v38, %v6423_v18  ;;  %v2145_v32 = vadd.f32 %v1889_v44, %v6434_v26  ;;  %5211 = vtanh.f32 %v2399_v53  ;;  %v3779_v53 = vld [vmem:[%s5949_s13 + $0x120] sm:$0xff] }
 0x1c2   : > { %v1382_v6 = vmul.f32 %v6477_v2, %v6477_v2  ;;  %v1637_v38 = vmul.f32 %v1381_v49, %v6473_v39  ;;  %v2148_v52 = vadd.f32 %v1892_v42, %v6451_v41  ;;  %v6526_v42 = vadd.f32 %v6211_v55, %v6415_v23  ;;  %4236 = vmatpush.msrb.mxu2 %v3779_v53  ;;  %v3763_v53 = vld [vmem:[%s5949_s13 + $0xa0] sm:$0xff] }
 0x1c3   : > { %v2400_v37 = vmul.f32 0.7978846, %v2144_v50  ;;  %v2401_v40 = vmul.f32 0.7978846, %v2145_v32  ;;  %v1384_v50 = vmul.f32 %v6505_v36, %v6505_v36  ;;  %v3795_v32 = vld [vmem:[%s5949_s13 + $0x1a0] sm:$0xff]  ;;  %4027 = vmatpush.msrb.mxu1 %v3763_v53 }
 0x1c4   : > { %v6484_v46 = vpop.f32.mrf.mxu2  ;;  %v6486_v7 = vpop.f32.mrf.mxu3  ;;  %v1638_v44 = vmul.f32 %v1382_v6, %v6477_v2  ;;  %v1893_v49 = vmul.f32 0.044715, %v1637_v38  ;;  %v6516_v6 = vadd.f32 %v6209_v54, %v6411_v8  ;;  %4445 = vmatpush.msrb.mxu3 %v3795_v32 }
 0x1c5   : > { %11059 = vst [vmem:[#allocation69_spill] sm:$0xff] %v6484_v46  ;;  %v6491_v43 = vpop.f32.mrf.mxu0  ;;  %v6493_v63 = vpop.f32.mrf.mxu1  ;;  %v6499_v46 = vadd.f32 %v6204_v51, %v6403_v27  ;;  %v2147_v51 = vadd.f32 %v1891_v45, %v6444_v3  ;;  %5213 = vtanh.f32 %v2400_v37  ;;  %v1640_v37 = vmul.f32 %v1384_v50, %v6505_v36  ;;  %v3747_v50 = vld [vmem:[%s5949_s13 + $0x20] sm:$0xff] }
 0x1c6   : > { %11060 = vst [vmem:[#allocation70_spill] sm:$0xff] %v6486_v7  ;;  %v2146_v7 = vadd.f32 %v1890_v47, %v6438_v48  ;;  %5215 = vtanh.f32 %v2401_v40  ;;  %v1385_v55 = vmul.f32 %v6516_v6, %v6516_v6  ;;  %3818 = vmatpush.msrb.mxu0 %v3747_v50 }
 0x1c7   : > { %11061 = vst [vmem:[#allocation71_spill] sm:$0xff] %v6491_v43  ;;  %v1383_v47 = vmul.f32 %v6499_v46, %v6499_v46  ;;  %v442_v43 = vld [vmem:[%s5932_s26 + $0x148] sm:$0xff]  ;;  %v2403_v54 = vmul.f32 0.7978846, %v2147_v51  ;;  %v1386_v51 = vmul.f32 %v6526_v42, %v6526_v42  ;;  %v1896_v32 = vmul.f32 0.044715, %v1640_v37 }
 0x1c8   : > { %11062 = vst [vmem:[#allocation72_spill] sm:$0xff] %v6493_v63  ;;  %675 = vmatmul.f32.gmra.mxu0 %v441_v58  ;;  %884 = vmatmul.f32.gmra.mxu1 %v441_v58  ;;  %v2402_v30 = vmul.f32 0.7978846, %v2146_v7  ;;  %v1894_v63 = vmul.f32 0.044715, %v1638_v44  ;;  %v2149_v44 = vadd.f32 %v1893_v49, %v6473_v39 }
 0x1c9   : > { %1093 = vmatmul.f32.gmra.mxu2 %v441_v58  ;;  %1302 = vmatmul.f32.gmra.mxu3 %v441_v58 }
 0x1ca   : > { %5217 = vtanh.f32 %v2402_v30  ;;  %v2150_v40 = vadd.f32 %v1894_v63, %v6477_v2 }
 0x1cb   : > { %5219 = vtanh.f32 %v2403_v54 }
 0x1cc   : > { %v6518_v58 = vpop.f32.mrf.mxu2  ;;  %v6520_v45 = vpop.f32.mrf.mxu3  ;;  %v2406_v37 = vmul.f32 0.7978846, %v2150_v40  ;;  %v2152_v40 = vadd.f32 %v1896_v32, %v6505_v36  ;;  %v6582_v32 = vadd.f32 %v6222_v61, %v6403_v27  ;;  %v444_v61 = vld [vmem:[%s5932_s26 + $0x158] sm:$0xff] }
 0x1cd   : > { %11063 = vst [vmem:[#allocation73_spill] sm:$0xff] %v6518_v58  ;;  %v6528_v7 = vpop.f32.mrf.mxu0  ;;  %v6530_v38 = vpop.f32.mrf.mxu1  ;;  %v1639_v58 = vmul.f32 %v1383_v47, %v6499_v46  ;;  %v6543_v47 = vadd.f32 %v6213_v56, %v6403_v27  ;;  %v2405_v56 = vmul.f32 0.7978846, %v2149_v44 }
 0x1ce   : > { %11064 = vst [vmem:[#allocation74_spill] sm:$0xff] %v6520_v45  ;;  %v2404_v45 = vmul.f32 0.7978846, %v2148_v52  ;;  %v6547_v52 = vadd.f32 %v6215_v57, %v6405_v31  ;;  %v1642_v57 = vmul.f32 %v1386_v51, %v6526_v42 }
 0x1cf   : > { %11065 = vst [vmem:[#allocation75_spill] sm:$0xff] %v6528_v7  ;;  %v1895_v49 = vmul.f32 0.044715, %v1639_v58  ;;  %v1641_v7 = vmul.f32 %v1385_v55, %v6516_v6  ;;  %v443_v58 = vld [vmem:[%s5932_s26 + $0x150] sm:$0xff]  ;;  %v1387_v55 = vmul.f32 %v6543_v47, %v6543_v47 }
 0x1d0   : > { %11066 = vst [vmem:[#allocation76_spill] sm:$0xff] %v6530_v38  ;;  %678 = vmatmul.f32.gmra.mxu0 %v442_v43  ;;  %887 = vmatmul.f32.gmra.mxu1 %v442_v43  ;;  %v5212_v38 = vpop.eup %5211  ;;  %5221 = vtanh.f32 %v2404_v45  ;;  %v1388_v50 = vmul.f32 %v6547_v52, %v6547_v52  ;;  %v6568_v45 = vadd.f32 %v6218_v59, %v6411_v8 }
 0x1d1   : > { %1096 = vmatmul.f32.gmra.mxu2 %v442_v43  ;;  %1305 = vmatmul.f32.gmra.mxu3 %v442_v43  ;;  %v5214_v30 = vpop.eup %5213  ;;  %v2911_v33 = vadd.f32 1.0, %v5212_v38  ;;  %v2151_v51 = vadd.f32 %v1895_v49, %v6499_v46  ;;  %5223 = vtanh.f32 %v2405_v56  ;;  %v1643_v59 = vmul.f32 %v1387_v55, %v6543_v47 }
 0x1d2   : > { %v5216_v35 = vpop.eup %5215  ;;  %v2912_v44 = vadd.f32 1.0, %v5214_v30  ;;  %5225 = vtanh.f32 %v2406_v37  ;;  %v1644_v30 = vmul.f32 %v1388_v50, %v6547_v52  ;;  %v6586_v56 = vadd.f32 %v6224_v62, %v6405_v31 }
 0x1d3   : > { %v5218_v29 = vpop.eup %5217  ;;  %v2913_v38 = vadd.f32 1.0, %v5216_v35  ;;  %v6578_v35 = vadd.f32 %v6220_v60, %v6415_v23  ;;  %v2408_v55 = vmul.f32 0.7978846, %v2152_v40 }
 0x1d4   : > { %v6552_v43 = vpop.f32.mrf.mxu2  ;;  %v6554_v63 = vpop.f32.mrf.mxu3  ;;  %v3168_v49 = vmul.f32 0.5, %v2912_v44  ;;  %v1900_v22 = vmul.f32 0.044715, %v1644_v30 }
 0x1d5   : > { %11067 = vst [vmem:[#allocation77_spill] sm:$0xff] %v6552_v43  ;;  %v6557_v54 = vpop.f32.mrf.mxu0  ;;  %v6559_v34 = vpop.f32.mrf.mxu1  ;;  %v2914_v43 = vadd.f32 1.0, %v5218_v29  ;;  %v3169_v37 = vmul.f32 0.5, %v2913_v38 }
 0x1d6   : > { %11068 = vst [vmem:[#allocation78_spill] sm:$0xff] %v6554_v63  ;;  %v5220_v53 = vpop.eup %5219  ;;  %v3167_v63 = vmul.f32 0.5, %v2911_v33  ;;  %v2407_v33 = vmul.f32 0.7978846, %v2151_v51  ;;  %v6604_v40 = vmul.f32 %v3168_v49, %v6423_v18 }
 0x1d7   : > { %11069 = vst [vmem:[#allocation79_spill] sm:$0xff] %v6557_v54  ;;  %v1897_v54 = vmul.f32 0.044715, %v1641_v7  ;;  %v5222_v28 = vpop.eup %5221  ;;  %v1389_v7 = vmul.f32 %v6568_v45, %v6568_v45  ;;  %v2915_v29 = vadd.f32 1.0, %v5220_v53  ;;  %v3170_v51 = vmul.f32 0.5, %v2914_v43 }
 0x1d8   : > { %11070 = vst [vmem:[#allocation80_spill] sm:$0xff] %v6559_v34  ;;  %681 = vmatmul.f32.gmra.mxu0 %v443_v58  ;;  %890 = vmatmul.f32.gmra.mxu1 %v443_v58  ;;  %v1898_v34 = vmul.f32 0.044715, %v1642_v57  ;;  %v6599_v53 = vmul.f32 %v3167_v63, %v6409_v13  ;;  %v2916_v25 = vadd.f32 1.0, %v5222_v28  ;;  %v5224_v24 = vpop.eup %5223  ;;  %v1391_v13 = vmul.f32 %v6582_v32, %v6582_v32 }
 0x1d9   : > { %1099 = vmatmul.f32.gmra.mxu2 %v443_v58  ;;  %1308 = vmatmul.f32.gmra.mxu3 %v443_v58  ;;  %v2153_v50 = vadd.f32 %v1897_v54, %v6516_v6  ;;  %v1645_v38 = vmul.f32 %v1389_v7, %v6568_v45  ;;  %11076 = vst [vmem:[#allocation86_spill] sm:$0xff] %v6604_v40  ;;  %v5226_v54 = vpop.eup %5225  ;;  %v3171_v63 = vmul.f32 0.5, %v2915_v29  ;;  %5227 = vtanh.f32 %v2407_v33 }
 0x1da   : > { %11075 = vst [vmem:[#allocation85_spill] sm:$0xff] %v6599_v53  ;;  %v2154_v62 = vadd.f32 %v1898_v34, %v6526_v42  ;;  %v1392_v28 = vmul.f32 %v6586_v56, %v6586_v56  ;;  %v6613_v34 = vmul.f32 %v3169_v37, %v6434_v26  ;;  %5229 = vtanh.f32 %v2408_v55 }
 0x1db   : > { %v2409_v18 = vmul.f32 0.7978846, %v2153_v50  ;;  %v6616_v43 = vmul.f32 %v3170_v51, %v6438_v48  ;;  %v2917_v30 = vadd.f32 1.0, %v5224_v24  ;;  %v1901_v49 = vmul.f32 0.044715, %v1645_v38 }
 0x1dc   : > { %v6588_v57 = vpop.f32.mrf.mxu2  ;;  %v6590_v58 = vpop.f32.mrf.mxu3  ;;  %11077 = vst [vmem:[#allocation87_spill] sm:$0xff] %v6613_v34  ;;  %v2410_v7 = vmul.f32 0.7978846, %v2154_v62  ;;  %v6620_v29 = vadd.f32 %v6227_v0, %v6411_v8  ;;  %v6624_v26 = vadd.f32 %v6229_v1, %v6415_v23  ;;  %v2918_v33 = vadd.f32 1.0, %v5226_v54 }
 0x1dd   : > { %11071 = vst [vmem:[#allocation81_spill] sm:$0xff] %v6588_v57  ;;  %v6593_v60 = vpop.f32.mrf.mxu0  ;;  %v6595_v44 = vpop.f32.mrf.mxu1  ;;  %v1899_v57 = vmul.f32 0.044715, %v1643_v59  ;;  %v3172_v59 = vmul.f32 0.5, %v2916_v25  ;;  %v1647_v55 = vmul.f32 %v1391_v13, %v6582_v32  ;;  %v6630_v25 = vadd.f32 %v6233_v4, %v6403_v27 }
 0x1de   : > { %11072 = vst [vmem:[#allocation82_spill] sm:$0xff] %v6590_v58  ;;  %v6633_v24 = vmul.f32 %v3171_v63, %v6444_v3  ;;  %v1648_v0 = vmul.f32 %v1392_v28, %v6586_v56  ;;  %v6638_v48 = vadd.f32 %v6235_v5, %v6405_v31  ;;  %5231 = vtanh.f32 %v2409_v18  ;;  %v445_v3 = vld [vmem:[%s5932_s26 + $0x160] sm:$0xff] }
 0x1df   : > { %11073 = vst [vmem:[#allocation83_spill] sm:$0xff] %v6593_v60  ;;  %v6651_v62 = vmul.f32 %v3172_v59, %v6451_v41  ;;  %v3173_v38 = vmul.f32 0.5, %v2917_v30  ;;  %5233 = vtanh.f32 %v2410_v7  ;;  %v2156_v5 = vadd.f32 %v1900_v22, %v6547_v52 }
 0x1e0   : > { %11074 = vst [vmem:[#allocation84_spill] sm:$0xff] %v6595_v44  ;;  %v1390_v44 = vmul.f32 %v6578_v35, %v6578_v35  ;;  %684 = vmatmul.f32.gmra.mxu0 %v444_v61  ;;  %893 = vmatmul.f32.gmra.mxu1 %v444_v61  ;;  %v1393_v13 = vmul.f32 %v6620_v29, %v6620_v29  ;;  %v3174_v63 = vmul.f32 0.5, %v2918_v33  ;;  %v1904_v22 = vmul.f32 0.044715, %v1648_v0 }
 0x1e1   : > { %1102 = vmatmul.f32.gmra.mxu2 %v444_v61  ;;  %1311 = vmatmul.f32.gmra.mxu3 %v444_v61  ;;  %11078 = vst [vmem:[#allocation88_spill] sm:$0xff] %v6616_v43  ;;  %v5228_v61 = vpop.eup %5227  ;;  %v2157_v28 = vadd.f32 %v1901_v49, %v6568_v45  ;;  %v1395_v41 = vmul.f32 %v6630_v25, %v6630_v25 }
 0x1e2   : > { %v1646_v37 = vmul.f32 %v1390_v44, %v6578_v35  ;;  %11079 = vst [vmem:[#allocation89_spill] sm:$0xff] %v6633_v24  ;;  %v2155_v44 = vadd.f32 %v1899_v57, %v6543_v47  ;;  %v5230_v54 = vpop.eup %5229  ;;  %v1394_v57 = vmul.f32 %v6624_v26, %v6624_v26  ;;  %v6663_v59 = vadd.f32 %v6240_v9, %v6411_v8 }
 0x1e3   : > { %11084 = vst [vmem:[#allocation94_spill] sm:$0xff] %v6651_v62  ;;  %v1396_v30 = vmul.f32 %v6638_v48, %v6638_v48  ;;  %v2919_v7 = vadd.f32 1.0, %v5228_v61  ;;  %v6669_v49 = vadd.f32 %v6242_v10, %v6415_v23  ;;  %v6672_v33 = vmul.f32 %v3173_v38, %v6473_v39  ;;  %v450_v62 = vld [vmem:[%s5932_s26 + $0x188] sm:$0xff] }
 0x1e4   : > { %v6640_v1 = vpop.f32.mrf.mxu2  ;;  %v6642_v50 = vpop.f32.mrf.mxu3  ;;  %v1902_v18 = vmul.f32 0.044715, %v1646_v37  ;;  %v2920_v9 = vadd.f32 1.0, %v5230_v54  ;;  %v2412_v37 = vmul.f32 0.7978846, %v2156_v5  ;;  %v1649_v0 = vmul.f32 %v1393_v13, %v6620_v29 }
 0x1e5   : > { %11080 = vst [vmem:[#allocation90_spill] sm:$0xff] %v6640_v1  ;;  %v6645_v51 = vpop.f32.mrf.mxu0  ;;  %v6647_v4 = vpop.f32.mrf.mxu1  ;;  %v2413_v61 = vmul.f32 0.7978846, %v2157_v28  ;;  %v1397_v39 = vmul.f32 %v6663_v59, %v6663_v59  ;;  %v6684_v38 = vadd.f32 %v6244_v11, %v6403_v27  ;;  %v6688_v5 = vadd.f32 %v6246_v12, %v6405_v31  ;;  %v446_v12 = vld [vmem:[%s5932_s26 + $0x168] sm:$0xff] }
 0x1e6   : > { %11081 = vst [vmem:[#allocation91_spill] sm:$0xff] %v6642_v50  ;;  %v1650_v50 = vmul.f32 %v1394_v57, %v6624_v26  ;;  %v1652_v54 = vmul.f32 %v1396_v30, %v6638_v48  ;;  %v3778_v57 = vld [vmem:[%s5949_s13 + $0x118] sm:$0xff]  ;;  %v3175_v28 = vmul.f32 0.5, %v2919_v7  ;;  %v1398_v11 = vmul.f32 %v6669_v49, %v6669_v49 }
 0x1e7   : > { %11082 = vst [vmem:[#allocation92_spill] sm:$0xff] %v6645_v51  ;;  %v2411_v51 = vmul.f32 0.7978846, %v2155_v44  ;;  %v6677_v44 = vmul.f32 %v3174_v63, %v6477_v2  ;;  %v3794_v63 = vld [vmem:[%s5949_s13 + $0x198] sm:$0xff]  ;;  %4237 = vmatpush.msrb.mxu2 %v3778_v57  ;;  %v3176_v30 = vmul.f32 0.5, %v2920_v9 }
 0x1e8   : > { %11083 = vst [vmem:[#allocation93_spill] sm:$0xff] %v6647_v4  ;;  %v1903_v4 = vmul.f32 0.044715, %v1647_v55  ;;  %687 = vmatmul.f32.gmra.mxu0 %v445_v3  ;;  %896 = vmatmul.f32.gmra.mxu1 %v445_v3  ;;  %v5232_v55 = vpop.eup %5231  ;;  %v1906_v7 = vmul.f32 0.044715, %v1650_v50  ;;  %v6716_v9 = vmul.f32 %v3175_v28, %v6499_v46  ;;  %v1654_v50 = vmul.f32 %v1398_v11, %v6669_v49  ;;  %v3762_v28 = vld [vmem:[%s5949_s13 + $0x98] sm:$0xff] }
 0x1e9   : > { %1105 = vmatmul.f32.gmra.mxu2 %v445_v3  ;;  %1314 = vmatmul.f32.gmra.mxu3 %v445_v3  ;;  %11085 = vst [vmem:[#allocation95_spill] sm:$0xff] %v6672_v33  ;;  %v5234_v10 = vpop.eup %5233  ;;  %v1651_v3 = vmul.f32 %v1395_v41, %v6630_v25  ;;  %5235 = vtanh.f32 %v2411_v51  ;;  %v2158_v41 = vadd.f32 %v1902_v18, %v6578_v35  ;;  %v6713_v57 = vmul.f32 0.044715, %v1652_v54 }
 0x1ea   : > { %11086 = vst [vmem:[#allocation96_spill] sm:$0xff] %v6677_v44  ;;  %4446 = vmatpush.msrb.mxu3 %v3794_v63  ;;  %5237 = vtanh.f32 %v2412_v37  ;;  %v2922_v58 = vadd.f32 1.0, %v5234_v10  ;;  %v2159_v51 = vadd.f32 %v1903_v4, %v6582_v32  ;;  %v1653_v18 = vmul.f32 %v1397_v39, %v6663_v59  ;;  %4028 = vmatpush.msrb.mxu1 %v3762_v28 }
 0x1eb   : > { %5239 = vtanh.f32 %v2413_v61  ;;  %v1399_v44 = vmul.f32 %v6684_v38, %v6684_v38  ;;  %11091 = vst [vmem:[#allocation101_spill] sm:$0xff] %v6716_v9  ;;  %v2414_v37 = vmul.f32 0.7978846, %v2158_v41  ;;  %v6720_v4 = vmul.f32 %v3176_v30, %v6505_v36 }
 0x1ec   : > { %v6691_v2 = vpop.f32.mrf.mxu2  ;;  %v6693_v13 = vpop.f32.mrf.mxu3  ;;  %v6725_v10 = vadd.f32 %v6249_v14, %v6411_v8  ;;  %v6729_v46 = vadd.f32 %v6251_v15, %v6415_v23  ;;  %v2415_v39 = vmul.f32 0.7978846, %v2159_v51  ;;  %v6731_v63 = vmul.f32 0.044715, %v1653_v18 }
 0x1ed   : > { %11087 = vst [vmem:[#allocation97_spill] sm:$0xff] %v6691_v2  ;;  %v6700_v1 = vpop.f32.mrf.mxu0  ;;  %v6702_v60 = vpop.f32.mrf.mxu1  ;;  %v2921_v2 = vadd.f32 1.0, %v5232_v55  ;;  %v1655_v36 = vmul.f32 %v1399_v44, %v6684_v38  ;;  %v6740_v11 = vadd.f32 %v6253_v16, %v6403_v27  ;;  %v6744_v15 = vadd.f32 %v6255_v17, %v6405_v31  ;;  %v447_v16 = vld [vmem:[%s5932_s26 + $0x170] sm:$0xff] }
 0x1ee   : > { %11088 = vst [vmem:[#allocation98_spill] sm:$0xff] %v6693_v13  ;;  %v1905_v13 = vmul.f32 0.044715, %v1649_v0  ;;  %v2160_v0 = vadd.f32 %v1904_v22, %v6586_v56  ;;  %v3746_v22 = vld [vmem:[%s5949_s13 + $0x18] sm:$0xff]  ;;  %5241 = vtanh.f32 %v2414_v37  ;;  %v6751_v44 = vmul.f32 0.044715, %v1654_v50 }
 0x1ef   : > { %11089 = vst [vmem:[#allocation99_spill] sm:$0xff] %v6700_v1  ;;  %v6711_v1 = vmul.f32 0.044715, %v1651_v3  ;;  %v3177_v55 = vmul.f32 0.5, %v2921_v2  ;;  %v5236_v61 = vpop.eup %5235  ;;  %v3178_v3 = vmul.f32 0.5, %v2922_v58  ;;  %3819 = vmatpush.msrb.mxu0 %v3746_v22  ;;  %v1402_v37 = vmul.f32 %v6729_v46, %v6729_v46 }
 0x1f0   : > { %11090 = vst [vmem:[#allocation100_spill] sm:$0xff] %v6702_v60  ;;  %v1400_v60 = vmul.f32 %v6688_v5, %v6688_v5  ;;  %690 = vmatmul.f32.gmra.mxu0 %v446_v12  ;;  %899 = vmatmul.f32.gmra.mxu1 %v446_v12  ;;  %v5238_v54 = vpop.eup %5237  ;;  %v2161_v41 = vadd.f32 %v1905_v13, %v6620_v29  ;;  %v2923_v17 = vadd.f32 1.0, %v5236_v61  ;;  %v2416_v18 = vmul.f32 0.7978846, %v2160_v0 }
 0x1f1   : > { %1108 = vmatmul.f32.gmra.mxu2 %v446_v12  ;;  %1317 = vmatmul.f32.gmra.mxu3 %v446_v12  ;;  %11092 = vst [vmem:[#allocation102_spill] sm:$0xff] %v6720_v4  ;;  %v5240_v14 = vpop.eup %5239  ;;  %v6759_v51 = vmul.f32 %v3177_v55, %v6516_v6  ;;  %v2924_v22 = vadd.f32 1.0, %v5238_v54  ;;  %5243 = vtanh.f32 %v2415_v39  ;;  %v6768_v50 = vmul.f32 %v3178_v3, %v6526_v42  ;;  %v11121_v4 = vld [vmem:[#allocation16_spill] sm:$0xff] }
 0x1f2   : > { %v1656_v2 = vmul.f32 %v1400_v60, %v6688_v5  ;;  %v2162_v60 = vadd.f32 %v1906_v7, %v6624_v26  ;;  %v6765_v7 = vmul.f32 0.044715, %v1655_v36  ;;  %v2925_v28 = vadd.f32 1.0, %v5240_v14 }
 0x1f3   : > { %11097 = vst [vmem:[#allocation107_spill] sm:$0xff] %v6759_v51  ;;  %v1403_v6 = vmul.f32 %v6740_v11, %v6740_v11  ;;  %v1404_v55 = vmul.f32 %v6744_v15, %v6744_v15  ;;  %v6778_v61 = vadd.f32 %v6258_v19, %v6411_v8  ;;  %v6782_v42 = vadd.f32 %v6260_v20, %v6415_v23 }
 0x1f4   : > { %v6746_v58 = vpop.f32.mrf.mxu2  ;;  %v6748_v12 = vpop.f32.mrf.mxu3  ;;  %11098 = vst [vmem:[#allocation108_spill] sm:$0xff] %v6768_v50  ;;  %v2418_v0 = vmul.f32 0.7978846, %v2162_v60  ;;  %v3179_v3 = vmul.f32 0.5, %v2923_v17  ;;  %5245 = vtanh.f32 %v2416_v18  ;;  %v1658_v36 = vmul.f32 %v1402_v37, %v6729_v46  ;;  %v11099_v17 = vld [vmem:[#allocation8_spill] sm:$0xff] }
 0x1f5   : > { %11093 = vst [vmem:[#allocation103_spill] sm:$0xff] %v6746_v58  ;;  %v6753_v13 = vpop.f32.mrf.mxu0  ;;  %v6755_v30 = vpop.f32.mrf.mxu1  ;;  %v6790_v19 = vadd.f32 %v6262_v21, %v6403_v27  ;;  %v3181_v20 = vmul.f32 0.5, %v2925_v28  ;;  %v2164_v14 = vadd.f32 %v6713_v57, %v6638_v48  ;;  %v6798_v18 = vadd.f32 %v11099_v17, %v6405_v31  ;;  %v448_v28 = vld [vmem:[%s5932_s26 + $0x178] sm:$0xff] }
 0x1f6   : > { %11094 = vst [vmem:[#allocation104_spill] sm:$0xff] %v6748_v12  ;;  %v1401_v12 = vmul.f32 %v6725_v10, %v6725_v10  ;;  %v5242_v39 = vpop.eup %5241  ;;  %v1405_v21 = vmul.f32 %v6778_v61, %v6778_v61  ;;  %v1406_v57 = vmul.f32 %v6782_v42, %v6782_v42  ;;  %v6823_v50 = vmul.f32 0.044715, %v1658_v36 }
 0x1f7   : > { %11095 = vst [vmem:[#allocation105_spill] sm:$0xff] %v6753_v13  ;;  %v6770_v13 = vmul.f32 0.044715, %v1656_v2  ;;  %v3180_v2 = vmul.f32 0.5, %v2924_v22  ;;  %v5244_v60 = vpop.eup %5243  ;;  %v2420_v51 = vmul.f32 0.7978846, %v2164_v14  ;;  %v6915_v9 = vadd.f32 %v11121_v4, %v6405_v31 }
 0x1f8   : > { %11096 = vst [vmem:[#allocation106_spill] sm:$0xff] %v6755_v30  ;;  %v2417_v30 = vmul.f32 0.7978846, %v2161_v41  ;;  %693 = vmatmul.f32.gmra.mxu0 %v447_v16  ;;  %902 = vmatmul.f32.gmra.mxu1 %v447_v16  ;;  %v1657_v54 = vmul.f32 %v1401_v12, %v6725_v10  ;;  %v2163_v41 = vadd.f32 %v6711_v1, %v6630_v25 }
 0x1f9   : > { %1111 = vmatmul.f32.gmra.mxu2 %v447_v16  ;;  %1320 = vmatmul.f32.gmra.mxu3 %v447_v16  ;;  %v1659_v16 = vmul.f32 %v1403_v6, %v6740_v11  ;;  %v1660_v12 = vmul.f32 %v1404_v55, %v6744_v15  ;;  %v6814_v6 = vmul.f32 %v3179_v3, %v6543_v47  ;;  %v2926_v55 = vadd.f32 1.0, %v5242_v39 }
 0x1fa   : > { %5247 = vtanh.f32 %v2417_v30  ;;  %v6816_v17 = vmul.f32 0.044715, %v1657_v54  ;;  %v5246_v58 = vpop.eup %5245  ;;  %v6834_v39 = vmul.f32 %v3181_v20, %v6568_v45  ;;  %v1661_v54 = vmul.f32 %v1405_v21, %v6778_v61  ;;  %v11109_v21 = vld [vmem:[#allocation11_spill] sm:$0xff] }
 0x1fb   : > { %5249 = vtanh.f32 %v2418_v0  ;;  %11104 = vst [vmem:[#allocation112_spill] sm:$0xff] %v6814_v6  ;;  %v2419_v0 = vmul.f32 0.7978846, %v2163_v41  ;;  %v6827_v47 = vmul.f32 0.044715, %v1659_v16  ;;  %v1662_v36 = vmul.f32 %v1406_v57, %v6782_v42  ;;  %v11108_v16 = vld [vmem:[#allocation10_spill] sm:$0xff] }
 0x1fc   : > { %v6800_v1 = vpop.f32.mrf.mxu2  ;;  %v6802_v37 = vpop.f32.mrf.mxu3  ;;  %v6829_v3 = vmul.f32 0.044715, %v1660_v12  ;;  %11106 = vst [vmem:[#allocation114_spill] sm:$0xff] %v6834_v39  ;;  %v3182_v14 = vmul.f32 0.5, %v2926_v55  ;;  %v6844_v12 = vadd.f32 %v11108_v16, %v6415_v23  ;;  %v6849_v57 = vadd.f32 %v11109_v21, %v6403_v27  ;;  %v11110_v55 = vld [vmem:[#allocation12_spill] sm:$0xff] }
 0x1fd   : > { %11100 = vst [vmem:[#allocation8_spill] sm:$0xff] %v6800_v1  ;;  %v6808_v30 = vpop.f32.mrf.mxu0  ;;  %v6810_v22 = vpop.f32.mrf.mxu1  ;;  %v2165_v1 = vadd.f32 %v6731_v63, %v6663_v59  ;;  %5251 = vtanh.f32 %v2419_v0  ;;  %v6854_v39 = vadd.f32 %v11110_v55, %v6405_v31  ;;  %v6878_v6 = vmul.f32 0.044715, %v1662_v36 }
 0x1fe   : > { %11101 = vst [vmem:[#allocation109_spill] sm:$0xff] %v6802_v37  ;;  %v6819_v37 = vmul.f32 %v3180_v2, %v6547_v52  ;;  %v1408_v52 = vmul.f32 %v6798_v18, %v6798_v18  ;;  %v11107_v2 = vld [vmem:[#allocation9_spill] sm:$0xff]  ;;  %5253 = vtanh.f32 %v2420_v51 }
 0x1ff   : > { %11102 = vst [vmem:[#allocation110_spill] sm:$0xff] %v6808_v30  ;;  %v2927_v30 = vadd.f32 1.0, %v5244_v60  ;;  %v6840_v41 = vadd.f32 %v11107_v2, %v6411_v8  ;;  %v2421_v45 = vmul.f32 0.7978846, %v2165_v1  ;;  %v2166_v1 = vadd.f32 %v6751_v44, %v6669_v49 }
 0x200   : > { %11103 = vst [vmem:[#allocation111_spill] sm:$0xff] %v6810_v22  ;;  %v1407_v22 = vmul.f32 %v6790_v19, %v6790_v19  ;;  %696 = vmatmul.f32.gmra.mxu0 %v448_v28  ;;  %905 = vmatmul.f32.gmra.mxu1 %v448_v28  ;;  %v5248_v63 = vpop.eup %5247  ;;  %v1410_v44 = vmul.f32 %v6844_v12, %v6844_v12 }
 0x201   : > { %11105 = vst [vmem:[#allocation113_spill] sm:$0xff] %v6819_v37  ;;  %1114 = vmatmul.f32.gmra.mxu2 %v448_v28  ;;  %1323 = vmatmul.f32.gmra.mxu3 %v448_v28  ;;  %v5250_v60 = vpop.eup %5249  ;;  %v2928_v37 = vadd.f32 1.0, %v5246_v58  ;;  %v3183_v2 = vmul.f32 0.5, %v2927_v30  ;;  %v1664_v28 = vmul.f32 %v1408_v52, %v6798_v18  ;;  %v2929_v0 = vadd.f32 1.0, %v5248_v63  ;;  %v449_v30 = vld [vmem:[%s5932_s26 + $0x180] sm:$0xff] }
 0x202   : > { %v1663_v20 = vmul.f32 %v1407_v22, %v6790_v19  ;;  %v1409_v22 = vmul.f32 %v6840_v41, %v6840_v41  ;;  %v6870_v52 = vmul.f32 %v3182_v14, %v6578_v35  ;;  %v2930_v55 = vadd.f32 1.0, %v5250_v60 }
 0x203   : > { %v3184_v63 = vmul.f32 0.5, %v2928_v37  ;;  %5255 = vtanh.f32 %v2421_v45  ;;  %v6885_v35 = vmul.f32 %v3183_v2, %v6582_v32  ;;  %v5252_v14 = vpop.eup %5251  ;;  %v6887_v60 = vmul.f32 0.044715, %v1664_v28 }
 0x204   : > { %v6856_v16 = vpop.f32.mrf.mxu2  ;;  %v6858_v58 = vpop.f32.mrf.mxu3  ;;  %11115 = vst [vmem:[#allocation115_spill] sm:$0xff] %v6870_v52  ;;  %v3185_v37 = vmul.f32 0.5, %v2929_v0  ;;  %v1665_v45 = vmul.f32 %v1409_v22, %v6840_v41  ;;  %v2168_v2 = vadd.f32 %v6770_v13, %v6688_v5  ;;  %v1666_v28 = vmul.f32 %v1410_v44, %v6844_v12  ;;  %v11118_v0 = vld [vmem:[#allocation14_spill] sm:$0xff] }
 0x205   : > { %11111 = vst [vmem:[#allocation9_spill] sm:$0xff] %v6856_v16  ;;  %v6864_v21 = vpop.f32.mrf.mxu0  ;;  %v6866_v51 = vpop.f32.mrf.mxu1  ;;  %v2167_v16 = vadd.f32 %v6765_v7, %v6684_v38  ;;  %v1412_v7 = vmul.f32 %v6854_v39, %v6854_v39  ;;  %v6904_v22 = vmul.f32 %v3184_v63, %v6586_v56  ;;  %v2931_v13 = vadd.f32 1.0, %v5252_v14  ;;  %v3777_v63 = vld [vmem:[%s5949_s13 + $0x110] sm:$0xff] }
 0x206   : > { %11112 = vst [vmem:[#allocation10_spill] sm:$0xff] %v6858_v58  ;;  %v6874_v58 = vmul.f32 0.044715, %v1661_v54  ;;  %v2422_v54 = vmul.f32 0.7978846, %v2166_v1  ;;  %v5254_v36 = vpop.eup %5253  ;;  %v6901_v1 = vadd.f32 %v11118_v0, %v6415_v23  ;;  %v2169_v44 = vadd.f32 %v6816_v17, %v6725_v10  ;;  %4238 = vmatpush.msrb.mxu2 %v3777_v63 }
 0x207   : > { %11113 = vst [vmem:[#allocation11_spill] sm:$0xff] %v6864_v21  ;;  %v6880_v21 = vmul.f32 0.044715, %v1663_v20  ;;  %v3186_v20 = vmul.f32 0.5, %v2930_v55  ;;  %v2423_v32 = vmul.f32 0.7978846, %v2167_v16  ;;  %v1668_v14 = vmul.f32 %v1412_v7, %v6854_v39 }
 0x208   : > { %11114 = vst [vmem:[#allocation12_spill] sm:$0xff] %v6866_v51  ;;  %v1411_v51 = vmul.f32 %v6849_v57, %v6849_v57  ;;  %699 = vmatmul.f32.gmra.mxu0 %v449_v30  ;;  %908 = vmatmul.f32.gmra.mxu1 %v449_v30  ;;  %v11120_v16 = vld [vmem:[#allocation15_spill] sm:$0xff]  ;;  %5257 = vtanh.f32 %v2422_v54  ;;  %v6932_v4 = vmul.f32 %v3185_v37, %v6620_v29  ;;  %v2425_v37 = vmul.f32 0.7978846, %v2169_v44 }
 0x209   : > { %11116 = vst [vmem:[#allocation116_spill] sm:$0xff] %v6885_v35  ;;  %1117 = vmatmul.f32.gmra.mxu2 %v449_v30  ;;  %1326 = vmatmul.f32.gmra.mxu3 %v449_v30  ;;  %v11117_v35 = vld [vmem:[#allocation13_spill] sm:$0xff]  ;;  %v6909_v55 = vadd.f32 %v11120_v16, %v6403_v27  ;;  %v2170_v16 = vadd.f32 %v6823_v50, %v6729_v46  ;;  %5259 = vtanh.f32 %v2423_v32  ;;  %v3187_v32 = vmul.f32 0.5, %v2931_v13 }
 0x20a   : > { %v6897_v52 = vadd.f32 %v11117_v35, %v6411_v8  ;;  %11119 = vst [vmem:[#allocation13_spill] sm:$0xff] %v6904_v22  ;;  %v1667_v30 = vmul.f32 %v1411_v51, %v6849_v57  ;;  %v5256_v35 = vpop.eup %5255  ;;  %v3793_v51 = vld [vmem:[%s5949_s13 + $0x190] sm:$0xff]  ;;  %v2932_v22 = vadd.f32 1.0, %v5254_v36  ;;  %v1414_v50 = vmul.f32 %v6901_v1, %v6901_v1 }
 0x20b   : > { %4447 = vmatpush.msrb.mxu3 %v3793_v51  ;;  %11126 = vst [vmem:[#allocation118_spill] sm:$0xff] %v6932_v4  ;;  %v6941_v7 = vmul.f32 %v3186_v20, %v6624_v26  ;;  %v6943_v36 = vmul.f32 0.044715, %v1666_v28  ;;  %v1415_v63 = vmul.f32 %v6909_v55, %v6909_v55  ;;  %v2933_v29 = vadd.f32 1.0, %v5256_v35  ;;  %v11128_v26 = vld [vmem:[#allocation17_spill] sm:$0xff]  ;;  %v11130_v28 = vld [vmem:[#allocation18_spill] sm:$0xff] }
 0x20c   : > { %v6917_v0 = vpop.f32.mrf.mxu2  ;;  %v6919_v56 = vpop.f32.mrf.mxu3  ;;  %v1413_v54 = vmul.f32 %v6897_v52, %v6897_v52  ;;  %v2426_v51 = vmul.f32 0.7978846, %v2170_v16  ;;  %v6953_v20 = vadd.f32 %v11128_v26, %v6411_v8  ;;  %v6957_v35 = vadd.f32 %v11130_v28, %v6415_v23  ;;  %v3745_v4 = vld [vmem:[%s5949_s13 + $0x10] sm:$0xff] }
 0x20d   : > { %11122 = vst [vmem:[#allocation14_spill] sm:$0xff] %v6917_v0  ;;  %v6926_v33 = vpop.f32.mrf.mxu0  ;;  %v6928_v17 = vpop.f32.mrf.mxu1  ;;  %v6934_v0 = vmul.f32 0.044715, %v1665_v45  ;;  %v1416_v45 = vmul.f32 %v6915_v9, %v6915_v9  ;;  %v1670_v13 = vmul.f32 %v1414_v50, %v6901_v1  ;;  %v3761_v28 = vld [vmem:[%s5949_s13 + $0x90] sm:$0xff]  ;;  %v3189_v24 = vmul.f32 0.5, %v2933_v29  ;;  %3820 = vmatpush.msrb.mxu0 %v3745_v4 }
 0x20e   : > { %11123 = vst [vmem:[#allocation15_spill] sm:$0xff] %v6919_v56  ;;  %v2424_v56 = vmul.f32 0.7978846, %v2168_v2  ;;  %v3188_v2 = vmul.f32 0.5, %v2932_v22  ;;  %v5258_v44 = vpop.eup %5257  ;;  %v1669_v22 = vmul.f32 %v1413_v54, %v6897_v52  ;;  %4029 = vmatpush.msrb.mxu1 %v3761_v28  ;;  %v6978_v50 = vmul.f32 %v3187_v32, %v6630_v25  ;;  %v451_v25 = vld [vmem:[%s5932_s26 + $0x190] sm:$0xff] }
 0x20f   : > { %11124 = vst [vmem:[#allocation16_spill] sm:$0xff] %v6926_v33  ;;  %v6959_v33 = vmul.f32 0.044715, %v1668_v14  ;;  %v5260_v26 = vpop.eup %5259  ;;  %v1417_v29 = vmul.f32 %v6953_v20, %v6953_v20  ;;  %v2934_v32 = vadd.f32 1.0, %v5258_v44  ;;  %v11142_v44 = vld [vmem:[#allocation21_spill] sm:$0xff] }
 0x210   : > { %11125 = vst [vmem:[#allocation117_spill] sm:$0xff] %v6928_v17  ;;  %702 = vmatmul.f32.gmra.mxu0 %v450_v62  ;;  %911 = vmatmul.f32.gmra.mxu1 %v450_v62  ;;  %v6949_v17 = vmul.f32 0.044715, %v1667_v30  ;;  %5261 = vtanh.f32 %v2424_v56  ;;  %v11132_v30 = vld [vmem:[#allocation19_spill] sm:$0xff]  ;;  %v1672_v56 = vmul.f32 %v1416_v45, %v6915_v9  ;;  %v6996_v28 = vmul.f32 0.044715, %v1669_v22 }
 0x211   : > { %11127 = vst [vmem:[#allocation119_spill] sm:$0xff] %v6941_v7  ;;  %1120 = vmatmul.f32.gmra.mxu2 %v450_v62  ;;  %1329 = vmatmul.f32.gmra.mxu3 %v450_v62  ;;  %v6965_v16 = vadd.f32 %v11132_v30, %v6403_v27  ;;  %v1671_v7 = vmul.f32 %v1415_v63, %v6909_v55  ;;  %5263 = vtanh.f32 %v2425_v37  ;;  %v11138_v37 = vld [vmem:[#allocation20_spill] sm:$0xff] }
 0x212   : > { %11129 = vst [vmem:[#allocation17_spill] sm:$0xff] %v6953_v20  ;;  %v2171_v62 = vadd.f32 %v6827_v47, %v6740_v11  ;;  %v6981_v63 = vmul.f32 %v3188_v2, %v6638_v48  ;;  %5265 = vtanh.f32 %v2426_v51  ;;  %v1418_v47 = vmul.f32 %v6957_v35, %v6957_v35 }
 0x213   : > { %11131 = vst [vmem:[#allocation18_spill] sm:$0xff] %v6957_v35  ;;  %v6989_v45 = vadd.f32 %v11138_v37, %v6405_v31  ;;  %v1419_v48 = vmul.f32 %v6965_v16, %v6965_v16  ;;  %v2935_v2 = vadd.f32 1.0, %v5260_v26  ;;  %v2172_v51 = vadd.f32 %v6829_v3, %v6744_v15  ;;  %v11143_v26 = vld [vmem:[#allocation22_spill] sm:$0xff] }
 0x214   : > { %11133 = vst [vmem:[#allocation19_spill] sm:$0xff] %v6965_v16  ;;  %v6973_v14 = vpop.f32.mrf.mxu2  ;;  %v6975_v54 = vpop.f32.mrf.mxu3  ;;  %v7004_v37 = vmul.f32 0.044715, %v1671_v7  ;;  %v7013_v22 = vadd.f32 %v11142_v44, %v6411_v8  ;;  %v2173_v3 = vadd.f32 %v6874_v58, %v6778_v61  ;;  %v11144_v58 = vld [vmem:[#allocation23_spill] sm:$0xff] }
 0x215   : > { %11134 = vst [vmem:[#allocation120_spill] sm:$0xff] %v6973_v14  ;;  %v6991_v30 = vpop.f32.mrf.mxu0  ;;  %v6993_v4 = vpop.f32.mrf.mxu1  ;;  %v7002_v14 = vmul.f32 0.044715, %v1670_v13  ;;  %v1420_v13 = vmul.f32 %v6989_v45, %v6989_v45  ;;  %v1675_v44 = vmul.f32 %v1419_v48, %v6965_v16  ;;  %v2428_v43 = vmul.f32 0.7978846, %v2172_v51 }
 0x216   : > { %11135 = vst [vmem:[#allocation121_spill] sm:$0xff] %v6975_v54  ;;  %v5262_v54 = vpop.eup %5261  ;;  %v7028_v34 = vadd.f32 %v11144_v58, %v6403_v27  ;;  %v2429_v58 = vmul.f32 0.7978846, %v2173_v3  ;;  %v2175_v3 = vadd.f32 %v6880_v21, %v6790_v19 }
 0x217   : > { %11136 = vst [vmem:[#allocation122_spill] sm:$0xff] %v6978_v50  ;;  %v7017_v50 = vadd.f32 %v11143_v26, %v6415_v23  ;;  %v5264_v7 = vpop.eup %5263  ;;  %v3191_v26 = vmul.f32 0.5, %v2935_v2  ;;  %v7068_v21 = vmul.f32 0.044715, %v1675_v44 }
 0x218   : > { %11137 = vst [vmem:[#allocation123_spill] sm:$0xff] %v6981_v63  ;;  %v7009_v63 = vmul.f32 0.044715, %v1672_v56  ;;  %705 = vmatmul.f32.gmra.mxu0 %v451_v25  ;;  %914 = vmatmul.f32.gmra.mxu1 %v451_v25  ;;  %v5266_v56 = vpop.eup %5265  ;;  %v2937_v51 = vadd.f32 1.0, %v5264_v7  ;;  %v1423_v7 = vmul.f32 %v7028_v34, %v7028_v34  ;;  %v2431_v44 = vmul.f32 0.7978846, %v2175_v3 }
 0x219   : > { %11139 = vst [vmem:[#allocation20_spill] sm:$0xff] %v6991_v30  ;;  %v7007_v30 = vmul.f32 %v3189_v24, %v6663_v59  ;;  %v1673_v24 = vmul.f32 %v1417_v29, %v6953_v20  ;;  %v1674_v59 = vmul.f32 %v1418_v47, %v6957_v35  ;;  %1123 = vmatmul.f32.gmra.mxu2 %v451_v25  ;;  %v11145_v29 = vld [vmem:[#allocation24_spill] sm:$0xff]  ;;  %v2938_v35 = vadd.f32 1.0, %v5266_v56 }
 0x21a   : > { %11140 = vst [vmem:[#allocation124_spill] sm:$0xff] %v6993_v4  ;;  %v2427_v4 = vmul.f32 0.7978846, %v2171_v62  ;;  %1332 = vmatmul.f32.gmra.mxu3 %v451_v25  ;;  %v3190_v62 = vmul.f32 0.5, %v2934_v32  ;;  %v7032_v47 = vadd.f32 %v11145_v29, %v6405_v31  ;;  %v2174_v25 = vadd.f32 %v6878_v6, %v6782_v42  ;;  %v452_v6 = vld [vmem:[%s5932_s26 + $0x198] sm:$0xff] }
 0x21b   : > { %11141 = vst [vmem:[#allocation125_spill] sm:$0xff] %v7007_v30  ;;  %v2936_v30 = vadd.f32 1.0, %v5262_v54  ;;  %v1421_v32 = vmul.f32 %v7013_v22, %v7013_v22  ;;  %v1422_v54 = vmul.f32 %v7017_v50, %v7017_v50  ;;  %v7044_v40 = vmul.f32 0.044715, %v1673_v24 }
 0x21c   : > { %11146 = vst [vmem:[#allocation21_spill] sm:$0xff] %v7032_v47  ;;  %5267 = vtanh.f32 %v2427_v4  ;;  %v7040_v48 = vpop.f32.mrf.mxu2  ;;  %v7042_v2 = vpop.f32.mrf.mxu3  ;;  %v1676_v29 = vmul.f32 %v1420_v13, %v6989_v45  ;;  %v7053_v16 = vmul.f32 %v3190_v62, %v6669_v49  ;;  %v7055_v20 = vmul.f32 0.044715, %v1674_v59 }
 0x21d   : > { %11147 = vst [vmem:[#allocation22_spill] sm:$0xff] %v7040_v48  ;;  %v7047_v4 = vpop.f32.mrf.mxu0  ;;  %v7049_v53 = vpop.f32.mrf.mxu1  ;;  %v3192_v48 = vmul.f32 0.5, %v2936_v30  ;;  %5269 = vtanh.f32 %v2428_v43  ;;  %v1424_v24 = vmul.f32 %v7032_v47, %v7032_v47  ;;  %v7064_v13 = vmul.f32 %v3191_v26, %v6684_v38  ;;  %v11153_v26 = vld [vmem:[#allocation25_spill] sm:$0xff] }
 0x21e   : > { %11148 = vst [vmem:[#allocation23_spill] sm:$0xff] %v7042_v2  ;;  %v1677_v49 = vmul.f32 %v1421_v32, %v7013_v22  ;;  %v1678_v59 = vmul.f32 %v1422_v54, %v7017_v50  ;;  %v3193_v43 = vmul.f32 0.5, %v2937_v51  ;;  %5271 = vtanh.f32 %v2429_v58  ;;  %v11155_v32 = vld [vmem:[#allocation26_spill] sm:$0xff] }
 0x21f   : > { %11149 = vst [vmem:[#allocation24_spill] sm:$0xff] %v7047_v4  ;;  %v7070_v62 = vmul.f32 0.044715, %v1676_v29  ;;  %v3194_v56 = vmul.f32 0.5, %v2938_v35  ;;  %v2176_v38 = vadd.f32 %v6887_v60, %v6798_v18  ;;  %v7080_v54 = vadd.f32 %v11155_v32, %v6415_v23  ;;  %v11158_v29 = vld [vmem:[#allocation27_spill] sm:$0xff] }
 0x220   : > { %11150 = vst [vmem:[#allocation126_spill] sm:$0xff] %v7049_v53  ;;  %v2430_v53 = vmul.f32 0.7978846, %v2174_v25  ;;  %708 = vmatmul.f32.gmra.mxu0 %v452_v6  ;;  %917 = vmatmul.f32.gmra.mxu1 %v452_v6  ;;  %v7076_v25 = vadd.f32 %v11153_v26, %v6411_v8  ;;  %v7083_v51 = vmul.f32 %v3192_v48, %v6688_v5  ;;  %v7091_v26 = vmul.f32 0.044715, %v1677_v49 }
 0x221   : > { %11151 = vst [vmem:[#allocation127_spill] sm:$0xff] %v7053_v16  ;;  %1126 = vmatmul.f32.gmra.mxu2 %v452_v6  ;;  %v1679_v58 = vmul.f32 %v1423_v7, %v7028_v34  ;;  %v1680_v35 = vmul.f32 %v1424_v24, %v7032_v47  ;;  %v7089_v60 = vadd.f32 %v11158_v29, %v6403_v27  ;;  %v7093_v4 = vmul.f32 0.044715, %v1678_v59  ;;  %v11163_v7 = vld [vmem:[#allocation28_spill] sm:$0xff] }
 0x222   : > { %11152 = vst [vmem:[#allocation128_spill] sm:$0xff] %v7064_v13  ;;  %v5268_v30 = vpop.eup %5267  ;;  %1335 = vmatmul.f32.gmra.mxu3 %v452_v6  ;;  %5273 = vtanh.f32 %v2430_v53  ;;  %v7100_v48 = vmul.f32 %v3193_v43, %v6725_v10  ;;  %v2177_v3 = vadd.f32 %v6934_v0, %v6840_v41  ;;  %v7106_v24 = vadd.f32 %v11163_v7, %v6405_v31  ;;  %v453_v59 = vld [vmem:[%s5932_s26 + $0x1a0] sm:$0xff] }
 0x223   : > { %11154 = vst [vmem:[#allocation25_spill] sm:$0xff] %v7076_v25  ;;  %v5270_v6 = vpop.eup %5269  ;;  %v7114_v29 = vmul.f32 %v3194_v56, %v6729_v46  ;;  %v1425_v10 = vmul.f32 %v7076_v25, %v7076_v25  ;;  %v1426_v0 = vmul.f32 %v7080_v54, %v7080_v54  ;;  %5275 = vtanh.f32 %v2431_v44  ;;  %v11169_v44 = vld [vmem:[#allocation30_spill] sm:$0xff]  ;;  %v11171_v16 = vld [vmem:[#allocation32_spill] sm:$0xff] }
 0x224   : > { %11156 = vst [vmem:[#allocation26_spill] sm:$0xff] %v7080_v54  ;;  %v7095_v32 = vpop.f32.mrf.mxu2  ;;  %v7097_v5 = vpop.f32.mrf.mxu3  ;;  %v2178_v43 = vadd.f32 %v6943_v36, %v6844_v12  ;;  %v7122_v7 = vmul.f32 0.044715, %v1679_v58  ;;  %v2940_v46 = vadd.f32 1.0, %v5270_v6  ;;  %v7128_v56 = vmul.f32 0.044715, %v1680_v35 }
 0x225   : > { %11157 = vst [vmem:[#allocation129_spill] sm:$0xff] %v7083_v51  ;;  %v7108_v53 = vpop.f32.mrf.mxu0  ;;  %v7110_v49 = vpop.f32.mrf.mxu1  ;;  %v2433_v36 = vmul.f32 0.7978846, %v2177_v3  ;;  %v1428_v6 = vmul.f32 %v7106_v24, %v7106_v24 }
 0x226   : > { %11159 = vst [vmem:[#allocation27_spill] sm:$0xff] %v7089_v60  ;;  %v5272_v2 = vpop.eup %5271  ;;  %v2434_v3 = vmul.f32 0.7978846, %v2178_v43  ;;  %v3776_v43 = vld [vmem:[%s5949_s13 + $0x108] sm:$0xff] }
 0x227   : > { %11160 = vst [vmem:[#allocation130_spill] sm:$0xff] %v7095_v32  ;;  %v2939_v32 = vadd.f32 1.0, %v5268_v30  ;;  %v2179_v30 = vadd.f32 %v6949_v17, %v6849_v57  ;;  %v2941_v35 = vadd.f32 1.0, %v5272_v2  ;;  %4239 = vmatpush.msrb.mxu2 %v3776_v43 }
 0x228   : > { %11161 = vst [vmem:[#allocation131_spill] sm:$0xff] %v7097_v5  ;;  %v2432_v5 = vmul.f32 0.7978846, %v2176_v38  ;;  %v11168_v38 = vld [vmem:[#allocation29_spill] sm:$0xff]  ;;  %711 = vmatmul.f32.gmra.mxu0 %v453_v59  ;;  %920 = vmatmul.f32.gmra.mxu1 %v453_v59  ;;  %v5274_v58 = vpop.eup %5273 }
 0x229   : > { %11162 = vst [vmem:[#allocation132_spill] sm:$0xff] %v7100_v48  ;;  %1129 = vmatmul.f32.gmra.mxu2 %v453_v59  ;;  %v3195_v17 = vmul.f32 0.5, %v2939_v32  ;;  %v1682_v48 = vmul.f32 %v1426_v0, %v7080_v54  ;;  %v3196_v32 = vmul.f32 0.5, %v2940_v46  ;;  %v2435_v2 = vmul.f32 0.7978846, %v2179_v30  ;;  %v454_v30 = vld [vmem:[%s5932_s26 + $0x1a8] sm:$0xff] }
 0x22a   : > { %11164 = vst [vmem:[#allocation28_spill] sm:$0xff] %v7108_v53  ;;  %v7132_v53 = vadd.f32 %v11168_v38, %v6411_v8  ;;  %1338 = vmatmul.f32.gmra.mxu3 %v453_v59  ;;  %5277 = vtanh.f32 %v2432_v5  ;;  %v1681_v38 = vmul.f32 %v1425_v10, %v7076_v25  ;;  %v7149_v59 = vadd.f32 %v11171_v16, %v6405_v31 }
 0x22b   : > { %11165 = vst [vmem:[#allocation133_spill] sm:$0xff] %v7110_v49  ;;  %v1427_v49 = vmul.f32 %v7089_v60, %v7089_v60  ;;  %5279 = vtanh.f32 %v2433_v36  ;;  %v1684_v16 = vmul.f32 %v1428_v6, %v7106_v24  ;;  %v7168_v25 = vmul.f32 %v3195_v17, %v6740_v11 }
 0x22c   : > { %11166 = vst [vmem:[#allocation134_spill] sm:$0xff] %v7114_v29  ;;  %v7136_v29 = vadd.f32 %v11169_v44, %v6415_v23  ;;  %v11170_v44 = vld [vmem:[#allocation31_spill] sm:$0xff]  ;;  %v1429_v5 = vmul.f32 %v7132_v53, %v7132_v53  ;;  %v7155_v0 = vpop.f32.mrf.mxu2  ;;  %v3197_v47 = vmul.f32 0.5, %v2941_v35  ;;  %5281 = vtanh.f32 %v2434_v3  ;;  %v11179_v3 = vld [vmem:[#allocation33_spill] sm:$0xff] }
 0x22d   : > { %11167 = vst [vmem:[#allocation135_spill] sm:$0xff] %v7128_v56  ;;  %v7144_v51 = vadd.f32 %v11170_v44, %v6403_v27  ;;  %v1683_v13 = vmul.f32 %v1427_v49, %v7089_v60  ;;  %v5276_v56 = vpop.eup %5275  ;;  %v7157_v44 = vpop.f32.mrf.mxu3  ;;  %v3792_v49 = vld [vmem:[%s5949_s13 + $0x188] sm:$0xff]  ;;  %v2942_v60 = vadd.f32 1.0, %v5274_v58  ;;  %v7174_v58 = vmul.f32 0.044715, %v1682_v48 }
 0x22e   : > { %11172 = vst [vmem:[#allocation29_spill] sm:$0xff] %v7149_v59  ;;  %v1430_v10 = vmul.f32 %v7136_v29, %v7136_v29  ;;  %v7162_v54 = vpop.f32.mrf.mxu0  ;;  %v7164_v46 = vpop.f32.mrf.mxu1  ;;  %4448 = vmatpush.msrb.mxu3 %v3792_v49  ;;  %v1432_v43 = vmul.f32 %v7149_v59, %v7149_v59  ;;  %v7181_v49 = vmul.f32 %v3196_v32, %v6744_v15  ;;  %v2943_v11 = vadd.f32 1.0, %v5276_v56 }
 0x22f   : > { %11173 = vst [vmem:[#allocation30_spill] sm:$0xff] %v7155_v0  ;;  %v7172_v0 = vmul.f32 0.044715, %v1681_v38  ;;  %v1431_v36 = vmul.f32 %v7144_v51, %v7144_v51  ;;  %5283 = vtanh.f32 %v2435_v2  ;;  %v7183_v17 = vmul.f32 0.044715, %v1683_v13  ;;  %v11180_v2 = vld [vmem:[#allocation34_spill] sm:$0xff] }
 0x230   : > { %11174 = vst [vmem:[#allocation31_spill] sm:$0xff] %v7157_v44  ;;  %v2180_v44 = vadd.f32 %v6959_v33, %v6854_v39  ;;  %v5278_v6 = vpop.eup %5277  ;;  %v1685_v33 = vmul.f32 %v1429_v5, %v7132_v53  ;;  %v1686_v48 = vmul.f32 %v1430_v10, %v7136_v29  ;;  %714 = vmatmul.f32.gmra.mxu0 %v454_v30  ;;  %v3198_v35 = vmul.f32 0.5, %v2942_v60 }
 0x231   : > { %11175 = vst [vmem:[#allocation32_spill] sm:$0xff] %v7162_v54  ;;  %923 = vmatmul.f32.gmra.mxu1 %v454_v30  ;;  %v7187_v38 = vmul.f32 0.044715, %v1684_v16  ;;  %1132 = vmatmul.f32.gmra.mxu2 %v454_v30  ;;  %v2181_v13 = vadd.f32 %v6996_v28, %v6897_v52  ;;  %v5280_v56 = vpop.eup %5279  ;;  %v1687_v32 = vmul.f32 %v1431_v36, %v7144_v51  ;;  %v2944_v10 = vadd.f32 1.0, %v5278_v6  ;;  %v3760_v54 = vld [vmem:[%s5949_s13 + $0x88] sm:$0xff] }
 0x232   : > { %11176 = vst [vmem:[#allocation136_spill] sm:$0xff] %v7164_v46  ;;  %v7191_v46 = vadd.f32 %v11179_v3, %v6411_v8  ;;  %1341 = vmatmul.f32.gmra.mxu3 %v454_v30  ;;  %v2436_v15 = vmul.f32 0.7978846, %v2180_v44  ;;  %v7198_v5 = vadd.f32 %v11180_v2, %v6415_v23  ;;  %v7201_v60 = vmul.f32 %v3197_v47, %v6778_v61  ;;  %v11182_v3 = vld [vmem:[#allocation35_spill] sm:$0xff]  ;;  %v3744_v44 = vld [vmem:[%s5949_s13 + $0x8] sm:$0xff]  ;;  %v11184_v61 = vld [vmem:[#allocation36_spill] sm:$0xff] }
 0x233   : > { %11177 = vst [vmem:[#allocation137_spill] sm:$0xff] %v7168_v25  ;;  %v1688_v16 = vmul.f32 %v1432_v43, %v7149_v59  ;;  %v7206_v30 = vadd.f32 %v11182_v3, %v6403_v27  ;;  %v3199_v28 = vmul.f32 0.5, %v2943_v11  ;;  %v2182_v36 = vadd.f32 %v7002_v14, %v6901_v1  ;;  %3821 = vmatpush.msrb.mxu0 %v3744_v44 }
 0x234   : > { %11178 = vst [vmem:[#allocation138_spill] sm:$0xff] %v7181_v49  ;;  %v5282_v49 = vpop.eup %5281  ;;  %v7212_v2 = vmul.f32 0.044715, %v1685_v33  ;;  %v7214_v25 = vmul.f32 0.044715, %v1686_v48  ;;  %v7218_v47 = vadd.f32 %v11184_v61, %v6405_v31  ;;  %v7220_v6 = vpop.f32.mrf.mxu2  ;;  %4030 = vmatpush.msrb.mxu1 %v3760_v54  ;;  %v7225_v11 = vmul.f32 %v3198_v35, %v6782_v42 }
 0x235   : > { %11181 = vst [vmem:[#allocation33_spill] sm:$0xff] %v7201_v60  ;;  %v7222_v43 = vpop.f32.mrf.mxu3  ;;  %v5284_v3 = vpop.eup %5283  ;;  %v1433_v14 = vmul.f32 %v7191_v46, %v7191_v46  ;;  %v455_v60 = vld [vmem:[%s5932_s26 + $0x1b0] sm:$0xff]  ;;  %v2945_v61 = vadd.f32 1.0, %v5280_v56  ;;  %5285 = vtanh.f32 %v2436_v15  ;;  %v2437_v59 = vmul.f32 0.7978846, %v2181_v13  ;;  %v11192_v13 = vld [vmem:[#allocation37_spill] sm:$0xff] }
 0x236   : > { %11183 = vst [vmem:[#allocation34_spill] sm:$0xff] %v7206_v30  ;;  %v7229_v33 = vpop.f32.mrf.mxu0  ;;  %v7231_v48 = vpop.f32.mrf.mxu1  ;;  %v1434_v54 = vmul.f32 %v7198_v5, %v7198_v5  ;;  %v3200_v44 = vmul.f32 0.5, %v2944_v10  ;;  %v2183_v42 = vadd.f32 %v7004_v37, %v6909_v55  ;;  %v7240_v35 = vmul.f32 0.044715, %v1688_v16  ;;  %v11194_v16 = vld [vmem:[#allocation38_spill] sm:$0xff] }
 0x237   : > { %11185 = vst [vmem:[#allocation35_spill] sm:$0xff] %v7218_v47  ;;  %v1436_v15 = vmul.f32 %v7218_v47, %v7218_v47  ;;  %v7248_v56 = vadd.f32 %v11192_v13, %v6411_v8  ;;  %v2947_v37 = vadd.f32 1.0, %v5284_v3  ;;  %v1689_v10 = vmul.f32 %v1433_v14, %v7191_v46  ;;  %v11196_v13 = vld [vmem:[#allocation39_spill] sm:$0xff] }
 0x238   : > { %11186 = vst [vmem:[#allocation36_spill] sm:$0xff] %v7220_v6  ;;  %v7234_v6 = vmul.f32 0.044715, %v1687_v32  ;;  %717 = vmatmul.f32.gmra.mxu0 %v455_v60  ;;  %v7251_v32 = vmul.f32 %v3199_v28, %v6790_v19  ;;  %5287 = vtanh.f32 %v2437_v59  ;;  %v7264_v19 = vmul.f32 %v3200_v44, %v6798_v18 }
 0x239   : > { %11187 = vst [vmem:[#allocation139_spill] sm:$0xff] %v7222_v43  ;;  %v2946_v43 = vadd.f32 1.0, %v5282_v49  ;;  %926 = vmatmul.f32.gmra.mxu1 %v455_v60  ;;  %1135 = vmatmul.f32.gmra.mxu2 %v455_v60  ;;  %v3201_v49 = vmul.f32 0.5, %v2945_v61  ;;  %v2439_v28 = vmul.f32 0.7978846, %v2183_v42  ;;  %v1437_v59 = vmul.f32 %v7248_v56, %v7248_v56  ;;  %v11199_v61 = vld [vmem:[#allocation40_spill] sm:$0xff] }
 0x23a   : > { %11188 = vst [vmem:[#allocation140_spill] sm:$0xff] %v7225_v11  ;;  %v7256_v11 = vadd.f32 %v11194_v16, %v6415_v23  ;;  %1344 = vmatmul.f32.gmra.mxu3 %v455_v60  ;;  %v2184_v60 = vadd.f32 %v7009_v63, %v6915_v9  ;;  %v3203_v44 = vmul.f32 0.5, %v2947_v37  ;;  %v11203_v42 = vld [vmem:[#allocation17_spill] sm:$0xff] }
 0x23b   : > { %11189 = vst [vmem:[#allocation141_spill] sm:$0xff] %v7229_v33  ;;  %v1435_v33 = vmul.f32 %v7206_v30, %v7206_v30  ;;  %v5286_v3 = vpop.eup %5285  ;;  %v3202_v16 = vmul.f32 0.5, %v2946_v43  ;;  %v7281_v43 = vmul.f32 0.044715, %v1689_v10 }
 0x23c   : > { %11190 = vst [vmem:[#allocation142_spill] sm:$0xff] %v7231_v48  ;;  %v2438_v48 = vmul.f32 0.7978846, %v2182_v36  ;;  %v1690_v36 = vmul.f32 %v1434_v54, %v7198_v5  ;;  %v7273_v54 = vadd.f32 %v11199_v61, %v6405_v31  ;;  %v1438_v63 = vmul.f32 %v7256_v11, %v7256_v11  ;;  %v456_v61 = vld [vmem:[%s5932_s26 + $0x1b8] sm:$0xff] }
 0x23d   : > { %11191 = vst [vmem:[#allocation143_spill] sm:$0xff] %v7240_v35  ;;  %v7261_v35 = vadd.f32 %v11196_v13, %v6403_v27  ;;  %v1691_v14 = vmul.f32 %v1435_v33, %v7206_v30  ;;  %v7275_v13 = vpop.f32.mrf.mxu2  ;;  %v7277_v18 = vpop.f32.mrf.mxu3  ;;  %v2185_v33 = vadd.f32 %v7044_v40, %v11203_v42  ;;  %v2948_v37 = vadd.f32 1.0, %v5286_v3  ;;  %v11208_v30 = vld [vmem:[#allocation18_spill] sm:$0xff] }
 0x23e   : > { %11193 = vst [vmem:[#allocation37_spill] sm:$0xff] %v7251_v32  ;;  %5289 = vtanh.f32 %v2438_v48  ;;  %v1692_v48 = vmul.f32 %v1436_v15, %v7218_v47  ;;  %v7288_v32 = vpop.f32.mrf.mxu1  ;;  %v5288_v10 = vpop.eup %5287  ;;  %v7301_v47 = vmul.f32 %v3202_v16, %v6844_v12  ;;  %v1694_v12 = vmul.f32 %v1438_v63, %v7256_v11  ;;  %v11210_v16 = vld [vmem:[#allocation41_spill] sm:$0xff] }
 0x23f   : > { %11195 = vst [vmem:[#allocation38_spill] sm:$0xff] %v7256_v11  ;;  %v1439_v40 = vmul.f32 %v7261_v35, %v7261_v35  ;;  %5291 = vtanh.f32 %v2439_v28  ;;  %v7298_v15 = vmul.f32 0.044715, %v1691_v14  ;;  %v2441_v28 = vmul.f32 0.7978846, %v2185_v33  ;;  %v11214_v33 = vld [vmem:[#allocation19_spill] sm:$0xff] }
 0x240   : > { %11197 = vst [vmem:[#allocation39_spill] sm:$0xff] %v7261_v35  ;;  %720 = vmatmul.f32.gmra.mxu0 %v456_v61  ;;  %v7311_v14 = vmul.f32 0.044715, %v1692_v48  ;;  %v2187_v48 = vadd.f32 %v7068_v21, %v11214_v33 }
 0x241   : > { %11198 = vst [vmem:[#allocation144_spill] sm:$0xff] %v7264_v19  ;;  %v7286_v19 = vpop.f32.mrf.mxu0  ;;  %929 = vmatmul.f32.gmra.mxu1 %v456_v61  ;;  %1138 = vmatmul.f32.gmra.mxu2 %v456_v61 }
 0x242   : > { %11200 = vst [vmem:[#allocation40_spill] sm:$0xff] %v7273_v54  ;;  %1347 = vmatmul.f32.gmra.mxu3 %v456_v61 }
 0x243   : > { %11201 = vst [vmem:[#allocation145_spill] sm:$0xff] %v7275_v13  ;;  %v7292_v13 = vmul.f32 %v3201_v49, %v6840_v41  ;;  %v1693_v41 = vmul.f32 %v1437_v59, %v7248_v56  ;;  %v1440_v49 = vmul.f32 %v7273_v54, %v7273_v54 }
 0x244   : > { %11202 = vst [vmem:[#allocation146_spill] sm:$0xff] %v7277_v18  ;;  %v7294_v18 = vmul.f32 0.044715, %v1690_v36  ;;  %v7309_v36 = vmul.f32 %v3203_v44, %v6849_v57  ;;  %v5290_v3 = vpop.eup %5289  ;;  %v3204_v57 = vmul.f32 0.5, %v2948_v37  ;;  %v2949_v44 = vadd.f32 1.0, %v5288_v10 }
 0x245   : > { %11204 = vst [vmem:[#allocation17_spill] sm:$0xff] %v7286_v19  ;;  %v2440_v19 = vmul.f32 0.7978846, %v2184_v60  ;;  %v7316_v60 = vadd.f32 %v11210_v16, %v6411_v8  ;;  %v11217_v16 = vld [vmem:[#allocation44_spill] sm:$0xff]  ;;  %v5292_v11 = vpop.eup %5291  ;;  %v7333_v61 = vmul.f32 0.044715, %v1693_v41  ;;  %v7336_v37 = vpop.f32.mrf.mxu2 }
 0x246   : > { %11205 = vst [vmem:[#allocation147_spill] sm:$0xff] %v7288_v32  ;;  %v2186_v32 = vadd.f32 %v7055_v20, %v11208_v30  ;;  %v11212_v20 = vld [vmem:[#allocation42_spill] sm:$0xff]  ;;  %v7338_v10 = vpop.f32.mrf.mxu3  ;;  %v2950_v21 = vadd.f32 1.0, %v5290_v3  ;;  %v7348_v41 = vpop.f32.mrf.mxu1  ;;  %v3205_v3 = vmul.f32 0.5, %v2949_v44 }
 0x247   : > { %11206 = vst [vmem:[#allocation148_spill] sm:$0xff] %v7292_v13  ;;  %v7320_v59 = vadd.f32 %v11212_v20, %v6415_v23  ;;  %v7331_v13 = vadd.f32 %v11217_v16, %v6405_v31  ;;  %5293 = vtanh.f32 %v2440_v19  ;;  %v457_v16 = vld [vmem:[%s5932_s26 + $0x1c0] sm:$0xff] }
 0x248   : > { %11207 = vst [vmem:[#allocation149_spill] sm:$0xff] %v7301_v47  ;;  %v1695_v47 = vmul.f32 %v1439_v40, %v7261_v35  ;;  %v2442_v20 = vmul.f32 0.7978846, %v2186_v32  ;;  %v1696_v40 = vmul.f32 %v1440_v49, %v7273_v54  ;;  %5295 = vtanh.f32 %v2441_v28  ;;  %723 = vmatmul.f32.gmra.mxu0 %v457_v16 }
 0x249   : > { %11209 = vst [vmem:[#allocation18_spill] sm:$0xff] %v7309_v36  ;;  %v11215_v36 = vld [vmem:[#allocation43_spill] sm:$0xff]  ;;  %v1441_v35 = vmul.f32 %v7316_v60, %v7316_v60  ;;  %v1442_v19 = vmul.f32 %v7320_v59, %v7320_v59  ;;  %v7346_v32 = vpop.f32.mrf.mxu0  ;;  %v2188_v49 = vadd.f32 %v7070_v62, %v6989_v45  ;;  %v7356_v28 = vmul.f32 %v3204_v57, %v6854_v39 }
 0x24a   : > { %11211 = vst [vmem:[#allocation41_spill] sm:$0xff] %v7316_v60  ;;  %v7327_v63 = vadd.f32 %v11215_v36, %v6403_v27  ;;  %v7340_v36 = vmul.f32 0.044715, %v1694_v12  ;;  %v2443_v12 = vmul.f32 0.7978846, %v2187_v48  ;;  %v1444_v54 = vmul.f32 %v7331_v13, %v7331_v13  ;;  %932 = vmatmul.f32.gmra.mxu1 %v457_v16  ;;  %1141 = vmatmul.f32.gmra.mxu2 %v457_v16 }
 0x24b   : > { %11213 = vst [vmem:[#allocation42_spill] sm:$0xff] %v7320_v59  ;;  %5297 = vtanh.f32 %v2442_v20  ;;  %v3206_v57 = vmul.f32 0.5, %v2950_v21  ;;  %v1697_v48 = vmul.f32 %v1441_v35, %v7316_v60  ;;  %1350 = vmatmul.f32.gmra.mxu3 %v457_v16  ;;  %v2189_v20 = vadd.f32 %v7091_v26, %v7013_v22  ;;  %v11232_v21 = vld [vmem:[#allocation48_spill] sm:$0xff] }
 0x24c   : > { %11216 = vst [vmem:[#allocation19_spill] sm:$0xff] %v7327_v63  ;;  %5299 = vtanh.f32 %v2443_v12  ;;  %v2190_v35 = vadd.f32 %v7093_v4, %v7017_v50  ;;  %v1700_v16 = vmul.f32 %v1444_v54, %v7331_v13  ;;  %v7389_v26 = vmul.f32 %v3205_v3, %v6897_v52  ;;  %v3775_v4 = vld [vmem:[%s5949_s13 + $0x100] sm:$0xff] }
 0x24d   : > { %11218 = vst [vmem:[#allocation43_spill] sm:$0xff] %v7331_v13  ;;  %v5294_v44 = vpop.eup %5293  ;;  %v3791_v60 = vld [vmem:[%s5949_s13 + $0x180] sm:$0xff]  ;;  %v7404_v52 = vmul.f32 0.044715, %v1697_v48  ;;  %4240 = vmatpush.msrb.mxu2 %v3775_v4 }
 0x24e   : > { %11219 = vst [vmem:[#allocation44_spill] sm:$0xff] %v7336_v37  ;;  %v7353_v37 = vmul.f32 0.044715, %v1695_v47  ;;  %v11228_v47 = vld [vmem:[#allocation46_spill] sm:$0xff]  ;;  %v7397_v12 = vpop.f32.mrf.mxu3  ;;  %v2952_v54 = vadd.f32 1.0, %v5294_v44  ;;  %v7408_v3 = vpop.f32.mrf.mxu1  ;;  %4449 = vmatpush.msrb.mxu3 %v3791_v60  ;;  %v2191_v60 = vadd.f32 %v7122_v7, %v7028_v34  ;;  %v11243_v7 = vld [vmem:[#allocation21_spill] sm:$0xff] }
 0x24f   : > { %11220 = vst [vmem:[#allocation150_spill] sm:$0xff] %v7338_v10  ;;  %v1443_v10 = vmul.f32 %v7327_v63, %v7327_v63  ;;  %v7370_v39 = vadd.f32 %v11228_v47, %v6415_v23  ;;  %v2446_v44 = vmul.f32 0.7978846, %v2190_v35 }
 0x250   : > { %11221 = vst [vmem:[#allocation151_spill] sm:$0xff] %v7340_v36  ;;  %v11226_v36 = vld [vmem:[#allocation45_spill] sm:$0xff] }
 0x251   : > { %11222 = vst [vmem:[#allocation152_spill] sm:$0xff] %v7346_v32  ;;  %v2951_v32 = vadd.f32 1.0, %v5292_v11  ;;  %v7366_v62 = vadd.f32 %v11226_v36, %v6411_v8  ;;  %v2444_v11 = vmul.f32 0.7978846, %v2188_v49  ;;  %v11230_v36 = vld [vmem:[#allocation47_spill] sm:$0xff] }
 0x252   : > { %11223 = vst [vmem:[#allocation153_spill] sm:$0xff] %v7348_v41  ;;  %v7362_v41 = vmul.f32 0.044715, %v1696_v40  ;;  %v5296_v40 = vpop.eup %5295  ;;  %v7378_v47 = vadd.f32 %v11230_v36, %v6403_v27 }
 0x253   : > { %11224 = vst [vmem:[#allocation154_spill] sm:$0xff] %v7356_v28  ;;  %v1698_v28 = vmul.f32 %v1442_v19, %v7320_v59  ;;  %v1699_v19 = vmul.f32 %v1443_v10, %v7327_v63  ;;  %v3207_v49 = vmul.f32 0.5, %v2951_v32  ;;  %v1445_v36 = vmul.f32 %v7366_v62, %v7366_v62  ;;  %v7395_v59 = vpop.f32.mrf.mxu2  ;;  %v5298_v13 = vpop.eup %5297 }
 0x254   : > { %11225 = vst [vmem:[#allocation155_spill] sm:$0xff] %v7362_v41  ;;  %v7382_v41 = vadd.f32 %v11232_v21, %v6405_v31  ;;  %v1446_v21 = vmul.f32 %v7370_v39, %v7370_v39  ;;  %v7402_v10 = vmul.f32 %v3206_v57, %v6901_v1  ;;  %v7406_v32 = vpop.f32.mrf.mxu0  ;;  %v2953_v63 = vadd.f32 1.0, %v5296_v40 }
 0x255   : > { %11227 = vst [vmem:[#allocation45_spill] sm:$0xff] %v7366_v62  ;;  %5301 = vtanh.f32 %v2444_v11  ;;  %v1447_v1 = vmul.f32 %v7378_v47, %v7378_v47  ;;  %v7417_v48 = vmul.f32 0.044715, %v1699_v19  ;;  %v5300_v11 = vpop.eup %5299  ;;  %v3208_v40 = vmul.f32 0.5, %v2952_v54  ;;  %v11241_v19 = vld [vmem:[#allocation49_spill] sm:$0xff] }
 0x256   : > { %11229 = vst [vmem:[#allocation46_spill] sm:$0xff] %v7370_v39  ;;  %v1448_v57 = vmul.f32 %v7382_v41, %v7382_v41  ;;  %v2954_v35 = vadd.f32 1.0, %v5298_v13 }
 0x257   : > { %11231 = vst [vmem:[#allocation47_spill] sm:$0xff] %v7378_v47 }
 0x258   : > { %11233 = vst [vmem:[#allocation48_spill] sm:$0xff] %v7382_v41 }
 0x259   : > { %11234 = vst [vmem:[#allocation156_spill] sm:$0xff] %v7389_v26  ;;  %v458_v26 = vld [vmem:[%s5932_s26 + $0x1c8] sm:$0xff] }
 0x25a   : > { %11235 = vst [vmem:[#allocation157_spill] sm:$0xff] %v7395_v59  ;;  %v2445_v59 = vmul.f32 0.7978846, %v2189_v20  ;;  %v1702_v20 = vmul.f32 %v1446_v21, %v7370_v39  ;;  %726 = vmatmul.f32.gmra.mxu0 %v458_v26  ;;  %935 = vmatmul.f32.gmra.mxu1 %v458_v26  ;;  %v1704_v21 = vmul.f32 %v1448_v57, %v7382_v41  ;;  %v11254_v39 = vld [vmem:[#allocation25_spill] sm:$0xff] }
 0x25b   : > { %11236 = vst [vmem:[#allocation158_spill] sm:$0xff] %v7397_v12  ;;  %v7411_v12 = vmul.f32 0.044715, %v1698_v28  ;;  %v1701_v28 = vmul.f32 %v1445_v36, %v7366_v62  ;;  %1144 = vmatmul.f32.gmra.mxu2 %v458_v26  ;;  %1353 = vmatmul.f32.gmra.mxu3 %v458_v26  ;;  %v1703_v36 = vmul.f32 %v1447_v1, %v7378_v47  ;;  %v5302_v13 = vpop.eup %5301  ;;  %v3743_v26 = vld [vmem:[%s5949_s13] sm:$0xff]  ;;  %v2955_v1 = vadd.f32 1.0, %v5300_v11  ;;  %v7452_v41 = vpop.f32.mrf.mxu2 }
 0x25c   : > { %11237 = vst [vmem:[#allocation159_spill] sm:$0xff] %v7402_v10  ;;  %5303 = vtanh.f32 %v2445_v59  ;;  %v2447_v47 = vmul.f32 0.7978846, %v2191_v60  ;;  %3822 = vmatpush.msrb.mxu0 %v3743_v26  ;;  %v7461_v62 = vmul.f32 0.044715, %v1702_v20  ;;  %v7465_v11 = vpop.f32.mrf.mxu0  ;;  %v2956_v20 = vadd.f32 1.0, %v5302_v13 }
 0x25d   : > { %11238 = vst [vmem:[#allocation160_spill] sm:$0xff] %v7406_v32  ;;  %v7419_v32 = vmul.f32 0.044715, %v1700_v16  ;;  %v7430_v16 = vadd.f32 %v11241_v19, %v6411_v8  ;;  %5305 = vtanh.f32 %v2446_v44  ;;  %v11247_v19 = vld [vmem:[#allocation51_spill] sm:$0xff]  ;;  %v7450_v57 = vmul.f32 0.044715, %v1701_v28  ;;  %v7467_v28 = vpop.f32.mrf.mxu1 }
 0x25e   : > { %11239 = vst [vmem:[#allocation161_spill] sm:$0xff] %v7408_v3  ;;  %v7422_v3 = vmul.f32 %v3207_v49, %v6909_v55  ;;  %v3209_v55 = vmul.f32 0.5, %v2953_v63  ;;  %v11244_v49 = vld [vmem:[#allocation135_spill] sm:$0xff]  ;;  %v7442_v10 = vadd.f32 %v11247_v19, %v6403_v27  ;;  %v11249_v63 = vld [vmem:[#allocation52_spill] sm:$0xff]  ;;  %v7457_v44 = vmul.f32 %v3208_v40, %v6915_v9  ;;  %v11262_v13 = vld [vmem:[#allocation26_spill] sm:$0xff] }
 0x25f   : > { %11242 = vst [vmem:[#allocation49_spill] sm:$0xff] %v7430_v16  ;;  %v2192_v4 = vadd.f32 %v11244_v49, %v11243_v7  ;;  %v7446_v59 = vadd.f32 %v11249_v63, %v6405_v31  ;;  %v3759_v49 = vld [vmem:[%s5949_s13 + $0x80] sm:$0xff]  ;;  %v3210_v19 = vmul.f32 0.5, %v2954_v35  ;;  %v2193_v63 = vadd.f32 %v7172_v0, %v11254_v39 }
 0x260   : > { %11240 = vst [vmem:[#allocation162_spill] sm:$0xff] %v7422_v3  ;;  %v11245_v3 = vld [vmem:[#allocation50_spill] sm:$0xff]  ;;  %4031 = vmatpush.msrb.mxu1 %v3759_v49  ;;  %v1449_v60 = vmul.f32 %v7430_v16, %v7430_v16  ;;  %v7471_v26 = vmul.f32 %v3209_v55, %v11203_v42  ;;  %v7473_v9 = vmul.f32 0.044715, %v1703_v36  ;;  %v7475_v40 = vmul.f32 0.044715, %v1704_v21 }
 0x261   : > { %v7438_v54 = vadd.f32 %v11245_v3, %v6415_v23  ;;  %11248 = vst [vmem:[#allocation135_spill] sm:$0xff] %v7442_v10  ;;  %v7454_v3 = vpop.f32.mrf.mxu3  ;;  %v2448_v49 = vmul.f32 0.7978846, %v2192_v4  ;;  %5307 = vtanh.f32 %v2447_v47  ;;  %v11260_v55 = vld [vmem:[#allocation53_spill] sm:$0xff]  ;;  %v7488_v36 = vmul.f32 %v3210_v19, %v11208_v30  ;;  %v11265_v47 = vld [vmem:[#allocation55_spill] sm:$0xff] }
 0x262   : > { %11250 = vst [vmem:[#allocation50_spill] sm:$0xff] %v7446_v59  ;;  %v5304_v35 = vpop.eup %5303  ;;  %v7485_v4 = vadd.f32 %v11260_v55, %v6411_v8  ;;  %v2449_v21 = vmul.f32 0.7978846, %v2193_v63  ;;  %v3212_v19 = vmul.f32 0.5, %v2956_v20  ;;  %v11267_v55 = vld [vmem:[#allocation27_spill] sm:$0xff] }
 0x263   : > { %11246 = vst [vmem:[#allocation21_spill] sm:$0xff] %v7438_v54  ;;  %v1450_v0 = vmul.f32 %v7438_v54, %v7438_v54  ;;  %v5306_v42 = vpop.eup %5305  ;;  %5309 = vtanh.f32 %v2448_v49  ;;  %v2957_v63 = vadd.f32 1.0, %v5304_v35  ;;  %v7512_v49 = vpop.f32.mrf.mxu2 }
 0x264   : > { %11251 = vst [vmem:[#allocation51_spill] sm:$0xff] %v7452_v41  ;;  %v459_v41 = vld [vmem:[%s5932_s26 + $0x1d0] sm:$0xff]  ;;  %5311 = vtanh.f32 %v2449_v21 }
 0x265   : > { %11252 = vst [vmem:[#allocation52_spill] sm:$0xff] %v7454_v3  ;;  %v1451_v3 = vmul.f32 %v7442_v10, %v7442_v10  ;;  %729 = vmatmul.f32.gmra.mxu0 %v459_v41  ;;  %938 = vmatmul.f32.gmra.mxu1 %v459_v41  ;;  %v1706_v30 = vmul.f32 %v1450_v0, %v7438_v54 }
 0x266   : > { %11253 = vst [vmem:[#allocation163_spill] sm:$0xff] %v7457_v44  ;;  %v1705_v44 = vmul.f32 %v1449_v60, %v7430_v16  ;;  %1147 = vmatmul.f32.gmra.mxu2 %v459_v41  ;;  %1356 = vmatmul.f32.gmra.mxu3 %v459_v41  ;;  %v1453_v41 = vmul.f32 %v7485_v4, %v7485_v4 }
 0x267   : > { %11255 = vst [vmem:[#allocation25_spill] sm:$0xff] %v7465_v11  ;;  %v3211_v11 = vmul.f32 0.5, %v2955_v1  ;;  %v1707_v60 = vmul.f32 %v1451_v3, %v7442_v10  ;;  %v5308_v3 = vpop.eup %5307 }
 0x268   : > { %11256 = vst [vmem:[#allocation164_spill] sm:$0xff] %v7467_v28  ;;  %v1452_v28 = vmul.f32 %v7446_v59, %v7446_v59  ;;  %v7519_v35 = vmul.f32 0.044715, %v1705_v44  ;;  %v3213_v44 = vmul.f32 0.5, %v2957_v63  ;;  %v1709_v54 = vmul.f32 %v1453_v41, %v7485_v4  ;;  %v11276_v63 = vld [vmem:[#allocation57_spill] sm:$0xff] }
 0x269   : > { %11257 = vst [vmem:[#allocation165_spill] sm:$0xff] %v7471_v26  ;;  %v2194_v26 = vadd.f32 %v7174_v58, %v11262_v13  ;;  %v2195_v58 = vadd.f32 %v7183_v17, %v11267_v55  ;;  %v7514_v0 = vpop.f32.mrf.mxu3  ;;  %v7517_v20 = vmul.f32 %v3211_v11, %v11214_v33  ;;  %v2196_v33 = vadd.f32 %v7187_v38, %v7106_v24 }
 0x26a   : > { %11258 = vst [vmem:[#allocation166_spill] sm:$0xff] %v7473_v9  ;;  %v7499_v9 = vadd.f32 %v11265_v47, %v6403_v27  ;;  %v2958_v47 = vadd.f32 1.0, %v5306_v42  ;;  %v7532_v11 = vmul.f32 0.044715, %v1706_v30  ;;  %v2959_v38 = vadd.f32 1.0, %v5308_v3 }
 0x26b   : > { %11259 = vst [vmem:[#allocation167_spill] sm:$0xff] %v7475_v40  ;;  %v11263_v40 = vld [vmem:[#allocation54_spill] sm:$0xff]  ;;  %v2450_v17 = vmul.f32 0.7978846, %v2194_v26  ;;  %v7535_v26 = vmul.f32 %v3212_v19, %v6989_v45  ;;  %v2451_v21 = vmul.f32 0.7978846, %v2195_v58  ;;  %v2197_v45 = vadd.f32 %v7212_v2, %v7132_v53 }
 0x26c   : > { %11261 = vst [vmem:[#allocation53_spill] sm:$0xff] %v7488_v36  ;;  %v7495_v1 = vadd.f32 %v11263_v40, %v6415_v23  ;;  %v1708_v40 = vmul.f32 %v1452_v28, %v7446_v59  ;;  %v11268_v36 = vld [vmem:[#allocation56_spill] sm:$0xff]  ;;  %v1455_v42 = vmul.f32 %v7499_v9, %v7499_v9  ;;  %v7527_v59 = vpop.f32.mrf.mxu1  ;;  %v7550_v58 = vadd.f32 %v11276_v63, %v6411_v8 }
 0x26d   : > { %11266 = vst [vmem:[#allocation54_spill] sm:$0xff] %v7499_v9  ;;  %v7508_v16 = vadd.f32 %v11268_v36, %v6405_v31  ;;  %v7525_v36 = vpop.f32.mrf.mxu0  ;;  %5313 = vtanh.f32 %v2450_v17  ;;  %v11278_v17 = vld [vmem:[#allocation59_spill] sm:$0xff] }
 0x26e   : > { %11264 = vst [vmem:[#allocation26_spill] sm:$0xff] %v7495_v1  ;;  %v1454_v28 = vmul.f32 %v7495_v1, %v7495_v1  ;;  %v7539_v10 = vmul.f32 0.044715, %v1708_v40  ;;  %v1711_v19 = vmul.f32 %v1455_v42, %v7499_v9  ;;  %v7558_v3 = vadd.f32 %v11278_v17, %v6403_v27  ;;  %v11279_v42 = vld [vmem:[#allocation60_spill] sm:$0xff] }
 0x26f   : > { %11269 = vst [vmem:[#allocation55_spill] sm:$0xff] %v7508_v16  ;;  %5315 = vtanh.f32 %v2451_v21  ;;  %v7563_v63 = vadd.f32 %v11279_v42, %v6405_v31  ;;  %v2453_v21 = vmul.f32 0.7978846, %v2197_v45 }
 0x270   : > { %11270 = vst [vmem:[#allocation27_spill] sm:$0xff] %v7512_v49  ;;  %v460_v49 = vld [vmem:[%s5932_s26 + $0x1d8] sm:$0xff]  ;;  %v1710_v30 = vmul.f32 %v1454_v28, %v7495_v1 }
 0x271   : > { %11271 = vst [vmem:[#allocation56_spill] sm:$0xff] %v7514_v0  ;;  %v5310_v0 = vpop.eup %5309  ;;  %732 = vmatmul.f32.gmra.mxu0 %v460_v49  ;;  %941 = vmatmul.f32.gmra.mxu1 %v460_v49  ;;  %v7574_v17 = vpop.f32.mrf.mxu3 }
 0x272   : > { %11272 = vst [vmem:[#allocation168_spill] sm:$0xff] %v7517_v20  ;;  %v7537_v20 = vmul.f32 0.044715, %v1707_v60  ;;  %1150 = vmatmul.f32.gmra.mxu2 %v460_v49  ;;  %1359 = vmatmul.f32.gmra.mxu3 %v460_v49  ;;  %v2452_v60 = vmul.f32 0.7978846, %v2196_v33  ;;  %v5312_v40 = vpop.eup %5311  ;;  %v2960_v2 = vadd.f32 1.0, %v5310_v0  ;;  %v7566_v49 = vmul.f32 %v3213_v44, %v7013_v22 }
 0x273   : > { %11273 = vst [vmem:[#allocation169_spill] sm:$0xff] %v7525_v36  ;;  %v1456_v36 = vmul.f32 %v7508_v16, %v7508_v16  ;;  %v2198_v33 = vadd.f32 %v7214_v25, %v7136_v29  ;;  %v1457_v22 = vmul.f32 %v7550_v58, %v7550_v58  ;;  %v461_v25 = vld [vmem:[%s5932_s26 + $0x1e0] sm:$0xff] }
 0x274   : > { %11274 = vst [vmem:[#allocation170_spill] sm:$0xff] %v7527_v59  ;;  %v3214_v59 = vmul.f32 0.5, %v2958_v47  ;;  %v11277_v47 = vld [vmem:[#allocation58_spill] sm:$0xff]  ;;  %v7585_v42 = vpop.f32.mrf.mxu1  ;;  %5317 = vtanh.f32 %v2452_v60 }
 0x275   : > { %11275 = vst [vmem:[#allocation171_spill] sm:$0xff] %v7535_v26  ;;  %v7554_v41 = vadd.f32 %v11277_v47, %v6415_v23  ;;  %v1712_v28 = vmul.f32 %v1456_v36, %v7508_v16  ;;  %v7570_v47 = vmul.f32 0.044715, %v1709_v54  ;;  %v7572_v26 = vpop.f32.mrf.mxu2  ;;  %v3215_v36 = vmul.f32 0.5, %v2959_v38  ;;  %v7583_v44 = vpop.f32.mrf.mxu0 }
 0x276   : > { %11280 = vst [vmem:[#allocation57_spill] sm:$0xff] %v7563_v63  ;;  %v7577_v0 = vmul.f32 %v3214_v59, %v7017_v50  ;;  %v7579_v16 = vmul.f32 0.044715, %v1710_v30  ;;  %v2961_v54 = vadd.f32 1.0, %v5312_v40  ;;  %v1459_v59 = vmul.f32 %v7558_v3, %v7558_v3 }
 0x277   : > { %11281 = vst [vmem:[#allocation58_spill] sm:$0xff] %v7566_v49  ;;  %v7588_v49 = vmul.f32 0.044715, %v1711_v19  ;;  %v1458_v50 = vmul.f32 %v7554_v41, %v7554_v41  ;;  %v3216_v38 = vmul.f32 0.5, %v2960_v2  ;;  %v7594_v45 = vmul.f32 0.044715, %v1712_v28 }
 0x278   : > { %11282 = vst [vmem:[#allocation59_spill] sm:$0xff] %v7572_v26  ;;  %v5314_v26 = vpop.eup %5313  ;;  %v1460_v30 = vmul.f32 %v7563_v63, %v7563_v63  ;;  %v2199_v40 = vadd.f32 %v7234_v6, %v7144_v51  ;;  %v11290_v19 = vld [vmem:[#allocation61_spill] sm:$0xff]  ;;  %5319 = vtanh.f32 %v2453_v21  ;;  %v11293_v28 = vld [vmem:[#allocation143_spill] sm:$0xff]  ;;  %v7612_v6 = vmul.f32 %v3215_v36, %v7028_v34 }
 0x279   : > { %11283 = vst [vmem:[#allocation60_spill] sm:$0xff] %v7574_v17  ;;  %v5316_v60 = vpop.eup %5315  ;;  %v11291_v17 = vld [vmem:[#allocation62_spill] sm:$0xff]  ;;  %735 = vmatmul.f32.gmra.mxu0 %v461_v25  ;;  %944 = vmatmul.f32.gmra.mxu1 %v461_v25  ;;  %v11292_v2 = vld [vmem:[#allocation29_spill] sm:$0xff]  ;;  %v1714_v9 = vmul.f32 %v1458_v50, %v7554_v41  ;;  %v7621_v21 = vmul.f32 %v3216_v38, %v11243_v7  ;;  %v7634_v7 = vpop.f32.mrf.mxu3 }
 0x27a   : > { %11284 = vst [vmem:[#allocation172_spill] sm:$0xff] %v7577_v0  ;;  %v7606_v0 = vadd.f32 %v11291_v17, %v6415_v23  ;;  %1153 = vmatmul.f32.gmra.mxu2 %v461_v25  ;;  %1362 = vmatmul.f32.gmra.mxu3 %v461_v25  ;;  %v1715_v17 = vmul.f32 %v1459_v59, %v7558_v3  ;;  %v11298_v25 = vld [vmem:[#allocation64_spill] sm:$0xff]  ;;  %v2963_v34 = vadd.f32 1.0, %v5316_v60 }
 0x27b   : > { %11285 = vst [vmem:[#allocation173_spill] sm:$0xff] %v7579_v16  ;;  %v11295_v16 = vld [vmem:[#allocation63_spill] sm:$0xff]  ;;  %v1716_v36 = vmul.f32 %v1460_v30, %v7563_v63  ;;  %v7648_v63 = vmul.f32 0.044715, %v1714_v9 }
 0x27c   : > { %11286 = vst [vmem:[#allocation174_spill] sm:$0xff] %v7583_v44  ;;  %v2454_v44 = vmul.f32 0.7978846, %v2198_v33  ;;  %v1713_v33 = vmul.f32 %v1457_v22, %v7550_v58  ;;  %v7618_v1 = vadd.f32 %v11295_v16, %v6403_v27  ;;  %v5318_v22 = vpop.eup %5317  ;;  %v1462_v16 = vmul.f32 %v7606_v0, %v7606_v0  ;;  %v7640_v60 = vpop.f32.mrf.mxu1 }
 0x27d   : > { %11287 = vst [vmem:[#allocation175_spill] sm:$0xff] %v7585_v42  ;;  %v7602_v42 = vadd.f32 %v11290_v19, %v6411_v8  ;;  %v2962_v19 = vadd.f32 1.0, %v5314_v26  ;;  %v2455_v26 = vmul.f32 0.7978846, %v2199_v40  ;;  %v7632_v50 = vpop.f32.mrf.mxu2 }
 0x27e   : > { %11288 = vst [vmem:[#allocation176_spill] sm:$0xff] %v7588_v49  ;;  %v3217_v49 = vmul.f32 0.5, %v2961_v54  ;;  %5321 = vtanh.f32 %v2454_v44  ;;  %v7636_v38 = vmul.f32 0.044715, %v1713_v33  ;;  %v462_v44 = vld [vmem:[%s5932_s26 + $0x1e8] sm:$0xff]  ;;  %v2964_v33 = vadd.f32 1.0, %v5318_v22 }
 0x27f   : > { %11289 = vst [vmem:[#allocation177_spill] sm:$0xff] %v7594_v45  ;;  %v2200_v45 = vadd.f32 %v11293_v28, %v11292_v2  ;;  %v7625_v28 = vadd.f32 %v11298_v25, %v6405_v31  ;;  %v1461_v54 = vmul.f32 %v7602_v42, %v7602_v42  ;;  %v7638_v25 = vpop.f32.mrf.mxu0  ;;  %v3218_v40 = vmul.f32 0.5, %v2962_v19 }
 0x280   : > { %11294 = vst [vmem:[#allocation61_spill] sm:$0xff] %v7612_v6  ;;  %v7644_v30 = vmul.f32 %v3217_v49, %v11254_v39  ;;  %v5320_v6 = vpop.eup %5319  ;;  %5323 = vtanh.f32 %v2455_v26  ;;  %v2202_v39 = vadd.f32 %v7294_v18, %v7198_v5  ;;  %v7658_v49 = vmul.f32 0.044715, %v1716_v36 }
 0x281   : > { %11296 = vst [vmem:[#allocation62_spill] sm:$0xff] %v7618_v1  ;;  %v2456_v59 = vmul.f32 0.7978846, %v2200_v45  ;;  %v1463_v45 = vmul.f32 %v7618_v1, %v7618_v1  ;;  %v1718_v9 = vmul.f32 %v1462_v16, %v7606_v0  ;;  %738 = vmatmul.f32.gmra.mxu0 %v462_v44  ;;  %947 = vmatmul.f32.gmra.mxu1 %v462_v44  ;;  %v2965_v18 = vadd.f32 1.0, %v5320_v6  ;;  %v11313_v6 = vld [vmem:[#allocation34_spill] sm:$0xff] }
 0x282   : > { %11297 = vst [vmem:[#allocation29_spill] sm:$0xff] %v7621_v21  ;;  %v2201_v21 = vadd.f32 %v7281_v43, %v7191_v46  ;;  %v1717_v43 = vmul.f32 %v1461_v54, %v7602_v42  ;;  %1156 = vmatmul.f32.gmra.mxu2 %v462_v44  ;;  %1365 = vmatmul.f32.gmra.mxu3 %v462_v44  ;;  %v11308_v54 = vld [vmem:[#allocation66_spill] sm:$0xff] }
 0x283   : > { %11299 = vst [vmem:[#allocation143_spill] sm:$0xff] %v7625_v28  ;;  %5325 = vtanh.f32 %v2456_v59  ;;  %v1719_v36 = vmul.f32 %v1463_v45, %v7618_v1  ;;  %v7672_v16 = vadd.f32 %v11308_v54, %v6415_v23  ;;  %v11310_v59 = vld [vmem:[#allocation67_spill] sm:$0xff]  ;;  %v7686_v45 = vmul.f32 0.044715, %v1718_v9  ;;  %v11315_v54 = vld [vmem:[#allocation68_spill] sm:$0xff] }
 0x284   : > { %11300 = vst [vmem:[#allocation63_spill] sm:$0xff] %v7632_v50  ;;  %v7650_v50 = vmul.f32 0.044715, %v1715_v17  ;;  %v5322_v19 = vpop.eup %5321  ;;  %v11305_v17 = vld [vmem:[#allocation65_spill] sm:$0xff]  ;;  %v2457_v26 = vmul.f32 0.7978846, %v2201_v21  ;;  %v2203_v21 = vadd.f32 %v7298_v15, %v11313_v6  ;;  %v7700_v15 = vpop.f32.mrf.mxu1 }
 0x285   : > { %11301 = vst [vmem:[#allocation64_spill] sm:$0xff] %v7634_v7  ;;  %v7664_v22 = vadd.f32 %v11305_v17, %v6411_v8  ;;  %v7676_v7 = vadd.f32 %v11310_v59, %v6403_v27  ;;  %v3220_v17 = vmul.f32 0.5, %v2964_v33  ;;  %v7692_v59 = vpop.f32.mrf.mxu2  ;;  %v7694_v33 = vpop.f32.mrf.mxu3  ;;  %v11321_v9 = vld [vmem:[#allocation35_spill] sm:$0xff]  ;;  %v7705_v1 = vmul.f32 0.044715, %v1719_v36 }
 0x286   : > { %11302 = vst [vmem:[#allocation178_spill] sm:$0xff] %v7638_v25  ;;  %v3219_v25 = vmul.f32 0.5, %v2963_v34  ;;  %v7667_v34 = vmul.f32 %v3218_v40, %v11262_v13  ;;  %v2458_v13 = vmul.f32 0.7978846, %v2202_v39  ;;  %v7684_v40 = vmul.f32 0.044715, %v1717_v43 }
 0x287   : > { %11303 = vst [vmem:[#allocation179_spill] sm:$0xff] %v7640_v60  ;;  %v1464_v60 = vmul.f32 %v7625_v28, %v7625_v28  ;;  %v463_v39 = vld [vmem:[%s5932_s26 + $0x1f0] sm:$0xff]  ;;  %v3221_v43 = vmul.f32 0.5, %v2965_v18  ;;  %5327 = vtanh.f32 %v2457_v26  ;;  %v2459_v18 = vmul.f32 0.7978846, %v2203_v21 }
 0x288   : > { %11304 = vst [vmem:[#allocation180_spill] sm:$0xff] %v7644_v30  ;;  %v7680_v44 = vmul.f32 %v3219_v25, %v11267_v55  ;;  %v1465_v55 = vmul.f32 %v7664_v22, %v7664_v22  ;;  %v7698_v25 = vpop.f32.mrf.mxu0  ;;  %5329 = vtanh.f32 %v2458_v13 }
 0x289   : > { %11306 = vst [vmem:[#allocation65_spill] sm:$0xff] %v7664_v22  ;;  %v1720_v30 = vmul.f32 %v1464_v60, %v7625_v28  ;;  %v2966_v60 = vadd.f32 1.0, %v5322_v19  ;;  %v5324_v28 = vpop.eup %5323  ;;  %v1466_v19 = vmul.f32 %v7672_v16, %v7672_v16  ;;  %741 = vmatmul.f32.gmra.mxu0 %v463_v39  ;;  %950 = vmatmul.f32.gmra.mxu1 %v463_v39  ;;  %5331 = vtanh.f32 %v2459_v18 }
 0x28a   : > { %11307 = vst [vmem:[#allocation181_spill] sm:$0xff] %v7667_v34  ;;  %v7690_v34 = vadd.f32 %v11315_v54, %v6405_v31  ;;  %v2204_v54 = vadd.f32 %v7311_v14, %v11321_v9  ;;  %v2205_v14 = vadd.f32 %v7333_v61, %v7248_v56  ;;  %1159 = vmatmul.f32.gmra.mxu2 %v463_v39 }
 0x28b   : > { %11309 = vst [vmem:[#allocation66_spill] sm:$0xff] %v7672_v16  ;;  %v7720_v26 = vmul.f32 0.044715, %v1720_v30  ;;  %1368 = vmatmul.f32.gmra.mxu3 %v463_v39  ;;  %v1722_v61 = vmul.f32 %v1466_v19, %v7672_v16 }
 0x28c   : > { %11311 = vst [vmem:[#allocation67_spill] sm:$0xff] %v7676_v7  ;;  %v1468_v36 = vmul.f32 %v7690_v34, %v7690_v34  ;;  %v2460_v21 = vmul.f32 0.7978846, %v2204_v54  ;;  %v7758_v18 = vpop.f32.mrf.mxu1 }
 0x28d   : > { %11312 = vst [vmem:[#allocation182_spill] sm:$0xff] %v7680_v44  ;;  %v5326_v44 = vpop.eup %5325  ;;  %v7745_v54 = vpop.f32.mrf.mxu2 }
 0x28e   : > { %11314 = vst [vmem:[#allocation34_spill] sm:$0xff] %v7686_v45  ;;  %v2967_v45 = vadd.f32 1.0, %v5324_v28  ;;  %v2968_v13 = vadd.f32 1.0, %v5326_v44  ;;  %v11332_v44 = vld [vmem:[#allocation72_spill] sm:$0xff]  ;;  %v7747_v19 = vpop.f32.mrf.mxu3  ;;  %5333 = vtanh.f32 %v2460_v21 }
 0x28f   : > { %11316 = vst [vmem:[#allocation68_spill] sm:$0xff] %v7690_v34  ;;  %v7742_v39 = vadd.f32 %v11332_v44, %v6405_v31 }
 0x290   : > { %11317 = vst [vmem:[#allocation183_spill] sm:$0xff] %v7692_v59  ;;  %v7712_v59 = vmul.f32 %v3220_v17, %v7106_v24  ;;  %v1721_v24 = vmul.f32 %v1465_v55, %v7664_v22  ;;  %v7726_v17 = vmul.f32 %v3221_v43, %v7132_v53  ;;  %v5328_v55 = vpop.eup %5327  ;;  %v2461_v43 = vmul.f32 0.7978846, %v2205_v14  ;;  %v7756_v44 = vpop.f32.mrf.mxu0  ;;  %v464_v14 = vld [vmem:[%s5932_s26 + $0x1f8] sm:$0xff] }
 0x291   : > { %11318 = vst [vmem:[#allocation184_spill] sm:$0xff] %v7694_v33  ;;  %v1467_v33 = vmul.f32 %v7676_v7, %v7676_v7  ;;  %v5330_v22 = vpop.eup %5329  ;;  %744 = vmatmul.f32.gmra.mxu0 %v464_v14  ;;  %953 = vmatmul.f32.gmra.mxu1 %v464_v14 }
 0x292   : > { %11319 = vst [vmem:[#allocation185_spill] sm:$0xff] %v7698_v25  ;;  %5335 = vtanh.f32 %v2461_v43  ;;  %1162 = vmatmul.f32.gmra.mxu2 %v464_v14 }
 0x293   : > { %11320 = vst [vmem:[#allocation186_spill] sm:$0xff] %v7700_v15  ;;  %v11324_v15 = vld [vmem:[#allocation69_spill] sm:$0xff]  ;;  %v1723_v30 = vmul.f32 %v1467_v33, %v7676_v7  ;;  %v1724_v33 = vmul.f32 %v1468_v36, %v7690_v34  ;;  %v11338_v7 = vld [vmem:[#allocation151_spill] sm:$0xff]  ;;  %v3224_v36 = vmul.f32 0.5, %v2968_v13  ;;  %v7763_v34 = vmul.f32 0.044715, %v1722_v61  ;;  %1371 = vmatmul.f32.gmra.mxu3 %v464_v14 }
 0x294   : > { %11322 = vst [vmem:[#allocation35_spill] sm:$0xff] %v7705_v1  ;;  %v7716_v25 = vadd.f32 %v11324_v15, %v6411_v8  ;;  %v3222_v1 = vmul.f32 0.5, %v2966_v60  ;;  %v11328_v15 = vld [vmem:[#allocation70_spill] sm:$0xff]  ;;  %v11330_v60 = vld [vmem:[#allocation71_spill] sm:$0xff]  ;;  %v1472_v13 = vmul.f32 %v7742_v39, %v7742_v39  ;;  %v2970_v61 = vadd.f32 1.0, %v5330_v22 }
 0x295   : > { %11323 = vst [vmem:[#allocation187_spill] sm:$0xff] %v7712_v59  ;;  %v7732_v59 = vadd.f32 %v11328_v15, %v6415_v23  ;;  %v7736_v28 = vadd.f32 %v11330_v60, %v6403_v27  ;;  %v3223_v60 = vmul.f32 0.5, %v2967_v45  ;;  %v7769_v45 = vmul.f32 0.044715, %v1723_v30 }
 0x296   : > { %11325 = vst [vmem:[#allocation69_spill] sm:$0xff] %v7716_v25  ;;  %v1469_v53 = vmul.f32 %v7716_v25, %v7716_v25  ;;  %v7750_v15 = vmul.f32 %v3222_v1, %v7136_v29  ;;  %v7774_v21 = vmul.f32 0.044715, %v1724_v33  ;;  %v7788_v43 = vmul.f32 %v3224_v36, %v11292_v2  ;;  %v11354_v2 = vld [vmem:[#allocation41_spill] sm:$0xff]  ;;  %v11355_v36 = vld [vmem:[#allocation76_spill] sm:$0xff] }
 0x297   : > { %11326 = vst [vmem:[#allocation188_spill] sm:$0xff] %v7720_v26  ;;  %v7754_v26 = vmul.f32 0.044715, %v1721_v24  ;;  %v1470_v29 = vmul.f32 %v7732_v59, %v7732_v59  ;;  %v1471_v1 = vmul.f32 %v7736_v28, %v7736_v28 }
 0x298   : > { %11327 = vst [vmem:[#allocation189_spill] sm:$0xff] %v7726_v17  ;;  %v11337_v17 = vld [vmem:[#allocation38_spill] sm:$0xff]  ;;  %v1725_v24 = vmul.f32 %v1469_v53, %v7716_v25 }
 0x299   : > { %11329 = vst [vmem:[#allocation70_spill] sm:$0xff] %v7732_v59  ;;  %v2206_v16 = vadd.f32 %v11338_v7, %v11337_v17  ;;  %v2969_v7 = vadd.f32 1.0, %v5328_v55  ;;  %v11345_v55 = vld [vmem:[#allocation73_spill] sm:$0xff]  ;;  %v11346_v53 = vld [vmem:[#allocation74_spill] sm:$0xff]  ;;  %v1727_v22 = vmul.f32 %v1471_v1, %v7736_v28  ;;  %v7807_v1 = vpop.f32.mrf.mxu2 }
 0x29a   : > { %11331 = vst [vmem:[#allocation71_spill] sm:$0xff] %v7736_v28  ;;  %v7781_v30 = vadd.f32 %v11345_v55, %v6411_v8 }
 0x29b   : > { %11333 = vst [vmem:[#allocation72_spill] sm:$0xff] %v7742_v39 }
 0x29c   : > { %11334 = vst [vmem:[#allocation190_spill] sm:$0xff] %v7745_v54  ;;  %v11341_v54 = vld [vmem:[#allocation39_spill] sm:$0xff] }
 0x29d   : > { %11335 = vst [vmem:[#allocation191_spill] sm:$0xff] %v7747_v19  ;;  %v2207_v19 = vadd.f32 %v7353_v37, %v11341_v54  ;;  %v7777_v37 = vmul.f32 %v3223_v60, %v7144_v51  ;;  %v1726_v51 = vmul.f32 %v1470_v29, %v7732_v59  ;;  %v11349_v60 = vld [vmem:[#allocation40_spill] sm:$0xff]  ;;  %v7805_v29 = vadd.f32 %v11355_v36, %v6405_v31  ;;  %v11361_v36 = vld [vmem:[#allocation42_spill] sm:$0xff] }
 0x29e   : > { %11336 = vst [vmem:[#allocation192_spill] sm:$0xff] %v7750_v15  ;;  %v7785_v15 = vadd.f32 %v11346_v53, %v6415_v23  ;;  %v1728_v53 = vmul.f32 %v1472_v13, %v7742_v39  ;;  %v1473_v13 = vmul.f32 %v7781_v30, %v7781_v30  ;;  %v7815_v39 = vpop.f32.mrf.mxu0 }
 0x29f   : > { %11339 = vst [vmem:[#allocation38_spill] sm:$0xff] %v7756_v44  ;;  %v5332_v44 = vpop.eup %5331  ;;  %v2463_v33 = vmul.f32 0.7978846, %v2207_v19  ;;  %v2209_v19 = vadd.f32 %v7404_v52, %v11354_v2  ;;  %v7817_v52 = vpop.f32.mrf.mxu1  ;;  %v7821_v28 = vmul.f32 0.044715, %v1726_v51 }
 0x2a0   : > { %11340 = vst [vmem:[#allocation151_spill] sm:$0xff] %v7758_v18  ;;  %v2462_v18 = vmul.f32 0.7978846, %v2206_v16  ;;  %v3225_v16 = vmul.f32 0.5, %v2969_v7  ;;  %v5334_v55 = vpop.eup %5333  ;;  %v7809_v7 = vpop.f32.mrf.mxu3  ;;  %v7828_v59 = vmul.f32 0.044715, %v1728_v53 }
 0x2a1   : > { %11342 = vst [vmem:[#allocation39_spill] sm:$0xff] %v7769_v45  ;;  %v11352_v45 = vld [vmem:[#allocation75_spill] sm:$0xff] }
 0x2a2   : > { %11343 = vst [vmem:[#allocation193_spill] sm:$0xff] %v7774_v21  ;;  %v7794_v21 = vmul.f32 0.044715, %v1725_v24  ;;  %v7799_v14 = vadd.f32 %v11352_v45, %v6403_v27  ;;  %v2971_v24 = vadd.f32 1.0, %v5332_v44  ;;  %5337 = vtanh.f32 %v2462_v18 }
 0x2a3   : > { %11344 = vst [vmem:[#allocation194_spill] sm:$0xff] %v7777_v37  ;;  %v11350_v37 = vld [vmem:[#allocation155_spill] sm:$0xff]  ;;  %v1474_v45 = vmul.f32 %v7785_v15, %v7785_v15  ;;  %5339 = vtanh.f32 %v2463_v33  ;;  %v7824_v44 = vmul.f32 %v3225_v16, %v7191_v46  ;;  %v2972_v18 = vadd.f32 1.0, %v5334_v55  ;;  %v11367_v55 = vld [vmem:[#allocation77_spill] sm:$0xff] }
 0x2a4   : > { %11347 = vst [vmem:[#allocation73_spill] sm:$0xff] %v7785_v15  ;;  %v2208_v25 = vadd.f32 %v11350_v37, %v11349_v60  ;;  %v3226_v37 = vmul.f32 0.5, %v2970_v61  ;;  %v1476_v33 = vmul.f32 %v7805_v29, %v7805_v29  ;;  %v3227_v51 = vmul.f32 0.5, %v2971_v24 }
 0x2a5   : > { %11348 = vst [vmem:[#allocation74_spill] sm:$0xff] %v7788_v43  ;;  %v5336_v43 = vpop.eup %5335  ;;  %v1730_v16 = vmul.f32 %v1474_v45, %v7785_v15  ;;  %v7843_v53 = vadd.f32 %v11367_v55, %v6411_v8  ;;  %v11374_v55 = vld [vmem:[#allocation79_spill] sm:$0xff] }
 0x2a6   : > { %11351 = vst [vmem:[#allocation40_spill] sm:$0xff] %v7794_v21  ;;  %v2464_v61 = vmul.f32 0.7978846, %v2208_v25  ;;  %v2465_v21 = vmul.f32 0.7978846, %v2209_v19  ;;  %v7837_v46 = vmul.f32 %v3226_v37, %v7198_v5  ;;  %v2973_v25 = vadd.f32 1.0, %v5336_v43  ;;  %v7876_v15 = vpop.f32.mrf.mxu0 }
 0x2a7   : > { %11353 = vst [vmem:[#allocation155_spill] sm:$0xff] %v7799_v14  ;;  %v11369_v19 = vld [vmem:[#allocation87_spill] sm:$0xff]  ;;  %v3228_v37 = vmul.f32 0.5, %v2972_v18 }
 0x2a8   : > { %11356 = vst [vmem:[#allocation75_spill] sm:$0xff] %v7805_v29  ;;  %4241 = vmatmul.f32.vlgmr.msrb.gmra.mxu2 %v11369_v19  ;;  %5341 = vtanh.f32 %v2464_v61  ;;  %v11373_v43 = vld [vmem:[#allocation19_spill] sm:$0xff]  ;;  %v1732_v19 = vmul.f32 %v1476_v33, %v7805_v29  ;;  %v7865_v18 = vpop.f32.mrf.mxu3  ;;  %v3229_v61 = vmul.f32 0.5, %v2973_v25 }
 0x2a9   : > { %11357 = vst [vmem:[#allocation41_spill] sm:$0xff] %v7807_v1  ;;  %v2210_v1 = vadd.f32 %v7411_v12, %v11361_v36  ;;  %v11365_v12 = vld [vmem:[#allocation86_spill] sm:$0xff]  ;;  %v2211_v24 = vadd.f32 %v7417_v48, %v11373_v43  ;;  %5343 = vtanh.f32 %v2465_v21  ;;  %v7868_v48 = vmul.f32 %v3227_v51, %v11313_v6  ;;  %v7878_v21 = vpop.f32.mrf.mxu1 }
 0x2aa   : > { %11358 = vst [vmem:[#allocation76_spill] sm:$0xff] %v7809_v7  ;;  %v7826_v7 = vmul.f32 0.044715, %v1727_v22  ;;  %4032 = vmatmul.f32.vlgmr.msrb.gmra.mxu1 %v11365_v12  ;;  %v1729_v22 = vmul.f32 %v1473_v13, %v7781_v30  ;;  %v11371_v12 = vld [vmem:[#allocation78_spill] sm:$0xff] }
 0x2ab   : > { %11359 = vst [vmem:[#allocation195_spill] sm:$0xff] %v7815_v39  ;;  %v1475_v39 = vmul.f32 %v7799_v14, %v7799_v14  ;;  %v7849_v5 = vadd.f32 %v11371_v12, %v6415_v23  ;;  %v7863_v12 = vpop.f32.mrf.mxu2  ;;  %v2467_v25 = vmul.f32 0.7978846, %v2211_v24  ;;  %v7898_v24 = vmul.f32 %v3229_v61, %v7248_v56  ;;  %v11396_v61 = vld [vmem:[#allocation82_spill] sm:$0xff] }
 0x2ac   : > { %11360 = vst [vmem:[#allocation196_spill] sm:$0xff] %v7817_v52  ;;  %v11364_v52 = vld [vmem:[#allocation85_spill] sm:$0xff] }
 0x2ad   : > { %11362 = vst [vmem:[#allocation42_spill] sm:$0xff] %v7824_v44  ;;  %3823 = vmatmul.f32.vlgmr.msrb.gmra.mxu0 %v11364_v52  ;;  %v11370_v44 = vld [vmem:[#allocation88_spill] sm:$0xff]  ;;  %v2466_v52 = vmul.f32 0.7978846, %v2210_v1  ;;  %v1731_v45 = vmul.f32 %v1475_v39, %v7799_v14  ;;  %v11381_v39 = vld [vmem:[#allocation43_spill] sm:$0xff]  ;;  %v1478_v6 = vmul.f32 %v7849_v5, %v7849_v5 }
 0x2ae   : > { %11363 = vst [vmem:[#allocation197_spill] sm:$0xff] %v7828_v59  ;;  %4450 = vmatmul.f32.vlgmr.msrb.gmra.mxu3 %v11370_v44  ;;  %v5338_v59 = vpop.eup %5337  ;;  %v11376_v44 = vld [vmem:[#allocation80_spill] sm:$0xff]  ;;  %v2212_v14 = vadd.f32 %v7419_v32, %v11381_v39 }
 0x2af   : > { %11366 = vst [vmem:[#allocation85_spill] sm:$0xff] %v7837_v46  ;;  %v5340_v13 = vpop.eup %5339  ;;  %v7856_v46 = vadd.f32 %v11374_v55, %v6403_v27  ;;  %v7860_v1 = vadd.f32 %v11376_v44, %v6405_v31  ;;  %v7872_v55 = vmul.f32 0.044715, %v1729_v22  ;;  %v1477_v44 = vmul.f32 %v7843_v53, %v7843_v53 }
 0x2b0   : > { %11368 = vst [vmem:[#allocation86_spill] sm:$0xff] %v7843_v53  ;;  %v2974_v33 = vadd.f32 1.0, %v5338_v59  ;;  %5345 = vtanh.f32 %v2466_v52  ;;  %v2975_v51 = vadd.f32 1.0, %v5340_v13  ;;  %v5342_v59 = vpop.eup %5341  ;;  %v7893_v52 = vmul.f32 0.044715, %v1732_v19  ;;  %v11393_v19 = vld [vmem:[#allocation95_spill] sm:$0xff] }
 0x2b1   : > { %11372 = vst [vmem:[#allocation77_spill] sm:$0xff] %v7849_v5  ;;  %v1479_v32 = vmul.f32 %v7856_v46, %v7856_v46  ;;  %v1480_v22 = vmul.f32 %v7860_v1, %v7860_v1  ;;  %v2468_v13 = vmul.f32 0.7978846, %v2212_v14  ;;  %v5344_v29 = vpop.eup %5343  ;;  %4244 = vmatmul.f32.gmra.mxu2 %v11393_v19  ;;  %v1734_v14 = vmul.f32 %v1478_v6, %v7849_v5  ;;  %v11398_v19 = vld [vmem:[#allocation83_spill] sm:$0xff] }
 0x2b2   : > { %11375 = vst [vmem:[#allocation87_spill] sm:$0xff] %v7856_v46  ;;  %5347 = vtanh.f32 %v2467_v25 }
 0x2b3   : > { %11377 = vst [vmem:[#allocation88_spill] sm:$0xff] %v7860_v1  ;;  %v7926_v6 = vpop.f32.mrf.mxu2  ;;  %5349 = vtanh.f32 %v2468_v13 }
 0x2b4   : > { %11378 = vst [vmem:[#allocation78_spill] sm:$0xff] %v7863_v12  ;;  %v7880_v12 = vmul.f32 0.044715, %v1730_v16  ;;  %v11387_v16 = vld [vmem:[#allocation89_spill] sm:$0xff] }
 0x2b5   : > { %11379 = vst [vmem:[#allocation19_spill] sm:$0xff] %v7865_v18  ;;  %v7884_v18 = vmul.f32 0.044715, %v1731_v45  ;;  %3826 = vmatmul.f32.gmra.mxu0 %v11387_v16  ;;  %v11390_v45 = vld [vmem:[#allocation45_spill] sm:$0xff]  ;;  %v3230_v16 = vmul.f32 0.5, %v2974_v33  ;;  %v2976_v33 = vadd.f32 1.0, %v5342_v59 }
 0x2b6   : > { %11380 = vst [vmem:[#allocation79_spill] sm:$0xff] %v7868_v48  ;;  %v2213_v48 = vadd.f32 %v7450_v57, %v11390_v45  ;;  %v7914_v57 = vadd.f32 %v11396_v61, %v6415_v23  ;;  %v7928_v61 = vpop.f32.mrf.mxu3 }
 0x2b7   : > { %11382 = vst [vmem:[#allocation80_spill] sm:$0xff] %v7876_v15  ;;  %v7891_v15 = vmul.f32 %v3228_v37, %v11321_v9  ;;  %v11391_v9 = vld [vmem:[#allocation81_spill] sm:$0xff]  ;;  %v7939_v59 = vmul.f32 %v3230_v16, %v11337_v17  ;;  %v3232_v17 = vmul.f32 0.5, %v2976_v33  ;;  %v11418_v33 = vld [vmem:[#allocation167_spill] sm:$0xff] }
 0x2b8   : > { %11383 = vst [vmem:[#allocation43_spill] sm:$0xff] %v7878_v21  ;;  %v11388_v21 = vld [vmem:[#allocation94_spill] sm:$0xff]  ;;  %v7905_v37 = vadd.f32 %v11391_v9, %v6411_v8  ;;  %v1735_v9 = vmul.f32 %v1479_v32, %v7856_v46  ;;  %v2469_v25 = vmul.f32 0.7978846, %v2213_v48  ;;  %v11407_v48 = vld [vmem:[#allocation47_spill] sm:$0xff] }
 0x2b9   : > { %11384 = vst [vmem:[#allocation198_spill] sm:$0xff] %v7884_v18  ;;  %4035 = vmatmul.f32.gmra.mxu1 %v11388_v21  ;;  %v1733_v18 = vmul.f32 %v1477_v44, %v7843_v53  ;;  %v11395_v21 = vld [vmem:[#allocation46_spill] sm:$0xff]  ;;  %v5346_v44 = vpop.eup %5345  ;;  %v1736_v53 = vmul.f32 %v1480_v22, %v7860_v1  ;;  %v7934_v22 = vpop.f32.mrf.mxu0  ;;  %v7941_v1 = vmul.f32 0.044715, %v1734_v14 }
 0x2ba   : > { %11385 = vst [vmem:[#allocation199_spill] sm:$0xff] %v7891_v15  ;;  %v11394_v15 = vld [vmem:[#allocation96_spill] sm:$0xff]  ;;  %v2214_v56 = vadd.f32 %v7461_v62, %v11395_v21  ;;  %v1481_v32 = vmul.f32 %v7905_v37, %v7905_v37  ;;  %v2978_v13 = vadd.f32 1.0, %v5346_v44  ;;  %v5348_v16 = vpop.eup %5347  ;;  %v11413_v44 = vld [vmem:[#allocation102_spill] sm:$0xff]  ;;  %5351 = vtanh.f32 %v2469_v25 }
 0x2bb   : > { %11386 = vst [vmem:[#allocation200_spill] sm:$0xff] %v7893_v52  ;;  %4453 = vmatmul.f32.gmra.mxu3 %v11394_v15  ;;  %v7920_v15 = vadd.f32 %v11398_v19, %v6403_v27  ;;  %v11400_v62 = vld [vmem:[#allocation84_spill] sm:$0xff]  ;;  %v7930_v5 = vmul.f32 0.044715, %v1733_v18  ;;  %v7936_v19 = vpop.f32.mrf.mxu1  ;;  %v11408_v18 = vld [vmem:[#allocation166_spill] sm:$0xff] }
 0x2bc   : > { %11389 = vst [vmem:[#allocation89_spill] sm:$0xff] %v7898_v24  ;;  %v3231_v24 = vmul.f32 0.5, %v2975_v51  ;;  %v7924_v52 = vadd.f32 %v11400_v62, %v6405_v31  ;;  %v2977_v51 = vadd.f32 1.0, %v5344_v29  ;;  %v2470_v62 = vmul.f32 0.7978846, %v2214_v56 }
 0x2bd   : > { %11392 = vst [vmem:[#allocation94_spill] sm:$0xff] %v7905_v37  ;;  %v1482_v29 = vmul.f32 %v7914_v57, %v7914_v57  ;;  %v7954_v56 = vmul.f32 0.044715, %v1736_v53  ;;  %v11417_v53 = vld [vmem:[#allocation48_spill] sm:$0xff] }
 0x2be   : > { %11397 = vst [vmem:[#allocation45_spill] sm:$0xff] %v7914_v57  ;;  %v1484_v14 = vmul.f32 %v7924_v52, %v7924_v52  ;;  %5353 = vtanh.f32 %v2470_v62  ;;  %v7980_v62 = vmul.f32 %v3232_v17, %v11349_v60 }
 0x2bf   : > { %11399 = vst [vmem:[#allocation81_spill] sm:$0xff] %v7920_v15 }
 0x2c0   : > { %11401 = vst [vmem:[#allocation95_spill] sm:$0xff] %v7924_v52 }
 0x2c1   : > { %11402 = vst [vmem:[#allocation96_spill] sm:$0xff] %v7926_v6  ;;  %v7947_v6 = vmul.f32 0.044715, %v1735_v9  ;;  %4038 = vmatmul.f32.gmra.mxu1 %v11413_v44  ;;  %v1737_v9 = vmul.f32 %v1481_v32, %v7905_v37  ;;  %v3234_v32 = vmul.f32 0.5, %v2978_v13  ;;  %v11420_v37 = vld [vmem:[#allocation92_spill] sm:$0xff]  ;;  %v7989_v13 = vpop.f32.mrf.mxu3  ;;  %v8000_v17 = vpop.f32.mrf.mxu0 }
 0x2c2   : > { %11403 = vst [vmem:[#allocation46_spill] sm:$0xff] %v7928_v61  ;;  %v2215_v61 = vadd.f32 %v11408_v18, %v11407_v48  ;;  %v3233_v18 = vmul.f32 0.5, %v2977_v51  ;;  %v11419_v51 = vld [vmem:[#allocation91_spill] sm:$0xff] }
 0x2c3   : > { %11404 = vst [vmem:[#allocation82_spill] sm:$0xff] %v7934_v22  ;;  %v1483_v22 = vmul.f32 %v7920_v15, %v7920_v15  ;;  %v7972_v25 = vadd.f32 %v11419_v51, %v6415_v23  ;;  %v7987_v51 = vpop.f32.mrf.mxu2 }
 0x2c4   : > { %11405 = vst [vmem:[#allocation83_spill] sm:$0xff] %v7936_v19  ;;  %v7952_v19 = vmul.f32 %v3231_v24, %v11341_v54  ;;  %v11415_v54 = vld [vmem:[#allocation107_spill] sm:$0xff]  ;;  %v11416_v24 = vld [vmem:[#allocation108_spill] sm:$0xff]  ;;  %v2471_v44 = vmul.f32 0.7978846, %v2215_v61  ;;  %v7992_v61 = vmul.f32 %v3233_v18, %v11354_v2  ;;  %v8009_v18 = vmul.f32 %v3234_v32, %v11361_v36 }
 0x2c5   : > { %11406 = vst [vmem:[#allocation84_spill] sm:$0xff] %v7939_v59  ;;  %v11412_v59 = vld [vmem:[#allocation101_spill] sm:$0xff]  ;;  %4247 = vmatmul.f32.gmra.mxu2 %v11415_v54  ;;  %4456 = vmatmul.f32.gmra.mxu3 %v11416_v24  ;;  %v7977_v54 = vadd.f32 %v11420_v37, %v6403_v27  ;;  %v2979_v24 = vadd.f32 1.0, %v5348_v16  ;;  %v8002_v16 = vpop.f32.mrf.mxu1  ;;  %v1486_v2 = vmul.f32 %v7972_v25, %v7972_v25  ;;  %v11438_v32 = vld [vmem:[#allocation112_spill] sm:$0xff] }
 0x2c6   : > { %11409 = vst [vmem:[#allocation47_spill] sm:$0xff] %v7947_v6  ;;  %3829 = vmatmul.f32.gmra.mxu0 %v11412_v59  ;;  %v11414_v6 = vld [vmem:[#allocation90_spill] sm:$0xff]  ;;  %v1738_v59 = vmul.f32 %v1482_v29, %v7914_v57  ;;  %v11423_v29 = vld [vmem:[#allocation93_spill] sm:$0xff]  ;;  %5355 = vtanh.f32 %v2471_v44 }
 0x2c7   : > { %11410 = vst [vmem:[#allocation166_spill] sm:$0xff] %v7952_v19  ;;  %v7963_v46 = vadd.f32 %v11414_v6, %v6411_v8  ;;  %v2216_v19 = vadd.f32 %v11418_v33, %v11417_v53  ;;  %v1739_v6 = vmul.f32 %v1483_v22, %v7920_v15  ;;  %v1740_v33 = vmul.f32 %v1484_v14, %v7924_v52  ;;  %v11428_v22 = vld [vmem:[#allocation49_spill] sm:$0xff]  ;;  %v11441_v52 = vld [vmem:[#allocation115_spill] sm:$0xff] }
 0x2c8   : > { %11411 = vst [vmem:[#allocation201_spill] sm:$0xff] %v7954_v56  ;;  %v5350_v56 = vpop.eup %5349  ;;  %v7985_v57 = vadd.f32 %v11423_v29, %v6405_v31  ;;  %v2217_v37 = vadd.f32 %v7519_v35, %v11428_v22  ;;  %v7996_v15 = vmul.f32 0.044715, %v1737_v9  ;;  %v11439_v44 = vld [vmem:[#allocation113_spill] sm:$0xff] }
 0x2c9   : > { %11421 = vst [vmem:[#allocation101_spill] sm:$0xff] %v7977_v54  ;;  %v1485_v60 = vmul.f32 %v7963_v46, %v7963_v46  ;;  %v2980_v14 = vadd.f32 1.0, %v5350_v56  ;;  %v2472_v29 = vmul.f32 0.7978846, %v2216_v19  ;;  %v8011_v9 = vmul.f32 0.044715, %v1739_v6  ;;  %4041 = vmatmul.f32.gmra.mxu1 %v11439_v44 }
 0x2ca   : > { %11422 = vst [vmem:[#allocation102_spill] sm:$0xff] %v7980_v62  ;;  %v8004_v62 = vmul.f32 0.044715, %v1738_v59  ;;  %v8017_v56 = vmul.f32 0.044715, %v1740_v33  ;;  %v1488_v59 = vmul.f32 %v7985_v57, %v7985_v57 }
 0x2cb   : > { %11424 = vst [vmem:[#allocation90_spill] sm:$0xff] %v7985_v57  ;;  %v2473_v6 = vmul.f32 0.7978846, %v2217_v37  ;;  %5357 = vtanh.f32 %v2472_v29 }
 0x2cc   : > { %11425 = vst [vmem:[#allocation107_spill] sm:$0xff] %v7987_v51  ;;  %v5352_v51 = vpop.eup %5351  ;;  %v1744_v29 = vmul.f32 %v1488_v59, %v7985_v57  ;;  %v11455_v57 = vld [vmem:[#allocation50_spill] sm:$0xff] }
 0x2cd   : > { %11426 = vst [vmem:[#allocation108_spill] sm:$0xff] %v7989_v13  ;;  %v5354_v35 = vpop.eup %5353  ;;  %v3235_v13 = vmul.f32 0.5, %v2979_v24  ;;  %v11440_v24 = vld [vmem:[#allocation114_spill] sm:$0xff]  ;;  %4459 = vmatmul.f32.gmra.mxu3 %v11441_v52  ;;  %v2981_v33 = vadd.f32 1.0, %v5352_v51  ;;  %5359 = vtanh.f32 %v2473_v6 }
 0x2ce   : > { %11427 = vst [vmem:[#allocation48_spill] sm:$0xff] %v7992_v61  ;;  %v11436_v61 = vld [vmem:[#allocation97_spill] sm:$0xff]  ;;  %3832 = vmatmul.f32.gmra.mxu0 %v11438_v32  ;;  %4250 = vmatmul.f32.gmra.mxu2 %v11440_v24  ;;  %v11444_v32 = vld [vmem:[#allocation135_spill] sm:$0xff] }
 0x2cf   : > { %11429 = vst [vmem:[#allocation167_spill] sm:$0xff] %v8000_v17  ;;  %v1487_v17 = vmul.f32 %v7977_v54, %v7977_v54  ;;  %v8023_v36 = vadd.f32 %v11436_v61, %v6411_v8  ;;  %v2219_v44 = vadd.f32 %v7537_v20, %v11444_v32  ;;  %v8043_v52 = vmul.f32 %v3235_v13, %v11373_v43  ;;  %v8052_v20 = vpop.f32.mrf.mxu2  ;;  %v8058_v43 = vpop.f32.mrf.mxu0 }
 0x2d0   : > { %11430 = vst [vmem:[#allocation91_spill] sm:$0xff] %v8002_v16  ;;  %v11434_v16 = vld [vmem:[#allocation21_spill] sm:$0xff]  ;;  %v8060_v13 = vpop.f32.mrf.mxu1  ;;  %v3237_v59 = vmul.f32 0.5, %v2981_v33  ;;  %v8077_v33 = vmul.f32 0.044715, %v1744_v29  ;;  %v11466_v29 = vld [vmem:[#allocation119_spill] sm:$0xff] }
 0x2d1   : > { %11431 = vst [vmem:[#allocation92_spill] sm:$0xff] %v8004_v62  ;;  %v2218_v19 = vadd.f32 %v7532_v11, %v11434_v16  ;;  %v3236_v11 = vmul.f32 0.5, %v2980_v14  ;;  %v2982_v62 = vadd.f32 1.0, %v5354_v35  ;;  %v1743_v37 = vmul.f32 %v1487_v17, %v7977_v54  ;;  %v5356_v14 = vpop.eup %5355  ;;  %v11448_v35 = vld [vmem:[#allocation100_spill] sm:$0xff]  ;;  %v8054_v17 = vpop.f32.mrf.mxu3 }
 0x2d2   : > { %11432 = vst [vmem:[#allocation93_spill] sm:$0xff] %v8009_v18  ;;  %v1741_v18 = vmul.f32 %v1485_v60, %v7963_v46  ;;  %v11445_v60 = vld [vmem:[#allocation99_spill] sm:$0xff]  ;;  %v2475_v6 = vmul.f32 0.7978846, %v2219_v44  ;;  %v2983_v54 = vadd.f32 1.0, %v5356_v14  ;;  %v11460_v44 = vld [vmem:[#allocation13_spill] sm:$0xff] }
 0x2d3   : > { %11433 = vst [vmem:[#allocation49_spill] sm:$0xff] %v8011_v9  ;;  %v11442_v9 = vld [vmem:[#allocation98_spill] sm:$0xff]  ;;  %v8040_v24 = vadd.f32 %v11445_v60, %v6403_v27  ;;  %v2474_v51 = vmul.f32 0.7978846, %v2218_v19  ;;  %v8063_v19 = vmul.f32 %v3236_v11, %v11381_v39  ;;  %v2221_v39 = vadd.f32 %v7570_v47, %v7485_v4  ;;  %4044 = vmatmul.f32.gmra.mxu1 %v11460_v44  ;;  %v11468_v44 = vld [vmem:[#allocation105_spill] sm:$0xff] }
 0x2d4   : > { %11435 = vst [vmem:[#allocation21_spill] sm:$0xff] %v8017_v56  ;;  %v1742_v56 = vmul.f32 %v1486_v2, %v7972_v25  ;;  %v8033_v61 = vadd.f32 %v11442_v9, %v6415_v23  ;;  %v1489_v2 = vmul.f32 %v8023_v36, %v8023_v36  ;;  %v8050_v9 = vadd.f32 %v11448_v35, %v6405_v31 }
 0x2d5   : > { %11437 = vst [vmem:[#allocation97_spill] sm:$0xff] %v8023_v36  ;;  %v8056_v60 = vmul.f32 0.044715, %v1741_v18  ;;  %v5358_v18 = vpop.eup %5357  ;;  %5361 = vtanh.f32 %v2474_v51  ;;  %v8075_v11 = vmul.f32 0.044715, %v1743_v37  ;;  %v11463_v51 = vld [vmem:[#allocation104_spill] sm:$0xff]  ;;  %4462 = vmatmul.f32.gmra.mxu3 %v11466_v29 }
 0x2d6   : > { %11443 = vst [vmem:[#allocation112_spill] sm:$0xff] %v8033_v61  ;;  %v8067_v35 = vmul.f32 0.044715, %v1742_v56  ;;  %v1492_v56 = vmul.f32 %v8050_v9, %v8050_v9  ;;  %v8090_v47 = vadd.f32 %v11463_v51, %v6415_v23  ;;  %v11465_v37 = vld [vmem:[#allocation118_spill] sm:$0xff]  ;;  %5363 = vtanh.f32 %v2475_v6 }
 0x2d7   : > { %11446 = vst [vmem:[#allocation113_spill] sm:$0xff] %v8040_v24  ;;  %4253 = vmatmul.f32.gmra.mxu2 %v11465_v37  ;;  %v3239_v37 = vmul.f32 0.5, %v2983_v54  ;;  %v2477_v29 = vmul.f32 0.7978846, %v2221_v39  ;;  %v11476_v6 = vld [vmem:[#allocation26_spill] sm:$0xff] }
 0x2d8   : > { %11447 = vst [vmem:[#allocation114_spill] sm:$0xff] %v8043_v52  ;;  %v2220_v52 = vadd.f32 %v7539_v10, %v11455_v57  ;;  %v1745_v10 = vmul.f32 %v1489_v2, %v8023_v36  ;;  %v8095_v2 = vmul.f32 %v3237_v59, %v11390_v45  ;;  %v1748_v45 = vmul.f32 %v1492_v56, %v8050_v9  ;;  %v8113_v59 = vpop.f32.mrf.mxu2  ;;  %v8125_v39 = vpop.f32.mrf.mxu1 }
 0x2d9   : > { %11449 = vst [vmem:[#allocation115_spill] sm:$0xff] %v8050_v9  ;;  %v1494_v54 = vmul.f32 %v8090_v47, %v8090_v47 }
 0x2da   : > { %11450 = vst [vmem:[#allocation98_spill] sm:$0xff] %v8052_v20  ;;  %v1490_v20 = vmul.f32 %v8033_v61, %v8033_v61  ;;  %v2476_v36 = vmul.f32 0.7978846, %v2220_v52  ;;  %v11472_v52 = vld [vmem:[#allocation106_spill] sm:$0xff] }
 0x2db   : > { %11451 = vst [vmem:[#allocation135_spill] sm:$0xff] %v8054_v17  ;;  %v3238_v17 = vmul.f32 0.5, %v2982_v62  ;;  %v11459_v62 = vld [vmem:[#allocation116_spill] sm:$0xff] }
 0x2dc   : > { %11452 = vst [vmem:[#allocation99_spill] sm:$0xff] %v8058_v43  ;;  %v1491_v43 = vmul.f32 %v8040_v24, %v8040_v24  ;;  %3835 = vmatmul.f32.gmra.mxu0 %v11459_v62  ;;  %v1746_v62 = vmul.f32 %v1490_v20, %v8033_v61  ;;  %v8111_v20 = vadd.f32 %v11472_v52, %v6405_v31  ;;  %5365 = vtanh.f32 %v2476_v36 }
 0x2dd   : > { %11453 = vst [vmem:[#allocation100_spill] sm:$0xff] %v8060_v13  ;;  %v11461_v13 = vld [vmem:[#allocation103_spill] sm:$0xff]  ;;  %5367 = vtanh.f32 %v2477_v29  ;;  %v8140_v36 = vmul.f32 0.044715, %v1748_v45  ;;  %v11491_v29 = vld [vmem:[#allocation125_spill] sm:$0xff] }
 0x2de   : > { %11454 = vst [vmem:[#allocation202_spill] sm:$0xff] %v8063_v19  ;;  %v8086_v14 = vadd.f32 %v11461_v13, %v6411_v8  ;;  %v8100_v19 = vadd.f32 %v11468_v44, %v6403_v27  ;;  %v2984_v13 = vadd.f32 1.0, %v5358_v18  ;;  %v1747_v51 = vmul.f32 %v1491_v43, %v8040_v24  ;;  %v8115_v44 = vpop.f32.mrf.mxu3  ;;  %v11477_v18 = vld [vmem:[#allocation173_spill] sm:$0xff]  ;;  %v11492_v45 = vld [vmem:[#allocation127_spill] sm:$0xff] }
 0x2df   : > { %11456 = vst [vmem:[#allocation50_spill] sm:$0xff] %v8067_v35  ;;  %v8106_v35 = vmul.f32 0.044715, %v1745_v10  ;;  %v2222_v43 = vadd.f32 %v11477_v18, %v11476_v6  ;;  %v8127_v56 = vmul.f32 0.044715, %v1746_v62  ;;  %v11481_v18 = vld [vmem:[#allocation54_spill] sm:$0xff]  ;;  %4256 = vmatmul.f32.gmra.mxu2 %v11491_v29  ;;  %4465 = vmatmul.f32.gmra.mxu3 %v11492_v45 }
 0x2e0   : > { %11457 = vst [vmem:[#allocation203_spill] sm:$0xff] %v8075_v11  ;;  %v8104_v11 = vmul.f32 %v3238_v17, %v11395_v21  ;;  %v1493_v21 = vmul.f32 %v8086_v14, %v8086_v14  ;;  %v8123_v17 = vpop.f32.mrf.mxu0  ;;  %v1495_v52 = vmul.f32 %v8100_v19, %v8100_v19  ;;  %v8133_v61 = vmul.f32 0.044715, %v1747_v51  ;;  %v11487_v62 = vld [vmem:[#allocation8_spill] sm:$0xff]  ;;  %v11498_v45 = vld [vmem:[#allocation111_spill] sm:$0xff] }
 0x2e1   : > { %11458 = vst [vmem:[#allocation204_spill] sm:$0xff] %v8077_v33  ;;  %v5360_v33 = vpop.eup %5359 }
 0x2e2   : > { %11462 = vst [vmem:[#allocation116_spill] sm:$0xff] %v8086_v14  ;;  %v5362_v24 = vpop.eup %5361  ;;  %v2985_v10 = vadd.f32 1.0, %v5360_v33 }
 0x2e3   : > { %11464 = vst [vmem:[#allocation13_spill] sm:$0xff] %v8090_v47  ;;  %v5364_v33 = vpop.eup %5363  ;;  %v2986_v51 = vadd.f32 1.0, %v5362_v24 }
 0x2e4   : > { %11467 = vst [vmem:[#allocation103_spill] sm:$0xff] %v8095_v2  ;;  %v11490_v2 = vld [vmem:[#allocation123_spill] sm:$0xff] }
 0x2e5   : > { %11469 = vst [vmem:[#allocation104_spill] sm:$0xff] %v8100_v19  ;;  %4047 = vmatmul.f32.gmra.mxu1 %v11490_v2 }
 0x2e6   : > { %11470 = vst [vmem:[#allocation118_spill] sm:$0xff] %v8104_v11  ;;  %v11485_v11 = vld [vmem:[#allocation177_spill] sm:$0xff] }
 0x2e7   : > { %11471 = vst [vmem:[#allocation119_spill] sm:$0xff] %v8106_v35  ;;  %v8136_v35 = vmul.f32 %v3239_v37, %v11407_v48  ;;  %v1749_v48 = vmul.f32 %v1493_v21, %v8086_v14  ;;  %v1750_v37 = vmul.f32 %v1494_v54, %v8090_v47  ;;  %v11496_v21 = vld [vmem:[#allocation110_spill] sm:$0xff]  ;;  %v2987_v47 = vadd.f32 1.0, %v5364_v33  ;;  %v8185_v14 = vpop.f32.mrf.mxu1 }
 0x2e8   : > { %11473 = vst [vmem:[#allocation105_spill] sm:$0xff] %v8111_v20  ;;  %v8164_v54 = vadd.f32 %v11496_v21, %v6403_v27  ;;  %v8183_v33 = vpop.f32.mrf.mxu0 }
 0x2e9   : > { %11474 = vst [vmem:[#allocation106_spill] sm:$0xff] %v8113_v59  ;;  %v11482_v59 = vld [vmem:[#allocation176_spill] sm:$0xff] }
 0x2ea   : > { %11475 = vst [vmem:[#allocation205_spill] sm:$0xff] %v8115_v44  ;;  %v3240_v44 = vmul.f32 0.5, %v2984_v13  ;;  %v2223_v9 = vadd.f32 %v11482_v59, %v11481_v18  ;;  %v11489_v13 = vld [vmem:[#allocation122_spill] sm:$0xff]  ;;  %v2478_v59 = vmul.f32 0.7978846, %v2222_v43  ;;  %v5366_v43 = vpop.eup %5365 }
 0x2eb   : > { %11478 = vst [vmem:[#allocation26_spill] sm:$0xff] %v8123_v17  ;;  %v11484_v17 = vld [vmem:[#allocation55_spill] sm:$0xff]  ;;  %3838 = vmatmul.f32.gmra.mxu0 %v11489_v13  ;;  %v11493_v13 = vld [vmem:[#allocation109_spill] sm:$0xff]  ;;  %v5368_v21 = vpop.eup %5367 }
 0x2ec   : > { %11479 = vst [vmem:[#allocation173_spill] sm:$0xff] %v8125_v39  ;;  %v2224_v39 = vadd.f32 %v11485_v11, %v11484_v17  ;;  %v1496_v11 = vmul.f32 %v8111_v20, %v8111_v20  ;;  %v8160_v24 = vmul.f32 %v3240_v44, %v11417_v53  ;;  %v2479_v2 = vmul.f32 0.7978846, %v2223_v9  ;;  %v8174_v53 = vpop.f32.mrf.mxu2  ;;  %v8176_v9 = vpop.f32.mrf.mxu3 }
 0x2ed   : > { %11480 = vst [vmem:[#allocation206_spill] sm:$0xff] %v8127_v56  ;;  %v8144_v56 = vadd.f32 %v11487_v62, %v6411_v8  ;;  %v1751_v62 = vmul.f32 %v1495_v52, %v8100_v19  ;;  %v3242_v44 = vmul.f32 0.5, %v2986_v51  ;;  %5369 = vtanh.f32 %v2478_v59 }
 0x2ee   : > { %11483 = vst [vmem:[#allocation54_spill] sm:$0xff] %v8133_v61  ;;  %v8157_v61 = vadd.f32 %v11493_v13, %v6415_v23  ;;  %v2480_v29 = vmul.f32 0.7978846, %v2224_v39  ;;  %v8172_v13 = vadd.f32 %v11498_v45, %v6405_v31  ;;  %v8178_v19 = vmul.f32 0.044715, %v1749_v48 }
 0x2ef   : > { %11486 = vst [vmem:[#allocation176_spill] sm:$0xff] %v8140_v36  ;;  %v3241_v36 = vmul.f32 0.5, %v2985_v10  ;;  %v2225_v10 = vadd.f32 %v7636_v38, %v7550_v58  ;;  %v1497_v52 = vmul.f32 %v8144_v56, %v8144_v56  ;;  %v8180_v39 = vmul.f32 0.044715, %v1750_v37 }
 0x2f0   : > { %11488 = vst [vmem:[#allocation55_spill] sm:$0xff] %v8144_v56  ;;  %v1752_v38 = vmul.f32 %v1496_v11, %v8111_v20  ;;  %v1498_v51 = vmul.f32 %v8157_v61, %v8157_v61  ;;  %v2988_v59 = vadd.f32 1.0, %v5366_v43  ;;  %5371 = vtanh.f32 %v2479_v2 }
 0x2f1   : > { %11494 = vst [vmem:[#allocation177_spill] sm:$0xff] %v8157_v61  ;;  %v8188_v45 = vmul.f32 %v3241_v36, %v11428_v22  ;;  %v1499_v48 = vmul.f32 %v8164_v54, %v8164_v54  ;;  %v3243_v37 = vmul.f32 0.5, %v2987_v47  ;;  %5373 = vtanh.f32 %v2480_v29  ;;  %v11506_v22 = vld [vmem:[#allocation128_spill] sm:$0xff]  ;;  %v11507_v36 = vld [vmem:[#allocation129_spill] sm:$0xff]  ;;  %v11511_v29 = vld [vmem:[#allocation10_spill] sm:$0xff] }
 0x2f2   : > { %11495 = vst [vmem:[#allocation8_spill] sm:$0xff] %v8160_v24  ;;  %v8190_v24 = vmul.f32 0.044715, %v1751_v62  ;;  %v2481_v11 = vmul.f32 0.7978846, %v2225_v10  ;;  %4050 = vmatmul.f32.gmra.mxu1 %v11507_v36  ;;  %v8202_v62 = vmul.f32 %v3242_v44, %v11434_v16  ;;  %v2989_v43 = vadd.f32 1.0, %v5368_v21 }
 0x2f3   : > { %11497 = vst [vmem:[#allocation122_spill] sm:$0xff] %v8164_v54  ;;  %3841 = vmatmul.f32.gmra.mxu0 %v11506_v22  ;;  %v8204_v2 = vmul.f32 0.044715, %v1752_v38  ;;  %v8212_v10 = vadd.f32 %v11511_v29, %v6415_v23  ;;  %v2226_v22 = vadd.f32 %v7648_v63, %v7554_v41  ;;  %v5370_v16 = vpop.eup %5369  ;;  %v1754_v44 = vmul.f32 %v1498_v51, %v8157_v61  ;;  %v11515_v21 = vld [vmem:[#allocation11_spill] sm:$0xff] }
 0x2f4   : > { %11499 = vst [vmem:[#allocation123_spill] sm:$0xff] %v8172_v13  ;;  %v8221_v38 = vadd.f32 %v11515_v21, %v6403_v27  ;;  %v2227_v36 = vadd.f32 %v7650_v50, %v7558_v3  ;;  %v1755_v29 = vmul.f32 %v1499_v48, %v8164_v54  ;;  %5375 = vtanh.f32 %v2481_v11  ;;  %v8235_v61 = vpop.f32.mrf.mxu2 }
 0x2f5   : > { %11500 = vst [vmem:[#allocation125_spill] sm:$0xff] %v8174_v53  ;;  %v11514_v53 = vld [vmem:[#allocation134_spill] sm:$0xff]  ;;  %v8240_v50 = vmul.f32 %v3243_v37, %v11444_v32  ;;  %v3245_v48 = vmul.f32 0.5, %v2989_v43 }
 0x2f6   : > { %11501 = vst [vmem:[#allocation127_spill] sm:$0xff] %v8176_v9  ;;  %v11509_v9 = vld [vmem:[#allocation9_spill] sm:$0xff]  ;;  %4468 = vmatmul.f32.gmra.mxu3 %v11514_v53  ;;  %v1503_v32 = vmul.f32 %v8221_v38, %v8221_v38  ;;  %v2483_v43 = vmul.f32 0.7978846, %v2227_v36 }
 0x2f7   : > { %11502 = vst [vmem:[#allocation109_spill] sm:$0xff] %v8180_v39  ;;  %v8208_v47 = vadd.f32 %v11509_v9, %v6411_v8  ;;  %v3244_v9 = vmul.f32 0.5, %v2988_v59  ;;  %v11519_v53 = vld [vmem:[#allocation57_spill] sm:$0xff]  ;;  %v8237_v59 = vpop.f32.mrf.mxu3  ;;  %v11565_v39 = vld [vmem:[#allocation124_spill] sm:$0xff] }
 0x2f8   : > { %11503 = vst [vmem:[#allocation110_spill] sm:$0xff] %v8183_v33  ;;  %v1753_v33 = vmul.f32 %v1497_v52, %v8144_v56  ;;  %v11513_v52 = vld [vmem:[#allocation132_spill] sm:$0xff]  ;;  %v2228_v63 = vadd.f32 %v7658_v49, %v11519_v53  ;;  %v1502_v49 = vmul.f32 %v8212_v10, %v8212_v10 }
 0x2f9   : > { %11504 = vst [vmem:[#allocation111_spill] sm:$0xff] %v8185_v14  ;;  %v1500_v14 = vmul.f32 %v8172_v13, %v8172_v13  ;;  %4259 = vmatmul.f32.gmra.mxu2 %v11513_v52  ;;  %v11517_v52 = vld [vmem:[#allocation12_spill] sm:$0xff]  ;;  %v1501_v11 = vmul.f32 %v8208_v47, %v8208_v47  ;;  %v8255_v37 = vmul.f32 %v3244_v9, %v11455_v57 }
 0x2fa   : > { %11505 = vst [vmem:[#allocation207_spill] sm:$0xff] %v8190_v24  ;;  %v8228_v56 = vadd.f32 %v11517_v52, %v6405_v31  ;;  %v8232_v51 = vmul.f32 0.044715, %v1753_v33  ;;  %v8246_v52 = vpop.f32.mrf.mxu0  ;;  %v8248_v33 = vpop.f32.mrf.mxu1  ;;  %v2484_v20 = vmul.f32 0.7978846, %v2228_v63  ;;  %v11530_v63 = vld [vmem:[#allocation33_spill] sm:$0xff] }
 0x2fb   : > { %11508 = vst [vmem:[#allocation128_spill] sm:$0xff] %v8204_v2  ;;  %v5372_v2 = vpop.eup %5371  ;;  %v1756_v21 = vmul.f32 %v1500_v14, %v8172_v13  ;;  %v2990_v14 = vadd.f32 1.0, %v5370_v16  ;;  %v2482_v13 = vmul.f32 0.7978846, %v2226_v22  ;;  %v11528_v22 = vld [vmem:[#allocation137_spill] sm:$0xff] }
 0x2fc   : > { %11510 = vst [vmem:[#allocation129_spill] sm:$0xff] %v8208_v47  ;;  %v5374_v54 = vpop.eup %5373  ;;  %3844 = vmatmul.f32.gmra.mxu0 %v11528_v22  ;;  %v2991_v57 = vadd.f32 1.0, %v5372_v2  ;;  %v11532_v22 = vld [vmem:[#allocation14_spill] sm:$0xff] }
 0x2fd   : > { %11512 = vst [vmem:[#allocation9_spill] sm:$0xff] %v8212_v10  ;;  %v8263_v16 = vmul.f32 0.044715, %v1756_v21  ;;  %v2992_v9 = vadd.f32 1.0, %v5374_v54  ;;  %v5376_v36 = vpop.eup %5375  ;;  %5377 = vtanh.f32 %v2482_v13  ;;  %v1759_v21 = vmul.f32 %v1503_v32, %v8221_v38  ;;  %v11538_v13 = vld [vmem:[#allocation117_spill] sm:$0xff] }
 0x2fe   : > { %11516 = vst [vmem:[#allocation10_spill] sm:$0xff] %v8221_v38  ;;  %5379 = vtanh.f32 %v2483_v43  ;;  %v11553_v38 = vld [vmem:[#allocation37_spill] sm:$0xff] }
 0x2ff   : > { %11518 = vst [vmem:[#allocation132_spill] sm:$0xff] %v8228_v56  ;;  %5381 = vtanh.f32 %v2484_v20  ;;  %v8294_v32 = vpop.f32.mrf.mxu3 }
 0x300   : > { %11520 = vst [vmem:[#allocation134_spill] sm:$0xff] %v8232_v51  ;;  %v1504_v51 = vmul.f32 %v8228_v56, %v8228_v56 }
 0x301   : > { %11521 = vst [vmem:[#allocation11_spill] sm:$0xff] %v8235_v61  ;;  %v8250_v61 = vmul.f32 0.044715, %v1754_v44  ;;  %v11529_v44 = vld [vmem:[#allocation138_spill] sm:$0xff]  ;;  %4262 = vmatmul.f32.gmra.mxu2 %v11530_v63  ;;  %v3247_v63 = vmul.f32 0.5, %v2991_v57 }
 0x302   : > { %11522 = vst [vmem:[#allocation12_spill] sm:$0xff] %v8237_v59  ;;  %v8257_v59 = vmul.f32 0.044715, %v1755_v29  ;;  %4053 = vmatmul.f32.gmra.mxu1 %v11529_v44  ;;  %v1757_v29 = vmul.f32 %v1501_v11, %v8208_v47  ;;  %v8277_v44 = vadd.f32 %v11532_v22, %v6411_v8  ;;  %v1760_v2 = vmul.f32 %v1504_v51, %v8228_v56  ;;  %v8300_v56 = vpop.f32.mrf.mxu0 }
 0x303   : > { %11523 = vst [vmem:[#allocation57_spill] sm:$0xff] %v8246_v52  ;;  %v8268_v52 = vmul.f32 %v3245_v48, %v7485_v4  ;;  %v11534_v4 = vld [vmem:[#allocation15_spill] sm:$0xff]  ;;  %v11536_v48 = vld [vmem:[#allocation16_spill] sm:$0xff]  ;;  %v3248_v22 = vmul.f32 0.5, %v2992_v9 }
 0x304   : > { %11524 = vst [vmem:[#allocation208_spill] sm:$0xff] %v8248_v33  ;;  %v2229_v33 = vadd.f32 %v7684_v40, %v7602_v42  ;;  %v3246_v40 = vmul.f32 0.5, %v2990_v14  ;;  %v8281_v54 = vadd.f32 %v11534_v4, %v6415_v23  ;;  %v8286_v11 = vadd.f32 %v11536_v48, %v6403_v27  ;;  %v8292_v14 = vpop.f32.mrf.mxu2  ;;  %v8302_v48 = vpop.f32.mrf.mxu1  ;;  %3847 = vmatmul.f32.gmra.mxu0 %v11553_v38  ;;  %v11561_v38 = vld [vmem:[#allocation149_spill] sm:$0xff] }
 0x305   : > { %11525 = vst [vmem:[#allocation209_spill] sm:$0xff] %v8250_v61  ;;  %v11531_v61 = vld [vmem:[#allocation140_spill] sm:$0xff]  ;;  %v2993_v4 = vadd.f32 1.0, %v5376_v36  ;;  %v8296_v43 = vmul.f32 0.044715, %v1757_v29  ;;  %v1505_v57 = vmul.f32 %v8277_v44, %v8277_v44  ;;  %v11549_v36 = vld [vmem:[#allocation35_spill] sm:$0xff] }
 0x306   : > { %11526 = vst [vmem:[#allocation210_spill] sm:$0xff] %v8257_v59  ;;  %v1758_v59 = vmul.f32 %v1502_v49, %v8212_v10  ;;  %4471 = vmatmul.f32.gmra.mxu3 %v11531_v61  ;;  %v2485_v61 = vmul.f32 0.7978846, %v2229_v33  ;;  %v8290_v49 = vadd.f32 %v11538_v13, %v6405_v31  ;;  %v8305_v20 = vmul.f32 %v3246_v40, %v11476_v6  ;;  %v11546_v33 = vld [vmem:[#allocation34_spill] sm:$0xff]  ;;  %v11551_v40 = vld [vmem:[#allocation143_spill] sm:$0xff] }
 0x307   : > { %11527 = vst [vmem:[#allocation211_spill] sm:$0xff] %v8263_v16  ;;  %v2230_v13 = vadd.f32 %v11546_v33, %v7606_v0  ;;  %v1506_v9 = vmul.f32 %v8281_v54, %v8281_v54  ;;  %v1507_v6 = vmul.f32 %v8286_v11, %v8286_v11  ;;  %v11552_v33 = vld [vmem:[#allocation188_spill] sm:$0xff] }
 0x308   : > { %11533 = vst [vmem:[#allocation137_spill] sm:$0xff] %v8277_v44  ;;  %v8298_v51 = vmul.f32 0.044715, %v1758_v59  ;;  %v11548_v59 = vld [vmem:[#allocation62_spill] sm:$0xff]  ;;  %5383 = vtanh.f32 %v2485_v61  ;;  %v11556_v61 = vld [vmem:[#allocation120_spill] sm:$0xff] }
 0x309   : > { %11535 = vst [vmem:[#allocation138_spill] sm:$0xff] %v8281_v54  ;;  %v2231_v29 = vadd.f32 %v11549_v36, %v11548_v59  ;;  %v8328_v36 = vmul.f32 %v3247_v63, %v11481_v18  ;;  %v11560_v16 = vld [vmem:[#allocation148_spill] sm:$0xff]  ;;  %v11562_v18 = vld [vmem:[#allocation65_spill] sm:$0xff] }
 0x30a   : > { %11537 = vst [vmem:[#allocation33_spill] sm:$0xff] %v8286_v11  ;;  %4265 = vmatmul.f32.gmra.mxu2 %v11560_v16  ;;  %v2233_v63 = vadd.f32 %v7754_v26, %v11562_v18  ;;  %v8354_v16 = vadd.f32 %v11565_v39, %v6405_v31 }
 0x30b   : > { %11539 = vst [vmem:[#allocation140_spill] sm:$0xff] %v8290_v49  ;;  %v2487_v24 = vmul.f32 0.7978846, %v2231_v29 }
 0x30c   : > { %11540 = vst [vmem:[#allocation14_spill] sm:$0xff] %v8292_v14  ;;  %v8309_v14 = vmul.f32 0.044715, %v1759_v21  ;;  %v2232_v21 = vadd.f32 %v11552_v33, %v11551_v40  ;;  %v11558_v33 = vld [vmem:[#allocation121_spill] sm:$0xff]  ;;  %v8357_v26 = vpop.f32.mrf.mxu2 }
 0x30d   : > { %11541 = vst [vmem:[#allocation15_spill] sm:$0xff] %v8294_v32  ;;  %v8317_v32 = vmul.f32 0.044715, %v1760_v2  ;;  %v8331_v2 = vmul.f32 %v3248_v22, %v11484_v17  ;;  %v8339_v47 = vadd.f32 %v11558_v33, %v6415_v23  ;;  %v1761_v17 = vmul.f32 %v1505_v57, %v8277_v44  ;;  %v8359_v57 = vpop.f32.mrf.mxu3  ;;  %v11611_v44 = vld [vmem:[#allocation28_spill] sm:$0xff] }
 0x30e   : > { %11542 = vst [vmem:[#allocation16_spill] sm:$0xff] %v8296_v43  ;;  %v8335_v43 = vadd.f32 %v11556_v61, %v6411_v8  ;;  %4474 = vmatmul.f32.gmra.mxu3 %v11561_v38  ;;  %v1762_v22 = vmul.f32 %v1506_v9, %v8281_v54  ;;  %v1763_v33 = vmul.f32 %v1507_v6, %v8286_v11 }
 0x30f   : > { %11543 = vst [vmem:[#allocation117_spill] sm:$0xff] %v8298_v51  ;;  %v11554_v51 = vld [vmem:[#allocation144_spill] sm:$0xff]  ;;  %v1510_v39 = vmul.f32 %v8339_v47, %v8339_v47 }
 0x310   : > { %11544 = vst [vmem:[#allocation212_spill] sm:$0xff] %v8300_v56  ;;  %v5378_v56 = vpop.eup %5377  ;;  %4056 = vmatmul.f32.gmra.mxu1 %v11554_v51  ;;  %v2486_v51 = vmul.f32 0.7978846, %v2230_v13  ;;  %v2488_v13 = vmul.f32 0.7978846, %v2232_v21  ;;  %v1509_v6 = vmul.f32 %v8335_v43, %v8335_v43  ;;  %v8370_v21 = vpop.f32.mrf.mxu1 }
 0x311   : > { %11545 = vst [vmem:[#allocation213_spill] sm:$0xff] %v8302_v48  ;;  %v5380_v48 = vpop.eup %5379  ;;  %v2994_v38 = vadd.f32 1.0, %v5378_v56  ;;  %v8368_v56 = vpop.f32.mrf.mxu0 }
 0x312   : > { %11547 = vst [vmem:[#allocation34_spill] sm:$0xff] %v8309_v14  ;;  %v1508_v14 = vmul.f32 %v8290_v49, %v8290_v49  ;;  %v5382_v10 = vpop.eup %5381  ;;  %5385 = vtanh.f32 %v2486_v51  ;;  %v11576_v51 = vld [vmem:[#allocation154_spill] sm:$0xff] }
 0x313   : > { %11550 = vst [vmem:[#allocation62_spill] sm:$0xff] %v8317_v32  ;;  %v3249_v32 = vmul.f32 0.5, %v2993_v4  ;;  %v11563_v4 = vld [vmem:[#allocation20_spill] sm:$0xff]  ;;  %v2996_v54 = vadd.f32 1.0, %v5382_v10  ;;  %v5384_v29 = vpop.eup %5383  ;;  %5387 = vtanh.f32 %v2487_v24  ;;  %v11572_v10 = vld [vmem:[#allocation66_spill] sm:$0xff]  ;;  %v1765_v24 = vmul.f32 %v1509_v6, %v8335_v43 }
 0x314   : > { %11555 = vst [vmem:[#allocation35_spill] sm:$0xff] %v8331_v2  ;;  %v8349_v61 = vadd.f32 %v11563_v4, %v6403_v27  ;;  %v1764_v2 = vmul.f32 %v1508_v14, %v8290_v49  ;;  %v2995_v4 = vadd.f32 1.0, %v5380_v48  ;;  %v2489_v14 = vmul.f32 0.7978846, %v2233_v63 }
 0x315   : > { %11557 = vst [vmem:[#allocation143_spill] sm:$0xff] %v8335_v43  ;;  %v8362_v9 = vmul.f32 %v3249_v32, %v7550_v58  ;;  %v2234_v32 = vadd.f32 %v7763_v34, %v11572_v10  ;;  %v8378_v48 = vmul.f32 0.044715, %v1762_v22  ;;  %5389 = vtanh.f32 %v2488_v13  ;;  %v11577_v22 = vld [vmem:[#allocation156_spill] sm:$0xff] }
 0x316   : > { %11559 = vst [vmem:[#allocation188_spill] sm:$0xff] %v8339_v47  ;;  %v1511_v58 = vmul.f32 %v8349_v61, %v8349_v61  ;;  %v3250_v63 = vmul.f32 0.5, %v2994_v38  ;;  %v3252_v49 = vmul.f32 0.5, %v2996_v54  ;;  %v2997_v11 = vadd.f32 1.0, %v5384_v29  ;;  %4268 = vmatmul.f32.gmra.mxu2 %v11577_v22  ;;  %v11583_v54 = vld [vmem:[#allocation23_spill] sm:$0xff] }
 0x317   : > { %11564 = vst [vmem:[#allocation37_spill] sm:$0xff] %v8349_v61  ;;  %v1766_v34 = vmul.f32 %v1510_v39, %v8339_v47  ;;  %5391 = vtanh.f32 %v2489_v14  ;;  %v2490_v29 = vmul.f32 0.7978846, %v2234_v32  ;;  %v8401_v39 = vmul.f32 0.044715, %v1764_v2  ;;  %v11586_v14 = vld [vmem:[#allocation24_spill] sm:$0xff]  ;;  %v8414_v47 = vpop.f32.mrf.mxu3 }
 0x318   : > { %11566 = vst [vmem:[#allocation144_spill] sm:$0xff] %v8354_v16  ;;  %4059 = vmatmul.f32.gmra.mxu1 %v11576_v51  ;;  %v11581_v51 = vld [vmem:[#allocation22_spill] sm:$0xff]  ;;  %v5386_v6 = vpop.eup %5385  ;;  %v8417_v32 = vmul.f32 %v3250_v63, %v7554_v41  ;;  %v11600_v41 = vld [vmem:[#allocation193_spill] sm:$0xff] }
 0x319   : > { %11567 = vst [vmem:[#allocation120_spill] sm:$0xff] %v8357_v26  ;;  %v8372_v26 = vmul.f32 0.044715, %v1761_v17  ;;  %v3251_v17 = vmul.f32 0.5, %v2995_v4  ;;  %v8395_v38 = vadd.f32 %v11581_v51, %v6411_v8  ;;  %v8399_v4 = vadd.f32 %v11583_v54, %v6415_v23  ;;  %v5388_v51 = vpop.eup %5387  ;;  %v8429_v43 = vpop.f32.mrf.mxu0 }
 0x31a   : > { %11568 = vst [vmem:[#allocation121_spill] sm:$0xff] %v8359_v57  ;;  %v8380_v57 = vmul.f32 0.044715, %v1763_v33  ;;  %v11578_v33 = vld [vmem:[#allocation159_spill] sm:$0xff]  ;;  %v3253_v54 = vmul.f32 0.5, %v2997_v11  ;;  %5393 = vtanh.f32 %v2490_v29 }
 0x31b   : > { %11569 = vst [vmem:[#allocation148_spill] sm:$0xff] %v8368_v56  ;;  %v1512_v56 = vmul.f32 %v8354_v16, %v8354_v16  ;;  %4477 = vmatmul.f32.gmra.mxu3 %v11578_v33  ;;  %v8406_v33 = vadd.f32 %v11586_v14, %v6403_v27  ;;  %v8420_v2 = vmul.f32 %v3251_v17, %v7558_v3  ;;  %v5390_v14 = vpop.eup %5389 }
 0x31c   : > { %11570 = vst [vmem:[#allocation149_spill] sm:$0xff] %v8370_v21  ;;  %v11575_v21 = vld [vmem:[#allocation18_spill] sm:$0xff]  ;;  %v1513_v3 = vmul.f32 %v8395_v38, %v8395_v38  ;;  %v3000_v29 = vadd.f32 1.0, %v5390_v14  ;;  %v11615_v14 = vld [vmem:[#allocation133_spill] sm:$0xff] }
 0x31d   : > { %11571 = vst [vmem:[#allocation65_spill] sm:$0xff] %v8372_v26  ;;  %3850 = vmatmul.f32.gmra.mxu0 %v11575_v21  ;;  %v1767_v21 = vmul.f32 %v1511_v58, %v8349_v61  ;;  %v1768_v22 = vmul.f32 %v1512_v56, %v8354_v16  ;;  %v11588_v58 = vld [vmem:[#allocation126_spill] sm:$0xff]  ;;  %v8412_v61 = vpop.f32.mrf.mxu2  ;;  %v8423_v56 = vmul.f32 %v3252_v49, %v11519_v53  ;;  %v8425_v16 = vmul.f32 0.044715, %v1765_v24  ;;  %v5392_v11 = vpop.eup %5391 }
 0x31e   : > { %11573 = vst [vmem:[#allocation20_spill] sm:$0xff] %v8378_v48  ;;  %v11580_v48 = vld [vmem:[#allocation39_spill] sm:$0xff]  ;;  %v1514_v53 = vmul.f32 %v8399_v4, %v8399_v4  ;;  %v1515_v17 = vmul.f32 %v8406_v33, %v8406_v33 }
 0x31f   : > { %11574 = vst [vmem:[#allocation124_spill] sm:$0xff] %v8380_v57  ;;  %v11579_v57 = vld [vmem:[#allocation67_spill] sm:$0xff]  ;;  %v8435_v26 = vmul.f32 0.044715, %v1767_v21  ;;  %v8441_v49 = vmul.f32 0.044715, %v1768_v22 }
 0x320   : > { %v2235_v13 = vadd.f32 %v11580_v48, %v11579_v57  ;;  %11582 = vst [vmem:[#allocation66_spill] sm:$0xff] %v8395_v38  ;;  %v8410_v48 = vadd.f32 %v11588_v58, %v6405_v31  ;;  %v8427_v58 = vmul.f32 0.044715, %v1766_v34  ;;  %v2998_v34 = vadd.f32 1.0, %v5386_v6  ;;  %v11608_v22 = vld [vmem:[#allocation40_spill] sm:$0xff] }
 0x321   : > { %11584 = vst [vmem:[#allocation18_spill] sm:$0xff] %v8399_v4  ;;  %v8461_v6 = vadd.f32 %v11611_v44, %v6403_v27 }
 0x322   : > { %11585 = vst [vmem:[#allocation154_spill] sm:$0xff] %v8401_v39  ;;  %v11599_v39 = vld [vmem:[#allocation68_spill] sm:$0xff]  ;;  %v1516_v24 = vmul.f32 %v8410_v48, %v8410_v48 }
 0x323   : > { %11587 = vst [vmem:[#allocation156_spill] sm:$0xff] %v8406_v33  ;;  %v2236_v63 = vadd.f32 %v11600_v41, %v11599_v39  ;;  %v11605_v41 = vld [vmem:[#allocation162_spill] sm:$0xff] }
 0x324   : > { %11589 = vst [vmem:[#allocation159_spill] sm:$0xff] %v8410_v48  ;;  %v1772_v44 = vmul.f32 %v1516_v24, %v8410_v48  ;;  %v11621_v24 = vld [vmem:[#allocation70_spill] sm:$0xff] }
 0x325   : > { %11590 = vst [vmem:[#allocation67_spill] sm:$0xff] %v8412_v61  ;;  %v8431_v61 = vpop.f32.mrf.mxu1  ;;  %3853 = vmatmul.f32.gmra.mxu0 %v11605_v41  ;;  %v2492_v41 = vmul.f32 0.7978846, %v2236_v63  ;;  %v8478_v63 = vpop.f32.mrf.mxu2 }
 0x326   : > { %11591 = vst [vmem:[#allocation39_spill] sm:$0xff] %v8414_v47  ;;  %v2491_v47 = vmul.f32 0.7978846, %v2235_v13  ;;  %v11603_v13 = vld [vmem:[#allocation130_spill] sm:$0xff] }
 0x327   : > { %11592 = vst [vmem:[#allocation22_spill] sm:$0xff] %v8417_v32  ;;  %v8449_v21 = vadd.f32 %v11603_v13, %v6411_v8  ;;  %v11614_v13 = vld [vmem:[#allocation53_spill] sm:$0xff]  ;;  %v8474_v32 = vmul.f32 %v3253_v54, %v7602_v42  ;;  %v8486_v42 = vpop.f32.mrf.mxu0 }
 0x328   : > { %11593 = vst [vmem:[#allocation23_spill] sm:$0xff] %v8420_v2  ;;  %4480 = vmatmul.f32.gmra.mxu3 %v11614_v13  ;;  %5395 = vtanh.f32 %v2491_v47  ;;  %v1771_v2 = vmul.f32 %v1515_v17, %v8406_v33  ;;  %v5394_v13 = vpop.eup %5393  ;;  %v1519_v17 = vmul.f32 %v8461_v6, %v8461_v6  ;;  %v8500_v33 = vmul.f32 0.044715, %v1772_v44 }
 0x329   : > { %11594 = vst [vmem:[#allocation24_spill] sm:$0xff] %v8423_v56  ;;  %v11613_v56 = vld [vmem:[#allocation165_spill] sm:$0xff]  ;;  %v1517_v47 = vmul.f32 %v8449_v21, %v8449_v21  ;;  %5397 = vtanh.f32 %v2492_v41  ;;  %v3002_v41 = vadd.f32 1.0, %v5394_v13 }
 0x32a   : > { %11595 = vst [vmem:[#allocation126_spill] sm:$0xff] %v8425_v16  ;;  %4271 = vmatmul.f32.gmra.mxu2 %v11613_v56  ;;  %v3254_v56 = vmul.f32 0.5, %v2998_v34  ;;  %v2238_v34 = vadd.f32 %v7821_v28, %v11621_v24  ;;  %v8498_v48 = vmul.f32 0.044715, %v1771_v2  ;;  %v11626_v28 = vld [vmem:[#allocation168_spill] sm:$0xff] }
 0x32b   : > { %11596 = vst [vmem:[#allocation214_spill] sm:$0xff] %v8427_v58  ;;  %v11609_v58 = vld [vmem:[#allocation131_spill] sm:$0xff] }
 0x32c   : > { %11597 = vst [vmem:[#allocation215_spill] sm:$0xff] %v8429_v43  ;;  %v2999_v43 = vadd.f32 1.0, %v5388_v51  ;;  %v8457_v16 = vadd.f32 %v11609_v58, %v6415_v23  ;;  %v1770_v51 = vmul.f32 %v1514_v53, %v8399_v4  ;;  %v3001_v58 = vadd.f32 1.0, %v5392_v11 }
 0x32d   : > { %11598 = vst [vmem:[#allocation216_spill] sm:$0xff] %v8431_v61  ;;  %v11606_v61 = vld [vmem:[#allocation163_spill] sm:$0xff]  ;;  %v8488_v54 = vpop.f32.mrf.mxu1  ;;  %3856 = vmatmul.f32.gmra.mxu0 %v11626_v28 }
 0x32e   : > { %11601 = vst [vmem:[#allocation68_spill] sm:$0xff] %v8435_v26  ;;  %4062 = vmatmul.f32.gmra.mxu1 %v11606_v61  ;;  %v11607_v26 = vld [vmem:[#allocation69_spill] sm:$0xff]  ;;  %v1769_v61 = vmul.f32 %v1513_v3, %v8395_v38  ;;  %v8480_v3 = vpop.f32.mrf.mxu3  ;;  %v3255_v53 = vmul.f32 0.5, %v2999_v43  ;;  %v1518_v11 = vmul.f32 %v8457_v16, %v8457_v16 }
 0x32f   : > { %11602 = vst [vmem:[#allocation193_spill] sm:$0xff] %v8441_v49  ;;  %v2237_v49 = vadd.f32 %v11608_v22, %v11607_v26  ;;  %v8469_v22 = vadd.f32 %v11615_v14, %v6405_v31  ;;  %v3256_v14 = vmul.f32 0.5, %v3000_v29  ;;  %v5396_v29 = vpop.eup %5395 }
 0x330   : > { %11604 = vst [vmem:[#allocation130_spill] sm:$0xff] %v8449_v21  ;;  %v1774_v44 = vmul.f32 %v1518_v11, %v8457_v16  ;;  %v5398_v11 = vpop.eup %5397 }
 0x331   : > { %11610 = vst [vmem:[#allocation162_spill] sm:$0xff] %v8457_v16  ;;  %v2493_v4 = vmul.f32 0.7978846, %v2237_v49  ;;  %v1520_v43 = vmul.f32 %v8469_v22, %v8469_v22  ;;  %v3257_v49 = vmul.f32 0.5, %v3001_v58  ;;  %v11628_v58 = vld [vmem:[#allocation71_spill] sm:$0xff]  ;;  %v8518_v13 = vmul.f32 %v3256_v14, %v11551_v40  ;;  %v8554_v16 = vpop.f32.mrf.mxu0 }
 0x332   : > { %11612 = vst [vmem:[#allocation163_spill] sm:$0xff] %v8461_v6  ;;  %v2239_v2 = vadd.f32 %v7826_v7, %v11628_v58  ;;  %v3258_v14 = vmul.f32 0.5, %v3002_v41 }
 0x333   : > { %11616 = vst [vmem:[#allocation69_spill] sm:$0xff] %v8469_v22  ;;  %5399 = vtanh.f32 %v2493_v4  ;;  %v1776_v28 = vmul.f32 %v1520_v43, %v8469_v22  ;;  %v8526_v7 = vmul.f32 %v3257_v49, %v11562_v18  ;;  %v11639_v43 = vld [vmem:[#allocation197_spill] sm:$0xff]  ;;  %v8544_v49 = vpop.f32.mrf.mxu2 }
 0x334   : > { %11617 = vst [vmem:[#allocation40_spill] sm:$0xff] %v8478_v63  ;;  %v8492_v63 = vmul.f32 0.044715, %v1769_v61  ;;  %v11627_v61 = vld [vmem:[#allocation171_spill] sm:$0xff] }
 0x335   : > { %11618 = vst [vmem:[#allocation131_spill] sm:$0xff] %v8480_v3  ;;  %v8494_v3 = vmul.f32 0.044715, %v1770_v51  ;;  %v8509_v51 = vmul.f32 %v3255_v53, %v11548_v59  ;;  %v11631_v59 = vld [vmem:[#allocation30_spill] sm:$0xff]  ;;  %v3003_v53 = vadd.f32 1.0, %v5396_v29 }
 0x336   : > { %11619 = vst [vmem:[#allocation28_spill] sm:$0xff] %v8486_v42  ;;  %v8503_v42 = vmul.f32 %v3254_v56, %v7606_v0  ;;  %4065 = vmatmul.f32.gmra.mxu1 %v11627_v61  ;;  %v11629_v0 = vld [vmem:[#allocation58_spill] sm:$0xff]  ;;  %v11630_v56 = vld [vmem:[#allocation172_spill] sm:$0xff]  ;;  %v8523_v4 = vadd.f32 %v11631_v59, %v6411_v8  ;;  %v8546_v29 = vpop.f32.mrf.mxu3 }
 0x337   : > { %11620 = vst [vmem:[#allocation165_spill] sm:$0xff] %v8488_v54  ;;  %v1773_v54 = vmul.f32 %v1517_v47, %v8449_v21  ;;  %4274 = vmatmul.f32.gmra.mxu2 %v11629_v0  ;;  %4483 = vmatmul.f32.gmra.mxu3 %v11630_v56  ;;  %v2494_v47 = vmul.f32 0.7978846, %v2238_v34  ;;  %v11636_v0 = vld [vmem:[#allocation32_spill] sm:$0xff] }
 0x338   : > { %11622 = vst [vmem:[#allocation53_spill] sm:$0xff] %v8492_v63  ;;  %v8534_v40 = vadd.f32 %v11636_v0, %v6403_v27  ;;  %v11638_v34 = vld [vmem:[#allocation72_spill] sm:$0xff]  ;;  %v8550_v0 = vmul.f32 0.044715, %v1774_v44 }
 0x339   : > { %11623 = vst [vmem:[#allocation133_spill] sm:$0xff] %v8494_v3  ;;  %v2240_v56 = vadd.f32 %v11639_v43, %v11638_v34  ;;  %v8538_v22 = vmul.f32 0.044715, %v1773_v54  ;;  %v11641_v59 = vld [vmem:[#allocation136_spill] sm:$0xff]  ;;  %v8556_v54 = vpop.f32.mrf.mxu1  ;;  %5401 = vtanh.f32 %v2494_v47  ;;  %v11649_v43 = vld [vmem:[#allocation73_spill] sm:$0xff] }
 0x33a   : > { %11624 = vst [vmem:[#allocation70_spill] sm:$0xff] %v8498_v48  ;;  %v8542_v18 = vadd.f32 %v11641_v59, %v6405_v31  ;;  %v2242_v59 = vadd.f32 %v7880_v12, %v11649_v43  ;;  %v1523_v47 = vmul.f32 %v8534_v40, %v8534_v40  ;;  %v11663_v48 = vld [vmem:[#allocation181_spill] sm:$0xff] }
 0x33b   : > { %11625 = vst [vmem:[#allocation217_spill] sm:$0xff] %v8500_v33  ;;  %v1775_v33 = vmul.f32 %v1519_v17, %v8461_v6  ;;  %v11634_v17 = vld [vmem:[#allocation31_spill] sm:$0xff]  ;;  %v2241_v6 = vadd.f32 %v7872_v55, %v7781_v30  ;;  %v11651_v55 = vld [vmem:[#allocation36_spill] sm:$0xff]  ;;  %v2496_v12 = vmul.f32 0.7978846, %v2240_v56 }
 0x33c   : > { %11632 = vst [vmem:[#allocation168_spill] sm:$0xff] %v8523_v4  ;;  %v8530_v61 = vadd.f32 %v11634_v17, %v6415_v23  ;;  %v2495_v17 = vmul.f32 0.7978846, %v2239_v2  ;;  %v1521_v2 = vmul.f32 %v8523_v4, %v8523_v4  ;;  %v8566_v44 = vadd.f32 %v11651_v55, %v6411_v8  ;;  %v11656_v55 = vld [vmem:[#allocation61_spill] sm:$0xff]  ;;  %v11662_v56 = vld [vmem:[#allocation180_spill] sm:$0xff] }
 0x33d   : > { %11633 = vst [vmem:[#allocation171_spill] sm:$0xff] %v8526_v7  ;;  %v8552_v41 = vmul.f32 0.044715, %v1775_v33  ;;  %v3004_v33 = vadd.f32 1.0, %v5398_v11  ;;  %3859 = vmatmul.f32.gmra.mxu0 %v11656_v55  ;;  %v11657_v11 = vld [vmem:[#allocation29_spill] sm:$0xff]  ;;  %v1779_v38 = vmul.f32 %v1523_v47, %v8534_v40 }
 0x33e   : > { %11635 = vst [vmem:[#allocation71_spill] sm:$0xff] %v8530_v61  ;;  %4068 = vmatmul.f32.gmra.mxu1 %v11657_v11  ;;  %5403 = vtanh.f32 %v2495_v17  ;;  %v2498_v3 = vmul.f32 0.7978846, %v2242_v59  ;;  %v1777_v55 = vmul.f32 %v1521_v2, %v8523_v4  ;;  %v1525_v17 = vmul.f32 %v8566_v44, %v8566_v44  ;;  %v8603_v59 = vpop.f32.mrf.mxu2  ;;  %v8605_v2 = vpop.f32.mrf.mxu3 }
 0x33f   : > { %11637 = vst [vmem:[#allocation58_spill] sm:$0xff] %v8534_v40  ;;  %4277 = vmatmul.f32.gmra.mxu2 %v11662_v56  ;;  %4486 = vmatmul.f32.gmra.mxu3 %v11663_v48  ;;  %v3260_v11 = vmul.f32 0.5, %v3004_v33  ;;  %5405 = vtanh.f32 %v2496_v12  ;;  %v11669_v33 = vld [vmem:[#allocation200_spill] sm:$0xff] }
 0x340   : > { %11640 = vst [vmem:[#allocation172_spill] sm:$0xff] %v8538_v22  ;;  %v5400_v22 = vpop.eup %5399  ;;  %v8624_v40 = vmul.f32 0.044715, %v1777_v55 }
 0x341   : > { %11642 = vst [vmem:[#allocation30_spill] sm:$0xff] %v8542_v18  ;;  %v5402_v63 = vpop.eup %5401  ;;  %v8615_v12 = vpop.f32.mrf.mxu1 }
 0x342   : > { %11643 = vst [vmem:[#allocation31_spill] sm:$0xff] %v8544_v49  ;;  %v8560_v49 = vmul.f32 0.044715, %v1776_v28  ;;  %v1524_v28 = vmul.f32 %v8542_v18, %v8542_v18 }
 0x343   : > { %11644 = vst [vmem:[#allocation32_spill] sm:$0xff] %v8546_v29  ;;  %v11654_v29 = vld [vmem:[#allocation139_spill] sm:$0xff] }
 0x344   : > { %11645 = vst [vmem:[#allocation72_spill] sm:$0xff] %v8550_v0  ;;  %v11658_v0 = vld [vmem:[#allocation141_spill] sm:$0xff]  ;;  %v1780_v48 = vmul.f32 %v1524_v28, %v8542_v18  ;;  %v5404_v18 = vpop.eup %5403 }
 0x345   : > { %11646 = vst [vmem:[#allocation197_spill] sm:$0xff] %v8552_v41  ;;  %v2497_v41 = vmul.f32 0.7978846, %v2241_v6  ;;  %v8585_v21 = vadd.f32 %v11658_v0, %v6403_v27  ;;  %v3259_v6 = vmul.f32 0.5, %v3003_v53  ;;  %v11668_v53 = vld [vmem:[#allocation75_spill] sm:$0xff] }
 0x346   : > { %11647 = vst [vmem:[#allocation136_spill] sm:$0xff] %v8554_v16  ;;  %v1522_v16 = vmul.f32 %v8530_v61, %v8530_v61  ;;  %v2244_v4 = vadd.f32 %v11669_v33, %v11668_v53  ;;  %v8622_v33 = vmul.f32 %v3260_v11, %v11599_v39 }
 0x347   : > { %11648 = vst [vmem:[#allocation218_spill] sm:$0xff] %v8556_v54  ;;  %v8573_v54 = vmul.f32 %v3258_v14, %v11572_v10  ;;  %v11660_v10 = vld [vmem:[#allocation142_spill] sm:$0xff]  ;;  %5407 = vtanh.f32 %v2497_v41  ;;  %v8619_v41 = vmul.f32 %v3259_v6, %v11579_v57  ;;  %v11679_v6 = vld [vmem:[#allocation187_spill] sm:$0xff] }
 0x348   : > { %11650 = vst [vmem:[#allocation73_spill] sm:$0xff] %v8560_v49  ;;  %v8579_v49 = vadd.f32 %v11654_v29, %v6415_v23  ;;  %v8589_v14 = vadd.f32 %v11660_v10, %v6405_v31  ;;  %v3005_v29 = vadd.f32 1.0, %v5400_v22  ;;  %v1778_v0 = vmul.f32 %v1522_v16, %v8530_v61  ;;  %v11664_v10 = vld [vmem:[#allocation155_spill] sm:$0xff]  ;;  %v11678_v57 = vld [vmem:[#allocation182_spill] sm:$0xff]  ;;  %4071 = vmatmul.f32.gmra.mxu1 %v11679_v6 }
 0x349   : > { %11652 = vst [vmem:[#allocation36_spill] sm:$0xff] %v8566_v44  ;;  %v1527_v16 = vmul.f32 %v8585_v21, %v8585_v21  ;;  %5409 = vtanh.f32 %v2498_v3  ;;  %v8632_v3 = vmul.f32 0.044715, %v1780_v48  ;;  %3862 = vmatmul.f32.gmra.mxu0 %v11678_v57  ;;  %v2500_v39 = vmul.f32 0.7978846, %v2244_v4  ;;  %v11684_v57 = vld [vmem:[#allocation145_spill] sm:$0xff] }
 0x34a   : > { %11653 = vst [vmem:[#allocation219_spill] sm:$0xff] %v8573_v54  ;;  %v11665_v54 = vld [vmem:[#allocation198_spill] sm:$0xff]  ;;  %v1526_v22 = vmul.f32 %v8579_v49, %v8579_v49  ;;  %v1528_v47 = vmul.f32 %v8589_v14, %v8589_v14  ;;  %v3261_v28 = vmul.f32 0.5, %v3005_v29  ;;  %v8626_v61 = vmul.f32 0.044715, %v1778_v0  ;;  %v11680_v0 = vld [vmem:[#allocation189_spill] sm:$0xff] }
 0x34b   : > { %11655 = vst [vmem:[#allocation139_spill] sm:$0xff] %v8579_v49  ;;  %v2243_v56 = vadd.f32 %v11665_v54, %v11664_v10  ;;  %v8613_v54 = vpop.f32.mrf.mxu0  ;;  %v8630_v29 = vmul.f32 0.044715, %v1779_v38  ;;  %v1783_v55 = vmul.f32 %v1527_v16, %v8585_v21  ;;  %4280 = vmatmul.f32.gmra.mxu2 %v11680_v0  ;;  %v3007_v38 = vadd.f32 1.0, %v5404_v18  ;;  %v11686_v4 = vld [vmem:[#allocation146_spill] sm:$0xff]  ;;  %v11688_v0 = vld [vmem:[#allocation17_spill] sm:$0xff] }
 0x34c   : > { %11659 = vst [vmem:[#allocation61_spill] sm:$0xff] %v8585_v21  ;;  %v1784_v11 = vmul.f32 %v1528_v47, %v8589_v14  ;;  %v8648_v6 = vadd.f32 %v11684_v57, %v6411_v8  ;;  %v8652_v16 = vadd.f32 %v11686_v4, %v6415_v23  ;;  %v11690_v18 = vld [vmem:[#allocation77_spill] sm:$0xff]  ;;  %v11692_v57 = vld [vmem:[#allocation147_spill] sm:$0xff]  ;;  %v8668_v4 = vpop.f32.mrf.mxu3 }
 0x34d   : > { %11661 = vst [vmem:[#allocation29_spill] sm:$0xff] %v8589_v14  ;;  %v2499_v7 = vmul.f32 0.7978846, %v2243_v56  ;;  %v11681_v56 = vld [vmem:[#allocation192_spill] sm:$0xff]  ;;  %v8664_v21 = vadd.f32 %v11692_v57, %v6405_v31 }
 0x34e   : > { %11666 = vst [vmem:[#allocation141_spill] sm:$0xff] %v8603_v59  ;;  %v1781_v59 = vmul.f32 %v1525_v17, %v8566_v44  ;;  %v1782_v17 = vmul.f32 %v1526_v22, %v8579_v49  ;;  %4489 = vmatmul.f32.gmra.mxu3 %v11681_v56  ;;  %v8656_v56 = vadd.f32 %v11688_v0, %v6403_v27  ;;  %v8666_v49 = vpop.f32.mrf.mxu2  ;;  %v8672_v0 = vmul.f32 0.044715, %v1784_v11  ;;  %v11706_v44 = vld [vmem:[#allocation194_spill] sm:$0xff] }
 0x34f   : > { %11667 = vst [vmem:[#allocation142_spill] sm:$0xff] %v8605_v2  ;;  %v3006_v2 = vadd.f32 1.0, %v5402_v63  ;;  %v5406_v63 = vpop.eup %5405  ;;  %5411 = vtanh.f32 %v2499_v7  ;;  %v1529_v57 = vmul.f32 %v8648_v6, %v8648_v6 }
 0x350   : > { %11670 = vst [vmem:[#allocation180_spill] sm:$0xff] %v8613_v54  ;;  %v11675_v54 = vld [vmem:[#allocation86_spill] sm:$0xff]  ;;  %v5408_v48 = vpop.eup %5407  ;;  %v8644_v22 = vmul.f32 0.044715, %v1781_v59  ;;  %v2246_v59 = vadd.f32 %v7941_v1, %v11690_v18  ;;  %5413 = vtanh.f32 %v2500_v39  ;;  %v3263_v1 = vmul.f32 0.5, %v3007_v38 }
 0x351   : > { %11671 = vst [vmem:[#allocation181_spill] sm:$0xff] %v8615_v12  ;;  %v2245_v12 = vadd.f32 %v7930_v5, %v11675_v54  ;;  %v8642_v5 = vmul.f32 %v3261_v28, %v11607_v26  ;;  %v3262_v47 = vmul.f32 0.5, %v3006_v2  ;;  %v5410_v14 = vpop.eup %5409  ;;  %v8660_v28 = vmul.f32 0.044715, %v1782_v17  ;;  %3865 = vmatmul.f32.gmra.mxu0 %v11706_v44 }
 0x352   : > { %11672 = vst [vmem:[#allocation155_spill] sm:$0xff] %v8622_v33  ;;  %v3008_v2 = vadd.f32 1.0, %v5406_v63  ;;  %v3009_v17 = vadd.f32 1.0, %v5408_v48  ;;  %v11701_v63 = vld [vmem:[#allocation47_spill] sm:$0xff]  ;;  %v2502_v11 = vmul.f32 0.7978846, %v2246_v59  ;;  %v1532_v38 = vmul.f32 %v8664_v21, %v8664_v21 }
 0x353   : > { %11673 = vst [vmem:[#allocation198_spill] sm:$0xff] %v8624_v40  ;;  %v2501_v26 = vmul.f32 0.7978846, %v2245_v12  ;;  %v8674_v7 = vpop.f32.mrf.mxu0  ;;  %v8676_v12 = vpop.f32.mrf.mxu1  ;;  %v11704_v48 = vld [vmem:[#allocation44_spill] sm:$0xff]  ;;  %v11709_v59 = vld [vmem:[#allocation150_spill] sm:$0xff]  ;;  %v8710_v44 = vmul.f32 %v3263_v1, %v11628_v58 }
 0x354   : > { %11674 = vst [vmem:[#allocation75_spill] sm:$0xff] %v8626_v61  ;;  %v11713_v40 = vld [vmem:[#allocation42_spill] sm:$0xff] }
 0x355   : > { %11676 = vst [vmem:[#allocation200_spill] sm:$0xff] %v8630_v29  ;;  %5415 = vtanh.f32 %v2501_v26  ;;  %v5412_v26 = vpop.eup %5411  ;;  %v8701_v29 = vadd.f32 %v11709_v59, %v6415_v23  ;;  %4283 = vmatmul.f32.gmra.mxu2 %v11713_v40  ;;  %v11715_v59 = vld [vmem:[#allocation153_spill] sm:$0xff] }
 0x356   : > { %11677 = vst [vmem:[#allocation86_spill] sm:$0xff] %v8632_v3  ;;  %v3264_v3 = vmul.f32 0.5, %v3008_v2  ;;  %5417 = vtanh.f32 %v2502_v11  ;;  %v8722_v1 = vpop.f32.mrf.mxu2 }
 0x357   : > { %11682 = vst [vmem:[#allocation182_spill] sm:$0xff] %v8642_v5 }
 0x358   : > { %11683 = vst [vmem:[#allocation187_spill] sm:$0xff] %v8644_v22  ;;  %v8670_v22 = vmul.f32 0.044715, %v1783_v55  ;;  %v1531_v55 = vmul.f32 %v8656_v56, %v8656_v56 }
 0x359   : > { %11685 = vst [vmem:[#allocation189_spill] sm:$0xff] %v8648_v6 }
 0x35a   : > { %11687 = vst [vmem:[#allocation192_spill] sm:$0xff] %v8652_v16 }
 0x35b   : > { %11689 = vst [vmem:[#allocation145_spill] sm:$0xff] %v8656_v56 }
 0x35c   : > { %11691 = vst [vmem:[#allocation146_spill] sm:$0xff] %v8660_v28  ;;  %v3010_v28 = vadd.f32 1.0, %v5410_v14  ;;  %v11707_v14 = vld [vmem:[#allocation74_spill] sm:$0xff] }
 0x35d   : > { %11693 = vst [vmem:[#allocation17_spill] sm:$0xff] %v8664_v21  ;;  %4074 = vmatmul.f32.gmra.mxu1 %v11707_v14  ;;  %v3265_v14 = vmul.f32 0.5, %v3009_v17  ;;  %v8724_v17 = vpop.f32.mrf.mxu3 }
 0x35e   : > { %11694 = vst [vmem:[#allocation77_spill] sm:$0xff] %v8666_v49  ;;  %v1530_v49 = vmul.f32 %v8652_v16, %v8652_v16  ;;  %v3266_v33 = vmul.f32 0.5, %v3010_v28 }
 0x35f   : > { %11695 = vst [vmem:[#allocation147_spill] sm:$0xff] %v8668_v4  ;;  %v11700_v4 = vld [vmem:[#allocation87_spill] sm:$0xff]  ;;  %v8738_v11 = vmul.f32 %v3265_v14, %v7781_v30 }
 0x360   : > { %11696 = vst [vmem:[#allocation220_spill] sm:$0xff] %v8670_v22  ;;  %v2247_v39 = vadd.f32 %v11701_v63, %v11700_v4  ;;  %v8692_v22 = vadd.f32 %v11704_v48, %v6411_v8  ;;  %v8697_v63 = vmul.f32 %v3262_v47, %v11621_v24  ;;  %v11714_v48 = vld [vmem:[#allocation85_spill] sm:$0xff]  ;;  %v5414_v24 = vpop.eup %5413  ;;  %v1785_v47 = vmul.f32 %v1529_v57, %v8648_v6 }
 0x361   : > { %11697 = vst [vmem:[#allocation221_spill] sm:$0xff] %v8672_v0  ;;  %v11703_v0 = vld [vmem:[#allocation201_spill] sm:$0xff]  ;;  %4492 = vmatmul.f32.gmra.mxu3 %v11714_v48  ;;  %v1786_v2 = vmul.f32 %v1530_v49, %v8652_v16  ;;  %v1788_v48 = vmul.f32 %v1532_v38, %v8664_v21  ;;  %v8727_v49 = vmul.f32 %v3264_v3, %v11638_v34  ;;  %v3011_v57 = vadd.f32 1.0, %v5412_v26 }
 0x362   : > { %11698 = vst [vmem:[#allocation222_spill] sm:$0xff] %v8674_v7  ;;  %v11702_v7 = vld [vmem:[#allocation88_spill] sm:$0xff]  ;;  %v2503_v5 = vmul.f32 0.7978846, %v2247_v39  ;;  %v1533_v58 = vmul.f32 %v8692_v22, %v8692_v22  ;;  %v1534_v39 = vmul.f32 %v8701_v29, %v8701_v29  ;;  %v3012_v38 = vadd.f32 1.0, %v5414_v24  ;;  %v11727_v24 = vld [vmem:[#allocation79_spill] sm:$0xff] }
 0x363   : > { %11699 = vst [vmem:[#allocation223_spill] sm:$0xff] %v8676_v12  ;;  %v2248_v12 = vadd.f32 %v11703_v0, %v11702_v7  ;;  %v11711_v0 = vld [vmem:[#allocation152_spill] sm:$0xff]  ;;  %v8742_v34 = vmul.f32 0.044715, %v1786_v2  ;;  %v8753_v30 = vmul.f32 0.044715, %v1788_v48  ;;  %3868 = vmatmul.f32.gmra.mxu0 %v11727_v24 }
 0x364   : > { %11705 = vst [vmem:[#allocation87_spill] sm:$0xff] %v8692_v22  ;;  %v8705_v61 = vadd.f32 %v11711_v0, %v6403_v27  ;;  %v1787_v0 = vmul.f32 %v1531_v55, %v8656_v56  ;;  %v8735_v55 = vpop.f32.mrf.mxu1  ;;  %5419 = vtanh.f32 %v2503_v5  ;;  %v1789_v14 = vmul.f32 %v1533_v58, %v8692_v22  ;;  %v11731_v48 = vld [vmem:[#allocation45_spill] sm:$0xff] }
 0x365   : > { %11708 = vst [vmem:[#allocation47_spill] sm:$0xff] %v8697_v63  ;;  %v8716_v63 = vadd.f32 %v11715_v59, %v6405_v31  ;;  %v2504_v40 = vmul.f32 0.7978846, %v2248_v12  ;;  %v5416_v59 = vpop.eup %5415  ;;  %v8733_v12 = vpop.f32.mrf.mxu0  ;;  %v3267_v2 = vmul.f32 0.5, %v3011_v57  ;;  %v11733_v24 = vld [vmem:[#allocation157_spill] sm:$0xff]  ;;  %v11735_v57 = vld [vmem:[#allocation158_spill] sm:$0xff] }
 0x366   : > { %11710 = vst [vmem:[#allocation88_spill] sm:$0xff] %v8701_v29  ;;  %v1535_v28 = vmul.f32 %v8705_v61, %v8705_v61  ;;  %v8746_v26 = vmul.f32 0.044715, %v1787_v0  ;;  %v3013_v21 = vadd.f32 1.0, %v5416_v59  ;;  %v5418_v5 = vpop.eup %5417  ;;  %v1790_v0 = vmul.f32 %v1534_v39, %v8701_v29  ;;  %v11737_v39 = vld [vmem:[#allocation81_spill] sm:$0xff] }
 0x367   : > { %11712 = vst [vmem:[#allocation201_spill] sm:$0xff] %v8705_v61  ;;  %v1536_v3 = vmul.f32 %v8716_v63, %v8716_v63  ;;  %5421 = vtanh.f32 %v2504_v40  ;;  %v11730_v40 = vld [vmem:[#allocation84_spill] sm:$0xff]  ;;  %v8771_v59 = vadd.f32 %v11735_v57, %v6415_v23  ;;  %v11744_v29 = vld [vmem:[#allocation21_spill] sm:$0xff]  ;;  %v8785_v56 = vmul.f32 0.044715, %v1789_v14  ;;  %v8787_v57 = vpop.f32.mrf.mxu2 }
 0x368   : > { %11716 = vst [vmem:[#allocation44_spill] sm:$0xff] %v8716_v63  ;;  %v3014_v16 = vadd.f32 1.0, %v5418_v5  ;;  %v8794_v6 = vmul.f32 0.044715, %v1790_v0 }
 0x369   : > { %11717 = vst [vmem:[#allocation194_spill] sm:$0xff] %v8722_v1  ;;  %v8749_v1 = vmul.f32 %v3266_v33, %v11649_v43  ;;  %v1791_v43 = vmul.f32 %v1535_v28, %v8705_v61  ;;  %v11729_v33 = vld [vmem:[#allocation89_spill] sm:$0xff]  ;;  %4495 = vmatmul.f32.gmra.mxu3 %v11730_v40  ;;  %v1792_v58 = vmul.f32 %v1536_v3, %v8716_v63  ;;  %v11743_v63 = vld [vmem:[#allocation95_spill] sm:$0xff] }
 0x36a   : > { %11718 = vst [vmem:[#allocation74_spill] sm:$0xff] %v8724_v17  ;;  %v8740_v17 = vmul.f32 0.044715, %v1785_v47  ;;  %v11728_v47 = vld [vmem:[#allocation199_spill] sm:$0xff]  ;;  %4286 = vmatmul.f32.gmra.mxu2 %v11729_v33  ;;  %v11738_v28 = vld [vmem:[#allocation49_spill] sm:$0xff]  ;;  %v11739_v33 = vld [vmem:[#allocation160_spill] sm:$0xff]  ;;  %v5420_v22 = vpop.eup %5419 }
 0x36b   : > { %11719 = vst [vmem:[#allocation150_spill] sm:$0xff] %v8733_v12  ;;  %v11725_v12 = vld [vmem:[#allocation94_spill] sm:$0xff]  ;;  %4077 = vmatmul.f32.gmra.mxu1 %v11728_v47  ;;  %v8767_v47 = vadd.f32 %v11733_v24, %v6411_v8  ;;  %v2251_v61 = vadd.f32 %v11738_v28, %v11737_v39  ;;  %v8777_v40 = vadd.f32 %v11739_v33, %v6403_v27  ;;  %v3269_v33 = vmul.f32 0.5, %v3013_v21 }
 0x36c   : > { %11720 = vst [vmem:[#allocation152_spill] sm:$0xff] %v8735_v55  ;;  %v2249_v55 = vadd.f32 %v7996_v15, %v11725_v12  ;;  %v3268_v15 = vmul.f32 0.5, %v3012_v38  ;;  %v11741_v38 = vld [vmem:[#allocation161_spill] sm:$0xff]  ;;  %v2252_v24 = vadd.f32 %v11744_v29, %v11743_v63  ;;  %v8792_v28 = vmul.f32 %v3267_v2, %v11664_v10 }
 0x36d   : > { %11721 = vst [vmem:[#allocation42_spill] sm:$0xff] %v8740_v17  ;;  %v5422_v17 = vpop.eup %5421  ;;  %v1538_v21 = vmul.f32 %v8771_v59, %v8771_v59  ;;  %v2507_v10 = vmul.f32 0.7978846, %v2251_v61  ;;  %v1539_v2 = vmul.f32 %v8777_v40, %v8777_v40  ;;  %v11754_v61 = vld [vmem:[#allocation51_spill] sm:$0xff] }
 0x36e   : > { %11722 = vst [vmem:[#allocation85_spill] sm:$0xff] %v8742_v34  ;;  %v2505_v3 = vmul.f32 0.7978846, %v2249_v55  ;;  %v8789_v34 = vpop.f32.mrf.mxu3  ;;  %v3824_v55 = vpop.f32.mrf.mxu0  ;;  %v8799_v29 = vmul.f32 %v3268_v15, %v11668_v53  ;;  %v2508_v0 = vmul.f32 0.7978846, %v2252_v24  ;;  %v11751_v53 = vld [vmem:[#allocation166_spill] sm:$0xff] }
 0x36f   : > { %11723 = vst [vmem:[#allocation153_spill] sm:$0xff] %v8746_v26  ;;  %3871 = vmatmul.f32.gmra.mxu0 %v11751_v53  ;;  %v3270_v15 = vmul.f32 0.5, %v3014_v16  ;;  %v11759_v24 = vld [vmem:[#allocation93_spill] sm:$0xff] }
 0x370   : > { %11724 = vst [vmem:[#allocation224_spill] sm:$0xff] %v8749_v1  ;;  %v4033_v1 = vpop.f32.mrf.mxu1  ;;  %5423 = vtanh.f32 %v2505_v3  ;;  %v11758_v3 = vld [vmem:[#allocation48_spill] sm:$0xff] }
 0x371   : > { %11726 = vst [vmem:[#allocation94_spill] sm:$0xff] %v8753_v30  ;;  %v11732_v30 = vld [vmem:[#allocation92_spill] sm:$0xff]  ;;  %4498 = vmatmul.f32.gmra.mxu3 %v11759_v24 }
 0x372   : > { %v2250_v26 = vadd.f32 %v11732_v30, %v11731_v48  ;;  %11734 = vst [vmem:[#allocation79_spill] sm:$0xff] %v8767_v47  ;;  %v8781_v30 = vadd.f32 %v11741_v38, %v6405_v31  ;;  %v8796_v38 = vmul.f32 0.044715, %v1791_v43  ;;  %v8814_v43 = vmul.f32 %v3269_v33, %v11675_v54  ;;  %4289 = vmatmul.f32.gmra.mxu2 %v11758_v3 }
 0x373   : > { %11736 = vst [vmem:[#allocation199_spill] sm:$0xff] %v8771_v59  ;;  %v2253_v54 = vadd.f32 %v8056_v60, %v7963_v46  ;;  %v4242_v60 = vpop.f32.mrf.mxu2 }
 0x374   : > { %11740 = vst [vmem:[#allocation89_spill] sm:$0xff] %v8777_v40  ;;  %v2506_v14 = vmul.f32 0.7978846, %v2250_v26  ;;  %v1540_v5 = vmul.f32 %v8781_v30, %v8781_v30  ;;  %v11752_v26 = vld [vmem:[#allocation102_spill] sm:$0xff] }
 0x375   : > { %11742 = vst [vmem:[#allocation84_spill] sm:$0xff] %v8781_v30  ;;  %4080 = vmatmul.f32.gmra.mxu1 %v11752_v26  ;;  %v4034_v26 = vadd.f32 %v4033_v1, %v3824_v55 }
 0x376   : > { %11745 = vst [vmem:[#allocation45_spill] sm:$0xff] %v8785_v56  ;;  %v8801_v56 = vmul.f32 0.044715, %v1792_v58  ;;  %v3015_v58 = vadd.f32 1.0, %v5420_v22  ;;  %5425 = vtanh.f32 %v2506_v14  ;;  %v1794_v22 = vmul.f32 %v1538_v21, %v8771_v59  ;;  %v11762_v14 = vld [vmem:[#allocation164_spill] sm:$0xff] }
 0x377   : > { %11746 = vst [vmem:[#allocation92_spill] sm:$0xff] %v8787_v57  ;;  %v3016_v57 = vadd.f32 1.0, %v5422_v17  ;;  %v11760_v17 = vld [vmem:[#allocation25_spill] sm:$0xff]  ;;  %5427 = vtanh.f32 %v2507_v10  ;;  %v1796_v53 = vmul.f32 %v1540_v5, %v8781_v30  ;;  %v8841_v21 = vmul.f32 %v3270_v15, %v11690_v18  ;;  %v3679_v15 = vld [vmem:[%s5951_s7] sm:$0xff] }
 0x378   : > { %11747 = vst [vmem:[#allocation157_spill] sm:$0xff] %v8789_v34  ;;  %v1537_v34 = vmul.f32 %v8767_v47, %v8767_v47  ;;  %v8832_v33 = vadd.f32 %v11760_v17, %v6403_v27  ;;  %5429 = vtanh.f32 %v2508_v0  ;;  %v3271_v3 = vmul.f32 0.5, %v3015_v58  ;;  %v5424_v17 = vpop.eup %5423  ;;  %v4036_v5 = vpop.f32.mrf.mxu1 }
 0x379   : > { %11748 = vst [vmem:[#allocation158_spill] sm:$0xff] %v8794_v6  ;;  %v3272_v24 = vmul.f32 0.5, %v3016_v57  ;;  %v4243_v55 = vadd.f32 %v4242_v60, %v4034_v26  ;;  %v2509_v0 = vmul.f32 0.7978846, %v2253_v54  ;;  %v8849_v30 = vmul.f32 0.044715, %v1794_v22 }
 0x37a   : > { %11749 = vst [vmem:[#allocation81_spill] sm:$0xff] %v8796_v38  ;;  %v11756_v38 = vld [vmem:[#allocation52_spill] sm:$0xff]  ;;  %v1793_v16 = vmul.f32 %v1537_v34, %v8767_v47  ;;  %v4451_v34 = vpop.f32.mrf.mxu3  ;;  %v1543_v18 = vmul.f32 %v8832_v33, %v8832_v33  ;;  %v11767_v57 = vld [vmem:[#allocation50_spill] sm:$0xff]  ;;  %v8858_v47 = vmul.f32 0.044715, %v1796_v53  ;;  %v11770_v60 = vld [vmem:[#allocation101_spill] sm:$0xff] }
 0x37b   : > { %11750 = vst [vmem:[#allocation49_spill] sm:$0xff] %v8801_v56  ;;  %v8818_v56 = vadd.f32 %v11754_v61, %v6411_v8  ;;  %v8822_v6 = vadd.f32 %v11756_v38, %v6415_v23  ;;  %v1795_v38 = vmul.f32 %v1539_v2, %v8777_v40  ;;  %v8838_v61 = vadd.f32 %v11762_v14, %v6405_v31  ;;  %v3827_v2 = vpop.f32.mrf.mxu0 }
 0x37c   : > { %11753 = vst [vmem:[#allocation160_spill] sm:$0xff] %v8814_v43  ;;  %v8847_v14 = vmul.f32 0.044715, %v1793_v16  ;;  %v2254_v58 = vadd.f32 %v11767_v57, %v7972_v25  ;;  %v5426_v40 = vpop.eup %5425  ;;  %v4452_v26 = vadd.f32 %v4451_v34, %v4243_v55  ;;  %v8867_v57 = vmul.f32 %v3271_v3, %v11700_v4  ;;  %v11775_v43 = vld [vmem:[#allocation118_spill] sm:$0xff]  ;;  %v11776_v4 = vld [vmem:[#allocation27_spill] sm:$0xff] }
 0x37d   : > { %11755 = vst [vmem:[#allocation161_spill] sm:$0xff] %v8818_v56  ;;  %v1541_v10 = vmul.f32 %v8818_v56, %v8818_v56  ;;  %v1542_v1 = vmul.f32 %v8822_v6, %v8822_v6  ;;  %v8856_v59 = vmul.f32 0.044715, %v1795_v38  ;;  %v5428_v16 = vpop.eup %5427  ;;  %v1544_v22 = vmul.f32 %v8838_v61, %v8838_v61  ;;  %4501 = vmatmul.f32.gmra.mxu3 %v11775_v43 }
 0x37e   : > { %11757 = vst [vmem:[#allocation95_spill] sm:$0xff] %v8822_v6  ;;  %v8870_v38 = vmul.f32 %v3272_v24, %v11702_v7  ;;  %v3017_v53 = vadd.f32 1.0, %v5424_v17  ;;  %v5430_v34 = vpop.eup %5429  ;;  %5431 = vtanh.f32 %v2509_v0  ;;  %v8879_v3 = vadd.f32 %v11776_v4, %v6411_v8  ;;  %v11778_v17 = vld [vmem:[#allocation56_spill] sm:$0xff]  ;;  %v11780_v0 = vld [vmem:[#allocation169_spill] sm:$0xff] }
 0x37f   : > { %11761 = vst [vmem:[#allocation21_spill] sm:$0xff] %v8832_v33  ;;  %v1797_v55 = vmul.f32 %v1541_v10, %v8818_v56  ;;  %v3018_v7 = vadd.f32 1.0, %v5426_v40  ;;  %v2510_v24 = vmul.f32 0.7978846, %v2254_v58  ;;  %v4037_v10 = vadd.f32 %v4036_v5, %v3827_v2  ;;  %v4245_v40 = vpop.f32.mrf.mxu2 }
 0x380   : > { %11763 = vst [vmem:[#allocation166_spill] sm:$0xff] %v8838_v61  ;;  %v1800_v43 = vmul.f32 %v1544_v22, %v8838_v61  ;;  %v3020_v4 = vadd.f32 1.0, %v5430_v34  ;;  %v1545_v22 = vmul.f32 %v8879_v3, %v8879_v3 }
 0x381   : > { %11764 = vst [vmem:[#allocation102_spill] sm:$0xff] %v8841_v21  ;;  %v11771_v21 = vld [vmem:[#allocation203_spill] sm:$0xff]  ;;  %v4246_v2 = vadd.f32 %v4245_v40, %v4037_v10  ;;  %v3274_v61 = vmul.f32 0.5, %v3018_v7  ;;  %5433 = vtanh.f32 %v2510_v24  ;;  %v11789_v24 = vld [vmem:[#allocation8_spill] sm:$0xff] }
 0x382   : > { %11765 = vst [vmem:[#allocation51_spill] sm:$0xff] %v8847_v14  ;;  %v2255_v54 = vadd.f32 %v11771_v21, %v11770_v60  ;;  %v11773_v14 = vld [vmem:[#allocation202_spill] sm:$0xff]  ;;  %v1798_v21 = vmul.f32 %v1542_v1, %v8822_v6  ;;  %v3019_v1 = vadd.f32 1.0, %v5428_v16  ;;  %v4454_v58 = vpop.f32.mrf.mxu3  ;;  %v3273_v16 = vmul.f32 0.5, %v3017_v53 }
 0x383   : > { %11766 = vst [vmem:[#allocation52_spill] sm:$0xff] %v8849_v30  ;;  %v11772_v30 = vld [vmem:[#allocation114_spill] sm:$0xff]  ;;  %4083 = vmatmul.f32.gmra.mxu1 %v11773_v14  ;;  %v8883_v14 = vadd.f32 %v11778_v17, %v6415_v23  ;;  %v8895_v17 = vmul.f32 0.044715, %v1797_v55  ;;  %v3830_v5 = vpop.f32.mrf.mxu0  ;;  %v4455_v55 = vadd.f32 %v4454_v58, %v4246_v2  ;;  %v3276_v40 = vmul.f32 0.5, %v3020_v4 }
 0x384   : > { %11768 = vst [vmem:[#allocation48_spill] sm:$0xff] %v8856_v59  ;;  %3874 = vmatmul.f32.gmra.mxu0 %v11772_v30  ;;  %v11774_v59 = vld [vmem:[#allocation103_spill] sm:$0xff]  ;;  %v1799_v30 = vmul.f32 %v1543_v18, %v8832_v33  ;;  %v8889_v18 = vadd.f32 %v11780_v0, %v6403_v27  ;;  %v3680_v0 = vld [vmem:[%s5951_s7 + $0x8] sm:$0xff]  ;;  %v11786_v33 = vld [vmem:[#allocation90_spill] sm:$0xff]  ;;  %v5432_v56 = vpop.eup %5431  ;;  %v1801_v2 = vmul.f32 %v1545_v22, %v8879_v3 }
 0x385   : > { %11769 = vst [vmem:[#allocation93_spill] sm:$0xff] %v8858_v47  ;;  %v4643_v47 = vadd.f32 %v4452_v26, %v3679_v15  ;;  %4292 = vmatmul.f32.gmra.mxu2 %v11774_v59  ;;  %v2511_v59 = vmul.f32 0.7978846, %v2255_v54  ;;  %v11782_v15 = vld [vmem:[#allocation170_spill] sm:$0xff]  ;;  %v4039_v54 = vpop.f32.mrf.mxu1  ;;  %v1546_v34 = vmul.f32 %v8883_v14, %v8883_v14  ;;  %4504 = vmatmul.f32.gmra.mxu3 %v8202_v62  ;;  %v11793_v62 = vld [vmem:[#allocation112_spill] sm:$0xff] }
 0x386   : > { %11777 = vst [vmem:[#allocation25_spill] sm:$0xff] %v8879_v3  ;;  %v8893_v26 = vadd.f32 %v11782_v15, %v6405_v31  ;;  %v11787_v15 = vld [vmem:[#allocation204_spill] sm:$0xff]  ;;  %v8906_v10 = vmul.f32 0.044715, %v1799_v30  ;;  %v1547_v53 = vmul.f32 %v8889_v18, %v8889_v18  ;;  %v8919_v30 = vmul.f32 %v3273_v16, %v11725_v12  ;;  %v11794_v12 = vld [vmem:[#allocation206_spill] sm:$0xff]  ;;  %v11804_v3 = vld [vmem:[#allocation175_spill] sm:$0xff] }
 0x387   : > { %11779 = vst [vmem:[#allocation164_spill] sm:$0xff] %v8883_v14  ;;  %v2256_v6 = vadd.f32 %v11787_v15, %v11786_v33  ;;  %5435 = vtanh.f32 %v2511_v59  ;;  %v8914_v15 = vmul.f32 0.044715, %v1800_v43  ;;  %v11792_v59 = vld [vmem:[#allocation119_spill] sm:$0xff]  ;;  %v1802_v43 = vmul.f32 %v1546_v34, %v8883_v14 }
 0x388   : > { %4707 = vst [vmem:[%s5951_s7] sm:$0xff] %v4643_v47  ;;  %v8897_v47 = vmul.f32 0.044715, %v1798_v21  ;;  %v3275_v21 = vmul.f32 0.5, %v3019_v1  ;;  %v1548_v7 = vmul.f32 %v8893_v26, %v8893_v26  ;;  %v11791_v1 = vld [vmem:[#allocation97_spill] sm:$0xff]  ;;  %v2258_v16 = vadd.f32 %v11794_v12, %v11793_v62 }
 0x389   : > { %11781 = vst [vmem:[#allocation50_spill] sm:$0xff] %v8889_v18  ;;  %v2257_v58 = vadd.f32 %v11792_v59, %v11791_v1  ;;  %v2512_v4 = vmul.f32 0.7978846, %v2256_v6  ;;  %v1803_v59 = vmul.f32 %v1547_v53, %v8889_v18  ;;  %v4248_v6 = vpop.f32.mrf.mxu2  ;;  %v11800_v18 = vld [vmem:[#allocation113_spill] sm:$0xff] }
 0x38a   : > { %11783 = vst [vmem:[#allocation101_spill] sm:$0xff] %v8893_v26  ;;  %v1804_v22 = vmul.f32 %v1548_v7, %v8893_v26  ;;  %v11801_v7 = vld [vmem:[#allocation54_spill] sm:$0xff] }
 0x38b   : > { %11784 = vst [vmem:[#allocation203_spill] sm:$0xff] %v8895_v17  ;;  %4086 = vmatmul.f32.gmra.mxu1 %v11789_v24  ;;  %v3021_v24 = vadd.f32 1.0, %v5432_v56  ;;  %v2513_v53 = vmul.f32 0.7978846, %v2257_v58  ;;  %v2259_v26 = vadd.f32 %v11801_v7, %v11800_v18  ;;  %5437 = vtanh.f32 %v2512_v4  ;;  %v11807_v17 = vld [vmem:[#allocation176_spill] sm:$0xff] }
 0x38c   : > { %11785 = vst [vmem:[#allocation114_spill] sm:$0xff] %v8897_v47  ;;  %3877 = vmatmul.f32.gmra.mxu0 %v8136_v35  ;;  %v4644_v47 = vadd.f32 %v4455_v55, %v3680_v0  ;;  %v8925_v35 = vmul.f32 %v3274_v61, %v11731_v48  ;;  %v4040_v0 = vadd.f32 %v4039_v54, %v3830_v5  ;;  %v5434_v55 = vpop.eup %5433  ;;  %v11795_v48 = vld [vmem:[#allocation59_spill] sm:$0xff]  ;;  %v4457_v61 = vpop.f32.mrf.mxu3  ;;  %v11798_v5 = vld [vmem:[#allocation60_spill] sm:$0xff]  ;;  %v8962_v7 = vmul.f32 0.044715, %v1802_v43 }
 0x38d   : > { %11788 = vst [vmem:[#allocation202_spill] sm:$0xff] %v8906_v10  ;;  %4295 = vmatmul.f32.gmra.mxu2 %v8188_v45  ;;  %v8930_v45 = vmul.f32 %v3275_v21, %v11737_v39  ;;  %v8938_v56 = vadd.f32 %v11795_v48, %v6411_v8  ;;  %v5436_v39 = vpop.eup %5435  ;;  %v8945_v54 = vadd.f32 %v11798_v5, %v6415_v23  ;;  %v3833_v21 = vpop.f32.mrf.mxu0  ;;  %v11802_v48 = vld [vmem:[#allocation174_spill] sm:$0xff]  ;;  %v3022_v10 = vadd.f32 1.0, %v5434_v55 }
 0x38e   : > { %11790 = vst [vmem:[#allocation103_spill] sm:$0xff] %v8914_v15  ;;  %v4249_v34 = vadd.f32 %v4248_v6, %v4040_v0  ;;  %v4042_v12 = vpop.f32.mrf.mxu1  ;;  %v8951_v14 = vadd.f32 %v11802_v48, %v6403_v27  ;;  %v3277_v15 = vmul.f32 0.5, %v3021_v24  ;;  %v2514_v0 = vmul.f32 0.7978846, %v2258_v16  ;;  %v11806_v6 = vld [vmem:[#allocation115_spill] sm:$0xff]  ;;  %4507 = vmatmul.f32.gmra.mxu3 %v8305_v20 }
 0x38f   : > { %4708 = vst [vmem:[%s5951_s7 + $0x8] sm:$0xff] %v4644_v47  ;;  %v8941_v47 = vmul.f32 %v3276_v40, %v11743_v63  ;;  %v8955_v63 = vadd.f32 %v11804_v3, %v6405_v31  ;;  %v3681_v40 = vld [vmem:[%s5951_s7 + $0x10] sm:$0xff]  ;;  %v2260_v58 = vadd.f32 %v11807_v17, %v11806_v6  ;;  %v1549_v48 = vmul.f32 %v8938_v56, %v8938_v56  ;;  %v11811_v20 = vld [vmem:[#allocation63_spill] sm:$0xff] }
 0x390   : > { %11796 = vst [vmem:[#allocation118_spill] sm:$0xff] %v8938_v56  ;;  %v4458_v5 = vadd.f32 %v4457_v61, %v4249_v34  ;;  %v3023_v3 = vadd.f32 1.0, %v5436_v39  ;;  %v1550_v24 = vmul.f32 %v8945_v54, %v8945_v54  ;;  %5439 = vtanh.f32 %v2513_v53 }
 0x391   : > { %11797 = vst [vmem:[#allocation27_spill] sm:$0xff] %v8941_v47  ;;  %v8960_v47 = vmul.f32 0.044715, %v1801_v2  ;;  %v2515_v17 = vmul.f32 0.7978846, %v2259_v26  ;;  %v4043_v16 = vadd.f32 %v4042_v12, %v3833_v21  ;;  %v3278_v55 = vmul.f32 0.5, %v3022_v10  ;;  %v4251_v39 = vpop.f32.mrf.mxu2 }
 0x392   : > { %11799 = vst [vmem:[#allocation56_spill] sm:$0xff] %v8945_v54  ;;  %v4645_v4 = vadd.f32 %v4458_v5, %v3681_v40  ;;  %v8972_v2 = vmul.f32 0.044715, %v1803_v59  ;;  %v8974_v43 = vmul.f32 0.044715, %v1804_v22  ;;  %5441 = vtanh.f32 %v2514_v0  ;;  %v11813_v59 = vld [vmem:[#allocation64_spill] sm:$0xff] }
 0x393   : > { %11803 = vst [vmem:[#allocation169_spill] sm:$0xff] %v8951_v14  ;;  %4089 = vmatmul.f32.gmra.mxu1 %v8255_v37  ;;  %v1552_v37 = vmul.f32 %v8955_v63, %v8955_v63  ;;  %v2516_v61 = vmul.f32 0.7978846, %v2260_v58  ;;  %v8983_v26 = vadd.f32 %v11811_v20, %v6411_v8  ;;  %v8987_v22 = vadd.f32 %v11813_v59, %v6415_v23  ;;  %v11815_v40 = vld [vmem:[#allocation116_spill] sm:$0xff]  ;;  %v11816_v59 = vld [vmem:[#allocation178_spill] sm:$0xff] }
 0x394   : > { %11805 = vst [vmem:[#allocation170_spill] sm:$0xff] %v8955_v63  ;;  %3880 = vmatmul.f32.gmra.mxu0 %v8240_v50  ;;  %v1551_v50 = vmul.f32 %v8951_v14, %v8951_v14  ;;  %v4460_v34 = vpop.f32.mrf.mxu3  ;;  %v3279_v53 = vmul.f32 0.5, %v3023_v3  ;;  %v2261_v5 = vadd.f32 %v8178_v19, %v11815_v40  ;;  %v1805_v10 = vmul.f32 %v1549_v48, %v8938_v56  ;;  %v3682_v3 = vld [vmem:[%s5951_s7 + $0x18] sm:$0xff] }
 0x395   : > { %11808 = vst [vmem:[#allocation90_spill] sm:$0xff] %v8962_v7  ;;  %4298 = vmatmul.f32.gmra.mxu2 %v8268_v52  ;;  %v5438_v52 = vpop.eup %5437  ;;  %v1806_v21 = vmul.f32 %v1550_v24, %v8945_v54  ;;  %v4252_v12 = vadd.f32 %v4251_v39, %v4043_v16  ;;  %v3836_v0 = vpop.f32.mrf.mxu0  ;;  %5443 = vtanh.f32 %v2515_v17  ;;  %v1808_v20 = vmul.f32 %v1552_v37, %v8955_v63  ;;  %v11818_v48 = vld [vmem:[#allocation179_spill] sm:$0xff]  ;;  %v11871_v7 = vld [vmem:[#allocation76_spill] sm:$0xff] }
 0x396   : > { %11809 = vst [vmem:[#allocation204_spill] sm:$0xff] %v8972_v2  ;;  %v4045_v58 = vpop.f32.mrf.mxu1  ;;  %v9001_v2 = vmul.f32 %v3277_v15, %v7963_v46  ;;  %v5440_v19 = vpop.eup %5439  ;;  %v9005_v24 = vadd.f32 %v11818_v48, %v6405_v31  ;;  %v3024_v39 = vadd.f32 1.0, %v5438_v52  ;;  %5445 = vtanh.f32 %v2516_v61  ;;  %v11820_v37 = vld [vmem:[#allocation35_spill] sm:$0xff] }
 0x397   : > { %11810 = vst [vmem:[#allocation8_spill] sm:$0xff] %v8974_v43  ;;  %v8997_v43 = vadd.f32 %v11816_v59, %v6403_v27  ;;  %v4461_v16 = vadd.f32 %v4460_v34, %v4252_v12  ;;  %v1553_v17 = vmul.f32 %v8983_v26, %v8983_v26  ;;  %v9014_v46 = vmul.f32 %v3278_v55, %v7972_v25  ;;  %v11823_v34 = vld [vmem:[#allocation22_spill] sm:$0xff]  ;;  %v11828_v63 = vld [vmem:[#allocation183_spill] sm:$0xff] }
 0x398   : > { %4709 = vst [vmem:[%s5951_s7 + $0x10] sm:$0xff] %v4645_v4  ;;  %v1807_v4 = vmul.f32 %v1551_v50, %v8951_v14  ;;  %v1554_v50 = vmul.f32 %v8987_v22, %v8987_v22  ;;  %v2517_v15 = vmul.f32 0.7978846, %v2261_v5  ;;  %v5442_v59 = vpop.eup %5441  ;;  %v9016_v48 = vmul.f32 0.044715, %v1805_v10  ;;  %4510 = vmatmul.f32.gmra.mxu3 %v11823_v34  ;;  %v11832_v14 = vld [vmem:[#allocation104_spill] sm:$0xff] }
 0x399   : > { %11812 = vst [vmem:[#allocation97_spill] sm:$0xff] %v8983_v26  ;;  %v9018_v52 = vmul.f32 0.044715, %v1806_v21  ;;  %v4646_v61 = vadd.f32 %v4461_v16, %v3682_v3  ;;  %v9023_v12 = vmul.f32 %v3279_v53, %v11770_v60  ;;  %v1555_v25 = vmul.f32 %v8997_v43, %v8997_v43  ;;  %v11826_v3 = vld [vmem:[#allocation13_spill] sm:$0xff] }
 0x39a   : > { %11814 = vst [vmem:[#allocation119_spill] sm:$0xff] %v8987_v22  ;;  %v3025_v55 = vadd.f32 1.0, %v5440_v19  ;;  %v1556_v10 = vmul.f32 %v9005_v24, %v9005_v24  ;;  %v4046_v21 = vadd.f32 %v4045_v58, %v3836_v0  ;;  %v11827_v16 = vld [vmem:[#allocation109_spill] sm:$0xff]  ;;  %v1809_v60 = vmul.f32 %v1553_v17, %v8983_v26  ;;  %v11830_v0 = vld [vmem:[#allocation184_spill] sm:$0xff]  ;;  %v11833_v17 = vld [vmem:[#allocation207_spill] sm:$0xff] }
 0x39b   : > { %11817 = vst [vmem:[#allocation112_spill] sm:$0xff] %v8997_v43  ;;  %4092 = vmatmul.f32.gmra.mxu1 %v11820_v37  ;;  %v9027_v37 = vmul.f32 0.044715, %v1808_v20  ;;  %v5444_v5 = vpop.eup %5443  ;;  %v2262_v34 = vadd.f32 %v11827_v16, %v11826_v3  ;;  %v1810_v53 = vmul.f32 %v1554_v50, %v8987_v22  ;;  %5447 = vtanh.f32 %v2517_v15  ;;  %v3683_v22 = vld [vmem:[%s5951_s7 + $0x20] sm:$0xff] }
 0x39c   : > { %11819 = vst [vmem:[#allocation206_spill] sm:$0xff] %v9005_v24  ;;  %3883 = vmatmul.f32.gmra.mxu0 %v8328_v36  ;;  %v9025_v36 = vmul.f32 0.044715, %v1807_v4  ;;  %v4254_v4 = vpop.f32.mrf.mxu2  ;;  %v4463_v20 = vpop.f32.mrf.mxu3  ;;  %v9044_v58 = vadd.f32 %v11830_v0, %v6415_v23  ;;  %v2263_v26 = vadd.f32 %v11833_v17, %v11832_v14  ;;  %v1811_v50 = vmul.f32 %v1555_v25, %v8997_v43  ;;  %v11836_v0 = vld [vmem:[#allocation186_spill] sm:$0xff]  ;;  %v11839_v17 = vld [vmem:[#allocation23_spill] sm:$0xff]  ;;  %v11840_v25 = vld [vmem:[#allocation24_spill] sm:$0xff] }
 0x39d   : > { %11821 = vst [vmem:[#allocation59_spill] sm:$0xff] %v9016_v48  ;;  %4301 = vmatmul.f32.gmra.mxu2 %v8362_v9  ;;  %v3280_v9 = vmul.f32 0.5, %v3024_v39  ;;  %v5446_v19 = vpop.eup %5445  ;;  %v4255_v39 = vadd.f32 %v4254_v4, %v4046_v21  ;;  %v1812_v54 = vmul.f32 %v1556_v10, %v9005_v24  ;;  %v9057_v48 = vadd.f32 %v11836_v0, %v6405_v31 }
 0x39e   : > { %11822 = vst [vmem:[#allocation60_spill] sm:$0xff] %v9018_v52  ;;  %v4048_v16 = vpop.f32.mrf.mxu1  ;;  %v3281_v52 = vmul.f32 0.5, %v3025_v55  ;;  %v2518_v4 = vmul.f32 0.7978846, %v2262_v34  ;;  %v9059_v56 = vmul.f32 0.044715, %v1809_v60  ;;  %v1558_v0 = vmul.f32 %v9044_v58, %v9044_v58 }
 0x39f   : > { %11824 = vst [vmem:[#allocation113_spill] sm:$0xff] %v9025_v36  ;;  %v9040_v36 = vadd.f32 %v11828_v63, %v6411_v8  ;;  %v3027_v63 = vadd.f32 1.0, %v5444_v5  ;;  %v4464_v21 = vadd.f32 %v4463_v20, %v4255_v39  ;;  %v3028_v5 = vadd.f32 1.0, %v5446_v19  ;;  %v11843_v19 = vld [vmem:[#allocation128_spill] sm:$0xff] }
 0x3a0   : > { %11825 = vst [vmem:[#allocation54_spill] sm:$0xff] %v9027_v37  ;;  %v3026_v37 = vadd.f32 1.0, %v5442_v59  ;;  %v11834_v59 = vld [vmem:[#allocation185_spill] sm:$0xff]  ;;  %4513 = vmatmul.f32.gmra.mxu3 %v8503_v42  ;;  %v2519_v34 = vmul.f32 0.7978846, %v2263_v26  ;;  %5449 = vtanh.f32 %v2518_v4  ;;  %v11845_v42 = vld [vmem:[#allocation134_spill] sm:$0xff]  ;;  %v9086_v43 = vmul.f32 %v3281_v52, %v11791_v1 }
 0x3a1   : > { %4710 = vst [vmem:[%s5951_s7 + $0x18] sm:$0xff] %v4646_v61  ;;  %v3839_v61 = vpop.f32.mrf.mxu0  ;;  %v9051_v15 = vadd.f32 %v11834_v59, %v6403_v27  ;;  %v9064_v59 = vmul.f32 %v3280_v9, %v11786_v33  ;;  %v1557_v10 = vmul.f32 %v9040_v36, %v9040_v36  ;;  %v4647_v20 = vadd.f32 %v4464_v21, %v3683_v22  ;;  %v5448_v60 = vpop.eup %5447  ;;  %v11842_v9 = vld [vmem:[#allocation105_spill] sm:$0xff] }
 0x3a2   : > { %11829 = vst [vmem:[#allocation174_spill] sm:$0xff] %v9040_v36  ;;  %v3282_v55 = vmul.f32 0.5, %v3026_v37  ;;  %v9072_v39 = vmul.f32 0.044715, %v1810_v53  ;;  %v3283_v37 = vmul.f32 0.5, %v3027_v63  ;;  %v4049_v22 = vadd.f32 %v4048_v16, %v3839_v61 }
 0x3a3   : > { %11831 = vst [vmem:[#allocation175_spill] sm:$0xff] %v9044_v58  ;;  %4095 = vmatmul.f32.gmra.mxu1 %v11840_v25  ;;  %v1559_v33 = vmul.f32 %v9051_v15, %v9051_v15  ;;  %v1560_v25 = vmul.f32 %v9057_v48, %v9057_v48  ;;  %v9083_v21 = vmul.f32 0.044715, %v1811_v50  ;;  %v1814_v61 = vmul.f32 %v1558_v0, %v9044_v58  ;;  %v11868_v58 = vld [vmem:[#allocation16_spill] sm:$0xff] }
 0x3a4   : > { %11835 = vst [vmem:[#allocation115_spill] sm:$0xff] %v9051_v15  ;;  %3886 = vmatmul.f32.gmra.mxu0 %v11839_v17  ;;  %v2264_v17 = vadd.f32 %v11843_v19, %v11842_v9  ;;  %v4257_v53 = vpop.f32.mrf.mxu2  ;;  %v4466_v24 = vpop.f32.mrf.mxu3  ;;  %v9089_v63 = vmul.f32 %v3282_v55, %v11793_v62  ;;  %v3284_v19 = vmul.f32 0.5, %v3028_v5  ;;  %5451 = vtanh.f32 %v2519_v34 }
 0x3a5   : > { %11837 = vst [vmem:[#allocation176_spill] sm:$0xff] %v9057_v48  ;;  %4304 = vmatmul.f32.gmra.mxu2 %v8474_v32  ;;  %v11844_v32 = vld [vmem:[#allocation55_spill] sm:$0xff]  ;;  %v4258_v16 = vadd.f32 %v4257_v53, %v4049_v22  ;;  %v1815_v50 = vmul.f32 %v1559_v33, %v9051_v15  ;;  %v3029_v1 = vadd.f32 1.0, %v5448_v60  ;;  %v1816_v62 = vmul.f32 %v1560_v25, %v9057_v48  ;;  %v11850_v22 = vld [vmem:[#allocation190_spill] sm:$0xff] }
 0x3a6   : > { %11838 = vst [vmem:[#allocation63_spill] sm:$0xff] %v9059_v56  ;;  %v2265_v26 = vadd.f32 %v11845_v42, %v11844_v32  ;;  %v3684_v42 = vld [vmem:[%s5951_s7 + $0x28] sm:$0xff]  ;;  %v2520_v52 = vmul.f32 0.7978846, %v2264_v17  ;;  %v9101_v0 = vmul.f32 0.044715, %v1812_v54  ;;  %v9105_v34 = vadd.f32 %v11850_v22, %v6411_v8 }
 0x3a7   : > { %11841 = vst [vmem:[#allocation64_spill] sm:$0xff] %v9072_v39  ;;  %v1813_v39 = vmul.f32 %v1557_v10, %v9040_v36  ;;  %v4467_v55 = vadd.f32 %v4466_v24, %v4258_v16  ;;  %v11847_v56 = vld [vmem:[#allocation177_spill] sm:$0xff]  ;;  %v11851_v33 = vld [vmem:[#allocation191_spill] sm:$0xff]  ;;  %v5450_v24 = vpop.eup %5449  ;;  %v11854_v54 = vld [vmem:[#allocation38_spill] sm:$0xff]  ;;  %v9126_v22 = vmul.f32 0.044715, %v1814_v61 }
 0x3a8   : > { %4711 = vst [vmem:[%s5951_s7 + $0x20] sm:$0xff] %v4647_v20  ;;  %v4051_v20 = vpop.f32.mrf.mxu1  ;;  %v2521_v5 = vmul.f32 0.7978846, %v2265_v26  ;;  %v11848_v10 = vld [vmem:[#allocation209_spill] sm:$0xff]  ;;  %v9109_v53 = vadd.f32 %v11851_v33, %v6415_v23  ;;  %v11856_v25 = vld [vmem:[#allocation171_spill] sm:$0xff]  ;;  %v11858_v16 = vld [vmem:[#allocation122_spill] sm:$0xff]  ;;  %5453 = vtanh.f32 %v2520_v52  ;;  %v1561_v61 = vmul.f32 %v9105_v34, %v9105_v34 }
 0x3a9   : > { %11846 = vst [vmem:[#allocation116_spill] sm:$0xff] %v9083_v21  ;;  %v3842_v4 = vpop.f32.mrf.mxu0  ;;  %v9096_v21 = vmul.f32 %v3283_v37, %v11800_v18  ;;  %v2266_v36 = vadd.f32 %v11848_v10, %v11847_v56  ;;  %v9114_v18 = vmul.f32 %v3284_v19, %v11806_v6  ;;  %v9116_v60 = vmul.f32 0.044715, %v1813_v39  ;;  %v11857_v26 = vld [vmem:[#allocation219_spill] sm:$0xff]  ;;  %v11859_v10 = vld [vmem:[#allocation210_spill] sm:$0xff] }
 0x3aa   : > { %11849 = vst [vmem:[#allocation178_spill] sm:$0xff] %v9101_v0  ;;  %v9120_v37 = vadd.f32 %v11854_v54, %v6403_v27  ;;  %v4648_v17 = vadd.f32 %v4467_v55, %v3684_v42  ;;  %4516 = vmatmul.f32.gmra.mxu3 %v11857_v26  ;;  %v3285_v39 = vmul.f32 0.5, %v3029_v1  ;;  %v5452_v19 = vpop.eup %5451  ;;  %v4052_v33 = vadd.f32 %v4051_v20, %v3842_v4  ;;  %v11863_v55 = vld [vmem:[#allocation123_spill] sm:$0xff] }
 0x3ab   : > { %11852 = vst [vmem:[#allocation179_spill] sm:$0xff] %v9109_v53  ;;  %4098 = vmatmul.f32.gmra.mxu1 %v8518_v13  ;;  %v11861_v13 = vld [vmem:[#allocation151_spill] sm:$0xff]  ;;  %5455 = vtanh.f32 %v2521_v5  ;;  %v2522_v42 = vmul.f32 0.7978846, %v2266_v36  ;;  %v9135_v26 = vmul.f32 0.044715, %v1815_v50 }
 0x3ac   : > { %3889 = vmatmul.f32.gmra.mxu0 %v8509_v51  ;;  %11853 = vst [vmem:[#allocation35_spill] sm:$0xff] %v9116_v60  ;;  %v2267_v51 = vadd.f32 %v11859_v10, %v11858_v16  ;;  %v9130_v6 = vadd.f32 %v11861_v13, %v6405_v31  ;;  %v11864_v54 = vld [vmem:[#allocation211_spill] sm:$0xff]  ;;  %v1562_v10 = vmul.f32 %v9109_v53, %v9109_v53  ;;  %v4260_v13 = vpop.f32.mrf.mxu2  ;;  %v4469_v1 = vpop.f32.mrf.mxu3  ;;  %v3030_v52 = vadd.f32 1.0, %v5450_v24 }
 0x3ad   : > { %11855 = vst [vmem:[#allocation22_spill] sm:$0xff] %v9120_v37  ;;  %4307 = vmatmul.f32.gmra.mxu2 %v11856_v25  ;;  %v2268_v25 = vadd.f32 %v11864_v54, %v11863_v55  ;;  %v9141_v48 = vmul.f32 0.044715, %v1816_v62  ;;  %v1563_v4 = vmul.f32 %v9120_v37, %v9120_v37  ;;  %v4261_v36 = vadd.f32 %v4260_v13, %v4052_v33  ;;  %v3685_v54 = vld [vmem:[%s5951_s7 + $0x30] sm:$0xff]  ;;  %v11869_v62 = vld [vmem:[#allocation41_spill] sm:$0xff] }
 0x3ae   : > { %11860 = vst [vmem:[#allocation13_spill] sm:$0xff] %v9126_v22  ;;  %v1564_v50 = vmul.f32 %v9130_v6, %v9130_v6  ;;  %v3031_v15 = vadd.f32 1.0, %v5452_v19  ;;  %v11867_v22 = vld [vmem:[#allocation129_spill] sm:$0xff]  ;;  %5457 = vtanh.f32 %v2522_v42  ;;  %v5454_v13 = vpop.eup %5453  ;;  %v1818_v0 = vmul.f32 %v1562_v10, %v9109_v53  ;;  %v11874_v42 = vld [vmem:[#allocation195_spill] sm:$0xff] }
 0x3af   : > { %11862 = vst [vmem:[#allocation109_spill] sm:$0xff] %v9130_v6  ;;  %v2269_v24 = vadd.f32 %v11868_v58, %v11867_v22  ;;  %v4470_v60 = vadd.f32 %v4469_v1, %v4261_v36  ;;  %v2524_v33 = vmul.f32 0.7978846, %v2268_v25  ;;  %v11873_v58 = vld [vmem:[#allocation155_spill] sm:$0xff]  ;;  %v1819_v1 = vmul.f32 %v1563_v4, %v9120_v37  ;;  %v11876_v36 = vld [vmem:[#allocation182_spill] sm:$0xff] }
 0x3b0   : > { %4712 = vst [vmem:[%s5951_s7 + $0x28] sm:$0xff] %v4648_v17  ;;  %v4054_v5 = vpop.f32.mrf.mxu1  ;;  %v2523_v17 = vmul.f32 0.7978846, %v2267_v51  ;;  %v1817_v51 = vmul.f32 %v1561_v61, %v9105_v34  ;;  %v9168_v25 = vadd.f32 %v11874_v42, %v6403_v27  ;;  %v11877_v10 = vld [vmem:[#allocation47_spill] sm:$0xff]  ;;  %v3032_v37 = vadd.f32 1.0, %v5454_v13 }
 0x3b1   : > { %11865 = vst [vmem:[#allocation183_spill] sm:$0xff] %v9135_v26  ;;  %v3845_v20 = vpop.f32.mrf.mxu0  ;;  %v9149_v26 = vmul.f32 %v3285_v39, %v11815_v40  ;;  %v9161_v40 = vadd.f32 %v11871_v7, %v6415_v23  ;;  %v3286_v39 = vmul.f32 0.5, %v3030_v52  ;;  %v5456_v19 = vpop.eup %5455  ;;  %v4649_v61 = vadd.f32 %v4470_v60, %v3685_v54 }
 0x3b2   : > { %11866 = vst [vmem:[#allocation184_spill] sm:$0xff] %v9141_v48  ;;  %v9155_v48 = vadd.f32 %v11869_v62, %v6411_v8  ;;  %4519 = vmatmul.f32.gmra.mxu3 %v11877_v10  ;;  %5459 = vtanh.f32 %v2523_v17  ;;  %v1820_v7 = vmul.f32 %v1564_v50, %v9130_v6  ;;  %v3287_v52 = vmul.f32 0.5, %v3031_v15 }
 0x3b3   : > { %11872 = vst [vmem:[#allocation207_spill] sm:$0xff] %v9161_v40  ;;  %4101 = vmatmul.f32.gmra.mxu1 %v11873_v58  ;;  %v2525_v58 = vmul.f32 0.7978846, %v2269_v24  ;;  %v4055_v42 = vadd.f32 %v4054_v5, %v3845_v20  ;;  %5461 = vtanh.f32 %v2524_v33  ;;  %v9180_v60 = vmul.f32 0.044715, %v1817_v51  ;;  %v11882_v51 = vld [vmem:[#allocation9_spill] sm:$0xff] }
 0x3b4   : > { %11870 = vst [vmem:[#allocation104_spill] sm:$0xff] %v9155_v48  ;;  %3892 = vmatmul.f32.gmra.mxu0 %v8619_v41  ;;  %v11878_v41 = vld [vmem:[#allocation196_spill] sm:$0xff]  ;;  %v1565_v4 = vmul.f32 %v9155_v48, %v9155_v48  ;;  %v1566_v17 = vmul.f32 %v9161_v40, %v9161_v40  ;;  %v4263_v50 = vpop.f32.mrf.mxu2  ;;  %v4472_v54 = vpop.f32.mrf.mxu3  ;;  %v3033_v15 = vadd.f32 1.0, %v5456_v19  ;;  %v9187_v10 = vmul.f32 0.044715, %v1818_v0 }
 0x3b5   : > { %11875 = vst [vmem:[#allocation185_spill] sm:$0xff] %v9168_v25  ;;  %4310 = vmatmul.f32.gmra.mxu2 %v11876_v36  ;;  %v9175_v62 = vadd.f32 %v11878_v41, %v6405_v31  ;;  %v9185_v36 = vmul.f32 %v3286_v39, %v11826_v3  ;;  %v5458_v24 = vpop.eup %5457  ;;  %v1567_v20 = vmul.f32 %v9168_v25, %v9168_v25  ;;  %v9193_v6 = vmul.f32 0.044715, %v1819_v1  ;;  %v3686_v39 = vld [vmem:[%s5951_s7 + $0x38] sm:$0xff]  ;;  %v11886_v1 = vld [vmem:[#allocation78_spill] sm:$0xff] }
 0x3b6   : > { %4713 = vst [vmem:[%s5951_s7 + $0x30] sm:$0xff] %v4649_v61  ;;  %v4264_v5 = vadd.f32 %v4263_v50, %v4055_v42  ;;  %v11883_v61 = vld [vmem:[#allocation117_spill] sm:$0xff]  ;;  %v9195_v53 = vmul.f32 0.044715, %v1820_v7  ;;  %5463 = vtanh.f32 %v2525_v58  ;;  %v1821_v19 = vmul.f32 %v1565_v4, %v9155_v48 }
 0x3b7   : > { %11879 = vst [vmem:[#allocation186_spill] sm:$0xff] %v9175_v62  ;;  %v2270_v41 = vadd.f32 %v11883_v61, %v11882_v51  ;;  %v1568_v3 = vmul.f32 %v9175_v62, %v9175_v62  ;;  %v9202_v42 = vmul.f32 %v3287_v52, %v11832_v14  ;;  %v3288_v50 = vmul.f32 0.5, %v3032_v37  ;;  %v11888_v14 = vld [vmem:[#allocation224_spill] sm:$0xff]  ;;  %v11889_v52 = vld [vmem:[#allocation10_spill] sm:$0xff] }
 0x3b8   : > { %11880 = vst [vmem:[#allocation23_spill] sm:$0xff] %v9180_v60  ;;  %v4057_v13 = vpop.f32.mrf.mxu1  ;;  %v5460_v0 = vpop.eup %5459  ;;  %v1822_v60 = vmul.f32 %v1566_v17, %v9161_v40  ;;  %v9207_v61 = vadd.f32 %v11886_v1, %v6411_v8  ;;  %v3289_v7 = vmul.f32 0.5, %v3033_v15  ;;  %v3034_v58 = vadd.f32 1.0, %v5458_v24  ;;  %v11890_v17 = vld [vmem:[#allocation34_spill] sm:$0xff]  ;;  %v11893_v15 = vld [vmem:[#allocation80_spill] sm:$0xff] }
 0x3b9   : > { %11881 = vst [vmem:[#allocation24_spill] sm:$0xff] %v9187_v10  ;;  %v3848_v33 = vpop.f32.mrf.mxu0  ;;  %v4473_v10 = vadd.f32 %v4472_v54, %v4264_v5  ;;  %v1823_v4 = vmul.f32 %v1567_v20, %v9168_v25  ;;  %v2526_v37 = vmul.f32 0.7978846, %v2270_v41  ;;  %v2271_v5 = vadd.f32 %v11890_v17, %v11889_v52 }
 0x3ba   : > { %11884 = vst [vmem:[#allocation105_spill] sm:$0xff] %v9193_v6  ;;  %4522 = vmatmul.f32.gmra.mxu3 %v11888_v14  ;;  %v1824_v1 = vmul.f32 %v1568_v3, %v9175_v62  ;;  %v9223_v24 = vadd.f32 %v11893_v15, %v6403_v27  ;;  %v3035_v20 = vadd.f32 1.0, %v5460_v0  ;;  %v4058_v41 = vadd.f32 %v4057_v13, %v3848_v33  ;;  %v11899_v33 = vld [vmem:[#allocation132_spill] sm:$0xff]  ;;  %v11900_v13 = vld [vmem:[#allocation62_spill] sm:$0xff] }
 0x3bb   : > { %11885 = vst [vmem:[#allocation128_spill] sm:$0xff] %v9195_v53  ;;  %4104 = vmatmul.f32.gmra.mxu1 %v8727_v49  ;;  %v5462_v53 = vpop.eup %5461  ;;  %v4650_v54 = vadd.f32 %v4473_v10, %v3686_v39  ;;  %v9225_v10 = vmul.f32 0.044715, %v1821_v19  ;;  %v9233_v14 = vmul.f32 %v3288_v50, %v11842_v9  ;;  %v9235_v17 = vmul.f32 0.044715, %v1822_v60 }
 0x3bc   : > { %11887 = vst [vmem:[#allocation55_spill] sm:$0xff] %v9207_v61  ;;  %3895 = vmatmul.f32.gmra.mxu0 %v8710_v44  ;;  %v11891_v44 = vld [vmem:[#allocation19_spill] sm:$0xff]  ;;  %v5464_v3 = vpop.eup %5463  ;;  %v4266_v15 = vpop.f32.mrf.mxu2  ;;  %v3290_v19 = vmul.f32 0.5, %v3034_v58  ;;  %v3036_v62 = vadd.f32 1.0, %v5462_v53  ;;  %5465 = vtanh.f32 %v2526_v37  ;;  %v2272_v9 = vadd.f32 %v11900_v13, %v11899_v33 }
 0x3bd   : > { %4313 = vmatmul.f32.gmra.mxu2 %v8738_v11  ;;  %v9219_v49 = vadd.f32 %v11891_v44, %v6415_v23  ;;  %11894 = vst [vmem:[#allocation177_spill] sm:$0xff] %v9223_v24  ;;  %v11896_v11 = vld [vmem:[#allocation43_spill] sm:$0xff]  ;;  %v1569_v44 = vmul.f32 %v9207_v61, %v9207_v61  ;;  %v4475_v0 = vpop.f32.mrf.mxu3  ;;  %v4267_v25 = vadd.f32 %v4266_v15, %v4058_v41  ;;  %v3291_v58 = vmul.f32 0.5, %v3035_v20  ;;  %v11903_v20 = vld [vmem:[#allocation160_spill] sm:$0xff] }
 0x3be   : > { %11895 = vst [vmem:[#allocation209_spill] sm:$0xff] %v9225_v10  ;;  %v9229_v39 = vadd.f32 %v11896_v11, %v6405_v31  ;;  %v1571_v60 = vmul.f32 %v9223_v24, %v9223_v24  ;;  %v9247_v10 = vmul.f32 %v3289_v7, %v11844_v32  ;;  %v9249_v53 = vmul.f32 0.044715, %v1823_v4 }
 0x3bf   : > { %11892 = vst [vmem:[#allocation134_spill] sm:$0xff] %v9219_v49  ;;  %v1570_v50 = vmul.f32 %v9219_v49, %v9219_v49  ;;  %v3037_v41 = vadd.f32 1.0, %v5464_v3  ;;  %v9253_v15 = vmul.f32 0.044715, %v1824_v1  ;;  %v1825_v13 = vmul.f32 %v1569_v44, %v9207_v61  ;;  %v11905_v1 = vld [vmem:[#allocation137_spill] sm:$0xff] }
 0x3c0   : > { %11897 = vst [vmem:[#allocation190_spill] sm:$0xff] %v9229_v39  ;;  %v4060_v11 = vpop.f32.mrf.mxu1  ;;  %v1572_v37 = vmul.f32 %v9229_v39, %v9229_v39  ;;  %v9259_v32 = vmul.f32 %v3290_v19, %v11847_v56  ;;  %v3292_v7 = vmul.f32 0.5, %v3036_v62  ;;  %v11906_v3 = vld [vmem:[#allocation65_spill] sm:$0xff]  ;;  %v9272_v56 = vmul.f32 %v3291_v58, %v11858_v16  ;;  %v11915_v16 = vld [vmem:[#allocation83_spill] sm:$0xff] }
 0x3c1   : > { %4714 = vst [vmem:[%s5951_s7 + $0x38] sm:$0xff] %v4650_v54  ;;  %v3851_v40 = vpop.f32.mrf.mxu0  ;;  %v2527_v54 = vmul.f32 0.7978846, %v2271_v5  ;;  %v4476_v5 = vadd.f32 %v4475_v0, %v4267_v25  ;;  %v2528_v25 = vmul.f32 0.7978846, %v2272_v9  ;;  %v2273_v0 = vadd.f32 %v11906_v3, %v11905_v1  ;;  %v11909_v9 = vld [vmem:[#allocation138_spill] sm:$0xff] }
 0x3c2   : > { %11898 = vst [vmem:[#allocation191_spill] sm:$0xff] %v9235_v17  ;;  %v3687_v17 = vld [vmem:[%s5951_s7 + $0x40] sm:$0xff]  ;;  %v1826_v44 = vmul.f32 %v1570_v50, %v9219_v49  ;;  %v5466_v62 = vpop.eup %5465  ;;  %v4061_v19 = vadd.f32 %v4060_v11, %v3851_v40  ;;  %v11911_v50 = vld [vmem:[#allocation46_spill] sm:$0xff]  ;;  %v9288_v58 = vadd.f32 %v11915_v16, %v6405_v31  ;;  %v9291_v40 = vmul.f32 %v3292_v7, %v11863_v55 }
 0x3c3   : > { %11901 = vst [vmem:[#allocation38_spill] sm:$0xff] %v9249_v53  ;;  %4107 = vmatmul.f32.gmra.mxu1 %v8799_v29  ;;  %v4651_v4 = vadd.f32 %v4476_v5, %v3687_v17  ;;  %v11904_v53 = vld [vmem:[#allocation102_spill] sm:$0xff]  ;;  %5467 = vtanh.f32 %v2527_v54  ;;  %v11907_v29 = vld [vmem:[#allocation96_spill] sm:$0xff]  ;;  %v1828_v17 = vmul.f32 %v1572_v37, %v9229_v39  ;;  %v3293_v54 = vmul.f32 0.5, %v3037_v41 }
 0x3c4   : > { %11902 = vst [vmem:[#allocation171_spill] sm:$0xff] %v9253_v15  ;;  %3898 = vmatmul.f32.gmra.mxu0 %v8792_v28  ;;  %4525 = vmatmul.f32.gmra.mxu3 %v11904_v53  ;;  %v1827_v28 = vmul.f32 %v1571_v60, %v9223_v24  ;;  %v9269_v61 = vadd.f32 %v11907_v29, %v6411_v8  ;;  %v11910_v53 = vld [vmem:[#allocation20_spill] sm:$0xff]  ;;  %v4269_v37 = vpop.f32.mrf.mxu2  ;;  %5469 = vtanh.f32 %v2528_v25  ;;  %v9295_v49 = vmul.f32 0.044715, %v1825_v13  ;;  %v3688_v15 = vld [vmem:[%s5951_s7 + $0x48] sm:$0xff] }
 0x3c5   : > { %4316 = vmatmul.f32.gmra.mxu2 %v11903_v20  ;;  %4715 = vst [vmem:[%s5951_s7 + $0x40] sm:$0xff] %v4651_v4  ;;  %v2274_v5 = vadd.f32 %v11910_v53, %v11909_v9  ;;  %v9280_v60 = vadd.f32 %v11911_v50, %v6415_v23  ;;  %v11913_v20 = vld [vmem:[#allocation82_spill] sm:$0xff]  ;;  %v4478_v4 = vpop.f32.mrf.mxu3  ;;  %v4270_v11 = vadd.f32 %v4269_v37, %v4061_v19  ;;  %v2529_v53 = vmul.f32 0.7978846, %v2273_v0  ;;  %v11917_v50 = vld [vmem:[#allocation33_spill] sm:$0xff]  ;;  %v11918_v39 = vld [vmem:[#allocation124_spill] sm:$0xff] }
 0x3c6   : > { %11908 = vst [vmem:[#allocation219_spill] sm:$0xff] %v9269_v61  ;;  %v9284_v3 = vadd.f32 %v11913_v20, %v6403_v27  ;;  %v2275_v24 = vadd.f32 %v11918_v39, %v11917_v50  ;;  %v9297_v20 = vmul.f32 0.044715, %v1826_v44  ;;  %v1573_v16 = vmul.f32 %v9269_v61, %v9269_v61 }
 0x3c7   : > { %11912 = vst [vmem:[#allocation122_spill] sm:$0xff] %v9280_v60  ;;  %v3038_v48 = vadd.f32 1.0, %v5466_v62  ;;  %v9302_v55 = vmul.f32 0.044715, %v1827_v28  ;;  %v4479_v7 = vadd.f32 %v4478_v4, %v4270_v11  ;;  %v9305_v19 = vmul.f32 %v3293_v54, %v11867_v22  ;;  %v11922_v62 = vld [vmem:[#allocation140_spill] sm:$0xff]  ;;  %v11924_v11 = vld [vmem:[#allocation143_spill] sm:$0xff] }
 0x3c8   : > { %11914 = vst [vmem:[#allocation210_spill] sm:$0xff] %v9284_v3  ;;  %v4063_v29 = vpop.f32.mrf.mxu1  ;;  %v2530_v25 = vmul.f32 0.7978846, %v2274_v5  ;;  %v9307_v0 = vmul.f32 0.044715, %v1828_v17  ;;  %v1574_v39 = vmul.f32 %v9280_v60, %v9280_v60  ;;  %v1575_v13 = vmul.f32 %v9284_v3, %v9284_v3  ;;  %v11923_v17 = vld [vmem:[#allocation154_spill] sm:$0xff] }
 0x3c9   : > { %11916 = vst [vmem:[#allocation151_spill] sm:$0xff] %v9288_v58  ;;  %v3854_v41 = vpop.f32.mrf.mxu0  ;;  %v5468_v6 = vpop.eup %5467  ;;  %v1576_v44 = vmul.f32 %v9288_v58, %v9288_v58  ;;  %v4652_v28 = vadd.f32 %v4479_v7, %v3688_v15  ;;  %5471 = vtanh.f32 %v2529_v53  ;;  %v2531_v22 = vmul.f32 0.7978846, %v2275_v24  ;;  %v11932_v7 = vld [vmem:[#allocation91_spill] sm:$0xff] }
 0x3ca   : > { %11919 = vst [vmem:[#allocation123_spill] sm:$0xff] %v9297_v20  ;;  %v2276_v54 = vadd.f32 %v11923_v17, %v11922_v62  ;;  %v1829_v5 = vmul.f32 %v1573_v16, %v9269_v61  ;;  %v3294_v37 = vmul.f32 0.5, %v3038_v48  ;;  %v3039_v4 = vadd.f32 1.0, %v5468_v6  ;;  %v11930_v6 = vld [vmem:[#allocation167_spill] sm:$0xff] }
 0x3cb   : > { %11920 = vst [vmem:[#allocation211_spill] sm:$0xff] %v9302_v55  ;;  %4110 = vmatmul.f32.gmra.mxu1 %v8870_v38  ;;  %v11926_v38 = vld [vmem:[#allocation107_spill] sm:$0xff]  ;;  %v4064_v24 = vadd.f32 %v4063_v29, %v3854_v41  ;;  %5473 = vtanh.f32 %v2530_v25  ;;  %v1830_v53 = vmul.f32 %v1574_v39, %v9280_v60  ;;  %v1831_v48 = vmul.f32 %v1575_v13, %v9284_v3  ;;  %v3689_v25 = vld [vmem:[%s5951_s7 + $0x50] sm:$0xff] }
 0x3cc   : > { %11921 = vst [vmem:[#allocation129_spill] sm:$0xff] %v9307_v0  ;;  %3901 = vmatmul.f32.gmra.mxu0 %v8867_v57  ;;  %4528 = vmatmul.f32.gmra.mxu3 %v8925_v35  ;;  %v11925_v0 = vld [vmem:[#allocation126_spill] sm:$0xff]  ;;  %v5470_v57 = vpop.eup %5469  ;;  %v9326_v15 = vadd.f32 %v11926_v38, %v6411_v8  ;;  %v9337_v16 = vadd.f32 %v11930_v6, %v6403_v27  ;;  %v4272_v17 = vpop.f32.mrf.mxu2  ;;  %5475 = vtanh.f32 %v2531_v22  ;;  %v2532_v29 = vmul.f32 0.7978846, %v2276_v54  ;;  %v11937_v54 = vld [vmem:[#allocation27_spill] sm:$0xff] }
 0x3cd   : > { %4319 = vmatmul.f32.gmra.mxu2 %v8919_v30  ;;  %v2277_v55 = vadd.f32 %v11925_v0, %v11924_v11  ;;  %v11928_v30 = vld [vmem:[#allocation108_spill] sm:$0xff]  ;;  %4716 = vst [vmem:[%s5951_s7 + $0x48] sm:$0xff] %v4652_v28  ;;  %v9341_v0 = vadd.f32 %v11932_v7, %v6405_v31  ;;  %v4481_v38 = vpop.f32.mrf.mxu3  ;;  %v4273_v61 = vadd.f32 %v4272_v17, %v4064_v24  ;;  %v3295_v13 = vmul.f32 0.5, %v3039_v4 }
 0x3ce   : > { %11927 = vst [vmem:[#allocation16_spill] sm:$0xff] %v9326_v15  ;;  %v9330_v35 = vadd.f32 %v11928_v30, %v6415_v23  ;;  %v1832_v30 = vmul.f32 %v1576_v44, %v9288_v58  ;;  %v9346_v39 = vmul.f32 %v3294_v37, %v11882_v51  ;;  %v3040_v6 = vadd.f32 1.0, %v5470_v57  ;;  %v11940_v57 = vld [vmem:[#allocation214_spill] sm:$0xff] }
 0x3cf   : > { %11931 = vst [vmem:[#allocation76_spill] sm:$0xff] %v9337_v16  ;;  %v2533_v3 = vmul.f32 0.7978846, %v2277_v55  ;;  %v5472_v60 = vpop.eup %5471  ;;  %v9348_v20 = vmul.f32 0.044715, %v1829_v5  ;;  %v1577_v7 = vmul.f32 %v9326_v15, %v9326_v15  ;;  %v4482_v24 = vadd.f32 %v4481_v38, %v4273_v61  ;;  %v11939_v61 = vld [vmem:[#allocation188_spill] sm:$0xff] }
 0x3d0   : > { %11929 = vst [vmem:[#allocation41_spill] sm:$0xff] %v9330_v35  ;;  %v4066_v41 = vpop.f32.mrf.mxu1  ;;  %v1578_v44 = vmul.f32 %v9330_v35, %v9330_v35  ;;  %v9354_v17 = vmul.f32 0.044715, %v1830_v53  ;;  %v9356_v22 = vmul.f32 0.044715, %v1831_v48  ;;  %v1579_v51 = vmul.f32 %v9337_v16, %v9337_v16 }
 0x3d1   : > { %11933 = vst [vmem:[#allocation155_spill] sm:$0xff] %v9341_v0  ;;  %v3857_v28 = vpop.f32.mrf.mxu0  ;;  %v1580_v55 = vmul.f32 %v9341_v0, %v9341_v0  ;;  %v5474_v5 = vpop.eup %5473  ;;  %v9364_v37 = vmul.f32 0.044715, %v1832_v30  ;;  %v4653_v4 = vadd.f32 %v4482_v24, %v3689_v25  ;;  %5477 = vtanh.f32 %v2532_v29  ;;  %v11942_v24 = vld [vmem:[#allocation68_spill] sm:$0xff] }
 0x3d2   : > { %11934 = vst [vmem:[#allocation195_spill] sm:$0xff] %v9348_v20  ;;  %v2278_v53 = vadd.f32 %v11940_v57, %v11939_v61  ;;  %v9371_v48 = vmul.f32 %v3295_v13, %v11889_v52  ;;  %v3296_v38 = vmul.f32 0.5, %v3040_v6  ;;  %5479 = vtanh.f32 %v2533_v3  ;;  %v5476_v58 = vpop.eup %5475  ;;  %v11943_v52 = vld [vmem:[#allocation98_spill] sm:$0xff] }
 0x3d3   : > { %11935 = vst [vmem:[#allocation182_spill] sm:$0xff] %v9354_v17  ;;  %4113 = vmatmul.f32.gmra.mxu1 %v11937_v54  ;;  %v1833_v54 = vmul.f32 %v1577_v7, %v9326_v15  ;;  %v1834_v30 = vmul.f32 %v1578_v44, %v9330_v35  ;;  %v4067_v25 = vadd.f32 %v4066_v41, %v3857_v28  ;;  %v3042_v6 = vadd.f32 1.0, %v5474_v5  ;;  %v11945_v7 = vld [vmem:[#allocation135_spill] sm:$0xff]  ;;  %v11948_v15 = vld [vmem:[#allocation193_spill] sm:$0xff] }
 0x3d4   : > { %11936 = vst [vmem:[#allocation47_spill] sm:$0xff] %v9356_v22  ;;  %3904 = vmatmul.f32.gmra.mxu0 %v8930_v45  ;;  %4531 = vmatmul.f32.gmra.mxu3 %v9014_v46  ;;  %v3041_v45 = vadd.f32 1.0, %v5472_v60  ;;  %v1835_v29 = vmul.f32 %v1579_v51, %v9337_v16  ;;  %v1836_v57 = vmul.f32 %v1580_v55, %v9341_v0  ;;  %v4275_v60 = vpop.f32.mrf.mxu2  ;;  %v2534_v35 = vmul.f32 0.7978846, %v2278_v53  ;;  %v11949_v55 = vld [vmem:[#allocation99_spill] sm:$0xff] }
 0x3d5   : > { %11938 = vst [vmem:[#allocation196_spill] sm:$0xff] %v9364_v37  ;;  %4322 = vmatmul.f32.gmra.mxu2 %v9001_v2  ;;  %v11941_v2 = vld [vmem:[#allocation37_spill] sm:$0xff]  ;;  %v9382_v13 = vadd.f32 %v11943_v52, %v6411_v8  ;;  %v4484_v3 = vpop.f32.mrf.mxu3  ;;  %v9386_v44 = vadd.f32 %v11945_v7, %v6415_v23  ;;  %v4276_v28 = vadd.f32 %v4275_v60, %v4067_v25  ;;  %v11951_v52 = vld [vmem:[#allocation100_spill] sm:$0xff]  ;;  %v3690_v5 = vld [vmem:[%s5951_s7 + $0x58] sm:$0xff]  ;;  %v3043_v7 = vadd.f32 1.0, %v5476_v58 }
 0x3d6   : > { %4717 = vst [vmem:[%s5951_s7 + $0x50] sm:$0xff] %v4653_v4  ;;  %v2279_v46 = vadd.f32 %v11942_v24, %v11941_v2  ;;  %v11947_v24 = vld [vmem:[#allocation144_spill] sm:$0xff]  ;;  %v9392_v0 = vadd.f32 %v11949_v55, %v6403_v27  ;;  %v9396_v16 = vadd.f32 %v11951_v52, %v6405_v31  ;;  %v9400_v37 = vmul.f32 %v3296_v38, %v11899_v33 }
 0x3d7   : > { %11944 = vst [vmem:[#allocation9_spill] sm:$0xff] %v9382_v13  ;;  %v2280_v51 = vadd.f32 %v11948_v15, %v11947_v24  ;;  %v5478_v25 = vpop.eup %5477  ;;  %v9402_v60 = vmul.f32 0.044715, %v1833_v54  ;;  %v4485_v53 = vadd.f32 %v4484_v3, %v4276_v28  ;;  %v3297_v22 = vmul.f32 0.5, %v3041_v45 }
 0x3d8   : > { %11946 = vst [vmem:[#allocation117_spill] sm:$0xff] %v9386_v44  ;;  %v4069_v4 = vpop.f32.mrf.mxu1  ;;  %v2535_v17 = vmul.f32 0.7978846, %v2279_v46  ;;  %v5480_v15 = vpop.eup %5479  ;;  %v9404_v20 = vmul.f32 0.044715, %v1834_v30  ;;  %v1581_v52 = vmul.f32 %v9382_v13, %v9382_v13  ;;  %v3298_v33 = vmul.f32 0.5, %v3042_v6 }
 0x3d9   : > { %v3860_v41 = vpop.f32.mrf.mxu0  ;;  %11950 = vst [vmem:[#allocation78_spill] sm:$0xff] %v9392_v0  ;;  %v9406_v55 = vmul.f32 0.044715, %v1835_v29  ;;  %v1582_v58 = vmul.f32 %v9386_v44, %v9386_v44  ;;  %v4654_v38 = vadd.f32 %v4485_v53, %v3690_v5  ;;  %5481 = vtanh.f32 %v2534_v35  ;;  %v11955_v5 = vld [vmem:[#allocation53_spill] sm:$0xff] }
 0x3da   : > { %11952 = vst [vmem:[#allocation224_spill] sm:$0xff] %v9396_v16  ;;  %v2536_v45 = vmul.f32 0.7978846, %v2280_v51  ;;  %v1583_v54 = vmul.f32 %v9392_v0, %v9392_v0  ;;  %v1584_v30 = vmul.f32 %v9396_v16, %v9396_v16  ;;  %v3044_v46 = vadd.f32 1.0, %v5478_v25  ;;  %v11954_v51 = vld [vmem:[#allocation66_spill] sm:$0xff]  ;;  %v11957_v53 = vld [vmem:[#allocation133_spill] sm:$0xff] }
 0x3db   : > { %4116 = vmatmul.f32.gmra.mxu1 %v9064_v59  ;;  %v9420_v59 = vmul.f32 0.044715, %v1836_v57  ;;  %4718 = vst [vmem:[%s5951_s7 + $0x58] sm:$0xff] %v4654_v38  ;;  %v4070_v29 = vadd.f32 %v4069_v4, %v3860_v41  ;;  %v3045_v3 = vadd.f32 1.0, %v5480_v15  ;;  %5483 = vtanh.f32 %v2535_v17  ;;  %v11956_v17 = vld [vmem:[#allocation18_spill] sm:$0xff] }
 0x3dc   : > { %3907 = vmatmul.f32.gmra.mxu0 %v9023_v12  ;;  %4534 = vmatmul.f32.gmra.mxu3 %v9089_v63  ;;  %v3299_v12 = vmul.f32 0.5, %v3043_v7  ;;  %v4278_v63 = vpop.f32.mrf.mxu2  ;;  %v9425_v6 = vmul.f32 %v3297_v22, %v11905_v1  ;;  %v9428_v28 = vmul.f32 %v3298_v33, %v11909_v9  ;;  %v2281_v7 = vadd.f32 %v11955_v5, %v11954_v51  ;;  %v3691_v22 = vld [vmem:[%s5951_s7 + $0x60] sm:$0xff]  ;;  %v11958_v5 = vld [vmem:[#allocation106_spill] sm:$0xff] }
 0x3dd   : > { %4325 = vmatmul.f32.gmra.mxu2 %v9086_v43  ;;  %11953 = vst [vmem:[#allocation10_spill] sm:$0xff] %v9420_v59  ;;  %v1837_v43 = vmul.f32 %v1581_v52, %v9382_v13  ;;  %v4487_v35 = vpop.f32.mrf.mxu3  ;;  %v1838_v57 = vmul.f32 %v1582_v58, %v9386_v44  ;;  %v4279_v25 = vadd.f32 %v4278_v63, %v4070_v29  ;;  %5485 = vtanh.f32 %v2536_v45  ;;  %v11959_v29 = vld [vmem:[#allocation205_spill] sm:$0xff]  ;;  %v11976_v13 = vld [vmem:[#allocation172_spill] sm:$0xff] }
 0x3de   : > { %v2282_v15 = vadd.f32 %v11957_v53, %v11956_v17  ;;  %v1839_v52 = vmul.f32 %v1583_v54, %v9392_v0  ;;  %v1840_v1 = vmul.f32 %v1584_v30, %v9396_v16  ;;  %v9439_v9 = vmul.f32 %v3299_v12, %v11917_v50  ;;  %v11962_v54 = vld [vmem:[#allocation26_spill] sm:$0xff]  ;;  %v11964_v50 = vld [vmem:[#allocation173_spill] sm:$0xff] }
 0x3df   : > { %v3300_v33 = vmul.f32 0.5, %v3044_v46  ;;  %v5482_v38 = vpop.eup %5481  ;;  %v9443_v58 = vadd.f32 %v11958_v5, %v6411_v8  ;;  %v9447_v45 = vadd.f32 %v11959_v29, %v6415_v23  ;;  %v4488_v63 = vadd.f32 %v4487_v35, %v4279_v25  ;;  %v11967_v35 = vld [vmem:[#allocation156_spill] sm:$0xff]  ;;  %v11968_v25 = vld [vmem:[#allocation70_spill] sm:$0xff] }
 0x3e0   : > { %v4072_v4 = vpop.f32.mrf.mxu1  ;;  %v3301_v53 = vmul.f32 0.5, %v3045_v3  ;;  %v9449_v44 = vmul.f32 0.044715, %v1837_v43  ;;  %v9453_v30 = vadd.f32 %v11962_v54, %v6403_v27  ;;  %v9457_v12 = vadd.f32 %v11964_v50, %v6405_v31 }
 0x3e1   : > { %v3863_v41 = vpop.f32.mrf.mxu0  ;;  %11960 = vst [vmem:[#allocation34_spill] sm:$0xff] %v9447_v45  ;;  %v2537_v46 = vmul.f32 0.7978846, %v2281_v7  ;;  %v5484_v5 = vpop.eup %5483  ;;  %v9461_v29 = vmul.f32 0.044715, %v1838_v57  ;;  %v4655_v3 = vadd.f32 %v4488_v63, %v3691_v22  ;;  %v2283_v54 = vadd.f32 %v11968_v25, %v11967_v35 }
 0x3e2   : > { %11961 = vst [vmem:[#allocation19_spill] sm:$0xff] %v9449_v44  ;;  %v2538_v43 = vmul.f32 0.7978846, %v2282_v15  ;;  %v9467_v50 = vmul.f32 0.044715, %v1839_v52  ;;  %v1585_v57 = vmul.f32 %v9443_v58, %v9443_v58  ;;  %v9480_v15 = vmul.f32 %v3301_v53, %v11924_v11  ;;  %v11973_v11 = vld [vmem:[#allocation125_spill] sm:$0xff] }
 0x3e3   : > { %11963 = vst [vmem:[#allocation80_spill] sm:$0xff] %v9453_v30  ;;  %4119 = vmatmul.f32.gmra.mxu1 %v9114_v18  ;;  %v9469_v16 = vmul.f32 0.044715, %v1840_v1  ;;  %v3046_v18 = vadd.f32 1.0, %v5482_v38  ;;  %v5486_v7 = vpop.eup %5485  ;;  %v1587_v52 = vmul.f32 %v9453_v30, %v9453_v30  ;;  %5487 = vtanh.f32 %v2537_v46  ;;  %v11975_v44 = vld [vmem:[#allocation130_spill] sm:$0xff] }
 0x3e4   : > { %11965 = vst [vmem:[#allocation43_spill] sm:$0xff] %v9457_v12  ;;  %3910 = vmatmul.f32.gmra.mxu0 %v9096_v21  ;;  %4537 = vmatmul.f32.gmra.mxu3 %v9185_v36  ;;  %v9472_v21 = vmul.f32 %v3300_v33, %v11922_v62  ;;  %v4073_v36 = vadd.f32 %v4072_v4, %v3863_v41  ;;  %v4281_v1 = vpop.f32.mrf.mxu2  ;;  %v3047_v33 = vadd.f32 1.0, %v5484_v5  ;;  %5489 = vtanh.f32 %v2538_v43  ;;  %v11972_v41 = vld [vmem:[#allocation217_spill] sm:$0xff]  ;;  %v11977_v43 = vld [vmem:[#allocation127_spill] sm:$0xff] }
 0x3e5   : > { %11966 = vst [vmem:[#allocation132_spill] sm:$0xff] %v9461_v29  ;;  %4328 = vmatmul.f32.gmra.mxu2 %v9149_v26  ;;  %v1586_v26 = vmul.f32 %v9447_v45, %v9447_v45  ;;  %v1588_v62 = vmul.f32 %v9457_v12, %v9457_v12  ;;  %v4490_v22 = vpop.f32.mrf.mxu3  ;;  %v9490_v53 = vadd.f32 %v11973_v11, %v6411_v8  ;;  %v3302_v0 = vmul.f32 0.5, %v3046_v18  ;;  %v11979_v11 = vld [vmem:[#allocation110_spill] sm:$0xff] }
 0x3e6   : > { %11969 = vst [vmem:[#allocation62_spill] sm:$0xff] %v9467_v50  ;;  %v4282_v38 = vadd.f32 %v4281_v1, %v4073_v36  ;;  %v3692_v50 = vld [vmem:[%s5951_s7 + $0x68] sm:$0xff]  ;;  %v3048_v29 = vadd.f32 1.0, %v5486_v7  ;;  %v2285_v59 = vadd.f32 %v11976_v13, %v11975_v44  ;;  %v1841_v46 = vmul.f32 %v1585_v57, %v9443_v58  ;;  %v11981_v7 = vld [vmem:[#allocation111_spill] sm:$0xff] }
 0x3e7   : > { %11970 = vst [vmem:[#allocation160_spill] sm:$0xff] %v9469_v16  ;;  %v11971_v16 = vld [vmem:[#allocation159_spill] sm:$0xff]  ;;  %v1842_v5 = vmul.f32 %v1586_v26, %v9447_v45  ;;  %v1843_v1 = vmul.f32 %v1587_v52, %v9453_v30  ;;  %v9505_v18 = vadd.f32 %v11979_v11, %v6403_v27  ;;  %v3303_v13 = vmul.f32 0.5, %v3047_v33 }
 0x3e8   : > { %4719 = vst [vmem:[%s5951_s7 + $0x60] sm:$0xff] %v4655_v3  ;;  %v4075_v25 = vpop.f32.mrf.mxu1  ;;  %v2539_v3 = vmul.f32 0.7978846, %v2283_v54  ;;  %v2284_v4 = vadd.f32 %v11972_v41, %v11971_v16  ;;  %v9499_v54 = vadd.f32 %v11977_v43, %v6415_v23  ;;  %v4491_v36 = vadd.f32 %v4490_v22, %v4282_v38 }
 0x3e9   : > { %v3866_v63 = vpop.f32.mrf.mxu0  ;;  %11974 = vst [vmem:[#allocation102_spill] sm:$0xff] %v9490_v53  ;;  %v1844_v41 = vmul.f32 %v1588_v62, %v9457_v12  ;;  %v9511_v57 = vadd.f32 %v11981_v7, %v6405_v31  ;;  %v5488_v62 = vpop.eup %5487  ;;  %v1589_v22 = vmul.f32 %v9490_v53, %v9490_v53  ;;  %v2541_v33 = vmul.f32 0.7978846, %v2285_v59 }
 0x3ea   : > { %11978 = vst [vmem:[#allocation137_spill] sm:$0xff] %v9499_v54  ;;  %v4656_v26 = vadd.f32 %v4491_v36, %v3692_v50  ;;  %5491 = vtanh.f32 %v2539_v3  ;;  %v2540_v52 = vmul.f32 0.7978846, %v2284_v4  ;;  %v5490_v38 = vpop.eup %5489  ;;  %v9520_v43 = vmul.f32 0.044715, %v1841_v46  ;;  %v11984_v3 = vld [vmem:[#allocation72_spill] sm:$0xff] }
 0x3eb   : > { %11980 = vst [vmem:[#allocation65_spill] sm:$0xff] %v9505_v18  ;;  %4122 = vmatmul.f32.gmra.mxu1 %v9233_v14  ;;  %v3304_v14 = vmul.f32 0.5, %v3048_v29  ;;  %v1590_v50 = vmul.f32 %v9499_v54, %v9499_v54  ;;  %v9527_v36 = vmul.f32 0.044715, %v1842_v5  ;;  %v9529_v11 = vmul.f32 0.044715, %v1843_v1 }
 0x3ec   : > { %3913 = vmatmul.f32.gmra.mxu0 %v9202_v42  ;;  %11982 = vst [vmem:[#allocation96_spill] sm:$0xff] %v9511_v57  ;;  %4540 = vmatmul.f32.gmra.mxu3 %v9259_v32  ;;  %v9518_v42 = vmul.f32 %v3302_v0, %v11939_v61  ;;  %v11983_v32 = vld [vmem:[#allocation162_spill] sm:$0xff]  ;;  %v1591_v0 = vmul.f32 %v9505_v18, %v9505_v18  ;;  %v4284_v61 = vpop.f32.mrf.mxu2  ;;  %5493 = vtanh.f32 %v2540_v52  ;;  %v3050_v12 = vadd.f32 1.0, %v5490_v38  ;;  %v11990_v52 = vld [vmem:[#allocation12_spill] sm:$0xff] }
 0x3ed   : > { %4331 = vmatmul.f32.gmra.mxu2 %v9247_v10  ;;  %4720 = vst [vmem:[%s5951_s7 + $0x68] sm:$0xff] %v4656_v26  ;;  %v4076_v10 = vadd.f32 %v4075_v25, %v3866_v63  ;;  %v2286_v4 = vadd.f32 %v11984_v3, %v11983_v32  ;;  %v4493_v59 = vpop.f32.mrf.mxu3  ;;  %v9534_v29 = vmul.f32 %v3303_v13, %v11941_v2  ;;  %v3049_v26 = vadd.f32 1.0, %v5488_v62  ;;  %v3693_v1 = vld [vmem:[%s5951_s7 + $0x70] sm:$0xff]  ;;  %v11987_v13 = vld [vmem:[#allocation11_spill] sm:$0xff] }
 0x3ee   : > { %11985 = vst [vmem:[#allocation138_spill] sm:$0xff] %v9527_v36  ;;  %v1592_v46 = vmul.f32 %v9511_v57, %v9511_v57  ;;  %v1845_v5 = vmul.f32 %v1589_v22, %v9490_v53  ;;  %v9541_v3 = vmul.f32 %v3304_v14, %v11947_v24  ;;  %5495 = vtanh.f32 %v2541_v33  ;;  %v11992_v24 = vld [vmem:[#allocation57_spill] sm:$0xff]  ;;  %v11994_v14 = vld [vmem:[#allocation163_spill] sm:$0xff] }
 0x3ef   : > { %11986 = vst [vmem:[#allocation20_spill] sm:$0xff] %v9529_v11  ;;  %v4285_v7 = vadd.f32 %v4284_v61, %v4076_v10  ;;  %v1846_v2 = vmul.f32 %v1590_v50, %v9499_v54  ;;  %v9546_v30 = vadd.f32 %v11987_v13, %v6411_v8  ;;  %v2542_v61 = vmul.f32 0.7978846, %v2286_v4  ;;  %v11995_v33 = vld [vmem:[#allocation197_spill] sm:$0xff] }
 0x3f0   : > { %v4078_v25 = vpop.f32.mrf.mxu1  ;;  %v5492_v11 = vpop.eup %5491  ;;  %v9548_v36 = vmul.f32 0.044715, %v1844_v41  ;;  %v9552_v62 = vadd.f32 %v11990_v52, %v6415_v23  ;;  %v9556_v22 = vadd.f32 %v11992_v24, %v6403_v27  ;;  %v2287_v38 = vadd.f32 %v11995_v33, %v11994_v14  ;;  %v11996_v41 = vld [vmem:[#allocation208_spill] sm:$0xff]  ;;  %v11999_v24 = vld [vmem:[#allocation73_spill] sm:$0xff] }
 0x3f1   : > { %v3869_v63 = vpop.f32.mrf.mxu0  ;;  %11988 = vst [vmem:[#allocation46_spill] sm:$0xff] %v9546_v30  ;;  %v4494_v10 = vadd.f32 %v4493_v59, %v4285_v7  ;;  %v1847_v50 = vmul.f32 %v1591_v0, %v9505_v18  ;;  %v9565_v4 = vadd.f32 %v11996_v41, %v6405_v31  ;;  %v3305_v7 = vmul.f32 0.5, %v3049_v26 }
 0x3f2   : > { %11989 = vst [vmem:[#allocation82_spill] sm:$0xff] %v9548_v36  ;;  %v3306_v13 = vmul.f32 0.5, %v3050_v12  ;;  %v3051_v52 = vadd.f32 1.0, %v5492_v11  ;;  %v5494_v33 = vpop.eup %5493  ;;  %v9572_v53 = vmul.f32 0.044715, %v1845_v5  ;;  %v1593_v0 = vmul.f32 %v9546_v30, %v9546_v30  ;;  %v12004_v36 = vld [vmem:[#allocation198_spill] sm:$0xff] }
 0x3f3   : > { %11991 = vst [vmem:[#allocation83_spill] sm:$0xff] %v9552_v62  ;;  %4125 = vmatmul.f32.gmra.mxu1 %v9291_v40  ;;  %v4657_v59 = vadd.f32 %v4494_v10, %v3693_v1  ;;  %v11998_v40 = vld [vmem:[#allocation69_spill] sm:$0xff]  ;;  %v4079_v1 = vadd.f32 %v4078_v25, %v3869_v63  ;;  %5497 = vtanh.f32 %v2542_v61  ;;  %v1594_v12 = vmul.f32 %v9552_v62, %v9552_v62  ;;  %v3694_v61 = vld [vmem:[%s5951_s7 + $0x78] sm:$0xff] }
 0x3f4   : > { %11993 = vst [vmem:[#allocation33_spill] sm:$0xff] %v9556_v22  ;;  %3916 = vmatmul.f32.gmra.mxu0 %v9272_v56  ;;  %4543 = vmatmul.f32.gmra.mxu3 %v9346_v39  ;;  %v1848_v56 = vmul.f32 %v1592_v46, %v9511_v57  ;;  %v2288_v54 = vadd.f32 %v11999_v24, %v11998_v40  ;;  %v9577_v39 = vmul.f32 0.044715, %v1846_v2  ;;  %v4287_v46 = vpop.f32.mrf.mxu2  ;;  %v2543_v5 = vmul.f32 0.7978846, %v2287_v38 }
 0x3f5   : > { %11997 = vst [vmem:[#allocation124_spill] sm:$0xff] %v9565_v4  ;;  %4334 = vmatmul.f32.gmra.mxu2 %v9305_v19  ;;  %v5496_v19 = vpop.eup %5495  ;;  %v1595_v11 = vmul.f32 %v9556_v22, %v9556_v22  ;;  %v4496_v26 = vpop.f32.mrf.mxu3  ;;  %v9583_v10 = vmul.f32 0.044715, %v1847_v50  ;;  %v1596_v41 = vmul.f32 %v9565_v4, %v9565_v4  ;;  %v9588_v2 = vmul.f32 %v3305_v7, %v11954_v51  ;;  %v12005_v51 = vld [vmem:[#allocation14_spill] sm:$0xff] }
 0x3f6   : > { %12000 = vst [vmem:[#allocation140_spill] sm:$0xff] %v9572_v53  ;;  %v9592_v24 = vmul.f32 %v3306_v13, %v11956_v17  ;;  %v3307_v57 = vmul.f32 0.5, %v3051_v52  ;;  %v3052_v18 = vadd.f32 1.0, %v5494_v33  ;;  %v1849_v38 = vmul.f32 %v1593_v0, %v9546_v30  ;;  %v12003_v53 = vld [vmem:[#allocation168_spill] sm:$0xff] }
 0x3f7   : > { %4721 = vst [vmem:[%s5951_s7 + $0x70] sm:$0xff] %v4657_v59  ;;  %v4288_v59 = vadd.f32 %v4287_v46, %v4079_v1  ;;  %v2289_v45 = vadd.f32 %v12004_v36, %v12003_v53  ;;  %v1850_v1 = vmul.f32 %v1594_v12, %v9552_v62  ;;  %v1851_v46 = vmul.f32 %v1595_v11, %v9556_v22  ;;  %v12007_v36 = vld [vmem:[#allocation15_spill] sm:$0xff]  ;;  %v12009_v0 = vld [vmem:[#allocation212_spill] sm:$0xff]  ;;  %v12036_v22 = vld [vmem:[#allocation146_spill] sm:$0xff] }
 0x3f8   : > { %12001 = vst [vmem:[#allocation154_spill] sm:$0xff] %v9577_v39  ;;  %v4081_v25 = vpop.f32.mrf.mxu1  ;;  %v2544_v39 = vmul.f32 0.7978846, %v2288_v54  ;;  %v9601_v7 = vadd.f32 %v12005_v51, %v6411_v8  ;;  %5499 = vtanh.f32 %v2543_v5  ;;  %v9605_v54 = vmul.f32 0.044715, %v1848_v56 }
 0x3f9   : > { %12002 = vst [vmem:[#allocation143_spill] sm:$0xff] %v9583_v10  ;;  %v3872_v63 = vpop.f32.mrf.mxu0  ;;  %v4497_v50 = vadd.f32 %v4496_v26, %v4288_v59  ;;  %v3053_v10 = vadd.f32 1.0, %v5496_v19  ;;  %v5498_v17 = vpop.eup %5497  ;;  %v1852_v13 = vmul.f32 %v1596_v41, %v9565_v4  ;;  %v9610_v52 = vadd.f32 %v12007_v36, %v6415_v23 }
 0x3fa   : > { %12006 = vst [vmem:[#allocation126_spill] sm:$0xff] %v9601_v7  ;;  %v3308_v56 = vmul.f32 0.5, %v3052_v18  ;;  %5501 = vtanh.f32 %v2544_v39  ;;  %v4082_v12 = vadd.f32 %v4081_v25, %v3872_v63  ;;  %v9624_v11 = vmul.f32 %v3307_v57, %v11967_v35  ;;  %v12017_v63 = vld [vmem:[#allocation75_spill] sm:$0xff] }
 0x3fb   : > { %4128 = vmatmul.f32.gmra.mxu1 %v9400_v37  ;;  %12008 = vst [vmem:[#allocation107_spill] sm:$0xff] %v9610_v52  ;;  %v4658_v33 = vadd.f32 %v4497_v50, %v3694_v61  ;;  %v12011_v37 = vld [vmem:[#allocation213_spill] sm:$0xff]  ;;  %v3309_v26 = vmul.f32 0.5, %v3053_v10  ;;  %v2545_v5 = vmul.f32 0.7978846, %v2289_v45  ;;  %v1597_v41 = vmul.f32 %v9601_v7, %v9601_v7  ;;  %v12016_v45 = vld [vmem:[#allocation71_spill] sm:$0xff] }
 0x3fc   : > { %3919 = vmatmul.f32.gmra.mxu0 %v9371_v48  ;;  %4546 = vmatmul.f32.gmra.mxu3 %v9428_v28  ;;  %v9616_v48 = vadd.f32 %v12009_v0, %v6403_v27  ;;  %v9620_v19 = vadd.f32 %v12011_v37, %v6405_v31  ;;  %v9628_v28 = vmul.f32 0.044715, %v1850_v1  ;;  %v4290_v59 = vpop.f32.mrf.mxu2  ;;  %v3054_v50 = vadd.f32 1.0, %v5498_v17  ;;  %v12019_v37 = vld [vmem:[#allocation58_spill] sm:$0xff] }
 0x3fd   : > { %4337 = vmatmul.f32.gmra.mxu2 %v9425_v6  ;;  %4722 = vst [vmem:[%s5951_s7 + $0x78] sm:$0xff] %v4658_v33  ;;  %v9626_v6 = vmul.f32 0.044715, %v1849_v38  ;;  %v4499_v61 = vpop.f32.mrf.mxu3  ;;  %v9632_v18 = vmul.f32 0.044715, %v1851_v46  ;;  %v1598_v39 = vmul.f32 %v9610_v52, %v9610_v52  ;;  %v4291_v35 = vadd.f32 %v4290_v59, %v4082_v12  ;;  %v3695_v46 = vld [vmem:[%s5951_s7 + $0x80] sm:$0xff] }
 0x3fe   : > { %12010 = vst [vmem:[#allocation108_spill] sm:$0xff] %v9616_v48  ;;  %v2290_v25 = vadd.f32 %v12017_v63, %v12016_v45  ;;  %v5500_v38 = vpop.eup %5499  ;;  %v9638_v1 = vmul.f32 0.044715, %v1852_v13  ;;  %v1599_v51 = vmul.f32 %v9616_v48, %v9616_v48  ;;  %v1600_v17 = vmul.f32 %v9620_v19, %v9620_v19  ;;  %v12020_v12 = vld [vmem:[#allocation200_spill] sm:$0xff] }
 0x3ff   : > { %12012 = vst [vmem:[#allocation167_spill] sm:$0xff] %v9620_v19  ;;  %v9646_v36 = vmul.f32 %v3308_v56, %v11971_v16  ;;  %v4500_v33 = vadd.f32 %v4499_v61, %v4291_v35  ;;  %v9649_v0 = vmul.f32 %v3309_v26, %v11975_v44  ;;  %5503 = vtanh.f32 %v2545_v5 }
 0x400   : > { %12013 = vst [vmem:[#allocation91_spill] sm:$0xff] %v9626_v6  ;;  %v4084_v10 = vpop.f32.mrf.mxu1  ;;  %v2291_v59 = vadd.f32 %v12020_v12, %v12019_v37  ;;  %v5502_v13 = vpop.eup %5501  ;;  %v1853_v63 = vmul.f32 %v1597_v41, %v9601_v7  ;;  %v3310_v44 = vmul.f32 0.5, %v3054_v50  ;;  %v1854_v56 = vmul.f32 %v1598_v39, %v9610_v52  ;;  %v12029_v39 = vld [vmem:[#allocation149_spill] sm:$0xff]  ;;  %v12035_v7 = vld [vmem:[#allocation139_spill] sm:$0xff] }
 0x401   : > { %12014 = vst [vmem:[#allocation27_spill] sm:$0xff] %v9628_v28  ;;  %v3875_v57 = vpop.f32.mrf.mxu0  ;;  %v4659_v26 = vadd.f32 %v4500_v33, %v3695_v46  ;;  %v3055_v5 = vadd.f32 1.0, %v5500_v38  ;;  %v2546_v41 = vmul.f32 0.7978846, %v2290_v25  ;;  %v1855_v61 = vmul.f32 %v1599_v51, %v9616_v48  ;;  %v3696_v52 = vld [vmem:[%s5951_s7 + $0x88] sm:$0xff] }
 0x402   : > { %12015 = vst [vmem:[#allocation188_spill] sm:$0xff] %v9632_v18  ;;  %v12023_v18 = vld [vmem:[#allocation121_spill] sm:$0xff]  ;;  %v1856_v35 = vmul.f32 %v1600_v17, %v9620_v19  ;;  %v9677_v46 = vadd.f32 %v12029_v39, %v6405_v31  ;;  %v2547_v38 = vmul.f32 0.7978846, %v2291_v59  ;;  %v9680_v25 = vmul.f32 0.044715, %v1853_v63 }
 0x403   : > { %12018 = vst [vmem:[#allocation214_spill] sm:$0xff] %v9638_v1  ;;  %v12021_v1 = vld [vmem:[#allocation120_spill] sm:$0xff]  ;;  %v9660_v16 = vadd.f32 %v12023_v18, %v6415_v23  ;;  %4131 = vmatmul.f32.gmra.mxu1 %v9472_v21  ;;  %v12028_v21 = vld [vmem:[#allocation86_spill] sm:$0xff]  ;;  %5505 = vtanh.f32 %v2546_v41  ;;  %v9691_v19 = vmul.f32 0.044715, %v1854_v56 }
 0x404   : > { %v9656_v4 = vadd.f32 %v12021_v1, %v6411_v8  ;;  %3922 = vmatmul.f32.gmra.mxu0 %v9439_v9  ;;  %4549 = vmatmul.f32.gmra.mxu3 %v9518_v42  ;;  %v12025_v18 = vld [vmem:[#allocation148_spill] sm:$0xff]  ;;  %v12027_v9 = vld [vmem:[#allocation30_spill] sm:$0xff]  ;;  %12030 = vst [vmem:[#allocation135_spill] sm:$0xff] %v9677_v46  ;;  %v3056_v42 = vadd.f32 1.0, %v5502_v13  ;;  %v12033_v13 = vld [vmem:[#allocation187_spill] sm:$0xff]  ;;  %5507 = vtanh.f32 %v2547_v38 }
 0x405   : > { %12024 = vst [vmem:[#allocation68_spill] sm:$0xff] %v9660_v16  ;;  %4340 = vmatmul.f32.gmra.mxu2 %v9480_v15  ;;  %v9671_v1 = vadd.f32 %v12025_v18, %v6403_v27  ;;  %v2292_v50 = vadd.f32 %v12028_v21, %v12027_v9  ;;  %v4085_v15 = vadd.f32 %v4084_v10, %v3875_v57  ;;  %v4502_v12 = vpop.f32.mrf.mxu3  ;;  %v5504_v21 = vpop.eup %5503  ;;  %v3311_v10 = vmul.f32 0.5, %v3055_v5  ;;  %v12032_v59 = vld [vmem:[#allocation36_spill] sm:$0xff] }
 0x406   : > { %12022 = vst [vmem:[#allocation37_spill] sm:$0xff] %v9656_v4  ;;  %v1601_v51 = vmul.f32 %v9656_v4, %v9656_v4  ;;  %v1602_v17 = vmul.f32 %v9660_v16, %v9660_v16  ;;  %v9687_v18 = vmul.f32 %v3310_v44, %v11983_v32  ;;  %v2293_v63 = vadd.f32 %v12033_v13, %v12032_v59 }
 0x407   : > { %12026 = vst [vmem:[#allocation98_spill] sm:$0xff] %v9671_v1  ;;  %v1603_v48 = vmul.f32 %v9671_v1, %v9671_v1  ;;  %v2294_v32 = vadd.f32 %v12036_v22, %v12035_v7  ;;  %v1604_v44 = vmul.f32 %v9677_v46, %v9677_v46  ;;  %v9700_v5 = vmul.f32 0.044715, %v1855_v61 }
 0x408   : > { %4723 = vst [vmem:[%s5951_s7 + $0x80] sm:$0xff] %v4659_v26  ;;  %v4293_v33 = vpop.f32.mrf.mxu2  ;;  %v4087_v57 = vpop.f32.mrf.mxu1  ;;  %v1857_v41 = vmul.f32 %v1601_v51, %v9656_v4  ;;  %v1858_v56 = vmul.f32 %v1602_v17, %v9660_v16  ;;  %v9706_v13 = vmul.f32 0.044715, %v1856_v35  ;;  %v9711_v61 = vmul.f32 %v3311_v10, %v11994_v14  ;;  %v12039_v17 = vld [vmem:[#allocation61_spill] sm:$0xff] }
 0x409   : > { %12031 = vst [vmem:[#allocation144_spill] sm:$0xff] %v9680_v25  ;;  %v4294_v39 = vadd.f32 %v4293_v33, %v4085_v15  ;;  %v3878_v26 = vpop.f32.mrf.mxu0  ;;  %v2548_v25 = vmul.f32 0.7978846, %v2292_v50  ;;  %v3312_v33 = vmul.f32 0.5, %v3056_v42  ;;  %v3057_v50 = vadd.f32 1.0, %v5504_v21  ;;  %v12042_v14 = vld [vmem:[#allocation221_spill] sm:$0xff] }
 0x40a   : > { %12034 = vst [vmem:[#allocation193_spill] sm:$0xff] %v9691_v19  ;;  %v2549_v42 = vmul.f32 0.7978846, %v2293_v63  ;;  %v1859_v38 = vmul.f32 %v1603_v48, %v9671_v1  ;;  %v2550_v51 = vmul.f32 0.7978846, %v2294_v32  ;;  %v1860_v35 = vmul.f32 %v1604_v44, %v9677_v46  ;;  %v12051_v1 = vld [vmem:[#allocation192_spill] sm:$0xff] }
 0x40b   : > { %v4503_v15 = vadd.f32 %v4502_v12, %v4294_v39  ;;  %12037 = vst [vmem:[#allocation99_spill] sm:$0xff] %v9700_v5  ;;  %4134 = vmatmul.f32.gmra.mxu1 %v9541_v3  ;;  %5509 = vtanh.f32 %v2548_v25  ;;  %v5506_v3 = vpop.eup %5505  ;;  %v9723_v39 = vmul.f32 0.044715, %v1857_v41  ;;  %v9725_v48 = vmul.f32 0.044715, %v1858_v56  ;;  %v12045_v25 = vld [vmem:[#allocation67_spill] sm:$0xff] }
 0x40c   : > { %3925 = vmatmul.f32.gmra.mxu0 %v9534_v29  ;;  %12038 = vst [vmem:[#allocation100_spill] sm:$0xff] %v9706_v13  ;;  %4552 = vmatmul.f32.gmra.mxu3 %v9592_v24  ;;  %v12040_v29 = vld [vmem:[#allocation220_spill] sm:$0xff]  ;;  %v12041_v24 = vld [vmem:[#allocation29_spill] sm:$0xff]  ;;  %v9729_v10 = vadd.f32 %v12045_v25, %v6411_v8  ;;  %v3313_v44 = vmul.f32 0.5, %v3057_v50  ;;  %5511 = vtanh.f32 %v2549_v42  ;;  %v3058_v46 = vadd.f32 1.0, %v5506_v3  ;;  %v12066_v19 = vld [vmem:[#allocation158_spill] sm:$0xff] }
 0x40d   : > { %v4660_v22 = vadd.f32 %v4503_v15, %v3696_v52  ;;  %4343 = vmatmul.f32.gmra.mxu2 %v9588_v2  ;;  %v2295_v12 = vadd.f32 %v12040_v29, %v12039_v17  ;;  %v4088_v52 = vadd.f32 %v4087_v57, %v3878_v26  ;;  %v9719_v2 = vmul.f32 %v3312_v33, %v11998_v40  ;;  %v4505_v32 = vpop.f32.mrf.mxu3  ;;  %v5508_v15 = vpop.eup %5507  ;;  %v12047_v26 = vld [vmem:[#allocation39_spill] sm:$0xff]  ;;  %v12049_v41 = vld [vmem:[#allocation189_spill] sm:$0xff]  ;;  %v12050_v29 = vld [vmem:[#allocation42_spill] sm:$0xff] }
 0x40e   : > { %v2296_v21 = vadd.f32 %v12042_v14, %v12041_v24  ;;  %12043 = vst [vmem:[#allocation66_spill] sm:$0xff] %v9723_v39  ;;  %v9733_v57 = vadd.f32 %v12047_v26, %v6415_v23  ;;  %v2297_v56 = vadd.f32 %v12050_v29, %v12049_v41  ;;  %v3697_v14 = vld [vmem:[%s5951_s7 + $0x90] sm:$0xff]  ;;  %5513 = vtanh.f32 %v2550_v51  ;;  %v12054_v39 = vld [vmem:[#allocation215_spill] sm:$0xff]  ;;  %v12057_v51 = vld [vmem:[#allocation216_spill] sm:$0xff] }
 0x40f   : > { %4724 = vst [vmem:[%s5951_s7 + $0x88] sm:$0xff] %v4660_v22  ;;  %v2551_v25 = vmul.f32 0.7978846, %v2295_v12  ;;  %v9740_v50 = vmul.f32 0.044715, %v1859_v38  ;;  %v9744_v26 = vadd.f32 %v12054_v39, %v6403_v27  ;;  %v1605_v29 = vmul.f32 %v9729_v10, %v9729_v10 }
 0x410   : > { %12044 = vst [vmem:[#allocation53_spill] sm:$0xff] %v9725_v48  ;;  %v4296_v63 = vpop.f32.mrf.mxu2  ;;  %v4090_v22 = vpop.f32.mrf.mxu1  ;;  %v12052_v48 = vld [vmem:[#allocation85_spill] sm:$0xff]  ;;  %v9746_v42 = vmul.f32 0.044715, %v1860_v35  ;;  %v9752_v12 = vadd.f32 %v12057_v51, %v6405_v31  ;;  %v3059_v38 = vadd.f32 1.0, %v5508_v15  ;;  %v1606_v3 = vmul.f32 %v9733_v57, %v9733_v57 }
 0x411   : > { %12046 = vst [vmem:[#allocation18_spill] sm:$0xff] %v9729_v10  ;;  %v4297_v40 = vadd.f32 %v4296_v63, %v4088_v52  ;;  %v3881_v33 = vpop.f32.mrf.mxu0  ;;  %v2298_v16 = vadd.f32 %v12052_v48, %v12051_v1  ;;  %v2552_v63 = vmul.f32 0.7978846, %v2296_v21  ;;  %v5510_v4 = vpop.eup %5509  ;;  %v3569_v35 = vmul.f32 %v3313_v44, %v12003_v53  ;;  %v12060_v51 = vld [vmem:[#allocation153_spill] sm:$0xff] }
 0x412   : > { %12048 = vst [vmem:[#allocation133_spill] sm:$0xff] %v9733_v57  ;;  %v2553_v39 = vmul.f32 0.7978846, %v2297_v56  ;;  %v3314_v48 = vmul.f32 0.5, %v3058_v46  ;;  %5515 = vtanh.f32 %v2551_v25  ;;  %v4091_v15 = vadd.f32 %v4090_v22, %v3881_v33  ;;  %v12063_v25 = vld [vmem:[#allocation87_spill] sm:$0xff] }
 0x413   : > { %12053 = vst [vmem:[#allocation106_spill] sm:$0xff] %v9740_v50  ;;  %v4506_v52 = vadd.f32 %v4505_v32, %v4297_v40  ;;  %4137 = vmatmul.f32.gmra.mxu1 %v9646_v36  ;;  %v2554_v32 = vmul.f32 0.7978846, %v2298_v16  ;;  %v12059_v40 = vld [vmem:[#allocation145_spill] sm:$0xff]  ;;  %v1607_v36 = vmul.f32 %v9744_v26, %v9744_v26  ;;  %5517 = vtanh.f32 %v2552_v63 }
 0x414   : > { %12055 = vst [vmem:[#allocation205_spill] sm:$0xff] %v9744_v26  ;;  %3928 = vmatmul.f32.gmra.mxu0 %v9624_v11  ;;  %4555 = vmatmul.f32.gmra.mxu3 %v9687_v18  ;;  %v2299_v11 = vadd.f32 %v12060_v51, %v12059_v40  ;;  %v1861_v53 = vmul.f32 %v1605_v29, %v9729_v10  ;;  %v3315_v56 = vmul.f32 0.5, %v3059_v38  ;;  %v12064_v51 = vld [vmem:[#allocation45_spill] sm:$0xff]  ;;  %v3060_v13 = vadd.f32 1.0, %v5510_v4  ;;  %v12065_v10 = vld [vmem:[#allocation88_spill] sm:$0xff] }
 0x415   : > { %12056 = vst [vmem:[#allocation26_spill] sm:$0xff] %v9746_v42  ;;  %v4661_v21 = vadd.f32 %v4506_v52, %v3697_v14  ;;  %4346 = vmatmul.f32.gmra.mxu2 %v9649_v0  ;;  %v5512_v42 = vpop.eup %5511  ;;  %v12061_v0 = vld [vmem:[#allocation17_spill] sm:$0xff]  ;;  %v12062_v14 = vld [vmem:[#allocation94_spill] sm:$0xff]  ;;  %v1608_v16 = vmul.f32 %v9752_v12, %v9752_v12  ;;  %v4508_v44 = vpop.f32.mrf.mxu3  ;;  %v2301_v50 = vadd.f32 %v12064_v51, %v12063_v25  ;;  %5519 = vtanh.f32 %v2553_v39 }
 0x416   : > { %12058 = vst [vmem:[#allocation173_spill] sm:$0xff] %v9752_v12  ;;  %v2300_v18 = vadd.f32 %v12062_v14, %v12061_v0  ;;  %v5514_v52 = vpop.eup %5513  ;;  %v3698_v14 = vld [vmem:[%s5951_s7 + $0x98] sm:$0xff]  ;;  %v3061_v5 = vadd.f32 1.0, %v5512_v42  ;;  %5521 = vtanh.f32 %v2554_v32  ;;  %v2555_v29 = vmul.f32 0.7978846, %v2299_v11  ;;  %v12068_v11 = vld [vmem:[#allocation81_spill] sm:$0xff] }
 0x417   : > { %4725 = vst [vmem:[%s5951_s7 + $0x90] sm:$0xff] %v4661_v21  ;;  %v1862_v21 = vmul.f32 %v1606_v3, %v9733_v57  ;;  %v2302_v28 = vadd.f32 %v12066_v19, %v12065_v10  ;;  %v3570_v38 = vmul.f32 %v3314_v48, %v12016_v45  ;;  %v3062_v6 = vadd.f32 1.0, %v5514_v52  ;;  %v12067_v48 = vld [vmem:[#allocation201_spill] sm:$0xff] }
 0x418   : > { %v4299_v46 = vpop.f32.mrf.mxu2  ;;  %v4093_v63 = vpop.f32.mrf.mxu1  ;;  %v2556_v30 = vmul.f32 0.7978846, %v2300_v18  ;;  %v1863_v3 = vmul.f32 %v1607_v36, %v9744_v26  ;;  %v3571_v4 = vmul.f32 %v3315_v56, %v12019_v37  ;;  %v2557_v42 = vmul.f32 0.7978846, %v2301_v50  ;;  %v12070_v50 = vld [vmem:[#allocation44_spill] sm:$0xff]  ;;  %v12090_v26 = vld [vmem:[#allocation114_spill] sm:$0xff] }
 0x419   : > { %v4300_v33 = vadd.f32 %v4299_v46, %v4091_v15  ;;  %v3884_v22 = vpop.f32.mrf.mxu0  ;;  %v5516_v51 = vpop.eup %5515  ;;  %v1864_v15 = vmul.f32 %v1608_v16, %v9752_v12  ;;  %v9783_v19 = vmul.f32 0.044715, %v1861_v53  ;;  %v3316_v45 = vmul.f32 0.5, %v3060_v13  ;;  %v12071_v53 = vld [vmem:[#allocation49_spill] sm:$0xff] }
 0x41a   : > { %v5518_v39 = vpop.eup %5517  ;;  %v2303_v36 = vadd.f32 %v12068_v11, %v12067_v48  ;;  %v9787_v18 = vmul.f32 0.044715, %v1862_v21  ;;  %v3317_v52 = vmul.f32 0.5, %v3061_v5  ;;  %5523 = vtanh.f32 %v2555_v29  ;;  %v3699_v29 = vld [vmem:[%s5951_s7 + $0xa0] sm:$0xff] }
 0x41b   : > { %v4509_v62 = vadd.f32 %v4508_v44, %v4300_v33  ;;  %4140 = vmatmul.f32.gmra.mxu1 %v9719_v2  ;;  %v5520_v16 = vpop.eup %5519  ;;  %v4094_v2 = vadd.f32 %v4093_v63, %v3884_v22  ;;  %v3318_v37 = vmul.f32 0.5, %v3062_v6  ;;  %5525 = vtanh.f32 %v2556_v30  ;;  %v12073_v6 = vld [vmem:[#allocation79_spill] sm:$0xff]  ;;  %v12076_v11 = vld [vmem:[#allocation52_spill] sm:$0xff] }
 0x41c   : > { %3931 = vmatmul.f32.gmra.mxu0 %v9711_v61  ;;  %4558 = vmatmul.f32.gmra.mxu3 %v3570_v38  ;;  %12069 = vst [vmem:[#allocation156_spill] sm:$0xff] %v9787_v18  ;;  %v2558_v61 = vmul.f32 0.7978846, %v2302_v28  ;;  %v9792_v46 = vmul.f32 0.044715, %v1863_v3  ;;  %v3063_v56 = vadd.f32 1.0, %v5516_v51  ;;  %5527 = vtanh.f32 %v2557_v42 }
 0x41d   : > { %v4662_v32 = vadd.f32 %v4509_v62, %v3698_v14  ;;  %4349 = vmatmul.f32.gmra.mxu2 %v3569_v35  ;;  %v2304_v62 = vadd.f32 %v12071_v53, %v12070_v50  ;;  %v5522_v35 = vpop.eup %5521  ;;  %v4511_v44 = vpop.f32.mrf.mxu3  ;;  %v3064_v21 = vadd.f32 1.0, %v5518_v39  ;;  %v3572_v14 = vmul.f32 %v3316_v45, %v12027_v9  ;;  %v12074_v63 = vld [vmem:[#allocation51_spill] sm:$0xff]  ;;  %v12078_v9 = vld [vmem:[#allocation40_spill] sm:$0xff] }
 0x41e   : > { %12072 = vst [vmem:[#allocation70_spill] sm:$0xff] %v9792_v46  ;;  %v2559_v22 = vmul.f32 0.7978846, %v2303_v36  ;;  %v2305_v30 = vadd.f32 %v12074_v63, %v12073_v6  ;;  %v3573_v38 = vmul.f32 %v3317_v52, %v12032_v59  ;;  %5529 = vtanh.f32 %v2558_v61  ;;  %v12075_v3 = vld [vmem:[#allocation199_spill] sm:$0xff] }
 0x41f   : > { %4726 = vst [vmem:[%s5951_s7 + $0x98] sm:$0xff] %v4662_v32  ;;  %v3065_v32 = vadd.f32 1.0, %v5520_v16  ;;  %v2306_v53 = vadd.f32 %v12076_v11, %v12075_v3  ;;  %v3574_v42 = vmul.f32 %v3318_v37, %v12035_v7  ;;  %v3066_v39 = vadd.f32 1.0, %v5522_v35  ;;  %v12079_v61 = vld [vmem:[#allocation131_spill] sm:$0xff] }
 0x420   : > { %v4302_v13 = vpop.f32.mrf.mxu2  ;;  %v4096_v28 = vpop.f32.mrf.mxu1  ;;  %v9802_v12 = vmul.f32 0.044715, %v1864_v15  ;;  %v9806_v45 = vadd.f32 %v12078_v9, %v6411_v8  ;;  %v3319_v59 = vmul.f32 0.5, %v3063_v56  ;;  %v3320_v36 = vmul.f32 0.5, %v3064_v21  ;;  %v12084_v56 = vld [vmem:[#allocation48_spill] sm:$0xff]  ;;  %v12089_v46 = vld [vmem:[#allocation95_spill] sm:$0xff] }
 0x421   : > { %v4303_v5 = vadd.f32 %v4302_v13, %v4094_v2  ;;  %v3887_v33 = vpop.f32.mrf.mxu0  ;;  %v2560_v2 = vmul.f32 0.7978846, %v2304_v62  ;;  %v5524_v13 = vpop.eup %5523  ;;  %v9810_v16 = vadd.f32 %v12079_v61, %v6415_v23  ;;  %5531 = vtanh.f32 %v2559_v22  ;;  %v12081_v62 = vld [vmem:[#allocation28_spill] sm:$0xff]  ;;  %v12088_v61 = vld [vmem:[#allocation203_spill] sm:$0xff] }
 0x422   : > { %12077 = vst [vmem:[#allocation159_spill] sm:$0xff] %v9802_v12  ;;  %v5526_v52 = vpop.eup %5525  ;;  %v2561_v15 = vmul.f32 0.7978846, %v2305_v30  ;;  %v9814_v35 = vadd.f32 %v12081_v62, %v6403_v27  ;;  %v3322_v63 = vmul.f32 0.5, %v3066_v39  ;;  %v3576_v9 = vmul.f32 %v3320_v36, %v12041_v24 }
 0x423   : > { %v4512_v51 = vadd.f32 %v4511_v44, %v4303_v5  ;;  %4143 = vmatmul.f32.gmra.mxu1 %v3572_v14  ;;  %12080 = vst [vmem:[#allocation217_spill] sm:$0xff] %v9810_v16  ;;  %v5528_v37 = vpop.eup %5527  ;;  %v2562_v44 = vmul.f32 0.7978846, %v2306_v53  ;;  %v12083_v5 = vld [vmem:[#allocation89_spill] sm:$0xff]  ;;  %v4097_v14 = vadd.f32 %v4096_v28, %v3887_v33  ;;  %5533 = vtanh.f32 %v2560_v2 }
 0x424   : > { %3934 = vmatmul.f32.gmra.mxu0 %v3571_v4  ;;  %4561 = vmatmul.f32.gmra.mxu3 %v3574_v42  ;;  %12082 = vst [vmem:[#allocation125_spill] sm:$0xff] %v9814_v35  ;;  %v3321_v4 = vmul.f32 0.5, %v3065_v32  ;;  %v2307_v21 = vadd.f32 %v12084_v56, %v12083_v5  ;;  %v5530_v22 = vpop.eup %5529  ;;  %v3575_v42 = vmul.f32 %v3319_v59, %v12039_v17  ;;  %v3067_v32 = vadd.f32 1.0, %v5524_v13  ;;  %v12087_v53 = vld [vmem:[#allocation161_spill] sm:$0xff] }
 0x425   : > { %v4663_v7 = vadd.f32 %v4512_v51, %v3699_v29  ;;  %4352 = vmatmul.f32.gmra.mxu2 %v3573_v38  ;;  %v12085_v29 = vld [vmem:[#allocation84_spill] sm:$0xff]  ;;  %v12086_v38 = vld [vmem:[#allocation93_spill] sm:$0xff]  ;;  %v4514_v51 = vpop.f32.mrf.mxu3  ;;  %v2309_v62 = vadd.f32 %v12088_v61, %v12087_v53  ;;  %v3068_v28 = vadd.f32 1.0, %v5526_v52  ;;  %v3069_v39 = vadd.f32 1.0, %v5528_v37 }
 0x426   : > { %v2308_v11 = vadd.f32 %v12086_v38, %v12085_v29  ;;  %5535 = vtanh.f32 %v2561_v15  ;;  %v3700_v2 = vld [vmem:[%s5951_s7 + $0xa8] sm:$0xff]  ;;  %v3577_v38 = vmul.f32 %v3321_v4, %v12049_v41  ;;  %v2563_v12 = vmul.f32 0.7978846, %v2307_v21 }
 0x427   : > { %4727 = vst [vmem:[%s5951_s7 + $0xa0] sm:$0xff] %v4663_v7  ;;  %5537 = vtanh.f32 %v2562_v44  ;;  %v2310_v17 = vadd.f32 %v12090_v26, %v12089_v46  ;;  %v5532_v59 = vpop.eup %5531  ;;  %v3578_v13 = vmul.f32 %v3322_v63, %v12051_v1  ;;  %v3070_v36 = vadd.f32 1.0, %v5530_v22  ;;  %v12091_v52 = vld [vmem:[#allocation165_spill] sm:$0xff] }
 0x428   : > { %v4305_v30 = vpop.f32.mrf.mxu2  ;;  %v4099_v33 = vpop.f32.mrf.mxu1  ;;  %v2564_v61 = vmul.f32 0.7978846, %v2308_v11  ;;  %v9834_v15 = vadd.f32 %v12091_v52, %v6405_v31  ;;  %v3323_v41 = vmul.f32 0.5, %v3067_v32  ;;  %v2565_v37 = vmul.f32 0.7978846, %v2309_v62  ;;  %v12094_v32 = vld [vmem:[#allocation202_spill] sm:$0xff] }
 0x429   : > { %v4306_v56 = vadd.f32 %v4305_v30, %v4097_v14  ;;  %v3890_v7 = vpop.f32.mrf.mxu0  ;;  %v1609_v14 = vmul.f32 %v9806_v45, %v9806_v45  ;;  %v5534_v4 = vpop.eup %5533  ;;  %v1610_v26 = vmul.f32 %v9810_v16, %v9810_v16  ;;  %v3324_v1 = vmul.f32 0.5, %v3068_v28 }
 0x42a   : > { %12092 = vst [vmem:[#allocation130_spill] sm:$0xff] %v9834_v15  ;;  %v3325_v21 = vmul.f32 0.5, %v3069_v39  ;;  %v1611_v63 = vmul.f32 %v9814_v35, %v9814_v35  ;;  %v3071_v11 = vadd.f32 1.0, %v5532_v59  ;;  %5539 = vtanh.f32 %v2563_v12  ;;  %v12096_v59 = vld [vmem:[#allocation103_spill] sm:$0xff] }
 0x42b   : > { %v4515_v24 = vadd.f32 %v4514_v51, %v4306_v56  ;;  %4146 = vmatmul.f32.gmra.mxu1 %v3576_v9  ;;  %v2566_v22 = vmul.f32 0.7978846, %v2310_v17  ;;  %v4100_v51 = vadd.f32 %v4099_v33, %v3890_v7  ;;  %5541 = vtanh.f32 %v2564_v61  ;;  %v12093_v9 = vld [vmem:[#allocation21_spill] sm:$0xff] }
 0x42c   : > { %3937 = vmatmul.f32.gmra.mxu0 %v3575_v42  ;;  %4564 = vmatmul.f32.gmra.mxu3 %v3578_v13  ;;  %v5536_v30 = vpop.eup %5535  ;;  %v3326_v42 = vmul.f32 0.5, %v3070_v36  ;;  %v2311_v62 = vadd.f32 %v12094_v32, %v12093_v9  ;;  %v3579_v28 = vmul.f32 %v3323_v41, %v12059_v40  ;;  %v3072_v39 = vadd.f32 1.0, %v5534_v4  ;;  %v12097_v36 = vld [vmem:[#allocation25_spill] sm:$0xff]  ;;  %v12098_v40 = vld [vmem:[#allocation164_spill] sm:$0xff]  ;;  %v12099_v41 = vld [vmem:[#allocation90_spill] sm:$0xff] }
 0x42d   : > { %v4664_v44 = vadd.f32 %v4515_v24, %v3700_v2  ;;  %4355 = vmatmul.f32.gmra.mxu2 %v3577_v38  ;;  %v5538_v56 = vpop.eup %5537  ;;  %v4517_v38 = vpop.f32.mrf.mxu3  ;;  %5543 = vtanh.f32 %v2565_v37  ;;  %v12095_v24 = vld [vmem:[#allocation166_spill] sm:$0xff]  ;;  %v3580_v7 = vmul.f32 %v3324_v1, %v12061_v0  ;;  %v3581_v33 = vmul.f32 %v3325_v21, %v12063_v25 }
 0x42e   : > { %v2312_v12 = vadd.f32 %v12096_v59, %v12095_v24  ;;  %v2313_v61 = vadd.f32 %v8960_v47, %v12097_v36  ;;  %v3327_v32 = vmul.f32 0.5, %v3071_v11  ;;  %v3073_v18 = vadd.f32 1.0, %v5536_v30 }
 0x42f   : > { %4728 = vst [vmem:[%s5951_s7 + $0xa8] sm:$0xff] %v4664_v44  ;;  %v3701_v44 = vld [vmem:[%s5951_s7 + $0xb0] sm:$0xff]  ;;  %5545 = vtanh.f32 %v2566_v22  ;;  %v2314_v37 = vadd.f32 %v12099_v41, %v12098_v40  ;;  %v3582_v59 = vmul.f32 %v3326_v42, %v12065_v10  ;;  %v1865_v0 = vmul.f32 %v1609_v14, %v9806_v45 }
 0x430   : > { %v4308_v2 = vpop.f32.mrf.mxu2  ;;  %v4102_v52 = vpop.f32.mrf.mxu1  ;;  %v1612_v25 = vmul.f32 %v9834_v15, %v9834_v15  ;;  %v3328_v47 = vmul.f32 0.5, %v3072_v39  ;;  %v2568_v1 = vmul.f32 0.7978846, %v2312_v12  ;;  %v1866_v11 = vmul.f32 %v1610_v26, %v9810_v16  ;;  %v12102_v26 = vld [vmem:[#allocation101_spill] sm:$0xff] }
 0x431   : > { %v4309_v17 = vadd.f32 %v4308_v2, %v4100_v51  ;;  %v3893_v13 = vpop.f32.mrf.mxu0  ;;  %v3074_v51 = vadd.f32 1.0, %v5538_v56  ;;  %v2567_v2 = vmul.f32 0.7978846, %v2311_v62  ;;  %v5540_v57 = vpop.eup %5539  ;;  %v1867_v22 = vmul.f32 %v1611_v63, %v9814_v35  ;;  %v12107_v35 = vld [vmem:[#allocation60_spill] sm:$0xff] }
 0x432   : > { %v5542_v21 = vpop.eup %5541  ;;  %v2569_v10 = vmul.f32 0.7978846, %v2313_v61  ;;  %v3583_v14 = vmul.f32 %v3327_v32, %v12067_v48  ;;  %v3329_v62 = vmul.f32 0.5, %v3073_v18  ;;  %v2570_v56 = vmul.f32 0.7978846, %v2314_v37 }
 0x433   : > { %v4518_v4 = vadd.f32 %v4517_v38, %v4309_v17  ;;  %4149 = vmatmul.f32.gmra.mxu1 %v3580_v7  ;;  %v5544_v42 = vpop.eup %5543  ;;  %v12100_v38 = vld [vmem:[#allocation50_spill] sm:$0xff]  ;;  %v4103_v39 = vadd.f32 %v4102_v52, %v3893_v13  ;;  %v3330_v12 = vmul.f32 0.5, %v3074_v51  ;;  %5547 = vtanh.f32 %v2567_v2  ;;  %v12103_v7 = vld [vmem:[#allocation8_spill] sm:$0xff]  ;;  %v12105_v52 = vld [vmem:[#allocation59_spill] sm:$0xff] }
 0x434   : > { %3940 = vmatmul.f32.gmra.mxu0 %v3579_v28  ;;  %4567 = vmatmul.f32.gmra.mxu3 %v3582_v59  ;;  %v12101_v28 = vld [vmem:[#allocation204_spill] sm:$0xff]  ;;  %v2316_v63 = vadd.f32 %v12103_v7, %v12102_v26  ;;  %v3584_v61 = vmul.f32 %v3328_v47, %v12070_v50  ;;  %v3076_v48 = vadd.f32 1.0, %v5542_v21  ;;  %5549 = vtanh.f32 %v2568_v1  ;;  %v12104_v13 = vld [vmem:[#allocation118_spill] sm:$0xff]  ;;  %v3702_v2 = vld [vmem:[%s5951_s7 + $0xb8] sm:$0xff] }
 0x435   : > { %v4665_v30 = vadd.f32 %v4518_v4, %v3701_v44  ;;  %4358 = vmatmul.f32.gmra.mxu2 %v3581_v33  ;;  %v2315_v17 = vadd.f32 %v12101_v28, %v12100_v38  ;;  %v5546_v44 = vpop.eup %5545  ;;  %v4520_v41 = vpop.f32.mrf.mxu3  ;;  %v3075_v4 = vadd.f32 1.0, %v5540_v57  ;;  %v3077_v59 = vadd.f32 1.0, %v5544_v42  ;;  %v12106_v7 = vld [vmem:[#allocation56_spill] sm:$0xff] }
 0x436   : > { %5551 = vtanh.f32 %v2569_v10  ;;  %v2317_v51 = vadd.f32 %v12105_v52, %v12104_v13  ;;  %v2318_v16 = vadd.f32 %v12107_v35, %v12106_v7  ;;  %v3586_v57 = vmul.f32 %v3330_v12, %v12075_v3 }
 0x437   : > { %4729 = vst [vmem:[%s5951_s7 + $0xb0] sm:$0xff] %v4665_v30  ;;  %v3585_v30 = vmul.f32 %v3329_v62, %v12073_v6  ;;  %5553 = vtanh.f32 %v2570_v56  ;;  %v2571_v28 = vmul.f32 0.7978846, %v2315_v17  ;;  %v3078_v47 = vadd.f32 1.0, %v5546_v44 }
 0x438   : > { %v4311_v33 = vpop.f32.mrf.mxu2  ;;  %v4105_v37 = vpop.f32.mrf.mxu1  ;;  %v2572_v1 = vmul.f32 0.7978846, %v2316_v63  ;;  %v9873_v21 = vmul.f32 0.044715, %v1865_v0  ;;  %v1868_v10 = vmul.f32 %v1612_v25, %v9834_v15  ;;  %v3331_v42 = vmul.f32 0.5, %v3075_v4  ;;  %v12111_v63 = vld [vmem:[#allocation169_spill] sm:$0xff] }
 0x439   : > { %v4312_v18 = vadd.f32 %v4311_v33, %v4103_v39  ;;  %v3896_v32 = vpop.f32.mrf.mxu0  ;;  %v3332_v39 = vmul.f32 0.5, %v3076_v48  ;;  %v5548_v6 = vpop.eup %5547  ;;  %v9876_v62 = vmul.f32 0.044715, %v1866_v11  ;;  %v3333_v35 = vmul.f32 0.5, %v3077_v59  ;;  %v12112_v25 = vld [vmem:[#allocation113_spill] sm:$0xff]  ;;  %v12113_v11 = vld [vmem:[#allocation170_spill] sm:$0xff] }
 0x43a   : > { %12108 = vst [vmem:[#allocation172_spill] sm:$0xff] %v9873_v21  ;;  %v2573_v17 = vmul.f32 0.7978846, %v2317_v51  ;;  %v5550_v3 = vpop.eup %5549  ;;  %v9878_v12 = vmul.f32 0.044715, %v1867_v22  ;;  %5555 = vtanh.f32 %v2571_v28  ;;  %v4106_v33 = vadd.f32 %v4105_v37, %v3896_v32  ;;  %v12115_v51 = vld [vmem:[#allocation97_spill] sm:$0xff] }
 0x43b   : > { %v4521_v50 = vadd.f32 %v4520_v41, %v4312_v18  ;;  %4152 = vmatmul.f32.gmra.mxu1 %v3584_v61  ;;  %12109 = vst [vmem:[#allocation127_spill] sm:$0xff] %v9876_v62  ;;  %v2574_v0 = vmul.f32 0.7978846, %v2318_v16  ;;  %v3334_v41 = vmul.f32 0.5, %v3078_v47  ;;  %5557 = vtanh.f32 %v2572_v1  ;;  %v12114_v61 = vld [vmem:[#allocation54_spill] sm:$0xff]  ;;  %v3703_v47 = vld [vmem:[%s5951_s7 + $0xc0] sm:$0xff] }
 0x43c   : > { %3943 = vmatmul.f32.gmra.mxu0 %v3583_v14  ;;  %4570 = vmatmul.f32.gmra.mxu3 %v3586_v57  ;;  %12110 = vst [vmem:[#allocation110_spill] sm:$0xff] %v9878_v12  ;;  %v2319_v14 = vadd.f32 %v12112_v25, %v12111_v63  ;;  %v5552_v44 = vpop.eup %5551  ;;  %v2320_v4 = vadd.f32 %v12114_v61, %v12113_v11  ;;  %v3079_v16 = vadd.f32 1.0, %v5548_v6  ;;  %v3080_v57 = vadd.f32 1.0, %v5550_v3  ;;  %v12117_v25 = vld [vmem:[#allocation119_spill] sm:$0xff]  ;;  %v12118_v61 = vld [vmem:[#allocation64_spill] sm:$0xff]  ;;  %v12130_v15 = vld [vmem:[#allocation13_spill] sm:$0xff] }
 0x43d   : > { %v4666_v56 = vadd.f32 %v4521_v50, %v3702_v2  ;;  %4361 = vmatmul.f32.gmra.mxu2 %v3585_v30  ;;  %v5554_v48 = vpop.eup %5553  ;;  %v4523_v59 = vpop.f32.mrf.mxu3  ;;  %v3587_v22 = vmul.f32 %v3331_v42, %v12083_v5  ;;  %v3588_v52 = vmul.f32 %v3332_v39, %v12085_v29  ;;  %v12116_v2 = vld [vmem:[#allocation63_spill] sm:$0xff]  ;;  %v3589_v37 = vmul.f32 %v3333_v35, %v12087_v53  ;;  %v12141_v21 = vld [vmem:[#allocation24_spill] sm:$0xff] }
 0x43e   : > { %v2321_v30 = vadd.f32 %v12116_v2, %v12115_v51  ;;  %5559 = vtanh.f32 %v2573_v17  ;;  %v3081_v1 = vadd.f32 1.0, %v5552_v44  ;;  %v2322_v5 = vadd.f32 %v12118_v61, %v12117_v25  ;;  %v12120_v3 = vld [vmem:[#allocation31_spill] sm:$0xff] }
 0x43f   : > { %4730 = vst [vmem:[%s5951_s7 + $0xb8] sm:$0xff] %v4666_v56  ;;  %5561 = vtanh.f32 %v2574_v0  ;;  %v2575_v56 = vmul.f32 0.7978846, %v2319_v14  ;;  %v3590_v29 = vmul.f32 %v3334_v41, %v12089_v46  ;;  %v3082_v39 = vadd.f32 1.0, %v5554_v48  ;;  %v12121_v46 = vld [vmem:[#allocation112_spill] sm:$0xff]  ;;  %v12140_v62 = vld [vmem:[#allocation179_spill] sm:$0xff] }
 0x440   : > { %v4314_v18 = vpop.f32.mrf.mxu2  ;;  %v4108_v32 = vpop.f32.mrf.mxu1  ;;  %v2576_v6 = vmul.f32 0.7978846, %v2320_v4  ;;  %v3335_v53 = vmul.f32 0.5, %v3079_v16  ;;  %v2577_v35 = vmul.f32 0.7978846, %v2321_v30  ;;  %v9898_v0 = vadd.f32 %v12120_v3, %v6411_v8  ;;  %v12122_v41 = vld [vmem:[#allocation116_spill] sm:$0xff] }
 0x441   : > { %v4315_v28 = vadd.f32 %v4314_v18, %v4106_v33  ;;  %v3899_v50 = vpop.f32.mrf.mxu0  ;;  %v5556_v2 = vpop.eup %5555  ;;  %v9894_v33 = vmul.f32 0.044715, %v1868_v10  ;;  %v3336_v44 = vmul.f32 0.5, %v3080_v57  ;;  %v2323_v4 = vadd.f32 %v12122_v41, %v12121_v46  ;;  %v12123_v10 = vld [vmem:[#allocation32_spill] sm:$0xff]  ;;  %v12125_v30 = vld [vmem:[#allocation206_spill] sm:$0xff]  ;;  %v3704_v41 = vld [vmem:[%s5951_s7 + $0xc8] sm:$0xff] }
 0x442   : > { %v5558_v17 = vpop.eup %5557  ;;  %v9904_v48 = vadd.f32 %v12123_v10, %v6415_v23  ;;  %v3337_v18 = vmul.f32 0.5, %v3081_v1  ;;  %5563 = vtanh.f32 %v2575_v56  ;;  %v3338_v16 = vmul.f32 0.5, %v3082_v39  ;;  %v12128_v39 = vld [vmem:[#allocation35_spill] sm:$0xff] }
 0x443   : > { %v4524_v42 = vadd.f32 %v4523_v59, %v4315_v28  ;;  %12119 = vst [vmem:[#allocation111_spill] sm:$0xff] %v9894_v33  ;;  %4155 = vmatmul.f32.gmra.mxu1 %v3588_v52  ;;  %v2578_v59 = vmul.f32 0.7978846, %v2322_v5  ;;  %v4109_v52 = vadd.f32 %v4108_v32, %v3899_v50  ;;  %5565 = vtanh.f32 %v2576_v6  ;;  %v12126_v28 = vld [vmem:[#allocation178_spill] sm:$0xff]  ;;  %v12129_v33 = vld [vmem:[#allocation175_spill] sm:$0xff] }
 0x444   : > { %3946 = vmatmul.f32.gmra.mxu0 %v3587_v22  ;;  %4573 = vmatmul.f32.gmra.mxu3 %v3590_v29  ;;  %12124 = vst [vmem:[#allocation162_spill] sm:$0xff] %v9904_v48  ;;  %v5560_v22 = vpop.eup %5559  ;;  %v3083_v29 = vadd.f32 1.0, %v5556_v2  ;;  %v3084_v3 = vadd.f32 1.0, %v5558_v17  ;;  %5567 = vtanh.f32 %v2577_v35  ;;  %v2579_v50 = vmul.f32 0.7978846, %v2323_v4  ;;  %v12127_v32 = vld [vmem:[#allocation174_spill] sm:$0xff] }
 0x445   : > { %v4667_v14 = vadd.f32 %v4524_v42, %v3703_v47  ;;  %4364 = vmatmul.f32.gmra.mxu2 %v3589_v37  ;;  %v2324_v37 = vadd.f32 %v12126_v28, %v12125_v30  ;;  %v5562_v57 = vpop.eup %5561  ;;  %v3591_v42 = vmul.f32 %v3335_v53, %v12093_v9  ;;  %v2325_v6 = vadd.f32 %v12128_v39, %v12127_v32  ;;  %v12133_v4 = vld [vmem:[#allocation218_spill] sm:$0xff]  ;;  %v12137_v39 = vld [vmem:[#allocation176_spill] sm:$0xff] }
 0x446   : > { %v3593_v10 = vmul.f32 %v3337_v18, %v12097_v36  ;;  %v3085_v28 = vadd.f32 1.0, %v5560_v22  ;;  %5569 = vtanh.f32 %v2578_v59  ;;  %v2326_v9 = vadd.f32 %v12130_v15, %v12129_v33 }
 0x447   : > { %4731 = vst [vmem:[%s5951_s7 + $0xc0] sm:$0xff] %v4667_v14  ;;  %v4526_v61 = vpop.f32.mrf.mxu3  ;;  %v3592_v14 = vmul.f32 %v3336_v44, %v12095_v24  ;;  %v3594_v53 = vmul.f32 %v3338_v16, %v12098_v40  ;;  %v3086_v35 = vadd.f32 1.0, %v5562_v57  ;;  %v2580_v17 = vmul.f32 0.7978846, %v2324_v37  ;;  %v12131_v24 = vld [vmem:[#allocation136_spill] sm:$0xff] }
 0x448   : > { %v4317_v47 = vpop.f32.mrf.mxu2  ;;  %v4111_v5 = vpop.f32.mrf.mxu1  ;;  %v9920_v44 = vadd.f32 %v12131_v24, %v6403_v27  ;;  %v3339_v36 = vmul.f32 0.5, %v3083_v29  ;;  %v3340_v18 = vmul.f32 0.5, %v3084_v3  ;;  %v1613_v40 = vmul.f32 %v9898_v0, %v9898_v0 }
 0x449   : > { %v4318_v1 = vadd.f32 %v4317_v47, %v4109_v52  ;;  %v3902_v56 = vpop.f32.mrf.mxu0  ;;  %v5564_v52 = vpop.eup %5563  ;;  %v9924_v47 = vadd.f32 %v12133_v4, %v6405_v31  ;;  %5571 = vtanh.f32 %v2579_v50  ;;  %v2581_v22 = vmul.f32 0.7978846, %v2325_v6 }
 0x44a   : > { %12132 = vst [vmem:[#allocation72_spill] sm:$0xff] %v9920_v44  ;;  %v5566_v15 = vpop.eup %5565  ;;  %v1614_v37 = vmul.f32 %v9904_v48, %v9904_v48  ;;  %v3341_v57 = vmul.f32 0.5, %v3085_v28  ;;  %v4112_v29 = vadd.f32 %v4111_v5, %v3902_v56  ;;  %v3342_v3 = vmul.f32 0.5, %v3086_v35 }
 0x44b   : > { %v4527_v2 = vadd.f32 %v4526_v61, %v4318_v1  ;;  %12134 = vst [vmem:[#allocation11_spill] sm:$0xff] %v9924_v47  ;;  %4158 = vmatmul.f32.gmra.mxu1 %v3592_v14  ;;  %v5568_v16 = vpop.eup %5567  ;;  %v2582_v61 = vmul.f32 0.7978846, %v2326_v9  ;;  %v12136_v1 = vld [vmem:[#allocation183_spill] sm:$0xff]  ;;  %5573 = vtanh.f32 %v2580_v17  ;;  %v3596_v24 = vmul.f32 %v3340_v18, %v12102_v26  ;;  %v3705_v17 = vld [vmem:[%s5951_s7 + $0xd0] sm:$0xff] }
 0x44c   : > { %3949 = vmatmul.f32.gmra.mxu0 %v3591_v42  ;;  %4576 = vmatmul.f32.gmra.mxu3 %v3594_v53  ;;  %v12135_v42 = vld [vmem:[#allocation115_spill] sm:$0xff]  ;;  %v3595_v53 = vmul.f32 %v3339_v36, %v12100_v38  ;;  %v3087_v28 = vadd.f32 1.0, %v5564_v52  ;;  %v3088_v5 = vadd.f32 1.0, %v5566_v15  ;;  %v3089_v35 = vadd.f32 1.0, %v5568_v16 }
 0x44d   : > { %v4668_v59 = vadd.f32 %v4527_v2, %v3704_v41  ;;  %4367 = vmatmul.f32.gmra.mxu2 %v3593_v10  ;;  %v2327_v14 = vadd.f32 %v12136_v1, %v12135_v42  ;;  %v12138_v41 = vld [vmem:[#allocation184_spill] sm:$0xff]  ;;  %v5570_v2 = vpop.eup %5569  ;;  %v12139_v9 = vld [vmem:[#allocation23_spill] sm:$0xff]  ;;  %5575 = vtanh.f32 %v2581_v22  ;;  %v2330_v38 = vadd.f32 %v12141_v21, %v12140_v62 }
 0x44e   : > { %v2328_v10 = vadd.f32 %v12138_v41, %v12137_v39  ;;  %v2329_v4 = vadd.f32 %v12139_v9, %v9105_v34  ;;  %v3597_v41 = vmul.f32 %v3341_v57, %v12104_v13  ;;  %5577 = vtanh.f32 %v2582_v61 }
 0x44f   : > { %4732 = vst [vmem:[%s5951_s7 + $0xc8] sm:$0xff] %v4668_v59  ;;  %v4529_v6 = vpop.f32.mrf.mxu3  ;;  %v2583_v12 = vmul.f32 0.7978846, %v2327_v14  ;;  %v5572_v36 = vpop.eup %5571  ;;  %v3598_v52 = vmul.f32 %v3342_v3, %v12106_v7  ;;  %v3090_v18 = vadd.f32 1.0, %v5570_v2  ;;  %v1616_v15 = vmul.f32 %v9924_v47, %v9924_v47 }
 0x450   : > { %v4320_v50 = vpop.f32.mrf.mxu2  ;;  %v4114_v56 = vpop.f32.mrf.mxu1  ;;  %v2584_v9 = vmul.f32 0.7978846, %v2328_v10  ;;  %v3343_v13 = vmul.f32 0.5, %v3087_v28  ;;  %v2585_v22 = vmul.f32 0.7978846, %v2329_v4  ;;  %v1869_v21 = vmul.f32 %v1613_v40, %v9898_v0 }
 0x451   : > { %v4321_v1 = vadd.f32 %v4320_v50, %v4112_v29  ;;  %v3905_v59 = vpop.f32.mrf.mxu0  ;;  %v1615_v29 = vmul.f32 %v9920_v44, %v9920_v44  ;;  %v5574_v16 = vpop.eup %5573  ;;  %v3344_v7 = vmul.f32 0.5, %v3088_v5  ;;  %v3345_v61 = vmul.f32 0.5, %v3089_v35 }
 0x452   : > { %v1870_v14 = vmul.f32 %v1614_v37, %v9904_v48  ;;  %v3091_v3 = vadd.f32 1.0, %v5572_v36  ;;  %5579 = vtanh.f32 %v2583_v12  ;;  %v2586_v10 = vmul.f32 0.7978846, %v2330_v38  ;;  %v12144_v37 = vld [vmem:[#allocation109_spill] sm:$0xff] }
 0x453   : > { %v4530_v26 = vadd.f32 %v4529_v6, %v4321_v1  ;;  %4161 = vmatmul.f32.gmra.mxu1 %v3596_v24  ;;  %v5576_v2 = vpop.eup %5575  ;;  %v4115_v50 = vadd.f32 %v4114_v56, %v3905_v59  ;;  %v3346_v6 = vmul.f32 0.5, %v3090_v18  ;;  %5581 = vtanh.f32 %v2584_v9  ;;  %v12143_v24 = vld [vmem:[#allocation105_spill] sm:$0xff]  ;;  %v3706_v9 = vld [vmem:[%s5951_s7 + $0xd8] sm:$0xff] }
 0x454   : > { %3952 = vmatmul.f32.gmra.mxu0 %v3595_v53  ;;  %4579 = vmatmul.f32.gmra.mxu3 %v3598_v52  ;;  %v12142_v53 = vld [vmem:[#allocation22_spill] sm:$0xff]  ;;  %v5578_v40 = vpop.eup %5577  ;;  %v3599_v5 = vmul.f32 %v3343_v13, %v12111_v63  ;;  %v3092_v35 = vadd.f32 1.0, %v5574_v16  ;;  %5583 = vtanh.f32 %v2585_v22  ;;  %v3600_v59 = vmul.f32 %v3344_v7, %v12113_v11  ;;  %v12147_v52 = vld [vmem:[#allocation209_spill] sm:$0xff]  ;;  %v12148_v63 = vld [vmem:[#allocation207_spill] sm:$0xff] }
 0x455   : > { %v4669_v57 = vadd.f32 %v4530_v26, %v3705_v17  ;;  %4370 = vmatmul.f32.gmra.mxu2 %v3597_v41  ;;  %v2331_v28 = vadd.f32 %v12143_v24, %v12142_v53  ;;  %v12145_v17 = vld [vmem:[#allocation128_spill] sm:$0xff]  ;;  %v3601_v56 = vmul.f32 %v3345_v61, %v12115_v51  ;;  %v3093_v24 = vadd.f32 1.0, %v5576_v2  ;;  %v12149_v13 = vld [vmem:[#allocation191_spill] sm:$0xff] }
 0x456   : > { %v2332_v12 = vadd.f32 %v12145_v17, %v12144_v37  ;;  %v12146_v26 = vld [vmem:[#allocation104_spill] sm:$0xff]  ;;  %5585 = vtanh.f32 %v2586_v10  ;;  %v2334_v22 = vadd.f32 %v12149_v13, %v12148_v63  ;;  %v3602_v17 = vmul.f32 %v3346_v6, %v12117_v25 }
 0x457   : > { %4733 = vst [vmem:[%s5951_s7 + $0xd0] sm:$0xff] %v4669_v57  ;;  %v4532_v1 = vpop.f32.mrf.mxu3  ;;  %v2333_v18 = vadd.f32 %v12147_v52, %v12146_v26  ;;  %v3347_v57 = vmul.f32 0.5, %v3091_v3  ;;  %v1871_v11 = vmul.f32 %v1615_v29, %v9920_v44  ;;  %v1872_v51 = vmul.f32 %v1616_v15, %v9924_v47  ;;  %v12150_v15 = vld [vmem:[#allocation185_spill] sm:$0xff]  ;;  %v12169_v47 = vld [vmem:[#allocation182_spill] sm:$0xff] }
 0x458   : > { %v4323_v4 = vpop.f32.mrf.mxu2  ;;  %v4117_v36 = vpop.f32.mrf.mxu1  ;;  %v3348_v7 = vmul.f32 0.5, %v3092_v35  ;;  %v2588_v61 = vmul.f32 0.7978846, %v2332_v12  ;;  %v9966_v10 = vmul.f32 0.044715, %v1869_v21  ;;  %v3349_v29 = vmul.f32 0.5, %v3093_v24 }
 0x459   : > { %v4324_v41 = vadd.f32 %v4323_v4, %v4115_v50  ;;  %v3908_v38 = vpop.f32.mrf.mxu0  ;;  %v3094_v50 = vadd.f32 1.0, %v5578_v40  ;;  %v2587_v4 = vmul.f32 0.7978846, %v2331_v28  ;;  %v5580_v48 = vpop.eup %5579  ;;  %v9968_v2 = vmul.f32 0.044715, %v1870_v14  ;;  %v12152_v21 = vld [vmem:[#allocation186_spill] sm:$0xff] }
 0x45a   : > { %v5582_v3 = vpop.eup %5581  ;;  %v2589_v25 = vmul.f32 0.7978846, %v2333_v18  ;;  %v3603_v28 = vmul.f32 %v3347_v57, %v12121_v46  ;;  %v2590_v40 = vmul.f32 0.7978846, %v2334_v22  ;;  %v4118_v35 = vadd.f32 %v4117_v36, %v3908_v38  ;;  %v12153_v14 = vld [vmem:[#allocation171_spill] sm:$0xff]  ;;  %v12178_v44 = vld [vmem:[#allocation41_spill] sm:$0xff] }
 0x45b   : > { %v4533_v16 = vadd.f32 %v4532_v1, %v4324_v41  ;;  %4164 = vmatmul.f32.gmra.mxu1 %v3600_v59  ;;  %v5584_v6 = vpop.eup %5583  ;;  %v3350_v12 = vmul.f32 0.5, %v3094_v50  ;;  %5587 = vtanh.f32 %v2587_v4  ;;  %v2336_v59 = vadd.f32 %v12153_v14, %v12152_v21  ;;  %v12154_v38 = vld [vmem:[#allocation55_spill] sm:$0xff] }
 0x45c   : > { %3955 = vmatmul.f32.gmra.mxu0 %v3599_v5  ;;  %4582 = vmatmul.f32.gmra.mxu3 %v3602_v17  ;;  %v12151_v5 = vld [vmem:[#allocation38_spill] sm:$0xff]  ;;  %v5586_v52 = vpop.eup %5585  ;;  %v3604_v18 = vmul.f32 %v3348_v7, %v12125_v30  ;;  %v3095_v13 = vadd.f32 1.0, %v5580_v48  ;;  %v3096_v46 = vadd.f32 1.0, %v5582_v3  ;;  %5589 = vtanh.f32 %v2588_v61  ;;  %v3707_v17 = vld [vmem:[%s5951_s7 + $0xe0] sm:$0xff] }
 0x45d   : > { %v4670_v1 = vadd.f32 %v4533_v16, %v3706_v9  ;;  %4373 = vmatmul.f32.gmra.mxu2 %v3601_v56  ;;  %v2335_v41 = vadd.f32 %v12151_v5, %v12150_v15  ;;  %v3097_v16 = vadd.f32 1.0, %v5584_v6  ;;  %5591 = vtanh.f32 %v2589_v25  ;;  %v12156_v5 = vld [vmem:[#allocation123_spill] sm:$0xff] }
 0x45e   : > { %v2337_v36 = vadd.f32 %v9295_v49, %v12154_v38  ;;  %v3605_v50 = vmul.f32 %v3349_v29, %v12127_v32  ;;  %5593 = vtanh.f32 %v2590_v40  ;;  %v3606_v48 = vmul.f32 %v3350_v12, %v12129_v33  ;;  %v12159_v29 = vld [vmem:[#allocation141_spill] sm:$0xff] }
 0x45f   : > { %4734 = vst [vmem:[%s5951_s7 + $0xd8] sm:$0xff] %v4670_v1  ;;  %v4535_v9 = vpop.f32.mrf.mxu3  ;;  %v2591_v4 = vmul.f32 0.7978846, %v2335_v41  ;;  %v12155_v1 = vld [vmem:[#allocation134_spill] sm:$0xff]  ;;  %v3098_v7 = vadd.f32 1.0, %v5586_v52  ;;  %v3351_v49 = vmul.f32 0.5, %v3095_v13  ;;  %v9990_v40 = vadd.f32 %v12159_v29, %v6411_v8 }
 0x460   : > { %v4326_v56 = vpop.f32.mrf.mxu2  ;;  %v4120_v22 = vpop.f32.mrf.mxu1  ;;  %v2338_v14 = vadd.f32 %v12156_v5, %v12155_v1  ;;  %v2592_v61 = vmul.f32 0.7978846, %v2336_v59  ;;  %v9984_v3 = vmul.f32 0.044715, %v1871_v11  ;;  %v9986_v6 = vmul.f32 0.044715, %v1872_v51 }
 0x461   : > { %v4327_v57 = vadd.f32 %v4326_v56, %v4118_v35  ;;  %v3911_v24 = vpop.f32.mrf.mxu0  ;;  %v3352_v25 = vmul.f32 0.5, %v3096_v46  ;;  %v5588_v32 = vpop.eup %5587  ;;  %v3353_v33 = vmul.f32 0.5, %v3097_v16  ;;  %v2593_v35 = vmul.f32 0.7978846, %v2337_v36  ;;  %v12160_v11 = vld [vmem:[#allocation142_spill] sm:$0xff]  ;;  %v12162_v59 = vld [vmem:[#allocation177_spill] sm:$0xff] }
 0x462   : > { %12157 = vst [vmem:[#allocation12_spill] sm:$0xff] %v9984_v3  ;;  %v5590_v12 = vpop.eup %5589  ;;  %v9994_v51 = vadd.f32 %v12160_v11, %v6415_v23  ;;  %5595 = vtanh.f32 %v2591_v4  ;;  %v12163_v52 = vld [vmem:[#allocation211_spill] sm:$0xff]  ;;  %v3354_v13 = vmul.f32 0.5, %v3098_v7  ;;  %v12164_v46 = vld [vmem:[#allocation190_spill] sm:$0xff]  ;;  %v3607_v5 = vmul.f32 %v3351_v49, %v12135_v42 }
 0x463   : > { %v4536_v30 = vadd.f32 %v4535_v9, %v4327_v57  ;;  %12158 = vst [vmem:[#allocation57_spill] sm:$0xff] %v9986_v6  ;;  %4167 = vmatmul.f32.gmra.mxu1 %v3604_v18  ;;  %v2339_v56 = vadd.f32 %v12163_v52, %v12162_v59  ;;  %v5592_v9 = vpop.eup %5591  ;;  %v4121_v18 = vadd.f32 %v4120_v22, %v3911_v24  ;;  %5597 = vtanh.f32 %v2592_v61  ;;  %v12165_v57 = vld [vmem:[#allocation129_spill] sm:$0xff]  ;;  %v12168_v6 = vld [vmem:[#allocation122_spill] sm:$0xff] }
 0x464   : > { %3958 = vmatmul.f32.gmra.mxu0 %v3603_v28  ;;  %4585 = vmatmul.f32.gmra.mxu3 %v3606_v48  ;;  %12161 = vst [vmem:[#allocation163_spill] sm:$0xff] %v9994_v51  ;;  %v2594_v28 = vmul.f32 0.7978846, %v2338_v14  ;;  %v2340_v16 = vadd.f32 %v12165_v57, %v12164_v46  ;;  %v5594_v36 = vpop.eup %5593  ;;  %v3608_v4 = vmul.f32 %v3352_v25, %v12137_v39  ;;  %v3099_v14 = vadd.f32 1.0, %v5588_v32  ;;  %v12167_v48 = vld [vmem:[#allocation195_spill] sm:$0xff]  ;;  %v3708_v61 = vld [vmem:[%s5951_s7 + $0xe8] sm:$0xff] }
 0x465   : > { %v4671_v41 = vadd.f32 %v4536_v30, %v3707_v17  ;;  %4376 = vmatmul.f32.gmra.mxu2 %v3605_v50  ;;  %v12166_v30 = vld [vmem:[#allocation219_spill] sm:$0xff]  ;;  %v3609_v22 = vmul.f32 %v3353_v33, %v9105_v34  ;;  %v3100_v7 = vadd.f32 1.0, %v5590_v12  ;;  %5599 = vtanh.f32 %v2593_v35  ;;  %v12171_v34 = vld [vmem:[#allocation181_spill] sm:$0xff] }
 0x466   : > { %v2341_v29 = vadd.f32 %v12167_v48, %v12166_v30  ;;  %v3101_v52 = vadd.f32 1.0, %v5592_v9  ;;  %5601 = vtanh.f32 %v2594_v28  ;;  %v2595_v57 = vmul.f32 0.7978846, %v2339_v56  ;;  %v12173_v9 = vld [vmem:[#allocation210_spill] sm:$0xff] }
 0x467   : > { %4735 = vst [vmem:[%s5951_s7 + $0xe0] sm:$0xff] %v4671_v41  ;;  %v4538_v50 = vpop.f32.mrf.mxu3  ;;  %v2342_v42 = vadd.f32 %v12169_v47, %v12168_v6  ;;  %v3610_v39 = vmul.f32 %v3354_v13, %v12140_v62  ;;  %v3102_v25 = vadd.f32 1.0, %v5594_v36  ;;  %v2596_v32 = vmul.f32 0.7978846, %v2340_v16  ;;  %v12174_v13 = vld [vmem:[#allocation47_spill] sm:$0xff] }
 0x468   : > { %v4329_v17 = vpop.f32.mrf.mxu2  ;;  %v4123_v24 = vpop.f32.mrf.mxu1  ;;  %v10016_v33 = vadd.f32 %v12171_v34, %v6405_v31  ;;  %v3355_v35 = vmul.f32 0.5, %v3099_v14  ;;  %v2597_v12 = vmul.f32 0.7978846, %v2341_v29  ;;  %v1617_v62 = vmul.f32 %v9990_v40, %v9990_v40 }
 0x469   : > { %v4330_v11 = vadd.f32 %v4329_v17, %v4121_v18  ;;  %v3914_v41 = vpop.f32.mrf.mxu0  ;;  %v5596_v48 = vpop.eup %5595  ;;  %v12170_v18 = vld [vmem:[#allocation180_spill] sm:$0xff]  ;;  %v3356_v56 = vmul.f32 0.5, %v3100_v7  ;;  %v2343_v16 = vadd.f32 %v12174_v13, %v12173_v9  ;;  %v1618_v36 = vmul.f32 %v9994_v51, %v9994_v51 }
 0x46a   : > { %v10012_v17 = vadd.f32 %v12170_v18, %v6403_v27  ;;  %12172 = vst [vmem:[#allocation197_spill] sm:$0xff] %v10016_v33  ;;  %v5598_v47 = vpop.eup %5597  ;;  %5603 = vtanh.f32 %v2595_v57  ;;  %v4124_v14 = vadd.f32 %v4123_v24, %v3914_v41  ;;  %v3358_v29 = vmul.f32 0.5, %v3102_v25  ;;  %v12177_v24 = vld [vmem:[#allocation16_spill] sm:$0xff] }
 0x46b   : > { %v4539_v49 = vadd.f32 %v4538_v50, %v4330_v11  ;;  %4170 = vmatmul.f32.gmra.mxu1 %v3608_v4  ;;  %v3357_v50 = vmul.f32 0.5, %v3101_v52  ;;  %v5600_v4 = vpop.eup %5599  ;;  %5605 = vtanh.f32 %v2596_v32  ;;  %v12175_v11 = vld [vmem:[#allocation151_spill] sm:$0xff]  ;;  %v3611_v18 = vmul.f32 %v3355_v35, %v12142_v53  ;;  %v3709_v32 = vld [vmem:[%s5951_s7 + $0xf0] sm:$0xff] }
 0x46c   : > { %3961 = vmatmul.f32.gmra.mxu0 %v3607_v5  ;;  %4588 = vmatmul.f32.gmra.mxu3 %v3610_v39  ;;  %v2598_v5 = vmul.f32 0.7978846, %v2342_v42  ;;  %v3103_v34 = vadd.f32 1.0, %v5596_v48  ;;  %v3104_v13 = vadd.f32 1.0, %v5598_v47  ;;  %5607 = vtanh.f32 %v2597_v12 }
 0x46d   : > { %v4672_v28 = vadd.f32 %v4539_v49, %v3708_v61  ;;  %4379 = vmatmul.f32.gmra.mxu2 %v3609_v22  ;;  %v12176_v61 = vld [vmem:[#allocation196_spill] sm:$0xff]  ;;  %v5602_v49 = vpop.eup %5601  ;;  %v2599_v41 = vmul.f32 0.7978846, %v2343_v16  ;;  %v2345_v25 = vadd.f32 %v9402_v60, %v12177_v24  ;;  %v3105_v3 = vadd.f32 1.0, %v5600_v4 }
 0x46e   : > { %v2344_v22 = vadd.f32 %v12176_v61, %v12175_v11  ;;  %v3613_v61 = vmul.f32 %v3357_v50, %v12146_v26  ;;  %5609 = vtanh.f32 %v2598_v5  ;;  %v2346_v53 = vadd.f32 %v9404_v20, %v12178_v44 }
 0x46f   : > { %4736 = vst [vmem:[%s5951_s7 + $0xe8] sm:$0xff] %v4672_v28  ;;  %v4541_v39 = vpop.f32.mrf.mxu3  ;;  %v3612_v28 = vmul.f32 %v3356_v56, %v12144_v37  ;;  %v3614_v35 = vmul.f32 %v3358_v29, %v12148_v63  ;;  %v3106_v12 = vadd.f32 1.0, %v5602_v49  ;;  %v1619_v37 = vmul.f32 %v10012_v17, %v10012_v17  ;;  %v12179_v49 = vld [vmem:[#allocation76_spill] sm:$0xff] }
 0x470   : > { %v4332_v7 = vpop.f32.mrf.mxu2  ;;  %v4126_v42 = vpop.f32.mrf.mxu1  ;;  %v2600_v47 = vmul.f32 0.7978846, %v2344_v22  ;;  %v1620_v60 = vmul.f32 %v10016_v33, %v10016_v33  ;;  %v3359_v26 = vmul.f32 0.5, %v3103_v34  ;;  %v3360_v56 = vmul.f32 0.5, %v3104_v13  ;;  %v12180_v34 = vld [vmem:[#allocation155_spill] sm:$0xff] }
 0x471   : > { %v4333_v52 = vadd.f32 %v4332_v7, %v4124_v14  ;;  %v3917_v57 = vpop.f32.mrf.mxu0  ;;  %v5604_v14 = vpop.eup %5603  ;;  %v1873_v20 = vmul.f32 %v1617_v62, %v9990_v40  ;;  %5611 = vtanh.f32 %v2599_v41  ;;  %v2601_v63 = vmul.f32 0.7978846, %v2345_v25  ;;  %v12181_v62 = vld [vmem:[#allocation10_spill] sm:$0xff] }
 0x472   : > { %v5606_v16 = vpop.eup %5605  ;;  %v1874_v4 = vmul.f32 %v1618_v36, %v9994_v51  ;;  %v3361_v29 = vmul.f32 0.5, %v3105_v3  ;;  %v2602_v22 = vmul.f32 0.7978846, %v2346_v53  ;;  %v2347_v7 = vadd.f32 %v9406_v55, %v12179_v49  ;;  %v12185_v51 = vld [vmem:[#allocation132_spill] sm:$0xff] }
 0x473   : > { %v4542_v48 = vadd.f32 %v4541_v39, %v4333_v52  ;;  %4173 = vmatmul.f32.gmra.mxu1 %v3612_v28  ;;  %v5608_v5 = vpop.eup %5607  ;;  %v4127_v39 = vadd.f32 %v4126_v42, %v3917_v57  ;;  %5613 = vtanh.f32 %v2600_v47  ;;  %v2348_v13 = vadd.f32 %v12181_v62, %v12180_v34  ;;  %v12184_v62 = vld [vmem:[#allocation117_spill] sm:$0xff] }
 0x474   : > { %3964 = vmatmul.f32.gmra.mxu0 %v3611_v18  ;;  %4591 = vmatmul.f32.gmra.mxu3 %v3614_v35  ;;  %v3362_v18 = vmul.f32 0.5, %v3106_v12  ;;  %v5610_v52 = vpop.eup %5609  ;;  %v3615_v25 = vmul.f32 %v3359_v26, %v12150_v15  ;;  %v3616_v36 = vmul.f32 %v3360_v56, %v12152_v21  ;;  %v3107_v3 = vadd.f32 1.0, %v5604_v14  ;;  %v3710_v12 = vld [vmem:[%s5951_s7 + $0xf8] sm:$0xff] }
 0x475   : > { %v4673_v50 = vadd.f32 %v4542_v48, %v3709_v32  ;;  %4382 = vmatmul.f32.gmra.mxu2 %v3613_v61  ;;  %v12182_v32 = vld [vmem:[#allocation9_spill] sm:$0xff]  ;;  %v12183_v61 = vld [vmem:[#allocation19_spill] sm:$0xff]  ;;  %v3108_v42 = vadd.f32 1.0, %v5606_v16  ;;  %v3109_v35 = vadd.f32 1.0, %v5608_v5  ;;  %5615 = vtanh.f32 %v2601_v63 }
 0x476   : > { %v2349_v53 = vadd.f32 %v12183_v61, %v12182_v32  ;;  %v3617_v47 = vmul.f32 %v3361_v29, %v12154_v38  ;;  %5617 = vtanh.f32 %v2602_v22  ;;  %v2350_v15 = vadd.f32 %v12185_v51, %v12184_v62 }
 0x477   : > { %4737 = vst [vmem:[%s5951_s7 + $0xf0] sm:$0xff] %v4673_v50  ;;  %v4544_v41 = vpop.f32.mrf.mxu3  ;;  %v2603_v50 = vmul.f32 0.7978846, %v2347_v7  ;;  %v5612_v26 = vpop.eup %5611  ;;  %v3618_v14 = vmul.f32 %v3362_v18, %v12155_v1  ;;  %v3110_v56 = vadd.f32 1.0, %v5610_v52  ;;  %v2604_v61 = vmul.f32 0.7978846, %v2348_v13 }
 0x478   : > { %v4335_v28 = vpop.f32.mrf.mxu2  ;;  %v4129_v57 = vpop.f32.mrf.mxu1  ;;  %v1876_v16 = vmul.f32 %v1620_v60, %v10016_v33  ;;  %v3363_v63 = vmul.f32 0.5, %v3107_v3  ;;  %v2605_v38 = vmul.f32 0.7978846, %v2349_v53  ;;  %v10058_v29 = vmul.f32 0.044715, %v1873_v20  ;;  %v12216_v33 = vld [vmem:[#allocation27_spill] sm:$0xff] }
 0x479   : > { %v4336_v55 = vadd.f32 %v4335_v28, %v4127_v39  ;;  %v3920_v48 = vpop.f32.mrf.mxu0  ;;  %v1875_v39 = vmul.f32 %v1619_v37, %v10012_v17  ;;  %v5614_v5 = vpop.eup %5613  ;;  %v3364_v51 = vmul.f32 0.5, %v3108_v42  ;;  %v3365_v7 = vmul.f32 0.5, %v3109_v35  ;;  %v12186_v28 = vld [vmem:[#allocation78_spill] sm:$0xff]  ;;  %v12189_v42 = vld [vmem:[#allocation160_spill] sm:$0xff] }
 0x47a   : > { %v10060_v1 = vmul.f32 0.044715, %v1874_v4  ;;  %v3111_v18 = vadd.f32 1.0, %v5612_v26  ;;  %5619 = vtanh.f32 %v2603_v50  ;;  %v2606_v37 = vmul.f32 0.7978846, %v2350_v15  ;;  %v12188_v4 = vld [vmem:[#allocation224_spill] sm:$0xff] }
 0x47b   : > { %v4545_v21 = vadd.f32 %v4544_v41, %v4336_v55  ;;  %4176 = vmatmul.f32.gmra.mxu1 %v3616_v36  ;;  %v5616_v13 = vpop.eup %5615  ;;  %v4130_v60 = vadd.f32 %v4129_v57, %v3920_v48  ;;  %v3366_v52 = vmul.f32 0.5, %v3110_v56  ;;  %5621 = vtanh.f32 %v2604_v61  ;;  %v12187_v41 = vld [vmem:[#allocation62_spill] sm:$0xff]  ;;  %v3711_v26 = vld [vmem:[%s5951_s7 + $0x100] sm:$0xff] }
 0x47c   : > { %3967 = vmatmul.f32.gmra.mxu0 %v3615_v25  ;;  %4594 = vmatmul.f32.gmra.mxu3 %v3618_v14  ;;  %v2351_v20 = vadd.f32 %v12187_v41, %v12186_v28  ;;  %v5618_v25 = vpop.eup %5617  ;;  %v3619_v53 = vmul.f32 %v3363_v63, %v12162_v59  ;;  %v3112_v55 = vadd.f32 1.0, %v5614_v5  ;;  %5623 = vtanh.f32 %v2605_v38  ;;  %v12190_v59 = vld [vmem:[#allocation34_spill] sm:$0xff] }
 0x47d   : > { %v4674_v22 = vadd.f32 %v4545_v21, %v3710_v12  ;;  %4385 = vmatmul.f32.gmra.mxu2 %v3617_v47  ;;  %v2352_v35 = vadd.f32 %v12189_v42, %v12188_v4  ;;  %v3620_v48 = vmul.f32 %v3364_v51, %v12164_v46  ;;  %v3621_v57 = vmul.f32 %v3365_v7, %v12166_v30  ;;  %v12191_v56 = vld [vmem:[#allocation138_spill] sm:$0xff]  ;;  %v12194_v7 = vld [vmem:[#allocation77_spill] sm:$0xff] }
 0x47e   : > { %v2353_v15 = vadd.f32 %v9520_v43, %v9443_v58  ;;  %v3367_v21 = vmul.f32 0.5, %v3111_v18  ;;  %v3113_v14 = vadd.f32 1.0, %v5616_v13  ;;  %5625 = vtanh.f32 %v2606_v37  ;;  %v12199_v42 = vld [vmem:[#allocation82_spill] sm:$0xff] }
 0x47f   : > { %4738 = vst [vmem:[%s5951_s7 + $0xf8] sm:$0xff] %v4674_v22  ;;  %v4547_v3 = vpop.f32.mrf.mxu3  ;;  %v2354_v61 = vadd.f32 %v12191_v56, %v12190_v59  ;;  %v3622_v38 = vmul.f32 %v3366_v52, %v12168_v6  ;;  %v3114_v5 = vadd.f32 1.0, %v5618_v25  ;;  %v2607_v22 = vmul.f32 0.7978846, %v2351_v20  ;;  %v12196_v25 = vld [vmem:[#allocation80_spill] sm:$0xff] }
 0x480   : > { %v4338_v36 = vpop.f32.mrf.mxu2  ;;  %v4132_v50 = vpop.f32.mrf.mxu1  ;;  %v10076_v41 = vmul.f32 0.044715, %v1875_v39  ;;  %v3368_v46 = vmul.f32 0.5, %v3112_v55  ;;  %v2608_v43 = vmul.f32 0.7978846, %v2352_v35  ;;  %v10082_v18 = vadd.f32 %v12194_v7, %v6411_v8  ;;  %v12198_v55 = vld [vmem:[#allocation43_spill] sm:$0xff] }
 0x481   : > { %v4339_v12 = vadd.f32 %v4338_v36, %v4130_v60  ;;  %v3923_v47 = vpop.f32.mrf.mxu0  ;;  %v5620_v60 = vpop.eup %5619  ;;  %v10078_v51 = vmul.f32 0.044715, %v1876_v16  ;;  %v2609_v6 = vmul.f32 0.7978846, %v2353_v15  ;;  %v3623_v39 = vmul.f32 %v3367_v21, %v12173_v9  ;;  %v12197_v36 = vld [vmem:[#allocation20_spill] sm:$0xff]  ;;  %v12202_v7 = vld [vmem:[#allocation137_spill] sm:$0xff] }
 0x482   : > { %12192 = vst [vmem:[#allocation208_spill] sm:$0xff] %v10076_v41  ;;  %v5622_v30 = vpop.eup %5621  ;;  %v3369_v52 = vmul.f32 0.5, %v3113_v14  ;;  %v2610_v20 = vmul.f32 0.7978846, %v2354_v61  ;;  %v3370_v16 = vmul.f32 0.5, %v3114_v5  ;;  %5627 = vtanh.f32 %v2607_v22 }
 0x483   : > { %v4548_v63 = vadd.f32 %v4547_v3, %v4339_v12  ;;  %4179 = vmatmul.f32.gmra.mxu1 %v3620_v48  ;;  %12193 = vst [vmem:[#allocation69_spill] sm:$0xff] %v10078_v51  ;;  %v5624_v13 = vpop.eup %5623  ;;  %v2355_v3 = vadd.f32 %v12197_v36, %v12196_v25  ;;  %v2356_v35 = vadd.f32 %v12199_v42, %v12198_v55  ;;  %v3116_v9 = vadd.f32 1.0, %v5622_v30  ;;  %v12204_v30 = vld [vmem:[#allocation147_spill] sm:$0xff] }
 0x484   : > { %3970 = vmatmul.f32.gmra.mxu0 %v3619_v53  ;;  %12195 = vst [vmem:[#allocation73_spill] sm:$0xff] %v10082_v18  ;;  %4597 = vmatmul.f32.gmra.mxu3 %v3622_v38  ;;  %v4133_v53 = vadd.f32 %v4132_v50, %v3923_v47  ;;  %v5626_v12 = vpop.eup %5625  ;;  %v3624_v15 = vmul.f32 %v3368_v46, %v12175_v11  ;;  %5629 = vtanh.f32 %v2608_v43  ;;  %v3117_v61 = vadd.f32 1.0, %v5624_v13  ;;  %v12200_v47 = vld [vmem:[#allocation102_spill] sm:$0xff]  ;;  %v12201_v50 = vld [vmem:[#allocation140_spill] sm:$0xff]  ;;  %v3712_v38 = vld [vmem:[%s5951_s7 + $0x108] sm:$0xff] }
 0x485   : > { %v4675_v37 = vadd.f32 %v4548_v63, %v3711_v26  ;;  %4388 = vmatmul.f32.gmra.mxu2 %v3621_v57  ;;  %v3115_v26 = vadd.f32 1.0, %v5620_v60  ;;  %5631 = vtanh.f32 %v2609_v6  ;;  %v2357_v63 = vadd.f32 %v12201_v50, %v12200_v47  ;;  %v12206_v6 = vld [vmem:[#allocation222_spill] sm:$0xff]  ;;  %v12215_v51 = vld [vmem:[#allocation83_spill] sm:$0xff] }
 0x486   : > { %v3625_v5 = vmul.f32 %v3369_v52, %v12177_v24  ;;  %5633 = vtanh.f32 %v2610_v20  ;;  %v2611_v22 = vmul.f32 0.7978846, %v2355_v3  ;;  %v3626_v60 = vmul.f32 %v3370_v16, %v12178_v44  ;;  %v12208_v3 = vld [vmem:[#allocation223_spill] sm:$0xff] }
 0x487   : > { %4739 = vst [vmem:[%s5951_s7 + $0x100] sm:$0xff] %v4675_v37  ;;  %v4550_v57 = vpop.f32.mrf.mxu3  ;;  %v12203_v37 = vld [vmem:[#allocation154_spill] sm:$0xff]  ;;  %v3118_v46 = vadd.f32 1.0, %v5626_v12  ;;  %v2612_v43 = vmul.f32 0.7978846, %v2356_v35  ;;  %v10100_v13 = vadd.f32 %v12204_v30, %v6415_v23  ;;  %v3371_v24 = vmul.f32 0.5, %v3115_v26 }
 0x488   : > { %v4341_v48 = vpop.f32.mrf.mxu2  ;;  %v4135_v56 = vpop.f32.mrf.mxu1  ;;  %v2358_v36 = vadd.f32 %v12203_v37, %v12202_v7  ;;  %v3372_v52 = vmul.f32 0.5, %v3116_v9  ;;  %v10108_v42 = vadd.f32 %v12208_v3, %v6405_v31  ;;  %v3373_v16 = vmul.f32 0.5, %v3117_v61  ;;  %v12214_v30 = vld [vmem:[#allocation91_spill] sm:$0xff] }
 0x489   : > { %v4342_v21 = vadd.f32 %v4341_v48, %v4133_v53  ;;  %v3926_v14 = vpop.f32.mrf.mxu0  ;;  %12205 = vst [vmem:[#allocation168_spill] sm:$0xff] %v10100_v13  ;;  %v10104_v53 = vadd.f32 %v12206_v6, %v6403_v27  ;;  %v5628_v20 = vpop.eup %5627  ;;  %v2613_v35 = vmul.f32 0.7978846, %v2357_v63  ;;  %v1621_v48 = vmul.f32 %v10082_v18, %v10082_v18 }
 0x48a   : > { %12209 = vst [vmem:[#allocation14_spill] sm:$0xff] %v10108_v42  ;;  %v5630_v12 = vpop.eup %5629  ;;  %5635 = vtanh.f32 %v2611_v22  ;;  %v3374_v50 = vmul.f32 0.5, %v3118_v46  ;;  %v3628_v22 = vmul.f32 %v3372_v52, %v12180_v34 }
 0x48b   : > { %v4551_v11 = vadd.f32 %v4550_v57, %v4342_v21  ;;  %12207 = vst [vmem:[#allocation198_spill] sm:$0xff] %v10104_v53  ;;  %4182 = vmatmul.f32.gmra.mxu1 %v3624_v15  ;;  %v12210_v57 = vld [vmem:[#allocation65_spill] sm:$0xff]  ;;  %v12211_v15 = vld [vmem:[#allocation143_spill] sm:$0xff]  ;;  %v5632_v9 = vpop.eup %5631  ;;  %v4136_v21 = vadd.f32 %v4135_v56, %v3926_v14  ;;  %5637 = vtanh.f32 %v2612_v43  ;;  %v3629_v56 = vmul.f32 %v3373_v16, %v12182_v32  ;;  %v3713_v43 = vld [vmem:[%s5951_s7 + $0x110] sm:$0xff] }
 0x48c   : > { %3973 = vmatmul.f32.gmra.mxu0 %v3623_v39  ;;  %4600 = vmatmul.f32.gmra.mxu3 %v3626_v60  ;;  %v2614_v39 = vmul.f32 0.7978846, %v2358_v36  ;;  %v2359_v26 = vadd.f32 %v12211_v15, %v12210_v57  ;;  %v5634_v61 = vpop.eup %5633  ;;  %v3119_v36 = vadd.f32 1.0, %v5628_v20  ;;  %v12213_v60 = vld [vmem:[#allocation46_spill] sm:$0xff]  ;;  %v3120_v46 = vadd.f32 1.0, %v5630_v12 }
 0x48d   : > { %v4676_v44 = vadd.f32 %v4551_v11, %v3712_v38  ;;  %4391 = vmatmul.f32.gmra.mxu2 %v3625_v5  ;;  %v12212_v38 = vld [vmem:[#allocation96_spill] sm:$0xff]  ;;  %v3627_v11 = vmul.f32 %v3371_v24, %v12179_v49  ;;  %v2361_v6 = vadd.f32 %v12214_v30, %v12213_v60  ;;  %5639 = vtanh.f32 %v2613_v35 }
 0x48e   : > { %v2360_v5 = vadd.f32 %v9605_v54, %v12212_v38  ;;  %v3121_v54 = vadd.f32 1.0, %v5632_v9  ;;  %5641 = vtanh.f32 %v2614_v39  ;;  %v2615_v15 = vmul.f32 0.7978846, %v2359_v26  ;;  %v12217_v26 = vld [vmem:[#allocation33_spill] sm:$0xff]  ;;  %v12218_v9 = vld [vmem:[#allocation188_spill] sm:$0xff] }
 0x48f   : > { %4740 = vst [vmem:[%s5951_s7 + $0x108] sm:$0xff] %v4676_v44  ;;  %v4553_v37 = vpop.f32.mrf.mxu3  ;;  %v2362_v49 = vadd.f32 %v12216_v33, %v12215_v51  ;;  %v3630_v34 = vmul.f32 %v3374_v50, %v12184_v62  ;;  %v3122_v52 = vadd.f32 1.0, %v5634_v61  ;;  %v1623_v32 = vmul.f32 %v10104_v53, %v10104_v53 }
 0x490   : > { %v4344_v63 = vpop.f32.mrf.mxu2  ;;  %v4138_v14 = vpop.f32.mrf.mxu1  ;;  %v2616_v20 = vmul.f32 0.7978846, %v2360_v5  ;;  %v3375_v16 = vmul.f32 0.5, %v3119_v36  ;;  %v2617_v35 = vmul.f32 0.7978846, %v2361_v6  ;;  %v1624_v33 = vmul.f32 %v10108_v42, %v10108_v42 }
 0x491   : > { %v4345_v3 = vadd.f32 %v4344_v63, %v4136_v21  ;;  %v3929_v44 = vpop.f32.mrf.mxu0  ;;  %v5636_v30 = vpop.eup %5635  ;;  %v1622_v21 = vmul.f32 %v10100_v13, %v10100_v13  ;;  %v3376_v62 = vmul.f32 0.5, %v3120_v46  ;;  %v2363_v50 = vadd.f32 %v12218_v9, %v12217_v26 }
 0x492   : > { %v5638_v12 = vpop.eup %5637  ;;  %v10135_v5 = vmul.f32 %v1621_v48, %v10082_v18  ;;  %v3377_v61 = vmul.f32 0.5, %v3121_v54  ;;  %5643 = vtanh.f32 %v2615_v15  ;;  %v2618_v63 = vmul.f32 0.7978846, %v2362_v49  ;;  %v12220_v48 = vld [vmem:[#allocation214_spill] sm:$0xff] }
 0x493   : > { %v4554_v24 = vadd.f32 %v4553_v37, %v4345_v3  ;;  %4185 = vmatmul.f32.gmra.mxu1 %v3628_v22  ;;  %v5640_v37 = vpop.eup %5639  ;;  %v3378_v22 = vmul.f32 0.5, %v3122_v52  ;;  %v3123_v36 = vadd.f32 1.0, %v5636_v30  ;;  %5645 = vtanh.f32 %v2616_v20  ;;  %v12222_v52 = vld [vmem:[#allocation144_spill] sm:$0xff]  ;;  %v3714_v20 = vld [vmem:[%s5951_s7 + $0x118] sm:$0xff] }
 0x494   : > { %3976 = vmatmul.f32.gmra.mxu0 %v3627_v11  ;;  %4603 = vmatmul.f32.gmra.mxu3 %v3630_v34  ;;  %v4139_v11 = vadd.f32 %v4138_v14, %v3929_v44  ;;  %v5642_v6 = vpop.eup %5641  ;;  %v3631_v46 = vmul.f32 %v3375_v16, %v12186_v28  ;;  %5647 = vtanh.f32 %v2617_v35  ;;  %v2619_v44 = vmul.f32 0.7978846, %v2363_v50  ;;  %v12221_v14 = vld [vmem:[#allocation126_spill] sm:$0xff]  ;;  %v12223_v28 = vld [vmem:[#allocation107_spill] sm:$0xff]  ;;  %v12224_v16 = vld [vmem:[#allocation193_spill] sm:$0xff] }
 0x495   : > { %v4677_v39 = vadd.f32 %v4554_v24, %v3713_v43  ;;  %4394 = vmatmul.f32.gmra.mxu2 %v3629_v56  ;;  %v3124_v43 = vadd.f32 1.0, %v5638_v12  ;;  %v12219_v24 = vld [vmem:[#allocation124_spill] sm:$0xff]  ;;  %v2365_v30 = vadd.f32 %v12222_v52, %v12221_v14  ;;  %v3633_v9 = vmul.f32 %v3377_v61, %v9443_v58 }
 0x496   : > { %v2364_v34 = vadd.f32 %v12220_v48, %v12219_v24  ;;  %v3125_v18 = vadd.f32 1.0, %v5640_v37  ;;  %5649 = vtanh.f32 %v2618_v63  ;;  %v2366_v35 = vadd.f32 %v12224_v16, %v12223_v28 }
 0x497   : > { %4741 = vst [vmem:[%s5951_s7 + $0x110] sm:$0xff] %v4677_v39  ;;  %v4556_v56 = vpop.f32.mrf.mxu3  ;;  %v3632_v39 = vmul.f32 %v3376_v62, %v12188_v4  ;;  %v3634_v48 = vmul.f32 %v3378_v22, %v12190_v59  ;;  %v1878_v4 = vmul.f32 %v1622_v21, %v10100_v13  ;;  %v1879_v62 = vmul.f32 %v1623_v32, %v10104_v53  ;;  %v12226_v59 = vld [vmem:[#allocation99_spill] sm:$0xff] }
 0x498   : > { %v4347_v3 = vpop.f32.mrf.mxu2  ;;  %v4141_v49 = vpop.f32.mrf.mxu1  ;;  %v3380_v50 = vmul.f32 0.5, %v3124_v43  ;;  %v2620_v58 = vmul.f32 0.7978846, %v2364_v34  ;;  %5651 = vtanh.f32 %v2619_v44  ;;  %v2621_v37 = vmul.f32 0.7978846, %v2365_v30  ;;  %v12227_v32 = vld [vmem:[#allocation167_spill] sm:$0xff] }
 0x499   : > { %v4348_v54 = vadd.f32 %v4347_v3, %v4139_v11  ;;  %v3932_v15 = vpop.f32.mrf.mxu0  ;;  %v3379_v11 = vmul.f32 0.5, %v3123_v36  ;;  %v3126_v3 = vadd.f32 1.0, %v5642_v6  ;;  %v5644_v41 = vpop.eup %5643  ;;  %v1880_v6 = vmul.f32 %v1624_v33, %v10108_v42  ;;  %v12230_v44 = vld [vmem:[#allocation66_spill] sm:$0xff] }
 0x49a   : > { %v5646_v61 = vpop.eup %5645  ;;  %v3381_v21 = vmul.f32 0.5, %v3125_v18  ;;  %v4142_v43 = vadd.f32 %v4141_v49, %v3932_v15  ;;  %v3127_v33 = vadd.f32 1.0, %v5644_v41  ;;  %5653 = vtanh.f32 %v2620_v58 }
 0x49b   : > { %v4557_v12 = vadd.f32 %v4556_v56, %v4348_v54  ;;  %4188 = vmatmul.f32.gmra.mxu1 %v3632_v39  ;;  %v12225_v56 = vld [vmem:[#allocation108_spill] sm:$0xff]  ;;  %v5648_v36 = vpop.eup %5647  ;;  %v2622_v54 = vmul.f32 0.7978846, %v2366_v35  ;;  %v3635_v34 = vmul.f32 %v3379_v11, %v12196_v25  ;;  %v3382_v39 = vmul.f32 0.5, %v3126_v3 }
 0x49c   : > { %3979 = vmatmul.f32.gmra.mxu0 %v3631_v46  ;;  %4606 = vmatmul.f32.gmra.mxu3 %v3634_v48  ;;  %v2367_v22 = vadd.f32 %v12226_v59, %v12225_v56  ;;  %v12228_v46 = vld [vmem:[#allocation100_spill] sm:$0xff]  ;;  %v3636_v48 = vmul.f32 %v3380_v50, %v12198_v55  ;;  %v3128_v18 = vadd.f32 1.0, %v5646_v61  ;;  %5655 = vtanh.f32 %v2621_v37 }
 0x49d   : > { %v4678_v63 = vadd.f32 %v4557_v12, %v3714_v20  ;;  %4397 = vmatmul.f32.gmra.mxu2 %v3633_v9  ;;  %v2368_v52 = vadd.f32 %v12228_v46, %v12227_v32  ;;  %v12229_v20 = vld [vmem:[#allocation37_spill] sm:$0xff]  ;;  %v5650_v9 = vpop.eup %5649  ;;  %v3715_v25 = vld [vmem:[%s5951_s7 + $0x120] sm:$0xff]  ;;  %v3637_v49 = vmul.f32 %v3381_v21, %v12200_v47  ;;  %5657 = vtanh.f32 %v2622_v54 }
 0x49e   : > { %v2369_v30 = vadd.f32 %v12230_v44, %v12229_v20  ;;  %v2623_v15 = vmul.f32 0.7978846, %v2367_v22  ;;  %v12231_v3 = vld [vmem:[#allocation68_spill] sm:$0xff]  ;;  %v12232_v44 = vld [vmem:[#allocation53_spill] sm:$0xff]  ;;  %v5652_v53 = vpop.eup %5651  ;;  %v3638_v41 = vmul.f32 %v3382_v39, %v12202_v7  ;;  %v3130_v55 = vadd.f32 1.0, %v5650_v9  ;;  %v12233_v39 = vld [vmem:[#allocation98_spill] sm:$0xff] }
 0x49f   : > { %4742 = vst [vmem:[%s5951_s7 + $0x118] sm:$0xff] %v4678_v63  ;;  %v4559_v12 = vpop.f32.mrf.mxu3  ;;  %v3129_v63 = vadd.f32 1.0, %v5648_v36  ;;  %v2624_v11 = vmul.f32 0.7978846, %v2368_v52  ;;  %v2370_v42 = vadd.f32 %v12232_v44, %v12231_v3  ;;  %v10167_v58 = vmul.f32 0.044715, %v10135_v5 }
 0x4a0   : > { %v4350_v16 = vpop.f32.mrf.mxu2  ;;  %v4144_v46 = vpop.f32.mrf.mxu1  ;;  %v2625_v50 = vmul.f32 0.7978846, %v2369_v30  ;;  %v10169_v61 = vmul.f32 0.044715, %v1878_v4  ;;  %v3383_v47 = vmul.f32 0.5, %v3127_v33  ;;  %v3384_v37 = vmul.f32 0.5, %v3128_v18 }
 0x4a1   : > { %v4351_v35 = vadd.f32 %v4350_v16, %v4142_v43  ;;  %v3935_v59 = vpop.f32.mrf.mxu0  ;;  %v10171_v22 = vmul.f32 0.044715, %v1879_v62  ;;  %v3385_v21 = vmul.f32 0.5, %v3129_v63  ;;  %5659 = vtanh.f32 %v2623_v15  ;;  %v5654_v7 = vpop.eup %5653  ;;  %v12234_v62 = vld [vmem:[#allocation106_spill] sm:$0xff] }
 0x4a2   : > { %v10173_v54 = vmul.f32 0.044715, %v1880_v6  ;;  %v3131_v52 = vadd.f32 1.0, %v5652_v53  ;;  %5661 = vtanh.f32 %v2624_v11  ;;  %v2626_v5 = vmul.f32 0.7978846, %v2370_v42  ;;  %v5656_v4 = vpop.eup %5655  ;;  %v12235_v9 = vld [vmem:[#allocation194_spill] sm:$0xff] }
 0x4a3   : > { %v4560_v13 = vadd.f32 %v4559_v12, %v4351_v35  ;;  %4191 = vmatmul.f32.gmra.mxu1 %v3636_v48  ;;  %v4145_v43 = vadd.f32 %v4144_v46, %v3935_v59  ;;  %5663 = vtanh.f32 %v2625_v50  ;;  %v2371_v30 = vadd.f32 %v12234_v62, %v12233_v39  ;;  %v12236_v48 = vld [vmem:[#allocation135_spill] sm:$0xff]  ;;  %v12237_v33 = vld [vmem:[#allocation26_spill] sm:$0xff]  ;;  %v3716_v11 = vld [vmem:[%s5951_s7 + $0x128] sm:$0xff] }
 0x4a4   : > { %3982 = vmatmul.f32.gmra.mxu0 %v3635_v34  ;;  %4609 = vmatmul.f32.gmra.mxu3 %v3638_v41  ;;  %v3386_v34 = vmul.f32 0.5, %v3130_v55  ;;  %v10180_v16 = vadd.f32 %v12235_v9, %v6411_v8  ;;  %v3639_v53 = vmul.f32 %v3383_v47, %v12210_v57  ;;  %v3640_v42 = vmul.f32 %v3384_v37, %v12212_v38  ;;  %v12239_v55 = vld [vmem:[#allocation133_spill] sm:$0xff]  ;;  %v12240_v57 = vld [vmem:[#allocation156_spill] sm:$0xff] }
 0x4a5   : > { %v4679_v36 = vadd.f32 %v4560_v13, %v3715_v25  ;;  %4400 = vmatmul.f32.gmra.mxu2 %v3637_v49  ;;  %v5658_v13 = vpop.eup %5657  ;;  %v2372_v18 = vadd.f32 %v12237_v33, %v12236_v48  ;;  %v3641_v63 = vmul.f32 %v3385_v21, %v12213_v60  ;;  %v3132_v15 = vadd.f32 1.0, %v5654_v7  ;;  %v12238_v25 = vld [vmem:[#allocation18_spill] sm:$0xff]  ;;  %v12244_v33 = vld [vmem:[#allocation205_spill] sm:$0xff] }
 0x4a6   : > { %v2373_v49 = vadd.f32 %v9783_v19, %v12238_v25  ;;  %v3387_v44 = vmul.f32 0.5, %v3131_v52  ;;  %v3133_v41 = vadd.f32 1.0, %v5656_v4  ;;  %5665 = vtanh.f32 %v2626_v5  ;;  %v12241_v60 = vld [vmem:[#allocation74_spill] sm:$0xff]  ;;  %v12243_v52 = vld [vmem:[#allocation152_spill] sm:$0xff] }
 0x4a7   : > { %4743 = vst [vmem:[%s5951_s7 + $0x120] sm:$0xff] %v4679_v36  ;;  %v4562_v6 = vpop.f32.mrf.mxu3  ;;  %v2374_v50 = vadd.f32 %v12240_v57, %v12239_v55  ;;  %v5660_v38 = vpop.eup %5659  ;;  %v3642_v37 = vmul.f32 %v3386_v34, %v12215_v51  ;;  %v3134_v36 = vadd.f32 1.0, %v5658_v13  ;;  %v10195_v21 = vadd.f32 %v12241_v60, %v6415_v23  ;;  %v12242_v19 = vld [vmem:[#allocation150_spill] sm:$0xff]  ;;  %v12247_v57 = vld [vmem:[#allocation159_spill] sm:$0xff] }
 0x4a8   : > { %v4353_v12 = vpop.f32.mrf.mxu2  ;;  %v4147_v46 = vpop.f32.mrf.mxu1  ;;  %v10199_v7 = vadd.f32 %v12242_v19, %v6403_v27  ;;  %v10203_v5 = vadd.f32 %v12243_v52, %v6405_v31  ;;  %v2628_v4 = vmul.f32 0.7978846, %v2372_v18  ;;  %v1625_v34 = vmul.f32 %v10180_v16, %v10180_v16  ;;  %v12246_v18 = vld [vmem:[#allocation173_spill] sm:$0xff] }
 0x4a9   : > { %v4354_v35 = vadd.f32 %v4353_v12, %v4145_v43  ;;  %v3938_v59 = vpop.f32.mrf.mxu0  ;;  %v2627_v43 = vmul.f32 0.7978846, %v2371_v30  ;;  %v5662_v62 = vpop.eup %5661  ;;  %v3388_v13 = vmul.f32 0.5, %v3132_v15  ;;  %v2629_v9 = vmul.f32 0.7978846, %v2373_v49  ;;  %v12249_v52 = vld [vmem:[#allocation217_spill] sm:$0xff] }
 0x4aa   : > { %v5664_v51 = vpop.eup %5663  ;;  %v3643_v27 = vmul.f32 %v3387_v44, %v12217_v26  ;;  %v3389_v12 = vmul.f32 0.5, %v3133_v41  ;;  %v2376_v60 = vadd.f32 %v12247_v57, %v12246_v18  ;;  %v3135_v15 = vadd.f32 1.0, %v5660_v38 }
 0x4ab   : > { %v4563_v47 = vadd.f32 %v4562_v6, %v4354_v35  ;;  %4194 = vmatmul.f32.gmra.mxu1 %v3640_v42  ;;  %v2630_v6 = vmul.f32 0.7978846, %v2374_v50  ;;  %v12245_v35 = vld [vmem:[#allocation70_spill] sm:$0xff]  ;;  %v3390_v42 = vmul.f32 0.5, %v3134_v36  ;;  %5667 = vtanh.f32 %v2627_v43 }
 0x4ac   : > { %3985 = vmatmul.f32.gmra.mxu0 %v3639_v53  ;;  %4612 = vmatmul.f32.gmra.mxu3 %v3642_v37  ;;  %v2375_v31 = vadd.f32 %v12245_v35, %v12244_v33  ;;  %v4148_v53 = vadd.f32 %v4147_v46, %v3938_v59  ;;  %v3136_v49 = vadd.f32 1.0, %v5662_v62  ;;  %v3137_v37 = vadd.f32 1.0, %v5664_v51  ;;  %v12248_v59 = vld [vmem:[#allocation172_spill] sm:$0xff]  ;;  %v3717_v36 = vld [vmem:[%s5951_s7 + $0x130] sm:$0xff] }
 0x4ad   : > { %v4680_v30 = vadd.f32 %v4563_v47, %v3716_v11  ;;  %4403 = vmatmul.f32.gmra.mxu2 %v3641_v63  ;;  %v5666_v11 = vpop.eup %5665  ;;  %5669 = vtanh.f32 %v2628_v4  ;;  %v3644_v50 = vmul.f32 %v3388_v13, %v12219_v24  ;;  %v2377_v46 = vadd.f32 %v12248_v59, %v9806_v45 }
 0x4ae   : > { %5671 = vtanh.f32 %v2629_v9  ;;  %v3645_v43 = vmul.f32 %v3389_v12, %v12221_v14  ;;  %v2631_v19 = vmul.f32 0.7978846, %v2375_v31  ;;  %v3646_v4 = vmul.f32 %v3390_v42, %v12223_v28  ;;  %v12251_v31 = vld [vmem:[#allocation125_spill] sm:$0xff]  ;;  %v12252_v42 = vld [vmem:[#allocation110_spill] sm:$0xff] }
 0x4af   : > { %4744 = vst [vmem:[%s5951_s7 + $0x128] sm:$0xff] %v4680_v30  ;;  %v4565_v47 = vpop.f32.mrf.mxu3  ;;  %5673 = vtanh.f32 %v2630_v6  ;;  %v12250_v30 = vld [vmem:[#allocation127_spill] sm:$0xff]  ;;  %v3138_v51 = vadd.f32 1.0, %v5666_v11  ;;  %v2632_v35 = vmul.f32 0.7978846, %v2376_v60  ;;  %v1626_v24 = vmul.f32 %v10195_v21, %v10195_v21 }
 0x4b0   : > { %v4356_v63 = vpop.f32.mrf.mxu2  ;;  %v4150_v41 = vpop.f32.mrf.mxu1  ;;  %v2378_v38 = vadd.f32 %v12250_v30, %v12249_v52  ;;  %v3391_v13 = vmul.f32 0.5, %v3135_v15  ;;  %v3392_v9 = vmul.f32 0.5, %v3136_v49  ;;  %v10225_v12 = vmul.f32 %v10199_v7, %v10199_v7 }
 0x4b1   : > { %v4357_v26 = vadd.f32 %v4356_v63, %v4148_v53  ;;  %v3941_v44 = vpop.f32.mrf.mxu0  ;;  %v3393_v53 = vmul.f32 0.5, %v3137_v37  ;;  %v5668_v14 = vpop.eup %5667  ;;  %v2633_v28 = vmul.f32 0.7978846, %v2377_v46  ;;  %v2379_v57 = vadd.f32 %v12252_v42, %v12251_v31  ;;  %v12253_v37 = vld [vmem:[#allocation130_spill] sm:$0xff] }
 0x4b2   : > { %v10232_v11 = vmul.f32 %v10203_v5, %v10203_v5  ;;  %5675 = vtanh.f32 %v2631_v19  ;;  %v2634_v63 = vmul.f32 0.7978846, %v2378_v38  ;;  %v4151_v15 = vadd.f32 %v4150_v41, %v3941_v44  ;;  %v12255_v42 = vld [vmem:[#allocation162_spill] sm:$0xff] }
 0x4b3   : > { %v4566_v62 = vadd.f32 %v4565_v47, %v4357_v26  ;;  %4197 = vmatmul.f32.gmra.mxu1 %v3644_v50  ;;  %v5670_v60 = vpop.eup %5669  ;;  %v3394_v49 = vmul.f32 0.5, %v3138_v51  ;;  %5677 = vtanh.f32 %v2632_v35  ;;  %v12254_v26 = vld [vmem:[#allocation111_spill] sm:$0xff]  ;;  %v3649_v30 = vmul.f32 %v3393_v53, %v12229_v20 }
 0x4b4   : > { %3988 = vmatmul.f32.gmra.mxu0 %v3643_v27  ;;  %4615 = vmatmul.f32.gmra.mxu3 %v3646_v4  ;;  %v1881_v27 = vmul.f32 %v1625_v34, %v10180_v16  ;;  %v5672_v47 = vpop.eup %5671  ;;  %v2380_v50 = vadd.f32 %v12254_v26, %v12253_v37  ;;  %v3647_v34 = vmul.f32 %v3391_v13, %v12225_v56  ;;  %v3139_v19 = vadd.f32 1.0, %v5668_v14  ;;  %v3718_v51 = vld [vmem:[%s5951_s7 + $0x138] sm:$0xff] }
 0x4b5   : > { %v4681_v6 = vadd.f32 %v4566_v62, %v3717_v36  ;;  %4406 = vmatmul.f32.gmra.mxu2 %v3645_v43  ;;  %v5674_v59 = vpop.eup %5673  ;;  %v3648_v43 = vmul.f32 %v3392_v9, %v12227_v32  ;;  %5679 = vtanh.f32 %v2633_v28  ;;  %v2635_v44 = vmul.f32 0.7978846, %v2379_v57  ;;  %v12256_v57 = vld [vmem:[#allocation92_spill] sm:$0xff] }
 0x4b6   : > { %v2381_v41 = vadd.f32 %v9966_v10, %v9898_v0  ;;  %v3140_v35 = vadd.f32 1.0, %v5670_v60  ;;  %5681 = vtanh.f32 %v2634_v63  ;;  %v2382_v56 = vadd.f32 %v9968_v2, %v12255_v42 }
 0x4b7   : > { %4745 = vst [vmem:[%s5951_s7 + $0x130] sm:$0xff] %v4681_v6  ;;  %v4568_v36 = vpop.f32.mrf.mxu3  ;;  %v3141_v6 = vadd.f32 1.0, %v5672_v47  ;;  %v3650_v32 = vmul.f32 %v3394_v49, %v12231_v3  ;;  %v3142_v20 = vadd.f32 1.0, %v5674_v59  ;;  %v2636_v9 = vmul.f32 0.7978846, %v2380_v50  ;;  %v12257_v47 = vld [vmem:[#allocation72_spill] sm:$0xff] }
 0x4b8   : > { %v4359_v46 = vpop.f32.mrf.mxu2  ;;  %v4153_v4 = vpop.f32.mrf.mxu1  ;;  %v10246_v14 = vmul.f32 0.044715, %v1881_v27  ;;  %v1882_v28 = vmul.f32 %v1626_v24, %v10195_v21  ;;  %v10251_v10 = vadd.f32 %v12256_v57, %v6411_v8  ;;  %v3395_v60 = vmul.f32 0.5, %v3139_v19  ;;  %v12259_v49 = vld [vmem:[#allocation157_spill] sm:$0xff] }
 0x4b9   : > { %v4360_v38 = vadd.f32 %v4359_v46, %v4151_v15  ;;  %v3944_v62 = vpop.f32.mrf.mxu0  ;;  %v5676_v53 = vpop.eup %5675  ;;  %5683 = vtanh.f32 %v2635_v44  ;;  %v2637_v3 = vmul.f32 0.7978846, %v2381_v41  ;;  %v12258_v15 = vld [vmem:[#allocation12_spill] sm:$0xff]  ;;  %v10257_v24 = vadd.f32 %v12259_v49, %v6415_v23 }
 0x4ba   : > { %v5678_v63 = vpop.eup %5677  ;;  %v2383_v27 = vadd.f32 %v12258_v15, %v12257_v47  ;;  %v3396_v26 = vmul.f32 0.5, %v3140_v35  ;;  %v3397_v8 = vmul.f32 0.5, %v3141_v6  ;;  %v2638_v50 = vmul.f32 0.7978846, %v2382_v56 }
 0x4bb   : > { %v4569_v13 = vadd.f32 %v4568_v36, %v4360_v38  ;;  %4200 = vmatmul.f32.gmra.mxu1 %v3648_v43  ;;  %v5680_v59 = vpop.eup %5679  ;;  %v4154_v46 = vadd.f32 %v4153_v4, %v3944_v62  ;;  %v3398_v36 = vmul.f32 0.5, %v3142_v20  ;;  %5685 = vtanh.f32 %v2636_v9  ;;  %v12261_v43 = vld [vmem:[#allocation57_spill] sm:$0xff]  ;;  %v12262_v4 = vld [vmem:[#allocation163_spill] sm:$0xff]  ;;  %v3719_v20 = vld [vmem:[%s5951_s7 + $0x140] sm:$0xff] }
 0x4bc   : > { %3991 = vmatmul.f32.gmra.mxu0 %v3647_v34  ;;  %4618 = vmatmul.f32.gmra.mxu3 %v3650_v32  ;;  %v12260_v34 = vld [vmem:[#allocation11_spill] sm:$0xff]  ;;  %v5682_v19 = vpop.eup %5681  ;;  %v3651_v41 = vmul.f32 %v3395_v60, %v12233_v39  ;;  %v3144_v23 = vadd.f32 1.0, %v5678_v63  ;;  %v2385_v35 = vadd.f32 %v10058_v29, %v9990_v40  ;;  %5687 = vtanh.f32 %v2637_v3 }
 0x4bd   : > { %v4682_v2 = vadd.f32 %v4569_v13, %v3718_v51  ;;  %4409 = vmatmul.f32.gmra.mxu2 %v3649_v30  ;;  %v2384_v30 = vadd.f32 %v12261_v43, %v12260_v34  ;;  %v3143_v51 = vadd.f32 1.0, %v5676_v53  ;;  %v2639_v62 = vmul.f32 0.7978846, %v2383_v27 }
 0x4be   : > { %v2386_v32 = vadd.f32 %v10060_v1, %v12262_v4  ;;  %v3652_v9 = vmul.f32 %v3396_v26, %v12236_v48  ;;  %v3653_v57 = vmul.f32 %v3397_v8, %v12238_v25  ;;  %5689 = vtanh.f32 %v2638_v50 }
 0x4bf   : > { %4746 = vst [vmem:[%s5951_s7 + $0x138] sm:$0xff] %v4682_v2  ;;  %v4571_v44 = vpop.f32.mrf.mxu3  ;;  %v3145_v2 = vadd.f32 1.0, %v5680_v59  ;;  %v5684_v39 = vpop.eup %5683  ;;  %v3654_v60 = vmul.f32 %v3398_v36, %v12239_v55  ;;  %v3146_v29 = vadd.f32 1.0, %v5682_v19  ;;  %v2640_v63 = vmul.f32 0.7978846, %v2384_v30  ;;  %v12263_v36 = vld [vmem:[#allocation208_spill] sm:$0xff] }
 0x4c0   : > { %v4362_v38 = vpop.f32.mrf.mxu2  ;;  %v4156_v13 = vpop.f32.mrf.mxu1  ;;  %v10271_v15 = vmul.f32 0.044715, %v1882_v28  ;;  %v1883_v3 = vmul.f32 %v10225_v12, %v10199_v7  ;;  %v3399_v1 = vmul.f32 0.5, %v3143_v51  ;;  %v2641_v48 = vmul.f32 0.7978846, %v2385_v35  ;;  %v12264_v51 = vld [vmem:[#allocation197_spill] sm:$0xff] }
 0x4c1   : > { %v4363_v6 = vadd.f32 %v4362_v38, %v4154_v46  ;;  %v3947_v56 = vpop.f32.mrf.mxu0  ;;  %v5686_v27 = vpop.eup %5685  ;;  %v3400_v49 = vmul.f32 0.5, %v3144_v23  ;;  %5691 = vtanh.f32 %v2639_v62  ;;  %v2642_v26 = vmul.f32 0.7978846, %v2386_v32  ;;  %v12265_v23 = vld [vmem:[#allocation69_spill] sm:$0xff] }
 0x4c2   : > { %v1629_v55 = vmul.f32 %v10251_v10, %v10251_v10  ;;  %v1630_v28 = vmul.f32 %v10257_v24, %v10257_v24  ;;  %v3401_v8 = vmul.f32 0.5, %v3145_v2  ;;  %v3147_v12 = vadd.f32 1.0, %v5684_v39  ;;  %v5688_v50 = vpop.eup %5687 }
 0x4c3   : > { %v4572_v53 = vadd.f32 %v4571_v44, %v4363_v6  ;;  %4203 = vmatmul.f32.gmra.mxu1 %v3652_v9  ;;  %v4157_v59 = vadd.f32 %v4156_v13, %v3947_v56  ;;  %v3402_v46 = vmul.f32 0.5, %v3146_v29  ;;  %5693 = vtanh.f32 %v2640_v63  ;;  %v12266_v13 = vld [vmem:[#allocation73_spill] sm:$0xff] }
 0x4c4   : > { %3994 = vmatmul.f32.gmra.mxu0 %v3651_v41  ;;  %4621 = vmatmul.f32.gmra.mxu3 %v3654_v60  ;;  %v2387_v43 = vadd.f32 %v12263_v36, %v10012_v17  ;;  %v5690_v30 = vpop.eup %5689  ;;  %v3655_v44 = vmul.f32 %v3399_v1, %v12244_v33  ;;  %v3148_v41 = vadd.f32 1.0, %v5686_v27  ;;  %5695 = vtanh.f32 %v2641_v48  ;;  %v3720_v9 = vld [vmem:[%s5951_s7 + $0x148] sm:$0xff]  ;;  %v12267_v33 = vld [vmem:[#allocation168_spill] sm:$0xff] }
 0x4c5   : > { %v4683_v25 = vadd.f32 %v4572_v53, %v3719_v20  ;;  %4412 = vmatmul.f32.gmra.mxu2 %v3653_v57  ;;  %v2388_v35 = vadd.f32 %v12265_v23, %v12264_v51  ;;  %v3656_v56 = vmul.f32 %v3400_v49, %v12246_v18  ;;  %5697 = vtanh.f32 %v2642_v26 }
 0x4c6   : > { %v2389_v20 = vadd.f32 %v10167_v58, %v12266_v13  ;;  %v3657_v57 = vmul.f32 %v3401_v8, %v9806_v45  ;;  %v3403_v2 = vmul.f32 0.5, %v3147_v12  ;;  %v3149_v39 = vadd.f32 1.0, %v5688_v50 }
 0x4c7   : > { %4747 = vst [vmem:[%s5951_s7 + $0x140] sm:$0xff] %v4683_v25  ;;  %v4574_v38 = vpop.f32.mrf.mxu3  ;;  %v2390_v53 = vadd.f32 %v10169_v61, %v12267_v33  ;;  %v5692_v60 = vpop.eup %5691  ;;  %v3658_v63 = vmul.f32 %v3402_v46, %v12249_v52  ;;  %v3150_v1 = vadd.f32 1.0, %v5690_v30  ;;  %v2643_v48 = vmul.f32 0.7978846, %v2387_v43  ;;  %v12268_v43 = vld [vmem:[#allocation198_spill] sm:$0xff] }
 0x4c8   : > { %v4365_v19 = vpop.f32.mrf.mxu2  ;;  %v4159_v32 = vpop.f32.mrf.mxu1  ;;  %v10293_v27 = vmul.f32 0.044715, %v1883_v3  ;;  %v1884_v18 = vmul.f32 %v10232_v11, %v10203_v5  ;;  %v3404_v45 = vmul.f32 0.5, %v3148_v41  ;;  %v2644_v58 = vmul.f32 0.7978846, %v2388_v35 }
 0x4c9   : > { %v4366_v6 = vadd.f32 %v4365_v19, %v4157_v59  ;;  %v3950_v62 = vpop.f32.mrf.mxu0  ;;  %v5694_v25 = vpop.eup %5693  ;;  %v1885_v49 = vmul.f32 %v1629_v55, %v10251_v10  ;;  %v1886_v61 = vmul.f32 %v1630_v28, %v10257_v24  ;;  %v2645_v52 = vmul.f32 0.7978846, %v2389_v20 }
 0x4ca   : > { %v5696_v8 = vpop.eup %5695  ;;  %v3659_v3 = vmul.f32 %v3403_v2, %v12251_v31  ;;  %v3405_v12 = vmul.f32 0.5, %v3149_v39  ;;  %v3151_v50 = vadd.f32 1.0, %v5692_v60  ;;  %v2646_v11 = vmul.f32 0.7978846, %v2390_v53 }
 0x4cb   : > { %v4575_v29 = vadd.f32 %v4574_v38, %v4366_v6  ;;  %4206 = vmatmul.f32.gmra.mxu1 %v3656_v56  ;;  %v5698_v59 = vpop.eup %5697  ;;  %v4160_v46 = vadd.f32 %v4159_v32, %v3950_v62  ;;  %v3406_v36 = vmul.f32 0.5, %v3150_v1  ;;  %5699 = vtanh.f32 %v2643_v48  ;;  %v3721_v32 = vld [vmem:[%s5951_s7 + $0x150] sm:$0xff] }
 0x4cc   : > { %3997 = vmatmul.f32.gmra.mxu0 %v3655_v44  ;;  %4624 = vmatmul.f32.gmra.mxu3 %v3658_v63  ;;  %v2391_v55 = vadd.f32 %v10171_v22, %v12268_v43  ;;  %v3660_v19 = vmul.f32 %v3404_v45, %v12253_v37  ;;  %v3152_v38 = vadd.f32 1.0, %v5694_v25  ;;  %5701 = vtanh.f32 %v2644_v58  ;;  %v12269_v44 = vld [vmem:[#allocation14_spill] sm:$0xff] }
 0x4cd   : > { %v4684_v26 = vadd.f32 %v4575_v29, %v3720_v9  ;;  %4415 = vmatmul.f32.gmra.mxu2 %v3657_v57  ;;  %v2392_v31 = vadd.f32 %v10173_v54, %v12269_v44  ;;  %v3153_v6 = vadd.f32 1.0, %v5696_v8  ;;  %5703 = vtanh.f32 %v2645_v52 }
 0x4ce   : > { %v2393_v62 = vadd.f32 %v10246_v14, %v10180_v16  ;;  %v3661_v22 = vmul.f32 %v3405_v12, %v9898_v0  ;;  %v3154_v56 = vadd.f32 1.0, %v5698_v59  ;;  %5705 = vtanh.f32 %v2646_v11 }
 0x4cf   : > { %4748 = vst [vmem:[%s5951_s7 + $0x148] sm:$0xff] %v4684_v26  ;;  %v4577_v30 = vpop.f32.mrf.mxu3  ;;  %v2394_v37 = vadd.f32 %v10271_v15, %v10195_v21  ;;  %v3662_v9 = vmul.f32 %v3406_v36, %v12255_v42  ;;  %v3407_v54 = vmul.f32 0.5, %v3151_v50  ;;  %v2647_v57 = vmul.f32 0.7978846, %v2391_v55 }
 0x4d0   : > { %v4368_v28 = vpop.f32.mrf.mxu2  ;;  %v4162_v35 = vpop.f32.mrf.mxu1  ;;  %v2140_v2 = vmul.f32 0.044715, %v1884_v18  ;;  %v3408_v39 = vmul.f32 0.5, %v3152_v38  ;;  %v2648_v53 = vmul.f32 0.7978846, %v2392_v31  ;;  %v3409_v0 = vmul.f32 0.5, %v3153_v6 }
 0x4d1   : > { %v4369_v41 = vadd.f32 %v4368_v28, %v4160_v46  ;;  %v3953_v23 = vpop.f32.mrf.mxu0  ;;  %v5700_v14 = vpop.eup %5699  ;;  %v2141_v60 = vmul.f32 0.044715, %v1885_v49  ;;  %v2649_v63 = vmul.f32 0.7978846, %v2393_v62  ;;  %v2142_v15 = vmul.f32 0.044715, %v1886_v61 }
 0x4d2   : > { %v5702_v1 = vpop.eup %5701  ;;  %v3410_v48 = vmul.f32 0.5, %v3154_v56  ;;  %v2650_v45 = vmul.f32 0.7978846, %v2394_v37  ;;  %v4163_v58 = vadd.f32 %v4162_v35, %v3953_v23  ;;  %v3663_v18 = vmul.f32 %v3407_v54, %v12257_v47  ;;  %v3722_v46 = vld [vmem:[%s5951_s7 + $0x158] sm:$0xff] }
 0x4d3   : > { %v4578_v20 = vadd.f32 %v4577_v30, %v4369_v41  ;;  %4209 = vmatmul.f32.gmra.mxu1 %v3660_v19  ;;  %v5704_v42 = vpop.eup %5703  ;;  %5707 = vtanh.f32 %v2647_v57  ;;  %v2395_v25 = vadd.f32 %v10293_v27, %v10199_v7  ;;  %v3664_v8 = vmul.f32 %v3408_v39, %v12260_v34 }
 0x4d4   : > { %4000 = vmatmul.f32.gmra.mxu0 %v3659_v3  ;;  %4627 = vmatmul.f32.gmra.mxu3 %v3662_v9  ;;  %v5706_v49 = vpop.eup %5705  ;;  %v3155_v3 = vadd.f32 1.0, %v5700_v14  ;;  %5709 = vtanh.f32 %v2648_v53  ;;  %v2396_v61 = vadd.f32 %v2140_v2, %v10203_v5  ;;  %v3665_v59 = vmul.f32 %v3409_v0, %v9990_v40  ;;  %v3723_v14 = vld [vmem:[%s5951_s7 + $0x160] sm:$0xff] }
 0x4d5   : > { %v4685_v29 = vadd.f32 %v4578_v20, %v3721_v32  ;;  %4418 = vmatmul.f32.gmra.mxu2 %v3661_v22  ;;  %5711 = vtanh.f32 %v2649_v63  ;;  %v2397_v47 = vadd.f32 %v2141_v60, %v10251_v10  ;;  %v3666_v27 = vmul.f32 %v3410_v48, %v12262_v4 }
 0x4d6   : > { %v3156_v36 = vadd.f32 1.0, %v5702_v1  ;;  %5713 = vtanh.f32 %v2650_v45  ;;  %v2398_v55 = vadd.f32 %v2142_v15, %v10257_v24  ;;  %v3157_v28 = vadd.f32 1.0, %v5704_v42 }
 0x4d7   : > { %4749 = vst [vmem:[%s5951_s7 + $0x150] sm:$0xff] %v4685_v29  ;;  %v4580_v52 = vpop.f32.mrf.mxu3  ;;  %v3158_v30 = vadd.f32 1.0, %v5706_v49  ;;  %v2651_v19 = vmul.f32 0.7978846, %v2395_v25  ;;  %v2652_v38 = vmul.f32 0.7978846, %v2396_v61 }
 0x4d8   : > { %v4371_v26 = vpop.f32.mrf.mxu2  ;;  %v4165_v11 = vpop.f32.mrf.mxu1  ;;  %v3411_v41 = vmul.f32 0.5, %v3155_v3  ;;  %v2653_v23 = vmul.f32 0.7978846, %v2397_v47  ;;  %v3412_v4 = vmul.f32 0.5, %v3156_v36  ;;  %v2654_v6 = vmul.f32 0.7978846, %v2398_v55 }
 0x4d9   : > { %v4372_v12 = vadd.f32 %v4371_v26, %v4163_v58  ;;  %v3956_v50 = vpop.f32.mrf.mxu0  ;;  %v5708_v31 = vpop.eup %5707  ;;  %v3413_v22 = vmul.f32 0.5, %v3157_v28  ;;  %v3414_v56 = vmul.f32 0.5, %v3158_v30  ;;  %5715 = vtanh.f32 %v2651_v19 }
 0x4da   : > { %v5710_v35 = vpop.eup %5709  ;;  %v4166_v32 = vadd.f32 %v4165_v11, %v3956_v50  ;;  %5717 = vtanh.f32 %v2652_v38  ;;  %v3667_v39 = vmul.f32 %v3411_v41, %v10012_v17  ;;  %v3159_v53 = vadd.f32 1.0, %v5708_v31  ;;  %v3724_v50 = vld [vmem:[%s5951_s7 + $0x168] sm:$0xff] }
 0x4db   : > { %v4581_v34 = vadd.f32 %v4580_v52, %v4372_v12  ;;  %4212 = vmatmul.f32.gmra.mxu1 %v3664_v8  ;;  %v5712_v62 = vpop.eup %5711  ;;  %5719 = vtanh.f32 %v2653_v23  ;;  %v3668_v60 = vmul.f32 %v3412_v4, %v12264_v51  ;;  %v3160_v29 = vadd.f32 1.0, %v5710_v35  ;;  %v3725_v23 = vld [vmem:[%s5951_s7 + $0x170] sm:$0xff] }
 0x4dc   : > { %4003 = vmatmul.f32.gmra.mxu0 %v3663_v18  ;;  %4630 = vmatmul.f32.gmra.mxu3 %v3666_v27  ;;  %v5714_v37 = vpop.eup %5713  ;;  %v3161_v0 = vadd.f32 1.0, %v5712_v62  ;;  %5721 = vtanh.f32 %v2654_v6  ;;  %v3669_v1 = vmul.f32 %v3413_v22, %v12266_v13  ;;  %v3670_v15 = vmul.f32 %v3414_v56, %v12267_v33 }
 0x4dd   : > { %v4686_v40 = vadd.f32 %v4581_v34, %v3722_v46  ;;  %4421 = vmatmul.f32.gmra.mxu2 %v3665_v59  ;;  %v3162_v48 = vadd.f32 1.0, %v5714_v37  ;;  %v3415_v17 = vmul.f32 0.5, %v3159_v53  ;;  %v3416_v51 = vmul.f32 0.5, %v3160_v29  ;;  %v3727_v29 = vld [vmem:[%s5951_s7 + $0x180] sm:$0xff] }
 0x4de   : > { %v3417_v18 = vmul.f32 0.5, %v3161_v0 }
 0x4df   : > { %4750 = vst [vmem:[%s5951_s7 + $0x158] sm:$0xff] %v4686_v40  ;;  %v4583_v9 = vpop.f32.mrf.mxu3  ;;  %v5716_v45 = vpop.eup %5715  ;;  %v3418_v26 = vmul.f32 0.5, %v3162_v48  ;;  %v3671_v12 = vmul.f32 %v3415_v17, %v12268_v43  ;;  %v3672_v11 = vmul.f32 %v3416_v51, %v12269_v44 }
 0x4e0   : > { %v4374_v20 = vpop.f32.mrf.mxu2  ;;  %v4168_v2 = vpop.f32.mrf.mxu1  ;;  %v3673_v59 = vmul.f32 %v3417_v18, %v10180_v16  ;;  %v3163_v47 = vadd.f32 1.0, %v5716_v45 }
 0x4e1   : > { %v4375_v54 = vadd.f32 %v4374_v20, %v4166_v32  ;;  %v3959_v57 = vpop.f32.mrf.mxu0  ;;  %v5718_v58 = vpop.eup %5717  ;;  %v3674_v36 = vmul.f32 %v3418_v26, %v10195_v21 }
 0x4e2   : > { %v5720_v25 = vpop.eup %5719  ;;  %v4169_v49 = vadd.f32 %v4168_v2, %v3959_v57  ;;  %v3164_v46 = vadd.f32 1.0, %v5718_v58  ;;  %v3419_v43 = vmul.f32 0.5, %v3163_v47  ;;  %v3728_v58 = vld [vmem:[%s5951_s7 + $0x188] sm:$0xff] }
 0x4e3   : > { %v4584_v63 = vadd.f32 %v4583_v9, %v4375_v54  ;;  %4215 = vmatmul.f32.gmra.mxu1 %v3668_v60  ;;  %v5722_v52 = vpop.eup %5721  ;;  %v3165_v55 = vadd.f32 1.0, %v5720_v25  ;;  %v3726_v54 = vld [vmem:[%s5951_s7 + $0x178] sm:$0xff] }
 0x4e4   : > { %4006 = vmatmul.f32.gmra.mxu0 %v3667_v39  ;;  %4633 = vmatmul.f32.gmra.mxu3 %v3670_v15  ;;  %v3166_v34 = vadd.f32 1.0, %v5722_v52  ;;  %v3420_v30 = vmul.f32 0.5, %v3164_v46  ;;  %v3675_v35 = vmul.f32 %v3419_v43, %v10199_v7 }
 0x4e5   : > { %v4687_v42 = vadd.f32 %v4584_v63, %v3723_v14  ;;  %4424 = vmatmul.f32.gmra.mxu2 %v3669_v1  ;;  %v3421_v44 = vmul.f32 0.5, %v3165_v55 }
 0x4e6   : > { %v3422_v38 = vmul.f32 0.5, %v3166_v34  ;;  %v3676_v4 = vmul.f32 %v3420_v30, %v10203_v5 }
 0x4e7   : > { %4751 = vst [vmem:[%s5951_s7 + $0x160] sm:$0xff] %v4687_v42  ;;  %v4586_v8 = vpop.f32.mrf.mxu3  ;;  %v3677_v62 = vmul.f32 %v3421_v44, %v10251_v10 }
 0x4e8   : > { %v4377_v13 = vpop.f32.mrf.mxu2  ;;  %v4171_v61 = vpop.f32.mrf.mxu1  ;;  %v3678_v32 = vmul.f32 %v3422_v38, %v10257_v24  ;;  %v3731_v38 = vld [vmem:[%s5951_s7 + $0x1a0] sm:$0xff] }
 0x4e9   : > { %v4378_v33 = vadd.f32 %v4377_v13, %v4169_v49  ;;  %v3962_v3 = vpop.f32.mrf.mxu0 }
 0x4ea   : > { %v4172_v19 = vadd.f32 %v4171_v61, %v3962_v3 }
 0x4eb   : > { %v4587_v27 = vadd.f32 %v4586_v8, %v4378_v33  ;;  %4218 = vmatmul.f32.gmra.mxu1 %v3672_v11  ;;  %v3729_v33 = vld [vmem:[%s5951_s7 + $0x190] sm:$0xff] }
 0x4ec   : > { %4009 = vmatmul.f32.gmra.mxu0 %v3671_v12  ;;  %4636 = vmatmul.f32.gmra.mxu3 %v3674_v36 }
 0x4ed   : > { %v4688_v28 = vadd.f32 %v4587_v27, %v3724_v50  ;;  %4427 = vmatmul.f32.gmra.mxu2 %v3673_v59  ;;  %v3730_v27 = vld [vmem:[%s5951_s7 + $0x198] sm:$0xff] }
 0x4ef   : > { %4752 = vst [vmem:[%s5951_s7 + $0x168] sm:$0xff] %v4688_v28  ;;  %v4589_v31 = vpop.f32.mrf.mxu3 }
 0x4f0   : > { %v4380_v16 = vpop.f32.mrf.mxu2  ;;  %v4174_v21 = vpop.f32.mrf.mxu1 }
 0x4f1   : > { %v4381_v40 = vadd.f32 %v4380_v16, %v4172_v19  ;;  %v3965_v41 = vpop.f32.mrf.mxu0 }
 0x4f2   : > { %v4175_v56 = vadd.f32 %v4174_v21, %v3965_v41 }
 0x4f3   : > { %v4590_v6 = vadd.f32 %v4589_v31, %v4381_v40  ;;  %4221 = vmatmul.f32.gmra.mxu1 %v3676_v4 }
 0x4f4   : > { %4012 = vmatmul.f32.gmra.mxu0 %v3675_v35  ;;  %4639 = vmatmul.f32.gmra.mxu3 %v3678_v32 }
 0x4f5   : > { %v4689_v22 = vadd.f32 %v4590_v6, %v3725_v23  ;;  %4430 = vmatmul.f32.gmra.mxu2 %v3677_v62  ;;  %v3732_v6 = vld [vmem:[%s5951_s7 + $0x1a8] sm:$0xff] }
 0x4f7   : > { %4753 = vst [vmem:[%s5951_s7 + $0x170] sm:$0xff] %v4689_v22  ;;  %v4592_v20 = vpop.f32.mrf.mxu3 }
 0x4f8   : > { %v4383_v37 = vpop.f32.mrf.mxu2  ;;  %v4177_v9 = vpop.f32.mrf.mxu1 }
 0x4f9   : > { %v4384_v7 = vadd.f32 %v4383_v37, %v4175_v56  ;;  %v3968_v5 = vpop.f32.mrf.mxu0 }
 0x4fa   : > { %v4178_v24 = vadd.f32 %v4177_v9, %v3968_v5  ;;  %v3733_v9 = vld [vmem:[%s5951_s7 + $0x1b0] sm:$0xff] }
 0x4fb   : > { %v4593_v57 = vadd.f32 %v4592_v20, %v4384_v7 }
 0x4fd   : > { %v4690_v10 = vadd.f32 %v4593_v57, %v3726_v54 }
 0x4ff   : > { %4754 = vst [vmem:[%s5951_s7 + $0x178] sm:$0xff] %v4690_v10  ;;  %v4595_v39 = vpop.f32.mrf.mxu3 }
 0x500   : > { %v4386_v2 = vpop.f32.mrf.mxu2  ;;  %v4180_v60 = vpop.f32.mrf.mxu1 }
 0x501   : > { %v4387_v53 = vadd.f32 %v4386_v2, %v4178_v24  ;;  %v3971_v14 = vpop.f32.mrf.mxu0 }
 0x502   : > { %v4181_v1 = vadd.f32 %v4180_v60, %v3971_v14  ;;  %v3734_v60 = vld [vmem:[%s5951_s7 + $0x1b8] sm:$0xff] }
 0x503   : > { %v4596_v0 = vadd.f32 %v4595_v39, %v4387_v53 }
 0x505   : > { %v4691_v63 = vadd.f32 %v4596_v0, %v3727_v29 }
 0x507   : > { %4755 = vst [vmem:[%s5951_s7 + $0x180] sm:$0xff] %v4691_v63  ;;  %v4598_v48 = vpop.f32.mrf.mxu3 }
 0x508   : > { %v4389_v15 = vpop.f32.mrf.mxu2  ;;  %v4183_v17 = vpop.f32.mrf.mxu1 }
 0x509   : > { %v4390_v45 = vadd.f32 %v4389_v15, %v4181_v1  ;;  %v3974_v42 = vpop.f32.mrf.mxu0 }
 0x50a   : > { %v4184_v25 = vadd.f32 %v4183_v17, %v3974_v42  ;;  %v3735_v17 = vld [vmem:[%s5951_s7 + $0x1c0] sm:$0xff] }
 0x50b   : > { %v4599_v51 = vadd.f32 %v4598_v48, %v4390_v45 }
 0x50d   : > { %v4692_v18 = vadd.f32 %v4599_v51, %v3728_v58 }
 0x50f   : > { %4756 = vst [vmem:[%s5951_s7 + $0x188] sm:$0xff] %v4692_v18  ;;  %v4601_v26 = vpop.f32.mrf.mxu3 }
 0x510   : > { %v4392_v49 = vpop.f32.mrf.mxu2  ;;  %v4186_v8 = vpop.f32.mrf.mxu1 }
 0x511   : > { %v4393_v52 = vadd.f32 %v4392_v49, %v4184_v25  ;;  %v3977_v13 = vpop.f32.mrf.mxu0 }
 0x512   : > { %v4187_v12 = vadd.f32 %v4186_v8, %v3977_v13  ;;  %v3736_v8 = vld [vmem:[%s5951_s7 + $0x1c8] sm:$0xff] }
 0x513   : > { %v4602_v3 = vadd.f32 %v4601_v26, %v4393_v52 }
 0x515   : > { %v4693_v61 = vadd.f32 %v4602_v3, %v3729_v33 }
 0x517   : > { %4757 = vst [vmem:[%s5951_s7 + $0x190] sm:$0xff] %v4693_v61  ;;  %v4604_v11 = vpop.f32.mrf.mxu3 }
 0x518   : > { %v4395_v50 = vpop.f32.mrf.mxu2  ;;  %v4189_v46 = vpop.f32.mrf.mxu1 }
 0x519   : > { %v4396_v59 = vadd.f32 %v4395_v50, %v4187_v12  ;;  %v3980_v47 = vpop.f32.mrf.mxu0 }
 0x51a   : > { %v4190_v34 = vadd.f32 %v4189_v46, %v3980_v47  ;;  %v3737_v46 = vld [vmem:[%s5951_s7 + $0x1d0] sm:$0xff] }
 0x51b   : > { %v4605_v36 = vadd.f32 %v4604_v11, %v4396_v59 }
 0x51d   : > { %v4694_v55 = vadd.f32 %v4605_v36, %v3730_v27 }
 0x51f   : > { %4758 = vst [vmem:[%s5951_s7 + $0x198] sm:$0xff] %v4694_v55  ;;  %v4607_v43 = vpop.f32.mrf.mxu3 }
 0x520   : > { %v4398_v28 = vpop.f32.mrf.mxu2  ;;  %v4192_v44 = vpop.f32.mrf.mxu1 }
 0x521   : > { %v4399_v30 = vadd.f32 %v4398_v28, %v4190_v34  ;;  %v3983_v19 = vpop.f32.mrf.mxu0 }
 0x522   : > { %v4193_v40 = vadd.f32 %v4192_v44, %v3983_v19  ;;  %v3738_v44 = vld [vmem:[%s5951_s7 + $0x1d8] sm:$0xff] }
 0x523   : > { %v4608_v16 = vadd.f32 %v4607_v43, %v4399_v30 }
 0x525   : > { %v4695_v31 = vadd.f32 %v4608_v16, %v3731_v38 }
 0x527   : > { %4759 = vst [vmem:[%s5951_s7 + $0x1a0] sm:$0xff] %v4695_v31  ;;  %v4610_v21 = vpop.f32.mrf.mxu3 }
 0x528   : > { %v4401_v41 = vpop.f32.mrf.mxu2  ;;  %v4195_v4 = vpop.f32.mrf.mxu1 }
 0x529   : > { %v4402_v23 = vadd.f32 %v4401_v41, %v4193_v40  ;;  %v3986_v35 = vpop.f32.mrf.mxu0 }
 0x52a   : > { %v4196_v22 = vadd.f32 %v4195_v4, %v3986_v35  ;;  %v3739_v4 = vld [vmem:[%s5951_s7 + $0x1e0] sm:$0xff] }
 0x52b   : > { %v4611_v62 = vadd.f32 %v4610_v21, %v4402_v23 }
 0x52d   : > { %v4696_v32 = vadd.f32 %v4611_v62, %v3732_v6 }
 0x52f   : > { %4760 = vst [vmem:[%s5951_s7 + $0x1a8] sm:$0xff] %v4696_v32  ;;  %v4613_v37 = vpop.f32.mrf.mxu3 }
 0x530   : > { %v4404_v56 = vpop.f32.mrf.mxu2  ;;  %v4198_v5 = vpop.f32.mrf.mxu1 }
 0x531   : > { %v4405_v20 = vadd.f32 %v4404_v56, %v4196_v22  ;;  %v3989_v7 = vpop.f32.mrf.mxu0 }
 0x532   : > { %v4199_v10 = vadd.f32 %v4198_v5, %v3989_v7 }
 0x533   : > { %v4614_v54 = vadd.f32 %v4613_v37, %v4405_v20  ;;  %v3740_v20 = vld [vmem:[%s5951_s7 + $0x1e8] sm:$0xff] }
 0x535   : > { %v4697_v57 = vadd.f32 %v4614_v54, %v3733_v9 }
 0x537   : > { %4761 = vst [vmem:[%s5951_s7 + $0x1b0] sm:$0xff] %v4697_v57  ;;  %v4616_v2 = vpop.f32.mrf.mxu3 }
 0x538   : > { %v4407_v24 = vpop.f32.mrf.mxu2  ;;  %v4201_v14 = vpop.f32.mrf.mxu1 }
 0x539   : > { %v4408_v39 = vadd.f32 %v4407_v24, %v4199_v10  ;;  %v3992_v53 = vpop.f32.mrf.mxu0 }
 0x53a   : > { %v4202_v63 = vadd.f32 %v4201_v14, %v3992_v53 }
 0x53b   : > { %v4617_v29 = vadd.f32 %v4616_v2, %v4408_v39  ;;  %v3741_v39 = vld [vmem:[%s5951_s7 + $0x1f0] sm:$0xff] }
 0x53d   : > { %v4698_v0 = vadd.f32 %v4617_v29, %v3734_v60 }
 0x53f   : > { %4762 = vst [vmem:[%s5951_s7 + $0x1b8] sm:$0xff] %v4698_v0  ;;  %v4619_v15 = vpop.f32.mrf.mxu3 }
 0x540   : > { %v4410_v1 = vpop.f32.mrf.mxu2  ;;  %v4204_v42 = vpop.f32.mrf.mxu1 }
 0x541   : > { %v4411_v48 = vadd.f32 %v4410_v1, %v4202_v63  ;;  %v3995_v45 = vpop.f32.mrf.mxu0 }
 0x542   : > { %v4205_v18 = vadd.f32 %v4204_v42, %v3995_v45 }
 0x543   : > { %v4620_v58 = vadd.f32 %v4619_v15, %v4411_v48  ;;  %v3742_v15 = vld [vmem:[%s5951_s7 + $0x1f8] sm:$0xff] }
 0x545   : > { %v4699_v51 = vadd.f32 %v4620_v58, %v3735_v17 }
 0x547   : > { %4763 = vst [vmem:[%s5951_s7 + $0x1c0] sm:$0xff] %v4699_v51  ;;  %v4622_v49 = vpop.f32.mrf.mxu3 }
 0x548   : > { %v4413_v25 = vpop.f32.mrf.mxu2  ;;  %v4207_v13 = vpop.f32.mrf.mxu1 }
 0x549   : > { %v4414_v26 = vadd.f32 %v4413_v25, %v4205_v18  ;;  %v3998_v52 = vpop.f32.mrf.mxu0 }
 0x54a   : > { %v4208_v61 = vadd.f32 %v4207_v13, %v3998_v52 }
 0x54b   : > { %v4623_v33 = vadd.f32 %v4622_v49, %v4414_v26 }
 0x54d   : > { %v4700_v3 = vadd.f32 %v4623_v33, %v3736_v8 }
 0x54f   : > { %4764 = vst [vmem:[%s5951_s7 + $0x1c8] sm:$0xff] %v4700_v3  ;;  %v4625_v50 = vpop.f32.mrf.mxu3 }
 0x550   : > { %v4416_v12 = vpop.f32.mrf.mxu2  ;;  %v4210_v47 = vpop.f32.mrf.mxu1 }
 0x551   : > { %v4417_v11 = vadd.f32 %v4416_v12, %v4208_v61  ;;  %v4001_v59 = vpop.f32.mrf.mxu0 }
 0x552   : > { %v4211_v55 = vadd.f32 %v4210_v47, %v4001_v59 }
 0x553   : > { %v4626_v27 = vadd.f32 %v4625_v50, %v4417_v11 }
 0x555   : > { %v4701_v36 = vadd.f32 %v4626_v27, %v3737_v46 }
 0x557   : > { %4765 = vst [vmem:[%s5951_s7 + $0x1d0] sm:$0xff] %v4701_v36  ;;  %v4628_v28 = vpop.f32.mrf.mxu3 }
 0x558   : > { %v4419_v34 = vpop.f32.mrf.mxu2  ;;  %v4213_v19 = vpop.f32.mrf.mxu1 }
 0x559   : > { %v4420_v43 = vadd.f32 %v4419_v34, %v4211_v55  ;;  %v4004_v30 = vpop.f32.mrf.mxu0 }
 0x55a   : > { %v4214_v31 = vadd.f32 %v4213_v19, %v4004_v30 }
 0x55b   : > { %v4629_v38 = vadd.f32 %v4628_v28, %v4420_v43 }
 0x55d   : > { %v4702_v16 = vadd.f32 %v4629_v38, %v3738_v44 }
 0x55f   : > { %4766 = vst [vmem:[%s5951_s7 + $0x1d8] sm:$0xff] %v4702_v16  ;;  %v4631_v41 = vpop.f32.mrf.mxu3 }
 0x560   : > { %v4422_v40 = vpop.f32.mrf.mxu2  ;;  %v4216_v35 = vpop.f32.mrf.mxu1 }
 0x561   : > { %v4423_v21 = vadd.f32 %v4422_v40, %v4214_v31  ;;  %v4007_v23 = vpop.f32.mrf.mxu0 }
 0x562   : > { %v4217_v32 = vadd.f32 %v4216_v35, %v4007_v23 }
 0x563   : > { %v4632_v6 = vadd.f32 %v4631_v41, %v4423_v21 }
 0x565   : > { %v4703_v62 = vadd.f32 %v4632_v6, %v3739_v4 }
 0x567   : > { %4767 = vst [vmem:[%s5951_s7 + $0x1e0] sm:$0xff] %v4703_v62  ;;  %v4634_v56 = vpop.f32.mrf.mxu3 }
 0x568   : > { %v4425_v22 = vpop.f32.mrf.mxu2  ;;  %v4219_v5 = vpop.f32.mrf.mxu1 }
 0x569   : > { %v4426_v37 = vadd.f32 %v4425_v22, %v4217_v32  ;;  %v4010_v7 = vpop.f32.mrf.mxu0 }
 0x56a   : > { %v4220_v57 = vadd.f32 %v4219_v5, %v4010_v7 }
 0x56b   : > { %v4635_v9 = vadd.f32 %v4634_v56, %v4426_v37 }
 0x56d   : > { %v4704_v54 = vadd.f32 %v4635_v9, %v3740_v20 }
 0x56f   : > { %4768 = vst [vmem:[%s5951_s7 + $0x1e8] sm:$0xff] %v4704_v54  ;;  %v4637_v24 = vpop.f32.mrf.mxu3 }
 0x570   : > { %v4428_v10 = vpop.f32.mrf.mxu2  ;;  %v4222_v60 = vpop.f32.mrf.mxu1 }
 0x571   : > { %v4429_v2 = vadd.f32 %v4428_v10, %v4220_v57  ;;  %v4013_v14 = vpop.f32.mrf.mxu0 }
 0x572   : > { %v4223_v0 = vadd.f32 %v4222_v60, %v4013_v14 }
 0x573   : > { %v4638_v53 = vadd.f32 %v4637_v24, %v4429_v2 }
 0x575   : > { %v4705_v29 = vadd.f32 %v4638_v53, %v3741_v39 }
 0x577   : > { %4769 = vst [vmem:[%s5951_s7 + $0x1f0] sm:$0xff] %v4705_v29  ;;  %v4640_v48 = vpop.f32.mrf.mxu3 }
 0x578   : > { %v4431_v63 = vpop.f32.mrf.mxu2 }
 0x579   : > { %v4432_v1 = vadd.f32 %v4431_v63, %v4223_v0 }
 0x57b   : > { %v4641_v45 = vadd.f32 %v4640_v48, %v4432_v1  ;;  %4774 = sbr.rel (%p5129_p4) target bundleno = 1476 (0x5c4), region = 48 }
 0x57d   : > { %v4706_v42 = vadd.f32 %v4641_v45, %v3742_v15 }
 0x57f   : > { %4770 = vst [vmem:[%s5951_s7 + $0x1f8] sm:$0xff] %v4706_v42 }
 0x580   : > { %v4775_v17 = vld [vmem:[%s5951_s7] sm:$0xff]  ;;  %v4776_v51 = vld [vmem:[%s5951_s7 + $0x8] sm:$0xff]  ;;  %v4777_v18 = vld [vmem:[%s5951_s7 + $0x10] sm:$0xff] }
 0x581   : > { %v10382_v58 = vld [vmem:[%s10624_s4] ss:$0 sm:$0xff]  ;;  %v4778_v25 = vld [vmem:[%s5951_s7 + $0x18] sm:$0xff]  ;;  %v4780_v8 = vld [vmem:[%s5951_s7 + $0x28] sm:$0xff] }
 0x582   : > { %v4843_v49 = vadd.f32 %v10382_v58, %v4775_v17  ;;  %v4844_v26 = vadd.f32 %v10382_v58, %v4776_v51  ;;  %v4845_v52 = vadd.f32 %v10382_v58, %v4777_v18  ;;  %v4779_v13 = vld [vmem:[%s5951_s7 + $0x20] sm:$0xff]  ;;  %v4846_v33 = vadd.f32 %v10382_v58, %v4778_v25  ;;  %v4781_v3 = vld [vmem:[%s5951_s7 + $0x30] sm:$0xff]  ;;  %v4782_v12 = vld [vmem:[%s5951_s7 + $0x38] sm:$0xff] }
 0x583   : > { %v4847_v61 = vadd.f32 %v10382_v58, %v4779_v13  ;;  %v4848_v50 = vadd.f32 %v10382_v58, %v4780_v8  ;;  %v4783_v11 = vld [vmem:[%s5951_s7 + $0x40] sm:$0xff]  ;;  %v4849_v59 = vadd.f32 %v10382_v58, %v4781_v3  ;;  %v4784_v47 = vld [vmem:[%s5951_s7 + $0x48] sm:$0xff]  ;;  %v4850_v46 = vadd.f32 %v10382_v58, %v4782_v12  ;;  %v4785_v27 = vld [vmem:[%s5951_s7 + $0x50] sm:$0xff] }
 0x584   : > { %4907 = vst [vmem:[%s5951_s7] sm:$0xff] %v4843_v49  ;;  %v4851_v36 = vadd.f32 %v10382_v58, %v4783_v11  ;;  %v4786_v55 = vld [vmem:[%s5951_s7 + $0x58] sm:$0xff]  ;;  %v4852_v34 = vadd.f32 %v10382_v58, %v4784_v47  ;;  %v4787_v28 = vld [vmem:[%s5951_s7 + $0x60] sm:$0xff]  ;;  %v4853_v43 = vadd.f32 %v10382_v58, %v4785_v27  ;;  %v4788_v30 = vld [vmem:[%s5951_s7 + $0x68] sm:$0xff] }
 0x585   : > { %4908 = vst [vmem:[%s5951_s7 + $0x8] sm:$0xff] %v4844_v26  ;;  %v4854_v19 = vadd.f32 %v10382_v58, %v4786_v55  ;;  %v4789_v44 = vld [vmem:[%s5951_s7 + $0x70] sm:$0xff]  ;;  %v4855_v38 = vadd.f32 %v10382_v58, %v4787_v28  ;;  %v4790_v16 = vld [vmem:[%s5951_s7 + $0x78] sm:$0xff]  ;;  %v4856_v31 = vadd.f32 %v10382_v58, %v4788_v30  ;;  %v4791_v40 = vld [vmem:[%s5951_s7 + $0x80] sm:$0xff] }
 0x586   : > { %4909 = vst [vmem:[%s5951_s7 + $0x10] sm:$0xff] %v4845_v52  ;;  %v4857_v41 = vadd.f32 %v10382_v58, %v4789_v44  ;;  %v4792_v21 = vld [vmem:[%s5951_s7 + $0x88] sm:$0xff]  ;;  %v4858_v23 = vadd.f32 %v10382_v58, %v4790_v16  ;;  %v4793_v35 = vld [vmem:[%s5951_s7 + $0x90] sm:$0xff]  ;;  %v4859_v4 = vadd.f32 %v10382_v58, %v4791_v40  ;;  %v4794_v6 = vld [vmem:[%s5951_s7 + $0x98] sm:$0xff] }
 0x587   : > { %4910 = vst [vmem:[%s5951_s7 + $0x18] sm:$0xff] %v4846_v33  ;;  %v4860_v62 = vadd.f32 %v10382_v58, %v4792_v21  ;;  %v4795_v32 = vld [vmem:[%s5951_s7 + $0xa0] sm:$0xff]  ;;  %v4861_v22 = vadd.f32 %v10382_v58, %v4793_v35  ;;  %v4796_v56 = vld [vmem:[%s5951_s7 + $0xa8] sm:$0xff]  ;;  %v4862_v37 = vadd.f32 %v10382_v58, %v4794_v6  ;;  %v4797_v20 = vld [vmem:[%s5951_s7 + $0xb0] sm:$0xff] }
 0x588   : > { %4911 = vst [vmem:[%s5951_s7 + $0x20] sm:$0xff] %v4847_v61  ;;  %v4863_v7 = vadd.f32 %v10382_v58, %v4795_v32  ;;  %v4798_v5 = vld [vmem:[%s5951_s7 + $0xb8] sm:$0xff]  ;;  %v4864_v9 = vadd.f32 %v10382_v58, %v4796_v56  ;;  %v4799_v54 = vld [vmem:[%s5951_s7 + $0xc0] sm:$0xff]  ;;  %v4865_v57 = vadd.f32 %v10382_v58, %v4797_v20  ;;  %v4800_v10 = vld [vmem:[%s5951_s7 + $0xc8] sm:$0xff] }
 0x589   : > { %4912 = vst [vmem:[%s5951_s7 + $0x28] sm:$0xff] %v4848_v50  ;;  %v4866_v24 = vadd.f32 %v10382_v58, %v4798_v5  ;;  %v4801_v2 = vld [vmem:[%s5951_s7 + $0xd0] sm:$0xff]  ;;  %v4867_v39 = vadd.f32 %v10382_v58, %v4799_v54  ;;  %v4802_v53 = vld [vmem:[%s5951_s7 + $0xd8] sm:$0xff]  ;;  %v4868_v14 = vadd.f32 %v10382_v58, %v4800_v10  ;;  %v4803_v60 = vld [vmem:[%s5951_s7 + $0xe0] sm:$0xff] }
 0x58a   : > { %4913 = vst [vmem:[%s5951_s7 + $0x30] sm:$0xff] %v4849_v59  ;;  %v4869_v29 = vadd.f32 %v10382_v58, %v4801_v2  ;;  %v4804_v0 = vld [vmem:[%s5951_s7 + $0xe8] sm:$0xff]  ;;  %v4870_v63 = vadd.f32 %v10382_v58, %v4802_v53  ;;  %v4805_v1 = vld [vmem:[%s5951_s7 + $0xf0] sm:$0xff]  ;;  %v4871_v15 = vadd.f32 %v10382_v58, %v4803_v60  ;;  %v4806_v48 = vld [vmem:[%s5951_s7 + $0xf8] sm:$0xff] }
 0x58b   : > { %4914 = vst [vmem:[%s5951_s7 + $0x38] sm:$0xff] %v4850_v46  ;;  %v4872_v45 = vadd.f32 %v10382_v58, %v4804_v0  ;;  %v4807_v42 = vld [vmem:[%s5951_s7 + $0x100] sm:$0xff]  ;;  %v4873_v17 = vadd.f32 %v10382_v58, %v4805_v1  ;;  %v4808_v51 = vld [vmem:[%s5951_s7 + $0x108] sm:$0xff]  ;;  %v4874_v18 = vadd.f32 %v10382_v58, %v4806_v48  ;;  %v4809_v25 = vld [vmem:[%s5951_s7 + $0x110] sm:$0xff] }
 0x58c   : > { %4915 = vst [vmem:[%s5951_s7 + $0x40] sm:$0xff] %v4851_v36  ;;  %v4875_v49 = vadd.f32 %v10382_v58, %v4807_v42  ;;  %v4810_v26 = vld [vmem:[%s5951_s7 + $0x118] sm:$0xff]  ;;  %v4876_v52 = vadd.f32 %v10382_v58, %v4808_v51  ;;  %v4811_v13 = vld [vmem:[%s5951_s7 + $0x120] sm:$0xff]  ;;  %v4877_v8 = vadd.f32 %v10382_v58, %v4809_v25  ;;  %v4812_v33 = vld [vmem:[%s5951_s7 + $0x128] sm:$0xff] }
 0x58d   : > { %4916 = vst [vmem:[%s5951_s7 + $0x48] sm:$0xff] %v4852_v34  ;;  %v4878_v3 = vadd.f32 %v10382_v58, %v4810_v26  ;;  %v4813_v61 = vld [vmem:[%s5951_s7 + $0x130] sm:$0xff]  ;;  %v4879_v12 = vadd.f32 %v10382_v58, %v4811_v13  ;;  %v4814_v50 = vld [vmem:[%s5951_s7 + $0x138] sm:$0xff]  ;;  %v4880_v11 = vadd.f32 %v10382_v58, %v4812_v33  ;;  %v4815_v59 = vld [vmem:[%s5951_s7 + $0x140] sm:$0xff] }
 0x58e   : > { %4917 = vst [vmem:[%s5951_s7 + $0x50] sm:$0xff] %v4853_v43  ;;  %v4881_v47 = vadd.f32 %v10382_v58, %v4813_v61  ;;  %v4816_v46 = vld [vmem:[%s5951_s7 + $0x148] sm:$0xff]  ;;  %v4882_v27 = vadd.f32 %v10382_v58, %v4814_v50  ;;  %v4817_v36 = vld [vmem:[%s5951_s7 + $0x150] sm:$0xff]  ;;  %v4883_v55 = vadd.f32 %v10382_v58, %v4815_v59  ;;  %v4818_v34 = vld [vmem:[%s5951_s7 + $0x158] sm:$0xff] }
 0x58f   : > { %4918 = vst [vmem:[%s5951_s7 + $0x58] sm:$0xff] %v4854_v19  ;;  %v4884_v28 = vadd.f32 %v10382_v58, %v4816_v46  ;;  %v4819_v43 = vld [vmem:[%s5951_s7 + $0x160] sm:$0xff]  ;;  %v4885_v30 = vadd.f32 %v10382_v58, %v4817_v36  ;;  %v4820_v19 = vld [vmem:[%s5951_s7 + $0x168] sm:$0xff]  ;;  %v4886_v44 = vadd.f32 %v10382_v58, %v4818_v34 }
 0x590   : > { %4919 = vst [vmem:[%s5951_s7 + $0x60] sm:$0xff] %v4855_v38  ;;  %v4821_v38 = vld [vmem:[%s5951_s7 + $0x170] sm:$0xff]  ;;  %v4887_v16 = vadd.f32 %v10382_v58, %v4819_v43  ;;  %v4888_v40 = vadd.f32 %v10382_v58, %v4820_v19 }
 0x591   : > { %4920 = vst [vmem:[%s5951_s7 + $0x68] sm:$0xff] %v4856_v31  ;;  %v4822_v31 = vld [vmem:[%s5951_s7 + $0x178] sm:$0xff]  ;;  %v4889_v21 = vadd.f32 %v10382_v58, %v4821_v38 }
 0x592   : > { %4921 = vst [vmem:[%s5951_s7 + $0x70] sm:$0xff] %v4857_v41  ;;  %v4823_v41 = vld [vmem:[%s5951_s7 + $0x180] sm:$0xff]  ;;  %v4890_v35 = vadd.f32 %v10382_v58, %v4822_v31 }
 0x593   : > { %4922 = vst [vmem:[%s5951_s7 + $0x78] sm:$0xff] %v4858_v23  ;;  %v4824_v23 = vld [vmem:[%s5951_s7 + $0x188] sm:$0xff]  ;;  %v4891_v6 = vadd.f32 %v10382_v58, %v4823_v41 }
 0x594   : > { %4923 = vst [vmem:[%s5951_s7 + $0x80] sm:$0xff] %v4859_v4  ;;  %v4825_v4 = vld [vmem:[%s5951_s7 + $0x190] sm:$0xff]  ;;  %v4892_v32 = vadd.f32 %v10382_v58, %v4824_v23 }
 0x595   : > { %4924 = vst [vmem:[%s5951_s7 + $0x88] sm:$0xff] %v4860_v62  ;;  %v4826_v62 = vld [vmem:[%s5951_s7 + $0x198] sm:$0xff]  ;;  %v4893_v56 = vadd.f32 %v10382_v58, %v4825_v4 }
 0x596   : > { %4925 = vst [vmem:[%s5951_s7 + $0x90] sm:$0xff] %v4861_v22  ;;  %v4827_v22 = vld [vmem:[%s5951_s7 + $0x1a0] sm:$0xff]  ;;  %v4894_v20 = vadd.f32 %v10382_v58, %v4826_v62 }
 0x597   : > { %4926 = vst [vmem:[%s5951_s7 + $0x98] sm:$0xff] %v4862_v37  ;;  %v4828_v37 = vld [vmem:[%s5951_s7 + $0x1a8] sm:$0xff]  ;;  %v4895_v5 = vadd.f32 %v10382_v58, %v4827_v22 }
 0x598   : > { %4927 = vst [vmem:[%s5951_s7 + $0xa0] sm:$0xff] %v4863_v7  ;;  %v4829_v7 = vld [vmem:[%s5951_s7 + $0x1b0] sm:$0xff]  ;;  %v4896_v54 = vadd.f32 %v10382_v58, %v4828_v37 }
 0x599   : > { %4928 = vst [vmem:[%s5951_s7 + $0xa8] sm:$0xff] %v4864_v9  ;;  %v4830_v9 = vld [vmem:[%s5951_s7 + $0x1b8] sm:$0xff]  ;;  %v4897_v10 = vadd.f32 %v10382_v58, %v4829_v7 }
 0x59a   : > { %4929 = vst [vmem:[%s5951_s7 + $0xb0] sm:$0xff] %v4865_v57  ;;  %v4831_v57 = vld [vmem:[%s5951_s7 + $0x1c0] sm:$0xff]  ;;  %v4898_v2 = vadd.f32 %v10382_v58, %v4830_v9 }
 0x59b   : > { %4930 = vst [vmem:[%s5951_s7 + $0xb8] sm:$0xff] %v4866_v24  ;;  %v4832_v24 = vld [vmem:[%s5951_s7 + $0x1c8] sm:$0xff]  ;;  %v4899_v53 = vadd.f32 %v10382_v58, %v4831_v57 }
 0x59c   : > { %4931 = vst [vmem:[%s5951_s7 + $0xc0] sm:$0xff] %v4867_v39  ;;  %v4833_v39 = vld [vmem:[%s5951_s7 + $0x1d0] sm:$0xff]  ;;  %v4900_v60 = vadd.f32 %v10382_v58, %v4832_v24 }
 0x59d   : > { %4932 = vst [vmem:[%s5951_s7 + $0xc8] sm:$0xff] %v4868_v14  ;;  %v4834_v14 = vld [vmem:[%s5951_s7 + $0x1d8] sm:$0xff]  ;;  %v4901_v0 = vadd.f32 %v10382_v58, %v4833_v39 }
 0x59e   : > { %4933 = vst [vmem:[%s5951_s7 + $0xd0] sm:$0xff] %v4869_v29  ;;  %v4835_v29 = vld [vmem:[%s5951_s7 + $0x1e0] sm:$0xff]  ;;  %v4902_v1 = vadd.f32 %v10382_v58, %v4834_v14 }
 0x59f   : > { %4934 = vst [vmem:[%s5951_s7 + $0xd8] sm:$0xff] %v4870_v63  ;;  %v4836_v63 = vld [vmem:[%s5951_s7 + $0x1e8] sm:$0xff]  ;;  %v4903_v48 = vadd.f32 %v10382_v58, %v4835_v29 }
 0x5a0   : > { %4935 = vst [vmem:[%s5951_s7 + $0xe0] sm:$0xff] %v4871_v15  ;;  %v4837_v15 = vld [vmem:[%s5951_s7 + $0x1f0] sm:$0xff]  ;;  %v4904_v42 = vadd.f32 %v10382_v58, %v4836_v63 }
 0x5a1   : > { %4936 = vst [vmem:[%s5951_s7 + $0xe8] sm:$0xff] %v4872_v45  ;;  %v4838_v45 = vld [vmem:[%s5951_s7 + $0x1f8] sm:$0xff] }
 0x5a2   : > { %4937 = vst [vmem:[%s5951_s7 + $0xf0] sm:$0xff] %v4873_v17  ;;  %v4905_v17 = vadd.f32 %v10382_v58, %v4837_v15  ;;  %v4906_v51 = vadd.f32 %v10382_v58, %v4838_v45 }
 0x5a3   : > { %4938 = vst [vmem:[%s5951_s7 + $0xf8] sm:$0xff] %v4874_v18 }
 0x5a4   : > { %4939 = vst [vmem:[%s5951_s7 + $0x100] sm:$0xff] %v4875_v49 }
 0x5a5   : > { %4940 = vst [vmem:[%s5951_s7 + $0x108] sm:$0xff] %v4876_v52 }
 0x5a6   : > { %4941 = vst [vmem:[%s5951_s7 + $0x110] sm:$0xff] %v4877_v8 }
 0x5a7   : > { %4942 = vst [vmem:[%s5951_s7 + $0x118] sm:$0xff] %v4878_v3 }
 0x5a8   : > { %4943 = vst [vmem:[%s5951_s7 + $0x120] sm:$0xff] %v4879_v12 }
 0x5a9   : > { %4944 = vst [vmem:[%s5951_s7 + $0x128] sm:$0xff] %v4880_v11 }
 0x5aa   : > { %4945 = vst [vmem:[%s5951_s7 + $0x130] sm:$0xff] %v4881_v47 }
 0x5ab   : > { %4946 = vst [vmem:[%s5951_s7 + $0x138] sm:$0xff] %v4882_v27 }
 0x5ac   : > { %4947 = vst [vmem:[%s5951_s7 + $0x140] sm:$0xff] %v4883_v55 }
 0x5ad   : > { %4948 = vst [vmem:[%s5951_s7 + $0x148] sm:$0xff] %v4884_v28 }
 0x5ae   : > { %4949 = vst [vmem:[%s5951_s7 + $0x150] sm:$0xff] %v4885_v30 }
 0x5af   : > { %4950 = vst [vmem:[%s5951_s7 + $0x158] sm:$0xff] %v4886_v44 }
 0x5b0   : > { %4951 = vst [vmem:[%s5951_s7 + $0x160] sm:$0xff] %v4887_v16 }
 0x5b1   : > { %4952 = vst [vmem:[%s5951_s7 + $0x168] sm:$0xff] %v4888_v40 }
 0x5b2   : > { %4953 = vst [vmem:[%s5951_s7 + $0x170] sm:$0xff] %v4889_v21 }
 0x5b3   : > { %4954 = vst [vmem:[%s5951_s7 + $0x178] sm:$0xff] %v4890_v35 }
 0x5b4   : > { %4955 = vst [vmem:[%s5951_s7 + $0x180] sm:$0xff] %v4891_v6 }
 0x5b5   : > { %4956 = vst [vmem:[%s5951_s7 + $0x188] sm:$0xff] %v4892_v32 }
 0x5b6   : > { %4957 = vst [vmem:[%s5951_s7 + $0x190] sm:$0xff] %v4893_v56 }
 0x5b7   : > { %4958 = vst [vmem:[%s5951_s7 + $0x198] sm:$0xff] %v4894_v20 }
 0x5b8   : > { %4959 = vst [vmem:[%s5951_s7 + $0x1a0] sm:$0xff] %v4895_v5 }
 0x5b9   : > { %4960 = vst [vmem:[%s5951_s7 + $0x1a8] sm:$0xff] %v4896_v54 }
 0x5ba   : > { %4961 = vst [vmem:[%s5951_s7 + $0x1b0] sm:$0xff] %v4897_v10 }
 0x5bb   : > { %4962 = vst [vmem:[%s5951_s7 + $0x1b8] sm:$0xff] %v4898_v2 }
 0x5bc   : > { %4963 = vst [vmem:[%s5951_s7 + $0x1c0] sm:$0xff] %v4899_v53 }
 0x5bd   : > { %4964 = vst [vmem:[%s5951_s7 + $0x1c8] sm:$0xff] %v4900_v60 }
 0x5be   : > { %4965 = vst [vmem:[%s5951_s7 + $0x1d0] sm:$0xff] %v4901_v0 }
 0x5bf   : > { %4966 = vst [vmem:[%s5951_s7 + $0x1d8] sm:$0xff] %v4902_v1 }
 0x5c0   : > { %4967 = vst [vmem:[%s5951_s7 + $0x1e0] sm:$0xff] %v4903_v48 }
 0x5c1   : > { %4968 = vst [vmem:[%s5951_s7 + $0x1e8] sm:$0xff] %v4904_v42 }
 0x5c2   : > { %4969 = vst [vmem:[%s5951_s7 + $0x1f0] sm:$0xff] %v4905_v17 }
 0x5c3   : > { %4970 = vst [vmem:[%s5951_s7 + $0x1f8] sm:$0xff] %v4906_v51 }
 0x5c4 PF: > { %s5136_s21 = sshll.u32 %s5806_s22, 9  ;;  %s4985_s27 = sshll.u32 %s5951_s7, 4  ;;  %s4986_s27 = int_to_ptr.vmem [resolvable:$true] %s4985_s27 }
 0x5c5   : > { %s4984_s26 = scalar_lea.hbm %s10625_s5, %s5136_s21  ;;  %s12270_s11 = sand.u32 1, %s5794_s19  }
 0x5c6   : > { %s4987_s8 = sshll.u32 %s4984_s26, 4  ;;  %s4972_s16 = scalar_lea.sflag [#allocation3], %s12270_s11  ;;  %s4988_s8 = int_to_ptr.hbm [resolvable:$true] %s4987_s8 }
 0x5c7   : > { %s5738_s14 = sshra.s32 %s4988_s8, 4  ;;  %s5744_s22 = scalar_lea.hbm %s10625_s5, 1024  ;;  %s5739_s14 = int_to_ptr.hbm [resolvable:$true] %s5738_s14 }
 0x5c8   : > { %s5740_s17 = scalar_lea.hbm %s5739_s14, 512  ;;  %p5745_p8 = scmp.lt.s32.totalorder %s5739_s14, %s10625_s5 }
 0x5c9   : > { %p5741_p5 = scmp.ne.s32.totalorder %s5739_s14, %s5740_s17  ;;  %p5746_p10 = scmp.lt.s32.totalorder %s5744_s22, %s5740_s17 }
 0x5cb   : > { %p5742_p6 = pnand %p5741_p5, %p5902_p3  ;;  %p5747_p11 = por %p5746_p10, %p5745_p8 }
 0x5cd   : > { %p5743_p7 = pneg %p5742_p6 }
 0x5cf   : > { %p5748_p12 = pnand %p5747_p11, %p5743_p7 }
 0x5d1   : > { %5751 = shalt.err (!%p5748_p12)
}
 0x5d2   : > { %s5821_s7 = smov 128   ;;  %s5822_s10 = smov 8  }
 0x5d3   : > { %5137 = dma.vmem_to_hbm [thread:$0]  (%p5902_p3), %s4986_s27, 8192, %s4988_s8, %s4972_s16, %s5821_s7, %s5821_s7, %s5822_s10  }
 0x5d4 PF: > { %p5143_p13 = scmp.ge.s32.totalorder %s5818_s25, 2  ;;  %s5002_s21 = sand.u32 1, %s5790_s18  }
 0x5d5   : > { %s5003_s12 = scalar_lea.sflag [#allocation3], %s5002_s21 }
 0x5d6   : > { %p5140_p0 = pnand %p5143_p13, %p5912_p9 }
 0x5d8   : > { %p5141_p1 = pneg %p5140_p0 }
 0x5da   : > { %5785 = dma.done.wait (%p5141_p1), %s5003_s12, 8192  }
 0x5db   : > { %5787 = vsyncadd (%p5141_p1), %s5003_s12, 4294959104  ;;  %s18_s25 = sadd.s32 1, %s5818_s25   ;;  %s12271_s22 = sld [smem:[#allocation5_spill]] }
 0x5dc   : > { %p15_p2 = scmp.ge.s32.totalorder %s18_s25, 6   ;;  %s12272_s30 = sld [smem:[#allocation6_spill]] }
 0x5dd   : > { %s12273_s24 = sld [smem:[#allocation7_spill]]  ;;  %s12274_s18 = smov %s5794_s19 }
 0x5de   : > { %s12275_s19 = smov %s5798_s20  ;;  %s12276_s20 = smov %s5920_s9 }
 0x5df   : > { %s12277_s21 = smov %s5810_s23  ;;  %17 = sbr.rel (!%p15_p2) target bundleno = 5 (0x5), region = 95 }
 0x5e2   : > { %s12278_s23 = smov %s12272_s30 }
 0x5e4   :  { %5009 = vsyncpa [#allocation3], 1 }
 0x5e5   :  { %5011 = vsyncpa [#allocation3 + $0x1], 1 }

</bundles_post_ra>
